<compile_context>
chip_gen: v7x
topology: tpu7x:2x2x1
jax: 0.10.0
libtpu: 0.0.40
codegen_flags: <defaults>
</compile_context>

<pallas_src>
import jax
import jax.numpy as jnp
from jax import lax
from jax.experimental import pallas as pl
from jax.experimental.pallas import tpu as pltpu


def _deepfake_lstm_kernel(
    # ---- inputs ----
    x_ref,                                          # (T, BT, D) time-major input tile
    w_ih_l0_ref, b_l0_ref, w_hh_l0f_ref, w_hh_l0b_ref,   # layer0: (D,8H),(1,8H),(H,4H),(H,4H)
    w_ih_l1_ref, b_l1_ref, w_hh_l1f_ref, w_hh_l1b_ref,   # layer1: (2H,8H),(1,8H),(H,4H),(H,4H)
    w_att_ref, b_att_ref,                           # (2H,1), (1,1)
    w_fc1_ref, b_fc1_ref,                           # (2H,H), (1,H)
    w_fc2_ref, b_fc2_ref,                           # (H,1), (1,1)
    # ---- outputs ----
    out_ref,                                        # (BT, 1)
    # ---- scratch ----
    g_ref,                                          # (T, BT, 8H) pre-gates (reused l0/l1)
    h0_ref,                                         # (T, BT, 2H) layer-0 hidden (fwd|bwd)
    h1_ref,                                         # (T, BT, 2H) layer-1 hidden (fwd|bwd)
):
    T, BT, D = x_ref.shape
    H = w_hh_l0f_ref.shape[0]
    H2, H4, H8 = 2 * H, 4 * H, 8 * H

    def bilstm(in_flat, w_ih_ref, b_ref, w_hh_f_ref, w_hh_b_ref, out_h_ref):
        # Hoisted input projection + bias for BOTH directions in one big MXU matmul.
        g_ref[...] = (
            jnp.dot(in_flat, w_ih_ref[...], preferred_element_type=jnp.float32)
            + b_ref[...]
        ).reshape(T, BT, H8)

        w_hh_f = w_hh_f_ref[...]
        w_hh_b = w_hh_b_ref[...]

        def cell(gates, c):                           # gate order: i, f, g, o (PyTorch)
            i_g = jax.nn.sigmoid(gates[:, 0:H])
            f_g = jax.nn.sigmoid(gates[:, H:H2])
            g_g = jnp.tanh(gates[:, H2:H2 + H])
            o_g = jax.nn.sigmoid(gates[:, H2 + H:H4])
            c_new = f_g * c + i_g * g_g
            h_new = o_g * jnp.tanh(c_new)
            return h_new, c_new

        def step(i, carry):
            hf, cf, hb, cb = carry
            tb = T - 1 - i
            # Two independent chains (fwd/bwd) interleaved in the same loop body.
            gates_f = g_ref[i, :, 0:H4] + jnp.dot(
                hf, w_hh_f, preferred_element_type=jnp.float32)
            gates_b = g_ref[tb, :, H4:H8] + jnp.dot(
                hb, w_hh_b, preferred_element_type=jnp.float32)
            hf, cf = cell(gates_f, cf)
            hb, cb = cell(gates_b, cb)
            out_h_ref[i, :, 0:H] = hf                 # fwd half
            out_h_ref[tb, :, H:H2] = hb               # bwd half
            return (hf, cf, hb, cb)

        z = jnp.zeros((BT, H), jnp.float32)
        if T <= 32:
            # Fully unrolled straight-line recurrence (static ref indices).
            carry = (z, z, z, z)
            for i in range(T):
                carry = step(i, carry)
        else:
            lax.fori_loop(0, T, step, (z, z, z, z), unroll=4)

    # ----- LSTM layer 0 (bidirectional) -----
    bilstm(x_ref[...].reshape(T * BT, D),
           w_ih_l0_ref, b_l0_ref, w_hh_l0f_ref, w_hh_l0b_ref, h0_ref)

    # TODO(synk): inter-layer Dropout and the fc Dropout are identity (eval-mode
    # semantics; PyTorch dropout is stochastic only in train mode).

    # ----- LSTM layer 1 (bidirectional), input = layer-0 (fwd|bwd) buffer -----
    bilstm(h0_ref[...].reshape(T * BT, H2),
           w_ih_l1_ref, b_l1_ref, w_hh_l1f_ref, w_hh_l1b_ref, h1_ref)

    # ----- attention pooling over time (softmax over seq axis), scores via MXU -----
    seq1 = h1_ref[...]                                             # (T, BT, 2H)
    scores = jnp.tanh(
        jnp.dot(seq1.reshape(T * BT, H2), w_att_ref[...],
                preferred_element_type=jnp.float32) + b_att_ref[...]
    ).reshape(T, BT, 1)
    m = jnp.max(scores, axis=0, keepdims=True)
    e = jnp.exp(scores - m)
    att = e / jnp.sum(e, axis=0, keepdims=True)                    # softmax over T
    context = jnp.sum(att * seq1, axis=0)                          # (BT, 2H)

    # ----- fc head: Linear -> ReLU -> (Dropout=identity) -> Linear -> sigmoid -----
    h_fc = jnp.maximum(
        jnp.dot(context, w_fc1_ref[...], preferred_element_type=jnp.float32)
        + b_fc1_ref[...], 0.0)                                     # (BT, H)
    logit = (jnp.dot(h_fc, w_fc2_ref[...], preferred_element_type=jnp.float32)
             + b_fc2_ref[...])                                     # (BT, 1)
    out_ref[...] = jax.nn.sigmoid(logit)


def deepfake_lstm_forward(x, params):
    """x: (B, T, input_size) float32.  Returns (B,) sigmoid scores (scalar if B==1)."""
    B, T, D = x.shape
    H = params["weight_hh_l0"].shape[1]
    f32 = jnp.float32

    # Pad batch to a sublane multiple (8); tile at most 256 rows per grid step so a
    # large batch becomes a "parallel" grid axis (megacore on v7x, MXU-M>=256 on v6e).
    if B > 256:
        bt = 256
        Bp = ((B + bt - 1) // bt) * bt
    else:
        bt = max(8, ((B + 7) // 8) * 8)
        Bp = bt
    grid = (Bp // bt,)

    x_p = jnp.zeros((Bp, T, D), f32).at[:B].set(x.astype(f32))
    x_t = jnp.transpose(x_p, (1, 0, 2))                        # (T, Bp, D) time-major

    def bilstm_params(layer):
        wf = params[f"weight_ih_l{layer}"]
        wb = params[f"weight_ih_l{layer}_reverse"]
        w_ih = jnp.concatenate([wf.T, wb.T], axis=1).astype(f32)          # (in, 8H)
        b = jnp.concatenate([
            params[f"bias_ih_l{layer}"] + params[f"bias_hh_l{layer}"],
            params[f"bias_ih_l{layer}_reverse"] + params[f"bias_hh_l{layer}_reverse"],
        ]).reshape(1, -1).astype(f32)                                     # (1, 8H)
        w_hh_f = params[f"weight_hh_l{layer}"].T.astype(f32)              # (H, 4H)
        w_hh_b = params[f"weight_hh_l{layer}_reverse"].T.astype(f32)      # (H, 4H)
        return [w_ih, b, w_hh_f, w_hh_b]

    args = [x_t] + bilstm_params(0) + bilstm_params(1) + [
        params["att_w"].reshape(2 * H, 1).astype(f32),                    # (2H, 1)
        params["att_b"].reshape(1, 1).astype(f32),                        # (1, 1)
        params["fc1_w"].T.astype(f32),                                    # (2H, H)
        params["fc1_b"].reshape(1, -1).astype(f32),                       # (1, H)
        params["fc2_w"].T.astype(f32),                                    # (H, 1)
        params["fc2_b"].reshape(1, 1).astype(f32),                        # (1, 1)
    ]

    in_specs = [pl.BlockSpec((T, bt, D), lambda i: (0, i, 0))]
    in_specs += [pl.BlockSpec(a.shape, lambda i: (0, 0)) for a in args[1:]]
    out_specs = pl.BlockSpec((bt, 1), lambda i: (i, 0))

    scratch_shapes = [
        pltpu.VMEM((T, bt, 8 * H), f32),   # pre-gates (shared by layer 0 and layer 1)
        pltpu.VMEM((T, bt, 2 * H), f32),   # layer-0 hidden sequence (fwd | bwd)
        pltpu.VMEM((T, bt, 2 * H), f32),   # layer-1 hidden sequence (fwd | bwd)
    ]
    # TODO(synk): for very long sequences on v7x (64 MiB VMEM), stream x / pre-gates
    # over time chunks (memory_space=pl.ANY + manual DMA) and store hidden seqs in bf16.

    param_bytes = sum(int(a.size) * a.dtype.itemsize for a in args[1:])
    x_block_bytes = T * bt * D * 4
    scratch_bytes = T * bt * (8 * H + 2 * (2 * H)) * 4
    vmem_limit = int(min(
        max(32 << 20, 2 * (x_block_bytes + param_bytes) + scratch_bytes + (8 << 20)),
        100 << 20))

    out = pl.pallas_call(
        _deepfake_lstm_kernel,
        out_shape=jax.ShapeDtypeStruct((Bp, 1), f32),
        grid=grid,
        in_specs=in_specs,
        out_specs=out_specs,
        scratch_shapes=scratch_shapes,
        compiler_params=pltpu.CompilerParams(
            dimension_semantics=("parallel",),
            vmem_limit_bytes=vmem_limit),
    )(*args)
    return jnp.squeeze(out[:B])


def init_params(key, input_size, hidden_size):
    """Deterministic synthetic parameters with PyTorch nn.LSTM / nn.Linear shapes."""
    H = hidden_size
    keys = iter(jax.random.split(key, 32))

    def rnd(shape, scale=0.05):
        return (scale * jax.random.normal(next(keys), shape)).astype(jnp.float32)

    p = {}
    for layer, in_dim in ((0, input_size), (1, 2 * H)):
        for sfx in ("", "_reverse"):
            name = f"l{layer}{sfx}"
            p[f"weight_ih_{name}"] = rnd((4 * H, in_dim))
            p[f"weight_hh_{name}"] = rnd((4 * H, H))
            p[f"bias_ih_{name}"] = rnd((4 * H,))
            p[f"bias_hh_{name}"] = rnd((4 * H,))
    p["att_w"] = rnd((1, 2 * H))
    p["att_b"] = rnd((1,))
    p["fc1_w"] = rnd((H, 2 * H))
    p["fc1_b"] = rnd((H,))
    p["fc2_w"] = rnd((1, H))
    p["fc2_b"] = rnd((1,))
    return p


def reference_forward(x, params):
    """Pure-JAX reference mirroring the PyTorch forward (eval mode)."""
    B, T, D = x.shape
    H = params["weight_hh_l0"].shape[1]

    def run_dir(seq_in, name, reverse):
        w_ih = params[f"weight_ih_{name}"]
        w_hh = params[f"weight_hh_{name}"]
        b = params[f"bias_ih_{name}"] + params[f"bias_hh_{name}"]
        h = jnp.zeros((B, H), jnp.float32)
        c = jnp.zeros((B, H), jnp.float32)
        outs = [None] * T
        order = range(T - 1, -1, -1) if reverse else range(T)
        for t in order:
            gates = seq_in[:, t, :] @ w_ih.T + h @ w_hh.T + b
            i = jax.nn.sigmoid(gates[:, :H])
            f = jax.nn.sigmoid(gates[:, H:2 * H])
            g = jnp.tanh(gates[:, 2 * H:3 * H])
            o = jax.nn.sigmoid(gates[:, 3 * H:])
            c = f * c + i * g
            h = o * jnp.tanh(c)
            outs[t] = h
        return jnp.stack(outs, axis=1)                              # (B, T, H)

    l0 = jnp.concatenate([run_dir(x, "l0", False),
                          run_dir(x, "l0_reverse", True)], axis=-1)
    l1 = jnp.concatenate([run_dir(l0, "l1", False),
                          run_dir(l0, "l1_reverse", True)], axis=-1)
    att = jnp.tanh(l1 @ params["att_w"].T + params["att_b"])        # (B, T, 1)
    att = jax.nn.softmax(att, axis=1)
    context = jnp.sum(att * l1, axis=1)                             # (B, 2H)
    h1 = jax.nn.relu(context @ params["fc1_w"].T + params["fc1_b"])
    logit = h1 @ params["fc2_w"].T + params["fc2_b"]
    return jax.nn.sigmoid(logit).squeeze()


if __name__ == "__main__":
    B, T, D, H = 2, 8, 128, 128        # small shapes consistent with the module
    key = jax.random.PRNGKey(0)
    kx, kp = jax.random.split(key)
    x = jax.random.normal(kx, (B, T, D), dtype=jnp.float32)
    params = init_params(kp, input_size=D, hidden_size=H)

    out = deepfake_lstm_forward(x, params)
    out = jax.block_until_ready(out)

    ref = reference_forward(x, params)
    assert out.shape == (B,), out.shape
    assert jnp.allclose(out, ref, rtol=1e-3, atol=1e-3), (out, ref)
    print("KERNEL_OK")
</pallas_src>

<mosaic_0001>
module attributes {stable_mosaic.version = 11 : i64} {
  func.func @_deepfake_lstm_kernel(%arg0: i32, %arg1: memref<8x8x128xf32, #tpu.memory_space<vmem>>, %arg2: memref<128x1024xf32, #tpu.memory_space<vmem>>, %arg3: memref<1x1024xf32, #tpu.memory_space<vmem>>, %arg4: memref<128x512xf32, #tpu.memory_space<vmem>>, %arg5: memref<128x512xf32, #tpu.memory_space<vmem>>, %arg6: memref<256x1024xf32, #tpu.memory_space<vmem>>, %arg7: memref<1x1024xf32, #tpu.memory_space<vmem>>, %arg8: memref<128x512xf32, #tpu.memory_space<vmem>>, %arg9: memref<128x512xf32, #tpu.memory_space<vmem>>, %arg10: memref<256x1xf32, #tpu.memory_space<vmem>>, %arg11: memref<1x1xf32, #tpu.memory_space<vmem>>, %arg12: memref<256x128xf32, #tpu.memory_space<vmem>>, %arg13: memref<1x128xf32, #tpu.memory_space<vmem>>, %arg14: memref<128x1xf32, #tpu.memory_space<vmem>>, %arg15: memref<1x1xf32, #tpu.memory_space<vmem>>, %arg16: memref<8x1xf32, #tpu.memory_space<vmem>>, %arg17: memref<8x8x1024xf32, #tpu.memory_space<vmem>>, %arg18: memref<8x8x256xf32, #tpu.memory_space<vmem>>, %arg19: memref<8x8x256xf32, #tpu.memory_space<vmem>>) attributes {dimension_semantics = [#tpu.dimension_semantics<parallel>], iteration_bounds = array<i64: 1>, scalar_prefetch = 0 : i64, scratch_operands = 3 : i64, tpu.core_type = #tpu.core_type<tc>, window_params = [{transform_indices = @transform_0, window_bounds = array<i64: 8, 8, 128>}, {pipeline_mode = #tpu.pipeline_mode<synchronous>, transform_indices = @transform_1, window_bounds = array<i64: 128, 1024>}, {pipeline_mode = #tpu.pipeline_mode<synchronous>, transform_indices = @transform_2, window_bounds = array<i64: 1, 1024>}, {pipeline_mode = #tpu.pipeline_mode<synchronous>, transform_indices = @transform_3, window_bounds = array<i64: 128, 512>}, {pipeline_mode = #tpu.pipeline_mode<synchronous>, transform_indices = @transform_4, window_bounds = array<i64: 128, 512>}, {pipeline_mode = #tpu.pipeline_mode<synchronous>, transform_indices = @transform_5, window_bounds = array<i64: 256, 1024>}, {pipeline_mode = #tpu.pipeline_mode<synchronous>, transform_indices = @transform_6, window_bounds = array<i64: 1, 1024>}, {pipeline_mode = #tpu.pipeline_mode<synchronous>, transform_indices = @transform_7, window_bounds = array<i64: 128, 512>}, {pipeline_mode = #tpu.pipeline_mode<synchronous>, transform_indices = @transform_8, window_bounds = array<i64: 128, 512>}, {pipeline_mode = #tpu.pipeline_mode<synchronous>, transform_indices = @transform_9, window_bounds = array<i64: 256, 1>}, {pipeline_mode = #tpu.pipeline_mode<synchronous>, transform_indices = @transform_10, window_bounds = array<i64: 1, 1>}, {pipeline_mode = #tpu.pipeline_mode<synchronous>, transform_indices = @transform_11, window_bounds = array<i64: 256, 128>}, {pipeline_mode = #tpu.pipeline_mode<synchronous>, transform_indices = @transform_12, window_bounds = array<i64: 1, 128>}, {pipeline_mode = #tpu.pipeline_mode<synchronous>, transform_indices = @transform_13, window_bounds = array<i64: 128, 1>}, {pipeline_mode = #tpu.pipeline_mode<synchronous>, transform_indices = @transform_14, window_bounds = array<i64: 1, 1>}, {transform_indices = @transform_15, window_bounds = array<i64: 8, 1>}]} {
    %c0 = arith.constant 0 : index
    %c0_0 = arith.constant 0 : index
    %c0_1 = arith.constant 0 : index
    %0 = vector.load %arg1[%c0, %c0_0, %c0_1] : memref<8x8x128xf32, #tpu.memory_space<vmem>>, vector<8x8x128xf32>
    %1 = vector.shape_cast %0 : vector<8x8x128xf32> to vector<64x128xf32>
    %c0_2 = arith.constant 0 : index
    %c0_3 = arith.constant 0 : index
    %2 = vector.load %arg2[%c0_2, %c0_3] : memref<128x1024xf32, #tpu.memory_space<vmem>>, vector<128x1024xf32>
    %cst = arith.constant dense<0.000000e+00> : vector<64x1024xf32>
    %3 = tpu.matmul %1, %2, %cst {dimension_numbers = #tpu.dot_dimension_numbers<[1], [0], [0], [1], [0, 0, 1, 1], [], []>} : vector<64x128xf32>, vector<128x1024xf32>, vector<64x1024xf32> -> vector<64x1024xf32>
    %c0_4 = arith.constant 0 : index
    %c0_5 = arith.constant 0 : index
    %4 = vector.load %arg3[%c0_4, %c0_5] : memref<1x1024xf32, #tpu.memory_space<vmem>>, vector<1x1024xf32>
    %5 = vector.broadcast %4 : vector<1x1024xf32> to vector<64x1024xf32>
    %6 = arith.addf %3, %5 : vector<64x1024xf32>
    %7 = vector.shape_cast %6 : vector<64x1024xf32> to vector<8x8x1024xf32>
    %c0_6 = arith.constant 0 : index
    %c0_7 = arith.constant 0 : index
    %c0_8 = arith.constant 0 : index
    %8 = vector.load %arg17[%c0_6, %c0_7, %c0_8] : memref<8x8x1024xf32, #tpu.memory_space<vmem>>, vector<8x8x1024xf32>
    tpu.vector_store %arg17[%c0_6, %c0_7, %c0_8], %7 {strides = array<i32>} : memref<8x8x1024xf32, #tpu.memory_space<vmem>>, vector<8x8x1024xf32>,
    %c0_9 = arith.constant 0 : index
    %c0_10 = arith.constant 0 : index
    %9 = vector.load %arg4[%c0_9, %c0_10] : memref<128x512xf32, #tpu.memory_space<vmem>>, vector<128x512xf32>
    %c0_11 = arith.constant 0 : index
    %c0_12 = arith.constant 0 : index
    %10 = vector.load %arg5[%c0_11, %c0_12] : memref<128x512xf32, #tpu.memory_space<vmem>>, vector<128x512xf32>
    %cst_13 = arith.constant 0.000000e+00 : f32
    %11 = vector.broadcast %cst_13 : f32 to vector<8x128xf32>
    %c0_14 = arith.constant 0 : index
    %c0_15 = arith.constant 0 : index
    %c0_16 = arith.constant 0 : index
    %12 = vector.load %arg17[%c0_14, %c0_15, %c0_16] : memref<8x8x1024xf32, #tpu.memory_space<vmem>>, vector<1x8x512xf32>
    %13 = vector.shape_cast %12 : vector<1x8x512xf32> to vector<8x512xf32>
    %cst_17 = arith.constant dense<0.000000e+00> : vector<8x512xf32>
    %14 = tpu.matmul %11, %9, %cst_17 {dimension_numbers = #tpu.dot_dimension_numbers<[1], [0], [0], [1], [0, 0, 1, 1], [], []>} : vector<8x128xf32>, vector<128x512xf32>, vector<8x512xf32> -> vector<8x512xf32>
    %15 = arith.addf %13, %14 : vector<8x512xf32>
    %c7 = arith.constant 7 : index
    %c0_18 = arith.constant 0 : index
    %c512 = arith.constant 512 : index
    %16 = vector.load %arg17[%c7, %c0_18, %c512] : memref<8x8x1024xf32, #tpu.memory_space<vmem>>, vector<1x8x512xf32>
    %17 = vector.shape_cast %16 : vector<1x8x512xf32> to vector<8x512xf32>
    %cst_19 = arith.constant dense<0.000000e+00> : vector<8x512xf32>
    %18 = tpu.matmul %11, %10, %cst_19 {dimension_numbers = #tpu.dot_dimension_numbers<[1], [0], [0], [1], [0, 0, 1, 1], [], []>} : vector<8x128xf32>, vector<128x512xf32>, vector<8x512xf32> -> vector<8x512xf32>
    %19 = arith.addf %17, %18 : vector<8x512xf32>
    %20 = vector.extract_strided_slice %15 {offsets = [0, 0], sizes = [8, 128], strides = [1, 1]} : vector<8x512xf32> to vector<8x128xf32>
    %21 = arith.negf %20 : vector<8x128xf32>
    %22 = math.exp %21 : vector<8x128xf32>
    %cst_20 = arith.constant 1.000000e+00 : f32
    %23 = vector.broadcast %cst_20 : f32 to vector<8x128xf32>
    %24 = arith.addf %23, %22 : vector<8x128xf32>
    %25 = arith.divf %23, %24 : vector<8x128xf32>
    %26 = vector.extract_strided_slice %15 {offsets = [0, 128], sizes = [8, 128], strides = [1, 1]} : vector<8x512xf32> to vector<8x128xf32>
    %27 = arith.negf %26 : vector<8x128xf32>
    %28 = math.exp %27 : vector<8x128xf32>
    %cst_21 = arith.constant 1.000000e+00 : f32
    %29 = vector.broadcast %cst_21 : f32 to vector<8x128xf32>
    %30 = arith.addf %29, %28 : vector<8x128xf32>
    %31 = arith.divf %29, %30 : vector<8x128xf32>
    %32 = vector.extract_strided_slice %15 {offsets = [0, 256], sizes = [8, 128], strides = [1, 1]} : vector<8x512xf32> to vector<8x128xf32>
    %33 = math.tanh %32 : vector<8x128xf32>
    %34 = vector.extract_strided_slice %15 {offsets = [0, 384], sizes = [8, 128], strides = [1, 1]} : vector<8x512xf32> to vector<8x128xf32>
    %35 = arith.negf %34 : vector<8x128xf32>
    %36 = math.exp %35 : vector<8x128xf32>
    %cst_22 = arith.constant 1.000000e+00 : f32
    %37 = vector.broadcast %cst_22 : f32 to vector<8x128xf32>
    %38 = arith.addf %37, %36 : vector<8x128xf32>
    %39 = arith.divf %37, %38 : vector<8x128xf32>
    %40 = arith.mulf %31, %11 : vector<8x128xf32>
    %41 = arith.mulf %25, %33 : vector<8x128xf32>
    %42 = arith.addf %40, %41 : vector<8x128xf32>
    %43 = math.tanh %42 : vector<8x128xf32>
    %44 = arith.mulf %39, %43 : vector<8x128xf32>
    %45 = vector.extract_strided_slice %19 {offsets = [0, 0], sizes = [8, 128], strides = [1, 1]} : vector<8x512xf32> to vector<8x128xf32>
    %46 = arith.negf %45 : vector<8x128xf32>
    %47 = math.exp %46 : vector<8x128xf32>
    %cst_23 = arith.constant 1.000000e+00 : f32
    %48 = vector.broadcast %cst_23 : f32 to vector<8x128xf32>
    %49 = arith.addf %48, %47 : vector<8x128xf32>
    %50 = arith.divf %48, %49 : vector<8x128xf32>
    %51 = vector.extract_strided_slice %19 {offsets = [0, 128], sizes = [8, 128], strides = [1, 1]} : vector<8x512xf32> to vector<8x128xf32>
    %52 = arith.negf %51 : vector<8x128xf32>
    %53 = math.exp %52 : vector<8x128xf32>
    %cst_24 = arith.constant 1.000000e+00 : f32
    %54 = vector.broadcast %cst_24 : f32 to vector<8x128xf32>
    %55 = arith.addf %54, %53 : vector<8x128xf32>
    %56 = arith.divf %54, %55 : vector<8x128xf32>
    %57 = vector.extract_strided_slice %19 {offsets = [0, 256], sizes = [8, 128], strides = [1, 1]} : vector<8x512xf32> to vector<8x128xf32>
    %58 = math.tanh %57 : vector<8x128xf32>
    %59 = vector.extract_strided_slice %19 {offsets = [0, 384], sizes = [8, 128], strides = [1, 1]} : vector<8x512xf32> to vector<8x128xf32>
    %60 = arith.negf %59 : vector<8x128xf32>
    %61 = math.exp %60 : vector<8x128xf32>
    %cst_25 = arith.constant 1.000000e+00 : f32
    %62 = vector.broadcast %cst_25 : f32 to vector<8x128xf32>
    %63 = arith.addf %62, %61 : vector<8x128xf32>
    %64 = arith.divf %62, %63 : vector<8x128xf32>
    %65 = arith.mulf %56, %11 : vector<8x128xf32>
    %66 = arith.mulf %50, %58 : vector<8x128xf32>
    %67 = arith.addf %65, %66 : vector<8x128xf32>
    %68 = math.tanh %67 : vector<8x128xf32>
    %69 = arith.mulf %64, %68 : vector<8x128xf32>
    %c0_26 = arith.constant 0 : index
    %c0_27 = arith.constant 0 : index
    %c0_28 = arith.constant 0 : index
    %70 = vector.load %arg18[%c0_26, %c0_27, %c0_28] : memref<8x8x256xf32, #tpu.memory_space<vmem>>, vector<1x8x128xf32>
    %71 = vector.shape_cast %70 : vector<1x8x128xf32> to vector<8x128xf32>
    %72 = vector.shape_cast %44 : vector<8x128xf32> to vector<1x8x128xf32>
    tpu.vector_store %arg18[%c0_26, %c0_27, %c0_28], %72 {strides = array<i32>} : memref<8x8x256xf32, #tpu.memory_space<vmem>>, vector<1x8x128xf32>,
    %c7_29 = arith.constant 7 : index
    %c0_30 = arith.constant 0 : index
    %c128 = arith.constant 128 : index
    %73 = vector.load %arg18[%c7_29, %c0_30, %c128] : memref<8x8x256xf32, #tpu.memory_space<vmem>>, vector<1x8x128xf32>
    %74 = vector.shape_cast %73 : vector<1x8x128xf32> to vector<8x128xf32>
    %75 = vector.shape_cast %69 : vector<8x128xf32> to vector<1x8x128xf32>
    tpu.vector_store %arg18[%c7_29, %c0_30, %c128], %75 {strides = array<i32>} : memref<8x8x256xf32, #tpu.memory_space<vmem>>, vector<1x8x128xf32>,
    %c1 = arith.constant 1 : index
    %c0_31 = arith.constant 0 : index
    %c0_32 = arith.constant 0 : index
    %76 = vector.load %arg17[%c1, %c0_31, %c0_32] : memref<8x8x1024xf32, #tpu.memory_space<vmem>>, vector<1x8x512xf32>
    %77 = vector.shape_cast %76 : vector<1x8x512xf32> to vector<8x512xf32>
    %cst_33 = arith.constant dense<0.000000e+00> : vector<8x512xf32>
    %78 = tpu.matmul %44, %9, %cst_33 {dimension_numbers = #tpu.dot_dimension_numbers<[1], [0], [0], [1], [0, 0, 1, 1], [], []>} : vector<8x128xf32>, vector<128x512xf32>, vector<8x512xf32> -> vector<8x512xf32>
    %79 = arith.addf %77, %78 : vector<8x512xf32>
    %c6 = arith.constant 6 : index
    %c0_34 = arith.constant 0 : index
    %c512_35 = arith.constant 512 : index
    %80 = vector.load %arg17[%c6, %c0_34, %c512_35] : memref<8x8x1024xf32, #tpu.memory_space<vmem>>, vector<1x8x512xf32>
    %81 = vector.shape_cast %80 : vector<1x8x512xf32> to vector<8x512xf32>
    %cst_36 = arith.constant dense<0.000000e+00> : vector<8x512xf32>
    %82 = tpu.matmul %69, %10, %cst_36 {dimension_numbers = #tpu.dot_dimension_numbers<[1], [0], [0], [1], [0, 0, 1, 1], [], []>} : vector<8x128xf32>, vector<128x512xf32>, vector<8x512xf32> -> vector<8x512xf32>
    %83 = arith.addf %81, %82 : vector<8x512xf32>
    %84 = vector.extract_strided_slice %79 {offsets = [0, 0], sizes = [8, 128], strides = [1, 1]} : vector<8x512xf32> to vector<8x128xf32>
    %85 = arith.negf %84 : vector<8x128xf32>
    %86 = math.exp %85 : vector<8x128xf32>
    %cst_37 = arith.constant 1.000000e+00 : f32
    %87 = vector.broadcast %cst_37 : f32 to vector<8x128xf32>
    %88 = arith.addf %87, %86 : vector<8x128xf32>
    %89 = arith.divf %87, %88 : vector<8x128xf32>
    %90 = vector.extract_strided_slice %79 {offsets = [0, 128], sizes = [8, 128], strides = [1, 1]} : vector<8x512xf32> to vector<8x128xf32>
    %91 = arith.negf %90 : vector<8x128xf32>
    %92 = math.exp %91 : vector<8x128xf32>
    %cst_38 = arith.constant 1.000000e+00 : f32
    %93 = vector.broadcast %cst_38 : f32 to vector<8x128xf32>
    %94 = arith.addf %93, %92 : vector<8x128xf32>
    %95 = arith.divf %93, %94 : vector<8x128xf32>
    %96 = vector.extract_strided_slice %79 {offsets = [0, 256], sizes = [8, 128], strides = [1, 1]} : vector<8x512xf32> to vector<8x128xf32>
    %97 = math.tanh %96 : vector<8x128xf32>
    %98 = vector.extract_strided_slice %79 {offsets = [0, 384], sizes = [8, 128], strides = [1, 1]} : vector<8x512xf32> to vector<8x128xf32>
    %99 = arith.negf %98 : vector<8x128xf32>
    %100 = math.exp %99 : vector<8x128xf32>
    %cst_39 = arith.constant 1.000000e+00 : f32
    %101 = vector.broadcast %cst_39 : f32 to vector<8x128xf32>
    %102 = arith.addf %101, %100 : vector<8x128xf32>
    %103 = arith.divf %101, %102 : vector<8x128xf32>
    %104 = arith.mulf %95, %42 : vector<8x128xf32>
    %105 = arith.mulf %89, %97 : vector<8x128xf32>
    %106 = arith.addf %104, %105 : vector<8x128xf32>
    %107 = math.tanh %106 : vector<8x128xf32>
    %108 = arith.mulf %103, %107 : vector<8x128xf32>
    %109 = vector.extract_strided_slice %83 {offsets = [0, 0], sizes = [8, 128], strides = [1, 1]} : vector<8x512xf32> to vector<8x128xf32>
    %110 = arith.negf %109 : vector<8x128xf32>
    %111 = math.exp %110 : vector<8x128xf32>
    %cst_40 = arith.constant 1.000000e+00 : f32
    %112 = vector.broadcast %cst_40 : f32 to vector<8x128xf32>
    %113 = arith.addf %112, %111 : vector<8x128xf32>
    %114 = arith.divf %112, %113 : vector<8x128xf32>
    %115 = vector.extract_strided_slice %83 {offsets = [0, 128], sizes = [8, 128], strides = [1, 1]} : vector<8x512xf32> to vector<8x128xf32>
    %116 = arith.negf %115 : vector<8x128xf32>
    %117 = math.exp %116 : vector<8x128xf32>
    %cst_41 = arith.constant 1.000000e+00 : f32
    %118 = vector.broadcast %cst_41 : f32 to vector<8x128xf32>
    %119 = arith.addf %118, %117 : vector<8x128xf32>
    %120 = arith.divf %118, %119 : vector<8x128xf32>
    %121 = vector.extract_strided_slice %83 {offsets = [0, 256], sizes = [8, 128], strides = [1, 1]} : vector<8x512xf32> to vector<8x128xf32>
    %122 = math.tanh %121 : vector<8x128xf32>
    %123 = vector.extract_strided_slice %83 {offsets = [0, 384], sizes = [8, 128], strides = [1, 1]} : vector<8x512xf32> to vector<8x128xf32>
    %124 = arith.negf %123 : vector<8x128xf32>
    %125 = math.exp %124 : vector<8x128xf32>
    %cst_42 = arith.constant 1.000000e+00 : f32
    %126 = vector.broadcast %cst_42 : f32 to vector<8x128xf32>
    %127 = arith.addf %126, %125 : vector<8x128xf32>
    %128 = arith.divf %126, %127 : vector<8x128xf32>
    %129 = arith.mulf %120, %67 : vector<8x128xf32>
    %130 = arith.mulf %114, %122 : vector<8x128xf32>
    %131 = arith.addf %129, %130 : vector<8x128xf32>
    %132 = math.tanh %131 : vector<8x128xf32>
    %133 = arith.mulf %128, %132 : vector<8x128xf32>
    %c1_43 = arith.constant 1 : index
    %c0_44 = arith.constant 0 : index
    %c0_45 = arith.constant 0 : index
    %134 = vector.load %arg18[%c1_43, %c0_44, %c0_45] : memref<8x8x256xf32, #tpu.memory_space<vmem>>, vector<1x8x128xf32>
    %135 = vector.shape_cast %134 : vector<1x8x128xf32> to vector<8x128xf32>
    %136 = vector.shape_cast %108 : vector<8x128xf32> to vector<1x8x128xf32>
    tpu.vector_store %arg18[%c1_43, %c0_44, %c0_45], %136 {strides = array<i32>} : memref<8x8x256xf32, #tpu.memory_space<vmem>>, vector<1x8x128xf32>,
    %c6_46 = arith.constant 6 : index
    %c0_47 = arith.constant 0 : index
    %c128_48 = arith.constant 128 : index
    %137 = vector.load %arg18[%c6_46, %c0_47, %c128_48] : memref<8x8x256xf32, #tpu.memory_space<vmem>>, vector<1x8x128xf32>
    %138 = vector.shape_cast %137 : vector<1x8x128xf32> to vector<8x128xf32>
    %139 = vector.shape_cast %133 : vector<8x128xf32> to vector<1x8x128xf32>
    tpu.vector_store %arg18[%c6_46, %c0_47, %c128_48], %139 {strides = array<i32>} : memref<8x8x256xf32, #tpu.memory_space<vmem>>, vector<1x8x128xf32>,
    %c2 = arith.constant 2 : index
    %c0_49 = arith.constant 0 : index
    %c0_50 = arith.constant 0 : index
    %140 = vector.load %arg17[%c2, %c0_49, %c0_50] : memref<8x8x1024xf32, #tpu.memory_space<vmem>>, vector<1x8x512xf32>
    %141 = vector.shape_cast %140 : vector<1x8x512xf32> to vector<8x512xf32>
    %cst_51 = arith.constant dense<0.000000e+00> : vector<8x512xf32>
    %142 = tpu.matmul %108, %9, %cst_51 {dimension_numbers = #tpu.dot_dimension_numbers<[1], [0], [0], [1], [0, 0, 1, 1], [], []>} : vector<8x128xf32>, vector<128x512xf32>, vector<8x512xf32> -> vector<8x512xf32>
    %143 = arith.addf %141, %142 : vector<8x512xf32>
    %c5 = arith.constant 5 : index
    %c0_52 = arith.constant 0 : index
    %c512_53 = arith.constant 512 : index
    %144 = vector.load %arg17[%c5, %c0_52, %c512_53] : memref<8x8x1024xf32, #tpu.memory_space<vmem>>, vector<1x8x512xf32>
    %145 = vector.shape_cast %144 : vector<1x8x512xf32> to vector<8x512xf32>
    %cst_54 = arith.constant dense<0.000000e+00> : vector<8x512xf32>
    %146 = tpu.matmul %133, %10, %cst_54 {dimension_numbers = #tpu.dot_dimension_numbers<[1], [0], [0], [1], [0, 0, 1, 1], [], []>} : vector<8x128xf32>, vector<128x512xf32>, vector<8x512xf32> -> vector<8x512xf32>
    %147 = arith.addf %145, %146 : vector<8x512xf32>
    %148 = vector.extract_strided_slice %143 {offsets = [0, 0], sizes = [8, 128], strides = [1, 1]} : vector<8x512xf32> to vector<8x128xf32>
    %149 = arith.negf %148 : vector<8x128xf32>
    %150 = math.exp %149 : vector<8x128xf32>
    %cst_55 = arith.constant 1.000000e+00 : f32
    %151 = vector.broadcast %cst_55 : f32 to vector<8x128xf32>
    %152 = arith.addf %151, %150 : vector<8x128xf32>
    %153 = arith.divf %151, %152 : vector<8x128xf32>
    %154 = vector.extract_strided_slice %143 {offsets = [0, 128], sizes = [8, 128], strides = [1, 1]} : vector<8x512xf32> to vector<8x128xf32>
    %155 = arith.negf %154 : vector<8x128xf32>
    %156 = math.exp %155 : vector<8x128xf32>
    %cst_56 = arith.constant 1.000000e+00 : f32
    %157 = vector.broadcast %cst_56 : f32 to vector<8x128xf32>
    %158 = arith.addf %157, %156 : vector<8x128xf32>
    %159 = arith.divf %157, %158 : vector<8x128xf32>
    %160 = vector.extract_strided_slice %143 {offsets = [0, 256], sizes = [8, 128], strides = [1, 1]} : vector<8x512xf32> to vector<8x128xf32>
    %161 = math.tanh %160 : vector<8x128xf32>
    %162 = vector.extract_strided_slice %143 {offsets = [0, 384], sizes = [8, 128], strides = [1, 1]} : vector<8x512xf32> to vector<8x128xf32>
    %163 = arith.negf %162 : vector<8x128xf32>
    %164 = math.exp %163 : vector<8x128xf32>
    %cst_57 = arith.constant 1.000000e+00 : f32
    %165 = vector.broadcast %cst_57 : f32 to vector<8x128xf32>
    %166 = arith.addf %165, %164 : vector<8x128xf32>
    %167 = arith.divf %165, %166 : vector<8x128xf32>
    %168 = arith.mulf %159, %106 : vector<8x128xf32>
    %169 = arith.mulf %153, %161 : vector<8x128xf32>
    %170 = arith.addf %168, %169 : vector<8x128xf32>
    %171 = math.tanh %170 : vector<8x128xf32>
    %172 = arith.mulf %167, %171 : vector<8x128xf32>
    %173 = vector.extract_strided_slice %147 {offsets = [0, 0], sizes = [8, 128], strides = [1, 1]} : vector<8x512xf32> to vector<8x128xf32>
    %174 = arith.negf %173 : vector<8x128xf32>
    %175 = math.exp %174 : vector<8x128xf32>
    %cst_58 = arith.constant 1.000000e+00 : f32
    %176 = vector.broadcast %cst_58 : f32 to vector<8x128xf32>
    %177 = arith.addf %176, %175 : vector<8x128xf32>
    %178 = arith.divf %176, %177 : vector<8x128xf32>
    %179 = vector.extract_strided_slice %147 {offsets = [0, 128], sizes = [8, 128], strides = [1, 1]} : vector<8x512xf32> to vector<8x128xf32>
    %180 = arith.negf %179 : vector<8x128xf32>
    %181 = math.exp %180 : vector<8x128xf32>
    %cst_59 = arith.constant 1.000000e+00 : f32
    %182 = vector.broadcast %cst_59 : f32 to vector<8x128xf32>
    %183 = arith.addf %182, %181 : vector<8x128xf32>
    %184 = arith.divf %182, %183 : vector<8x128xf32>
    %185 = vector.extract_strided_slice %147 {offsets = [0, 256], sizes = [8, 128], strides = [1, 1]} : vector<8x512xf32> to vector<8x128xf32>
    %186 = math.tanh %185 : vector<8x128xf32>
    %187 = vector.extract_strided_slice %147 {offsets = [0, 384], sizes = [8, 128], strides = [1, 1]} : vector<8x512xf32> to vector<8x128xf32>
    %188 = arith.negf %187 : vector<8x128xf32>
    %189 = math.exp %188 : vector<8x128xf32>
    %cst_60 = arith.constant 1.000000e+00 : f32
    %190 = vector.broadcast %cst_60 : f32 to vector<8x128xf32>
    %191 = arith.addf %190, %189 : vector<8x128xf32>
    %192 = arith.divf %190, %191 : vector<8x128xf32>
    %193 = arith.mulf %184, %131 : vector<8x128xf32>
    %194 = arith.mulf %178, %186 : vector<8x128xf32>
    %195 = arith.addf %193, %194 : vector<8x128xf32>
    %196 = math.tanh %195 : vector<8x128xf32>
    %197 = arith.mulf %192, %196 : vector<8x128xf32>
    %c2_61 = arith.constant 2 : index
    %c0_62 = arith.constant 0 : index
    %c0_63 = arith.constant 0 : index
    %198 = vector.load %arg18[%c2_61, %c0_62, %c0_63] : memref<8x8x256xf32, #tpu.memory_space<vmem>>, vector<1x8x128xf32>
    %199 = vector.shape_cast %198 : vector<1x8x128xf32> to vector<8x128xf32>
    %200 = vector.shape_cast %172 : vector<8x128xf32> to vector<1x8x128xf32>
    tpu.vector_store %arg18[%c2_61, %c0_62, %c0_63], %200 {strides = array<i32>} : memref<8x8x256xf32, #tpu.memory_space<vmem>>, vector<1x8x128xf32>,
    %c5_64 = arith.constant 5 : index
    %c0_65 = arith.constant 0 : index
    %c128_66 = arith.constant 128 : index
    %201 = vector.load %arg18[%c5_64, %c0_65, %c128_66] : memref<8x8x256xf32, #tpu.memory_space<vmem>>, vector<1x8x128xf32>
    %202 = vector.shape_cast %201 : vector<1x8x128xf32> to vector<8x128xf32>
    %203 = vector.shape_cast %197 : vector<8x128xf32> to vector<1x8x128xf32>
    tpu.vector_store %arg18[%c5_64, %c0_65, %c128_66], %203 {strides = array<i32>} : memref<8x8x256xf32, #tpu.memory_space<vmem>>, vector<1x8x128xf32>,
    %c3 = arith.constant 3 : index
    %c0_67 = arith.constant 0 : index
    %c0_68 = arith.constant 0 : index
    %204 = vector.load %arg17[%c3, %c0_67, %c0_68] : memref<8x8x1024xf32, #tpu.memory_space<vmem>>, vector<1x8x512xf32>
    %205 = vector.shape_cast %204 : vector<1x8x512xf32> to vector<8x512xf32>
    %cst_69 = arith.constant dense<0.000000e+00> : vector<8x512xf32>
    %206 = tpu.matmul %172, %9, %cst_69 {dimension_numbers = #tpu.dot_dimension_numbers<[1], [0], [0], [1], [0, 0, 1, 1], [], []>} : vector<8x128xf32>, vector<128x512xf32>, vector<8x512xf32> -> vector<8x512xf32>
    %207 = arith.addf %205, %206 : vector<8x512xf32>
    %c4 = arith.constant 4 : index
    %c0_70 = arith.constant 0 : index
    %c512_71 = arith.constant 512 : index
    %208 = vector.load %arg17[%c4, %c0_70, %c512_71] : memref<8x8x1024xf32, #tpu.memory_space<vmem>>, vector<1x8x512xf32>
    %209 = vector.shape_cast %208 : vector<1x8x512xf32> to vector<8x512xf32>
    %cst_72 = arith.constant dense<0.000000e+00> : vector<8x512xf32>
    %210 = tpu.matmul %197, %10, %cst_72 {dimension_numbers = #tpu.dot_dimension_numbers<[1], [0], [0], [1], [0, 0, 1, 1], [], []>} : vector<8x128xf32>, vector<128x512xf32>, vector<8x512xf32> -> vector<8x512xf32>
    %211 = arith.addf %209, %210 : vector<8x512xf32>
    %212 = vector.extract_strided_slice %207 {offsets = [0, 0], sizes = [8, 128], strides = [1, 1]} : vector<8x512xf32> to vector<8x128xf32>
    %213 = arith.negf %212 : vector<8x128xf32>
    %214 = math.exp %213 : vector<8x128xf32>
    %cst_73 = arith.constant 1.000000e+00 : f32
    %215 = vector.broadcast %cst_73 : f32 to vector<8x128xf32>
    %216 = arith.addf %215, %214 : vector<8x128xf32>
    %217 = arith.divf %215, %216 : vector<8x128xf32>
    %218 = vector.extract_strided_slice %207 {offsets = [0, 128], sizes = [8, 128], strides = [1, 1]} : vector<8x512xf32> to vector<8x128xf32>
    %219 = arith.negf %218 : vector<8x128xf32>
    %220 = math.exp %219 : vector<8x128xf32>
    %cst_74 = arith.constant 1.000000e+00 : f32
    %221 = vector.broadcast %cst_74 : f32 to vector<8x128xf32>
    %222 = arith.addf %221, %220 : vector<8x128xf32>
    %223 = arith.divf %221, %222 : vector<8x128xf32>
    %224 = vector.extract_strided_slice %207 {offsets = [0, 256], sizes = [8, 128], strides = [1, 1]} : vector<8x512xf32> to vector<8x128xf32>
    %225 = math.tanh %224 : vector<8x128xf32>
    %226 = vector.extract_strided_slice %207 {offsets = [0, 384], sizes = [8, 128], strides = [1, 1]} : vector<8x512xf32> to vector<8x128xf32>
    %227 = arith.negf %226 : vector<8x128xf32>
    %228 = math.exp %227 : vector<8x128xf32>
    %cst_75 = arith.constant 1.000000e+00 : f32
    %229 = vector.broadcast %cst_75 : f32 to vector<8x128xf32>
    %230 = arith.addf %229, %228 : vector<8x128xf32>
    %231 = arith.divf %229, %230 : vector<8x128xf32>
    %232 = arith.mulf %223, %170 : vector<8x128xf32>
    %233 = arith.mulf %217, %225 : vector<8x128xf32>
    %234 = arith.addf %232, %233 : vector<8x128xf32>
    %235 = math.tanh %234 : vector<8x128xf32>
    %236 = arith.mulf %231, %235 : vector<8x128xf32>
    %237 = vector.extract_strided_slice %211 {offsets = [0, 0], sizes = [8, 128], strides = [1, 1]} : vector<8x512xf32> to vector<8x128xf32>
    %238 = arith.negf %237 : vector<8x128xf32>
    %239 = math.exp %238 : vector<8x128xf32>
    %cst_76 = arith.constant 1.000000e+00 : f32
    %240 = vector.broadcast %cst_76 : f32 to vector<8x128xf32>
    %241 = arith.addf %240, %239 : vector<8x128xf32>
    %242 = arith.divf %240, %241 : vector<8x128xf32>
    %243 = vector.extract_strided_slice %211 {offsets = [0, 128], sizes = [8, 128], strides = [1, 1]} : vector<8x512xf32> to vector<8x128xf32>
    %244 = arith.negf %243 : vector<8x128xf32>
    %245 = math.exp %244 : vector<8x128xf32>
    %cst_77 = arith.constant 1.000000e+00 : f32
    %246 = vector.broadcast %cst_77 : f32 to vector<8x128xf32>
    %247 = arith.addf %246, %245 : vector<8x128xf32>
    %248 = arith.divf %246, %247 : vector<8x128xf32>
    %249 = vector.extract_strided_slice %211 {offsets = [0, 256], sizes = [8, 128], strides = [1, 1]} : vector<8x512xf32> to vector<8x128xf32>
    %250 = math.tanh %249 : vector<8x128xf32>
    %251 = vector.extract_strided_slice %211 {offsets = [0, 384], sizes = [8, 128], strides = [1, 1]} : vector<8x512xf32> to vector<8x128xf32>
    %252 = arith.negf %251 : vector<8x128xf32>
    %253 = math.exp %252 : vector<8x128xf32>
    %cst_78 = arith.constant 1.000000e+00 : f32
    %254 = vector.broadcast %cst_78 : f32 to vector<8x128xf32>
    %255 = arith.addf %254, %253 : vector<8x128xf32>
    %256 = arith.divf %254, %255 : vector<8x128xf32>
    %257 = arith.mulf %248, %195 : vector<8x128xf32>
    %258 = arith.mulf %242, %250 : vector<8x128xf32>
    %259 = arith.addf %257, %258 : vector<8x128xf32>
    %260 = math.tanh %259 : vector<8x128xf32>
    %261 = arith.mulf %256, %260 : vector<8x128xf32>
    %c3_79 = arith.constant 3 : index
    %c0_80 = arith.constant 0 : index
    %c0_81 = arith.constant 0 : index
    %262 = vector.load %arg18[%c3_79, %c0_80, %c0_81] : memref<8x8x256xf32, #tpu.memory_space<vmem>>, vector<1x8x128xf32>
    %263 = vector.shape_cast %262 : vector<1x8x128xf32> to vector<8x128xf32>
    %264 = vector.shape_cast %236 : vector<8x128xf32> to vector<1x8x128xf32>
    tpu.vector_store %arg18[%c3_79, %c0_80, %c0_81], %264 {strides = array<i32>} : memref<8x8x256xf32, #tpu.memory_space<vmem>>, vector<1x8x128xf32>,
    %c4_82 = arith.constant 4 : index
    %c0_83 = arith.constant 0 : index
    %c128_84 = arith.constant 128 : index
    %265 = vector.load %arg18[%c4_82, %c0_83, %c128_84] : memref<8x8x256xf32, #tpu.memory_space<vmem>>, vector<1x8x128xf32>
    %266 = vector.shape_cast %265 : vector<1x8x128xf32> to vector<8x128xf32>
    %267 = vector.shape_cast %261 : vector<8x128xf32> to vector<1x8x128xf32>
    tpu.vector_store %arg18[%c4_82, %c0_83, %c128_84], %267 {strides = array<i32>} : memref<8x8x256xf32, #tpu.memory_space<vmem>>, vector<1x8x128xf32>,
    %c4_85 = arith.constant 4 : index
    %c0_86 = arith.constant 0 : index
    %c0_87 = arith.constant 0 : index
    %268 = vector.load %arg17[%c4_85, %c0_86, %c0_87] : memref<8x8x1024xf32, #tpu.memory_space<vmem>>, vector<1x8x512xf32>
    %269 = vector.shape_cast %268 : vector<1x8x512xf32> to vector<8x512xf32>
    %cst_88 = arith.constant dense<0.000000e+00> : vector<8x512xf32>
    %270 = tpu.matmul %236, %9, %cst_88 {dimension_numbers = #tpu.dot_dimension_numbers<[1], [0], [0], [1], [0, 0, 1, 1], [], []>} : vector<8x128xf32>, vector<128x512xf32>, vector<8x512xf32> -> vector<8x512xf32>
    %271 = arith.addf %269, %270 : vector<8x512xf32>
    %c3_89 = arith.constant 3 : index
    %c0_90 = arith.constant 0 : index
    %c512_91 = arith.constant 512 : index
    %272 = vector.load %arg17[%c3_89, %c0_90, %c512_91] : memref<8x8x1024xf32, #tpu.memory_space<vmem>>, vector<1x8x512xf32>
    %273 = vector.shape_cast %272 : vector<1x8x512xf32> to vector<8x512xf32>
    %cst_92 = arith.constant dense<0.000000e+00> : vector<8x512xf32>
    %274 = tpu.matmul %261, %10, %cst_92 {dimension_numbers = #tpu.dot_dimension_numbers<[1], [0], [0], [1], [0, 0, 1, 1], [], []>} : vector<8x128xf32>, vector<128x512xf32>, vector<8x512xf32> -> vector<8x512xf32>
    %275 = arith.addf %273, %274 : vector<8x512xf32>
    %276 = vector.extract_strided_slice %271 {offsets = [0, 0], sizes = [8, 128], strides = [1, 1]} : vector<8x512xf32> to vector<8x128xf32>
    %277 = arith.negf %276 : vector<8x128xf32>
    %278 = math.exp %277 : vector<8x128xf32>
    %cst_93 = arith.constant 1.000000e+00 : f32
    %279 = vector.broadcast %cst_93 : f32 to vector<8x128xf32>
    %280 = arith.addf %279, %278 : vector<8x128xf32>
    %281 = arith.divf %279, %280 : vector<8x128xf32>
    %282 = vector.extract_strided_slice %271 {offsets = [0, 128], sizes = [8, 128], strides = [1, 1]} : vector<8x512xf32> to vector<8x128xf32>
    %283 = arith.negf %282 : vector<8x128xf32>
    %284 = math.exp %283 : vector<8x128xf32>
    %cst_94 = arith.constant 1.000000e+00 : f32
    %285 = vector.broadcast %cst_94 : f32 to vector<8x128xf32>
    %286 = arith.addf %285, %284 : vector<8x128xf32>
    %287 = arith.divf %285, %286 : vector<8x128xf32>
    %288 = vector.extract_strided_slice %271 {offsets = [0, 256], sizes = [8, 128], strides = [1, 1]} : vector<8x512xf32> to vector<8x128xf32>
    %289 = math.tanh %288 : vector<8x128xf32>
    %290 = vector.extract_strided_slice %271 {offsets = [0, 384], sizes = [8, 128], strides = [1, 1]} : vector<8x512xf32> to vector<8x128xf32>
    %291 = arith.negf %290 : vector<8x128xf32>
    %292 = math.exp %291 : vector<8x128xf32>
    %cst_95 = arith.constant 1.000000e+00 : f32
    %293 = vector.broadcast %cst_95 : f32 to vector<8x128xf32>
    %294 = arith.addf %293, %292 : vector<8x128xf32>
    %295 = arith.divf %293, %294 : vector<8x128xf32>
    %296 = arith.mulf %287, %234 : vector<8x128xf32>
    %297 = arith.mulf %281, %289 : vector<8x128xf32>
    %298 = arith.addf %296, %297 : vector<8x128xf32>
    %299 = math.tanh %298 : vector<8x128xf32>
    %300 = arith.mulf %295, %299 : vector<8x128xf32>
    %301 = vector.extract_strided_slice %275 {offsets = [0, 0], sizes = [8, 128], strides = [1, 1]} : vector<8x512xf32> to vector<8x128xf32>
    %302 = arith.negf %301 : vector<8x128xf32>
    %303 = math.exp %302 : vector<8x128xf32>
    %cst_96 = arith.constant 1.000000e+00 : f32
    %304 = vector.broadcast %cst_96 : f32 to vector<8x128xf32>
    %305 = arith.addf %304, %303 : vector<8x128xf32>
    %306 = arith.divf %304, %305 : vector<8x128xf32>
    %307 = vector.extract_strided_slice %275 {offsets = [0, 128], sizes = [8, 128], strides = [1, 1]} : vector<8x512xf32> to vector<8x128xf32>
    %308 = arith.negf %307 : vector<8x128xf32>
    %309 = math.exp %308 : vector<8x128xf32>
    %cst_97 = arith.constant 1.000000e+00 : f32
    %310 = vector.broadcast %cst_97 : f32 to vector<8x128xf32>
    %311 = arith.addf %310, %309 : vector<8x128xf32>
    %312 = arith.divf %310, %311 : vector<8x128xf32>
    %313 = vector.extract_strided_slice %275 {offsets = [0, 256], sizes = [8, 128], strides = [1, 1]} : vector<8x512xf32> to vector<8x128xf32>
    %314 = math.tanh %313 : vector<8x128xf32>
    %315 = vector.extract_strided_slice %275 {offsets = [0, 384], sizes = [8, 128], strides = [1, 1]} : vector<8x512xf32> to vector<8x128xf32>
    %316 = arith.negf %315 : vector<8x128xf32>
    %317 = math.exp %316 : vector<8x128xf32>
    %cst_98 = arith.constant 1.000000e+00 : f32
    %318 = vector.broadcast %cst_98 : f32 to vector<8x128xf32>
    %319 = arith.addf %318, %317 : vector<8x128xf32>
    %320 = arith.divf %318, %319 : vector<8x128xf32>
    %321 = arith.mulf %312, %259 : vector<8x128xf32>
    %322 = arith.mulf %306, %314 : vector<8x128xf32>
    %323 = arith.addf %321, %322 : vector<8x128xf32>
    %324 = math.tanh %323 : vector<8x128xf32>
    %325 = arith.mulf %320, %324 : vector<8x128xf32>
    %c4_99 = arith.constant 4 : index
    %c0_100 = arith.constant 0 : index
    %c0_101 = arith.constant 0 : index
    %326 = vector.load %arg18[%c4_99, %c0_100, %c0_101] : memref<8x8x256xf32, #tpu.memory_space<vmem>>, vector<1x8x128xf32>
    %327 = vector.shape_cast %326 : vector<1x8x128xf32> to vector<8x128xf32>
    %328 = vector.shape_cast %300 : vector<8x128xf32> to vector<1x8x128xf32>
    tpu.vector_store %arg18[%c4_99, %c0_100, %c0_101], %328 {strides = array<i32>} : memref<8x8x256xf32, #tpu.memory_space<vmem>>, vector<1x8x128xf32>,
    %c3_102 = arith.constant 3 : index
    %c0_103 = arith.constant 0 : index
    %c128_104 = arith.constant 128 : index
    %329 = vector.load %arg18[%c3_102, %c0_103, %c128_104] : memref<8x8x256xf32, #tpu.memory_space<vmem>>, vector<1x8x128xf32>
    %330 = vector.shape_cast %329 : vector<1x8x128xf32> to vector<8x128xf32>
    %331 = vector.shape_cast %325 : vector<8x128xf32> to vector<1x8x128xf32>
    tpu.vector_store %arg18[%c3_102, %c0_103, %c128_104], %331 {strides = array<i32>} : memref<8x8x256xf32, #tpu.memory_space<vmem>>, vector<1x8x128xf32>,
    %c5_105 = arith.constant 5 : index
    %c0_106 = arith.constant 0 : index
    %c0_107 = arith.constant 0 : index
    %332 = vector.load %arg17[%c5_105, %c0_106, %c0_107] : memref<8x8x1024xf32, #tpu.memory_space<vmem>>, vector<1x8x512xf32>
    %333 = vector.shape_cast %332 : vector<1x8x512xf32> to vector<8x512xf32>
    %cst_108 = arith.constant dense<0.000000e+00> : vector<8x512xf32>
    %334 = tpu.matmul %300, %9, %cst_108 {dimension_numbers = #tpu.dot_dimension_numbers<[1], [0], [0], [1], [0, 0, 1, 1], [], []>} : vector<8x128xf32>, vector<128x512xf32>, vector<8x512xf32> -> vector<8x512xf32>
    %335 = arith.addf %333, %334 : vector<8x512xf32>
    %c2_109 = arith.constant 2 : index
    %c0_110 = arith.constant 0 : index
    %c512_111 = arith.constant 512 : index
    %336 = vector.load %arg17[%c2_109, %c0_110, %c512_111] : memref<8x8x1024xf32, #tpu.memory_space<vmem>>, vector<1x8x512xf32>
    %337 = vector.shape_cast %336 : vector<1x8x512xf32> to vector<8x512xf32>
    %cst_112 = arith.constant dense<0.000000e+00> : vector<8x512xf32>
    %338 = tpu.matmul %325, %10, %cst_112 {dimension_numbers = #tpu.dot_dimension_numbers<[1], [0], [0], [1], [0, 0, 1, 1], [], []>} : vector<8x128xf32>, vector<128x512xf32>, vector<8x512xf32> -> vector<8x512xf32>
    %339 = arith.addf %337, %338 : vector<8x512xf32>
    %340 = vector.extract_strided_slice %335 {offsets = [0, 0], sizes = [8, 128], strides = [1, 1]} : vector<8x512xf32> to vector<8x128xf32>
    %341 = arith.negf %340 : vector<8x128xf32>
    %342 = math.exp %341 : vector<8x128xf32>
    %cst_113 = arith.constant 1.000000e+00 : f32
    %343 = vector.broadcast %cst_113 : f32 to vector<8x128xf32>
    %344 = arith.addf %343, %342 : vector<8x128xf32>
    %345 = arith.divf %343, %344 : vector<8x128xf32>
    %346 = vector.extract_strided_slice %335 {offsets = [0, 128], sizes = [8, 128], strides = [1, 1]} : vector<8x512xf32> to vector<8x128xf32>
    %347 = arith.negf %346 : vector<8x128xf32>
    %348 = math.exp %347 : vector<8x128xf32>
    %cst_114 = arith.constant 1.000000e+00 : f32
    %349 = vector.broadcast %cst_114 : f32 to vector<8x128xf32>
    %350 = arith.addf %349, %348 : vector<8x128xf32>
    %351 = arith.divf %349, %350 : vector<8x128xf32>
    %352 = vector.extract_strided_slice %335 {offsets = [0, 256], sizes = [8, 128], strides = [1, 1]} : vector<8x512xf32> to vector<8x128xf32>
    %353 = math.tanh %352 : vector<8x128xf32>
    %354 = vector.extract_strided_slice %335 {offsets = [0, 384], sizes = [8, 128], strides = [1, 1]} : vector<8x512xf32> to vector<8x128xf32>
    %355 = arith.negf %354 : vector<8x128xf32>
    %356 = math.exp %355 : vector<8x128xf32>
    %cst_115 = arith.constant 1.000000e+00 : f32
    %357 = vector.broadcast %cst_115 : f32 to vector<8x128xf32>
    %358 = arith.addf %357, %356 : vector<8x128xf32>
    %359 = arith.divf %357, %358 : vector<8x128xf32>
    %360 = arith.mulf %351, %298 : vector<8x128xf32>
    %361 = arith.mulf %345, %353 : vector<8x128xf32>
    %362 = arith.addf %360, %361 : vector<8x128xf32>
    %363 = math.tanh %362 : vector<8x128xf32>
    %364 = arith.mulf %359, %363 : vector<8x128xf32>
    %365 = vector.extract_strided_slice %339 {offsets = [0, 0], sizes = [8, 128], strides = [1, 1]} : vector<8x512xf32> to vector<8x128xf32>
    %366 = arith.negf %365 : vector<8x128xf32>
    %367 = math.exp %366 : vector<8x128xf32>
    %cst_116 = arith.constant 1.000000e+00 : f32
    %368 = vector.broadcast %cst_116 : f32 to vector<8x128xf32>
    %369 = arith.addf %368, %367 : vector<8x128xf32>
    %370 = arith.divf %368, %369 : vector<8x128xf32>
    %371 = vector.extract_strided_slice %339 {offsets = [0, 128], sizes = [8, 128], strides = [1, 1]} : vector<8x512xf32> to vector<8x128xf32>
    %372 = arith.negf %371 : vector<8x128xf32>
    %373 = math.exp %372 : vector<8x128xf32>
    %cst_117 = arith.constant 1.000000e+00 : f32
    %374 = vector.broadcast %cst_117 : f32 to vector<8x128xf32>
    %375 = arith.addf %374, %373 : vector<8x128xf32>
    %376 = arith.divf %374, %375 : vector<8x128xf32>
    %377 = vector.extract_strided_slice %339 {offsets = [0, 256], sizes = [8, 128], strides = [1, 1]} : vector<8x512xf32> to vector<8x128xf32>
    %378 = math.tanh %377 : vector<8x128xf32>
    %379 = vector.extract_strided_slice %339 {offsets = [0, 384], sizes = [8, 128], strides = [1, 1]} : vector<8x512xf32> to vector<8x128xf32>
    %380 = arith.negf %379 : vector<8x128xf32>
    %381 = math.exp %380 : vector<8x128xf32>
    %cst_118 = arith.constant 1.000000e+00 : f32
    %382 = vector.broadcast %cst_118 : f32 to vector<8x128xf32>
    %383 = arith.addf %382, %381 : vector<8x128xf32>
    %384 = arith.divf %382, %383 : vector<8x128xf32>
    %385 = arith.mulf %376, %323 : vector<8x128xf32>
    %386 = arith.mulf %370, %378 : vector<8x128xf32>
    %387 = arith.addf %385, %386 : vector<8x128xf32>
    %388 = math.tanh %387 : vector<8x128xf32>
    %389 = arith.mulf %384, %388 : vector<8x128xf32>
    %c5_119 = arith.constant 5 : index
    %c0_120 = arith.constant 0 : index
    %c0_121 = arith.constant 0 : index
    %390 = vector.load %arg18[%c5_119, %c0_120, %c0_121] : memref<8x8x256xf32, #tpu.memory_space<vmem>>, vector<1x8x128xf32>
    %391 = vector.shape_cast %390 : vector<1x8x128xf32> to vector<8x128xf32>
    %392 = vector.shape_cast %364 : vector<8x128xf32> to vector<1x8x128xf32>
    tpu.vector_store %arg18[%c5_119, %c0_120, %c0_121], %392 {strides = array<i32>} : memref<8x8x256xf32, #tpu.memory_space<vmem>>, vector<1x8x128xf32>,
    %c2_122 = arith.constant 2 : index
    %c0_123 = arith.constant 0 : index
    %c128_124 = arith.constant 128 : index
    %393 = vector.load %arg18[%c2_122, %c0_123, %c128_124] : memref<8x8x256xf32, #tpu.memory_space<vmem>>, vector<1x8x128xf32>
    %394 = vector.shape_cast %393 : vector<1x8x128xf32> to vector<8x128xf32>
    %395 = vector.shape_cast %389 : vector<8x128xf32> to vector<1x8x128xf32>
    tpu.vector_store %arg18[%c2_122, %c0_123, %c128_124], %395 {strides = array<i32>} : memref<8x8x256xf32, #tpu.memory_space<vmem>>, vector<1x8x128xf32>,
    %c6_125 = arith.constant 6 : index
    %c0_126 = arith.constant 0 : index
    %c0_127 = arith.constant 0 : index
    %396 = vector.load %arg17[%c6_125, %c0_126, %c0_127] : memref<8x8x1024xf32, #tpu.memory_space<vmem>>, vector<1x8x512xf32>
    %397 = vector.shape_cast %396 : vector<1x8x512xf32> to vector<8x512xf32>
    %cst_128 = arith.constant dense<0.000000e+00> : vector<8x512xf32>
    %398 = tpu.matmul %364, %9, %cst_128 {dimension_numbers = #tpu.dot_dimension_numbers<[1], [0], [0], [1], [0, 0, 1, 1], [], []>} : vector<8x128xf32>, vector<128x512xf32>, vector<8x512xf32> -> vector<8x512xf32>
    %399 = arith.addf %397, %398 : vector<8x512xf32>
    %c1_129 = arith.constant 1 : index
    %c0_130 = arith.constant 0 : index
    %c512_131 = arith.constant 512 : index
    %400 = vector.load %arg17[%c1_129, %c0_130, %c512_131] : memref<8x8x1024xf32, #tpu.memory_space<vmem>>, vector<1x8x512xf32>
    %401 = vector.shape_cast %400 : vector<1x8x512xf32> to vector<8x512xf32>
    %cst_132 = arith.constant dense<0.000000e+00> : vector<8x512xf32>
    %402 = tpu.matmul %389, %10, %cst_132 {dimension_numbers = #tpu.dot_dimension_numbers<[1], [0], [0], [1], [0, 0, 1, 1], [], []>} : vector<8x128xf32>, vector<128x512xf32>, vector<8x512xf32> -> vector<8x512xf32>
    %403 = arith.addf %401, %402 : vector<8x512xf32>
    %404 = vector.extract_strided_slice %399 {offsets = [0, 0], sizes = [8, 128], strides = [1, 1]} : vector<8x512xf32> to vector<8x128xf32>
    %405 = arith.negf %404 : vector<8x128xf32>
    %406 = math.exp %405 : vector<8x128xf32>
    %cst_133 = arith.constant 1.000000e+00 : f32
    %407 = vector.broadcast %cst_133 : f32 to vector<8x128xf32>
    %408 = arith.addf %407, %406 : vector<8x128xf32>
    %409 = arith.divf %407, %408 : vector<8x128xf32>
    %410 = vector.extract_strided_slice %399 {offsets = [0, 128], sizes = [8, 128], strides = [1, 1]} : vector<8x512xf32> to vector<8x128xf32>
    %411 = arith.negf %410 : vector<8x128xf32>
    %412 = math.exp %411 : vector<8x128xf32>
    %cst_134 = arith.constant 1.000000e+00 : f32
    %413 = vector.broadcast %cst_134 : f32 to vector<8x128xf32>
    %414 = arith.addf %413, %412 : vector<8x128xf32>
    %415 = arith.divf %413, %414 : vector<8x128xf32>
    %416 = vector.extract_strided_slice %399 {offsets = [0, 256], sizes = [8, 128], strides = [1, 1]} : vector<8x512xf32> to vector<8x128xf32>
    %417 = math.tanh %416 : vector<8x128xf32>
    %418 = vector.extract_strided_slice %399 {offsets = [0, 384], sizes = [8, 128], strides = [1, 1]} : vector<8x512xf32> to vector<8x128xf32>
    %419 = arith.negf %418 : vector<8x128xf32>
    %420 = math.exp %419 : vector<8x128xf32>
    %cst_135 = arith.constant 1.000000e+00 : f32
    %421 = vector.broadcast %cst_135 : f32 to vector<8x128xf32>
    %422 = arith.addf %421, %420 : vector<8x128xf32>
    %423 = arith.divf %421, %422 : vector<8x128xf32>
    %424 = arith.mulf %415, %362 : vector<8x128xf32>
    %425 = arith.mulf %409, %417 : vector<8x128xf32>
    %426 = arith.addf %424, %425 : vector<8x128xf32>
    %427 = math.tanh %426 : vector<8x128xf32>
    %428 = arith.mulf %423, %427 : vector<8x128xf32>
    %429 = vector.extract_strided_slice %403 {offsets = [0, 0], sizes = [8, 128], strides = [1, 1]} : vector<8x512xf32> to vector<8x128xf32>
    %430 = arith.negf %429 : vector<8x128xf32>
    %431 = math.exp %430 : vector<8x128xf32>
    %cst_136 = arith.constant 1.000000e+00 : f32
    %432 = vector.broadcast %cst_136 : f32 to vector<8x128xf32>
    %433 = arith.addf %432, %431 : vector<8x128xf32>
    %434 = arith.divf %432, %433 : vector<8x128xf32>
    %435 = vector.extract_strided_slice %403 {offsets = [0, 128], sizes = [8, 128], strides = [1, 1]} : vector<8x512xf32> to vector<8x128xf32>
    %436 = arith.negf %435 : vector<8x128xf32>
    %437 = math.exp %436 : vector<8x128xf32>
    %cst_137 = arith.constant 1.000000e+00 : f32
    %438 = vector.broadcast %cst_137 : f32 to vector<8x128xf32>
    %439 = arith.addf %438, %437 : vector<8x128xf32>
    %440 = arith.divf %438, %439 : vector<8x128xf32>
    %441 = vector.extract_strided_slice %403 {offsets = [0, 256], sizes = [8, 128], strides = [1, 1]} : vector<8x512xf32> to vector<8x128xf32>
    %442 = math.tanh %441 : vector<8x128xf32>
    %443 = vector.extract_strided_slice %403 {offsets = [0, 384], sizes = [8, 128], strides = [1, 1]} : vector<8x512xf32> to vector<8x128xf32>
    %444 = arith.negf %443 : vector<8x128xf32>
    %445 = math.exp %444 : vector<8x128xf32>
    %cst_138 = arith.constant 1.000000e+00 : f32
    %446 = vector.broadcast %cst_138 : f32 to vector<8x128xf32>
    %447 = arith.addf %446, %445 : vector<8x128xf32>
    %448 = arith.divf %446, %447 : vector<8x128xf32>
    %449 = arith.mulf %440, %387 : vector<8x128xf32>
    %450 = arith.mulf %434, %442 : vector<8x128xf32>
    %451 = arith.addf %449, %450 : vector<8x128xf32>
    %452 = math.tanh %451 : vector<8x128xf32>
    %453 = arith.mulf %448, %452 : vector<8x128xf32>
    %c6_139 = arith.constant 6 : index
    %c0_140 = arith.constant 0 : index
    %c0_141 = arith.constant 0 : index
    %454 = vector.load %arg18[%c6_139, %c0_140, %c0_141] : memref<8x8x256xf32, #tpu.memory_space<vmem>>, vector<1x8x128xf32>
    %455 = vector.shape_cast %454 : vector<1x8x128xf32> to vector<8x128xf32>
    %456 = vector.shape_cast %428 : vector<8x128xf32> to vector<1x8x128xf32>
    tpu.vector_store %arg18[%c6_139, %c0_140, %c0_141], %456 {strides = array<i32>} : memref<8x8x256xf32, #tpu.memory_space<vmem>>, vector<1x8x128xf32>,
    %c1_142 = arith.constant 1 : index
    %c0_143 = arith.constant 0 : index
    %c128_144 = arith.constant 128 : index
    %457 = vector.load %arg18[%c1_142, %c0_143, %c128_144] : memref<8x8x256xf32, #tpu.memory_space<vmem>>, vector<1x8x128xf32>
    %458 = vector.shape_cast %457 : vector<1x8x128xf32> to vector<8x128xf32>
    %459 = vector.shape_cast %453 : vector<8x128xf32> to vector<1x8x128xf32>
    tpu.vector_store %arg18[%c1_142, %c0_143, %c128_144], %459 {strides = array<i32>} : memref<8x8x256xf32, #tpu.memory_space<vmem>>, vector<1x8x128xf32>,
    %c7_145 = arith.constant 7 : index
    %c0_146 = arith.constant 0 : index
    %c0_147 = arith.constant 0 : index
    %460 = vector.load %arg17[%c7_145, %c0_146, %c0_147] : memref<8x8x1024xf32, #tpu.memory_space<vmem>>, vector<1x8x512xf32>
    %461 = vector.shape_cast %460 : vector<1x8x512xf32> to vector<8x512xf32>
    %cst_148 = arith.constant dense<0.000000e+00> : vector<8x512xf32>
    %462 = tpu.matmul %428, %9, %cst_148 {dimension_numbers = #tpu.dot_dimension_numbers<[1], [0], [0], [1], [0, 0, 1, 1], [], []>} : vector<8x128xf32>, vector<128x512xf32>, vector<8x512xf32> -> vector<8x512xf32>
    %463 = arith.addf %461, %462 : vector<8x512xf32>
    %c0_149 = arith.constant 0 : index
    %c0_150 = arith.constant 0 : index
    %c512_151 = arith.constant 512 : index
    %464 = vector.load %arg17[%c0_149, %c0_150, %c512_151] : memref<8x8x1024xf32, #tpu.memory_space<vmem>>, vector<1x8x512xf32>
    %465 = vector.shape_cast %464 : vector<1x8x512xf32> to vector<8x512xf32>
    %cst_152 = arith.constant dense<0.000000e+00> : vector<8x512xf32>
    %466 = tpu.matmul %453, %10, %cst_152 {dimension_numbers = #tpu.dot_dimension_numbers<[1], [0], [0], [1], [0, 0, 1, 1], [], []>} : vector<8x128xf32>, vector<128x512xf32>, vector<8x512xf32> -> vector<8x512xf32>
    %467 = arith.addf %465, %466 : vector<8x512xf32>
    %468 = vector.extract_strided_slice %463 {offsets = [0, 0], sizes = [8, 128], strides = [1, 1]} : vector<8x512xf32> to vector<8x128xf32>
    %469 = arith.negf %468 : vector<8x128xf32>
    %470 = math.exp %469 : vector<8x128xf32>
    %cst_153 = arith.constant 1.000000e+00 : f32
    %471 = vector.broadcast %cst_153 : f32 to vector<8x128xf32>
    %472 = arith.addf %471, %470 : vector<8x128xf32>
    %473 = arith.divf %471, %472 : vector<8x128xf32>
    %474 = vector.extract_strided_slice %463 {offsets = [0, 128], sizes = [8, 128], strides = [1, 1]} : vector<8x512xf32> to vector<8x128xf32>
    %475 = arith.negf %474 : vector<8x128xf32>
    %476 = math.exp %475 : vector<8x128xf32>
    %cst_154 = arith.constant 1.000000e+00 : f32
    %477 = vector.broadcast %cst_154 : f32 to vector<8x128xf32>
    %478 = arith.addf %477, %476 : vector<8x128xf32>
    %479 = arith.divf %477, %478 : vector<8x128xf32>
    %480 = vector.extract_strided_slice %463 {offsets = [0, 256], sizes = [8, 128], strides = [1, 1]} : vector<8x512xf32> to vector<8x128xf32>
    %481 = math.tanh %480 : vector<8x128xf32>
    %482 = vector.extract_strided_slice %463 {offsets = [0, 384], sizes = [8, 128], strides = [1, 1]} : vector<8x512xf32> to vector<8x128xf32>
    %483 = arith.negf %482 : vector<8x128xf32>
    %484 = math.exp %483 : vector<8x128xf32>
    %cst_155 = arith.constant 1.000000e+00 : f32
    %485 = vector.broadcast %cst_155 : f32 to vector<8x128xf32>
    %486 = arith.addf %485, %484 : vector<8x128xf32>
    %487 = arith.divf %485, %486 : vector<8x128xf32>
    %488 = arith.mulf %479, %426 : vector<8x128xf32>
    %489 = arith.mulf %473, %481 : vector<8x128xf32>
    %490 = arith.addf %488, %489 : vector<8x128xf32>
    %491 = math.tanh %490 : vector<8x128xf32>
    %492 = arith.mulf %487, %491 : vector<8x128xf32>
    %493 = vector.extract_strided_slice %467 {offsets = [0, 0], sizes = [8, 128], strides = [1, 1]} : vector<8x512xf32> to vector<8x128xf32>
    %494 = arith.negf %493 : vector<8x128xf32>
    %495 = math.exp %494 : vector<8x128xf32>
    %cst_156 = arith.constant 1.000000e+00 : f32
    %496 = vector.broadcast %cst_156 : f32 to vector<8x128xf32>
    %497 = arith.addf %496, %495 : vector<8x128xf32>
    %498 = arith.divf %496, %497 : vector<8x128xf32>
    %499 = vector.extract_strided_slice %467 {offsets = [0, 128], sizes = [8, 128], strides = [1, 1]} : vector<8x512xf32> to vector<8x128xf32>
    %500 = arith.negf %499 : vector<8x128xf32>
    %501 = math.exp %500 : vector<8x128xf32>
    %cst_157 = arith.constant 1.000000e+00 : f32
    %502 = vector.broadcast %cst_157 : f32 to vector<8x128xf32>
    %503 = arith.addf %502, %501 : vector<8x128xf32>
    %504 = arith.divf %502, %503 : vector<8x128xf32>
    %505 = vector.extract_strided_slice %467 {offsets = [0, 256], sizes = [8, 128], strides = [1, 1]} : vector<8x512xf32> to vector<8x128xf32>
    %506 = math.tanh %505 : vector<8x128xf32>
    %507 = vector.extract_strided_slice %467 {offsets = [0, 384], sizes = [8, 128], strides = [1, 1]} : vector<8x512xf32> to vector<8x128xf32>
    %508 = arith.negf %507 : vector<8x128xf32>
    %509 = math.exp %508 : vector<8x128xf32>
    %cst_158 = arith.constant 1.000000e+00 : f32
    %510 = vector.broadcast %cst_158 : f32 to vector<8x128xf32>
    %511 = arith.addf %510, %509 : vector<8x128xf32>
    %512 = arith.divf %510, %511 : vector<8x128xf32>
    %513 = arith.mulf %504, %451 : vector<8x128xf32>
    %514 = arith.mulf %498, %506 : vector<8x128xf32>
    %515 = arith.addf %513, %514 : vector<8x128xf32>
    %516 = math.tanh %515 : vector<8x128xf32>
    %517 = arith.mulf %512, %516 : vector<8x128xf32>
    %c7_159 = arith.constant 7 : index
    %c0_160 = arith.constant 0 : index
    %c0_161 = arith.constant 0 : index
    %518 = vector.load %arg18[%c7_159, %c0_160, %c0_161] : memref<8x8x256xf32, #tpu.memory_space<vmem>>, vector<1x8x128xf32>
    %519 = vector.shape_cast %518 : vector<1x8x128xf32> to vector<8x128xf32>
    %520 = vector.shape_cast %492 : vector<8x128xf32> to vector<1x8x128xf32>
    tpu.vector_store %arg18[%c7_159, %c0_160, %c0_161], %520 {strides = array<i32>} : memref<8x8x256xf32, #tpu.memory_space<vmem>>, vector<1x8x128xf32>,
    %c0_162 = arith.constant 0 : index
    %c0_163 = arith.constant 0 : index
    %c128_164 = arith.constant 128 : index
    %521 = vector.load %arg18[%c0_162, %c0_163, %c128_164] : memref<8x8x256xf32, #tpu.memory_space<vmem>>, vector<1x8x128xf32>
    %522 = vector.shape_cast %521 : vector<1x8x128xf32> to vector<8x128xf32>
    %523 = vector.shape_cast %517 : vector<8x128xf32> to vector<1x8x128xf32>
    tpu.vector_store %arg18[%c0_162, %c0_163, %c128_164], %523 {strides = array<i32>} : memref<8x8x256xf32, #tpu.memory_space<vmem>>, vector<1x8x128xf32>,
    %c0_165 = arith.constant 0 : index
    %c0_166 = arith.constant 0 : index
    %c0_167 = arith.constant 0 : index
    %524 = vector.load %arg18[%c0_165, %c0_166, %c0_167] : memref<8x8x256xf32, #tpu.memory_space<vmem>>, vector<8x8x256xf32>
    %525 = vector.shape_cast %524 : vector<8x8x256xf32> to vector<64x256xf32>
    %c0_168 = arith.constant 0 : index
    %c0_169 = arith.constant 0 : index
    %526 = vector.load %arg6[%c0_168, %c0_169] : memref<256x1024xf32, #tpu.memory_space<vmem>>, vector<256x1024xf32>
    %cst_170 = arith.constant dense<0.000000e+00> : vector<64x1024xf32>
    %527 = tpu.matmul %525, %526, %cst_170 {dimension_numbers = #tpu.dot_dimension_numbers<[1], [0], [0], [1], [0, 0, 1, 1], [], []>} : vector<64x256xf32>, vector<256x1024xf32>, vector<64x1024xf32> -> vector<64x1024xf32>
    %c0_171 = arith.constant 0 : index
    %c0_172 = arith.constant 0 : index
    %528 = vector.load %arg7[%c0_171, %c0_172] : memref<1x1024xf32, #tpu.memory_space<vmem>>, vector<1x1024xf32>
    %529 = vector.broadcast %528 : vector<1x1024xf32> to vector<64x1024xf32>
    %530 = arith.addf %527, %529 : vector<64x1024xf32>
    %531 = vector.shape_cast %530 : vector<64x1024xf32> to vector<8x8x1024xf32>
    %c0_173 = arith.constant 0 : index
    %c0_174 = arith.constant 0 : index
    %c0_175 = arith.constant 0 : index
    %532 = vector.load %arg17[%c0_173, %c0_174, %c0_175] : memref<8x8x1024xf32, #tpu.memory_space<vmem>>, vector<8x8x1024xf32>
    tpu.vector_store %arg17[%c0_173, %c0_174, %c0_175], %531 {strides = array<i32>} : memref<8x8x1024xf32, #tpu.memory_space<vmem>>, vector<8x8x1024xf32>,
    %c0_176 = arith.constant 0 : index
    %c0_177 = arith.constant 0 : index
    %533 = vector.load %arg8[%c0_176, %c0_177] : memref<128x512xf32, #tpu.memory_space<vmem>>, vector<128x512xf32>
    %c0_178 = arith.constant 0 : index
    %c0_179 = arith.constant 0 : index
    %534 = vector.load %arg9[%c0_178, %c0_179] : memref<128x512xf32, #tpu.memory_space<vmem>>, vector<128x512xf32>
    %cst_180 = arith.constant 0.000000e+00 : f32
    %535 = vector.broadcast %cst_180 : f32 to vector<8x128xf32>
    %c0_181 = arith.constant 0 : index
    %c0_182 = arith.constant 0 : index
    %c0_183 = arith.constant 0 : index
    %536 = vector.load %arg17[%c0_181, %c0_182, %c0_183] : memref<8x8x1024xf32, #tpu.memory_space<vmem>>, vector<1x8x512xf32>
    %537 = vector.shape_cast %536 : vector<1x8x512xf32> to vector<8x512xf32>
    %cst_184 = arith.constant dense<0.000000e+00> : vector<8x512xf32>
    %538 = tpu.matmul %535, %533, %cst_184 {dimension_numbers = #tpu.dot_dimension_numbers<[1], [0], [0], [1], [0, 0, 1, 1], [], []>} : vector<8x128xf32>, vector<128x512xf32>, vector<8x512xf32> -> vector<8x512xf32>
    %539 = arith.addf %537, %538 : vector<8x512xf32>
    %c7_185 = arith.constant 7 : index
    %c0_186 = arith.constant 0 : index
    %c512_187 = arith.constant 512 : index
    %540 = vector.load %arg17[%c7_185, %c0_186, %c512_187] : memref<8x8x1024xf32, #tpu.memory_space<vmem>>, vector<1x8x512xf32>
    %541 = vector.shape_cast %540 : vector<1x8x512xf32> to vector<8x512xf32>
    %cst_188 = arith.constant dense<0.000000e+00> : vector<8x512xf32>
    %542 = tpu.matmul %535, %534, %cst_188 {dimension_numbers = #tpu.dot_dimension_numbers<[1], [0], [0], [1], [0, 0, 1, 1], [], []>} : vector<8x128xf32>, vector<128x512xf32>, vector<8x512xf32> -> vector<8x512xf32>
    %543 = arith.addf %541, %542 : vector<8x512xf32>
    %544 = vector.extract_strided_slice %539 {offsets = [0, 0], sizes = [8, 128], strides = [1, 1]} : vector<8x512xf32> to vector<8x128xf32>
    %545 = arith.negf %544 : vector<8x128xf32>
    %546 = math.exp %545 : vector<8x128xf32>
    %cst_189 = arith.constant 1.000000e+00 : f32
    %547 = vector.broadcast %cst_189 : f32 to vector<8x128xf32>
    %548 = arith.addf %547, %546 : vector<8x128xf32>
    %549 = arith.divf %547, %548 : vector<8x128xf32>
    %550 = vector.extract_strided_slice %539 {offsets = [0, 128], sizes = [8, 128], strides = [1, 1]} : vector<8x512xf32> to vector<8x128xf32>
    %551 = arith.negf %550 : vector<8x128xf32>
    %552 = math.exp %551 : vector<8x128xf32>
    %cst_190 = arith.constant 1.000000e+00 : f32
    %553 = vector.broadcast %cst_190 : f32 to vector<8x128xf32>
    %554 = arith.addf %553, %552 : vector<8x128xf32>
    %555 = arith.divf %553, %554 : vector<8x128xf32>
    %556 = vector.extract_strided_slice %539 {offsets = [0, 256], sizes = [8, 128], strides = [1, 1]} : vector<8x512xf32> to vector<8x128xf32>
    %557 = math.tanh %556 : vector<8x128xf32>
    %558 = vector.extract_strided_slice %539 {offsets = [0, 384], sizes = [8, 128], strides = [1, 1]} : vector<8x512xf32> to vector<8x128xf32>
    %559 = arith.negf %558 : vector<8x128xf32>
    %560 = math.exp %559 : vector<8x128xf32>
    %cst_191 = arith.constant 1.000000e+00 : f32
    %561 = vector.broadcast %cst_191 : f32 to vector<8x128xf32>
    %562 = arith.addf %561, %560 : vector<8x128xf32>
    %563 = arith.divf %561, %562 : vector<8x128xf32>
    %564 = arith.mulf %555, %535 : vector<8x128xf32>
    %565 = arith.mulf %549, %557 : vector<8x128xf32>
    %566 = arith.addf %564, %565 : vector<8x128xf32>
    %567 = math.tanh %566 : vector<8x128xf32>
    %568 = arith.mulf %563, %567 : vector<8x128xf32>
    %569 = vector.extract_strided_slice %543 {offsets = [0, 0], sizes = [8, 128], strides = [1, 1]} : vector<8x512xf32> to vector<8x128xf32>
    %570 = arith.negf %569 : vector<8x128xf32>
    %571 = math.exp %570 : vector<8x128xf32>
    %cst_192 = arith.constant 1.000000e+00 : f32
    %572 = vector.broadcast %cst_192 : f32 to vector<8x128xf32>
    %573 = arith.addf %572, %571 : vector<8x128xf32>
    %574 = arith.divf %572, %573 : vector<8x128xf32>
    %575 = vector.extract_strided_slice %543 {offsets = [0, 128], sizes = [8, 128], strides = [1, 1]} : vector<8x512xf32> to vector<8x128xf32>
    %576 = arith.negf %575 : vector<8x128xf32>
    %577 = math.exp %576 : vector<8x128xf32>
    %cst_193 = arith.constant 1.000000e+00 : f32
    %578 = vector.broadcast %cst_193 : f32 to vector<8x128xf32>
    %579 = arith.addf %578, %577 : vector<8x128xf32>
    %580 = arith.divf %578, %579 : vector<8x128xf32>
    %581 = vector.extract_strided_slice %543 {offsets = [0, 256], sizes = [8, 128], strides = [1, 1]} : vector<8x512xf32> to vector<8x128xf32>
    %582 = math.tanh %581 : vector<8x128xf32>
    %583 = vector.extract_strided_slice %543 {offsets = [0, 384], sizes = [8, 128], strides = [1, 1]} : vector<8x512xf32> to vector<8x128xf32>
    %584 = arith.negf %583 : vector<8x128xf32>
    %585 = math.exp %584 : vector<8x128xf32>
    %cst_194 = arith.constant 1.000000e+00 : f32
    %586 = vector.broadcast %cst_194 : f32 to vector<8x128xf32>
    %587 = arith.addf %586, %585 : vector<8x128xf32>
    %588 = arith.divf %586, %587 : vector<8x128xf32>
    %589 = arith.mulf %580, %535 : vector<8x128xf32>
    %590 = arith.mulf %574, %582 : vector<8x128xf32>
    %591 = arith.addf %589, %590 : vector<8x128xf32>
    %592 = math.tanh %591 : vector<8x128xf32>
    %593 = arith.mulf %588, %592 : vector<8x128xf32>
    %c0_195 = arith.constant 0 : index
    %c0_196 = arith.constant 0 : index
    %c0_197 = arith.constant 0 : index
    %594 = vector.load %arg19[%c0_195, %c0_196, %c0_197] : memref<8x8x256xf32, #tpu.memory_space<vmem>>, vector<1x8x128xf32>
    %595 = vector.shape_cast %594 : vector<1x8x128xf32> to vector<8x128xf32>
    %596 = vector.shape_cast %568 : vector<8x128xf32> to vector<1x8x128xf32>
    tpu.vector_store %arg19[%c0_195, %c0_196, %c0_197], %596 {strides = array<i32>} : memref<8x8x256xf32, #tpu.memory_space<vmem>>, vector<1x8x128xf32>,
    %c7_198 = arith.constant 7 : index
    %c0_199 = arith.constant 0 : index
    %c128_200 = arith.constant 128 : index
    %597 = vector.load %arg19[%c7_198, %c0_199, %c128_200] : memref<8x8x256xf32, #tpu.memory_space<vmem>>, vector<1x8x128xf32>
    %598 = vector.shape_cast %597 : vector<1x8x128xf32> to vector<8x128xf32>
    %599 = vector.shape_cast %593 : vector<8x128xf32> to vector<1x8x128xf32>
    tpu.vector_store %arg19[%c7_198, %c0_199, %c128_200], %599 {strides = array<i32>} : memref<8x8x256xf32, #tpu.memory_space<vmem>>, vector<1x8x128xf32>,
    %c1_201 = arith.constant 1 : index
    %c0_202 = arith.constant 0 : index
    %c0_203 = arith.constant 0 : index
    %600 = vector.load %arg17[%c1_201, %c0_202, %c0_203] : memref<8x8x1024xf32, #tpu.memory_space<vmem>>, vector<1x8x512xf32>
    %601 = vector.shape_cast %600 : vector<1x8x512xf32> to vector<8x512xf32>
    %cst_204 = arith.constant dense<0.000000e+00> : vector<8x512xf32>
    %602 = tpu.matmul %568, %533, %cst_204 {dimension_numbers = #tpu.dot_dimension_numbers<[1], [0], [0], [1], [0, 0, 1, 1], [], []>} : vector<8x128xf32>, vector<128x512xf32>, vector<8x512xf32> -> vector<8x512xf32>
    %603 = arith.addf %601, %602 : vector<8x512xf32>
    %c6_205 = arith.constant 6 : index
    %c0_206 = arith.constant 0 : index
    %c512_207 = arith.constant 512 : index
    %604 = vector.load %arg17[%c6_205, %c0_206, %c512_207] : memref<8x8x1024xf32, #tpu.memory_space<vmem>>, vector<1x8x512xf32>
    %605 = vector.shape_cast %604 : vector<1x8x512xf32> to vector<8x512xf32>
    %cst_208 = arith.constant dense<0.000000e+00> : vector<8x512xf32>
    %606 = tpu.matmul %593, %534, %cst_208 {dimension_numbers = #tpu.dot_dimension_numbers<[1], [0], [0], [1], [0, 0, 1, 1], [], []>} : vector<8x128xf32>, vector<128x512xf32>, vector<8x512xf32> -> vector<8x512xf32>
    %607 = arith.addf %605, %606 : vector<8x512xf32>
    %608 = vector.extract_strided_slice %603 {offsets = [0, 0], sizes = [8, 128], strides = [1, 1]} : vector<8x512xf32> to vector<8x128xf32>
    %609 = arith.negf %608 : vector<8x128xf32>
    %610 = math.exp %609 : vector<8x128xf32>
    %cst_209 = arith.constant 1.000000e+00 : f32
    %611 = vector.broadcast %cst_209 : f32 to vector<8x128xf32>
    %612 = arith.addf %611, %610 : vector<8x128xf32>
    %613 = arith.divf %611, %612 : vector<8x128xf32>
    %614 = vector.extract_strided_slice %603 {offsets = [0, 128], sizes = [8, 128], strides = [1, 1]} : vector<8x512xf32> to vector<8x128xf32>
    %615 = arith.negf %614 : vector<8x128xf32>
    %616 = math.exp %615 : vector<8x128xf32>
    %cst_210 = arith.constant 1.000000e+00 : f32
    %617 = vector.broadcast %cst_210 : f32 to vector<8x128xf32>
    %618 = arith.addf %617, %616 : vector<8x128xf32>
    %619 = arith.divf %617, %618 : vector<8x128xf32>
    %620 = vector.extract_strided_slice %603 {offsets = [0, 256], sizes = [8, 128], strides = [1, 1]} : vector<8x512xf32> to vector<8x128xf32>
    %621 = math.tanh %620 : vector<8x128xf32>
    %622 = vector.extract_strided_slice %603 {offsets = [0, 384], sizes = [8, 128], strides = [1, 1]} : vector<8x512xf32> to vector<8x128xf32>
    %623 = arith.negf %622 : vector<8x128xf32>
    %624 = math.exp %623 : vector<8x128xf32>
    %cst_211 = arith.constant 1.000000e+00 : f32
    %625 = vector.broadcast %cst_211 : f32 to vector<8x128xf32>
    %626 = arith.addf %625, %624 : vector<8x128xf32>
    %627 = arith.divf %625, %626 : vector<8x128xf32>
    %628 = arith.mulf %619, %566 : vector<8x128xf32>
    %629 = arith.mulf %613, %621 : vector<8x128xf32>
    %630 = arith.addf %628, %629 : vector<8x128xf32>
    %631 = math.tanh %630 : vector<8x128xf32>
    %632 = arith.mulf %627, %631 : vector<8x128xf32>
    %633 = vector.extract_strided_slice %607 {offsets = [0, 0], sizes = [8, 128], strides = [1, 1]} : vector<8x512xf32> to vector<8x128xf32>
    %634 = arith.negf %633 : vector<8x128xf32>
    %635 = math.exp %634 : vector<8x128xf32>
    %cst_212 = arith.constant 1.000000e+00 : f32
    %636 = vector.broadcast %cst_212 : f32 to vector<8x128xf32>
    %637 = arith.addf %636, %635 : vector<8x128xf32>
    %638 = arith.divf %636, %637 : vector<8x128xf32>
    %639 = vector.extract_strided_slice %607 {offsets = [0, 128], sizes = [8, 128], strides = [1, 1]} : vector<8x512xf32> to vector<8x128xf32>
    %640 = arith.negf %639 : vector<8x128xf32>
    %641 = math.exp %640 : vector<8x128xf32>
    %cst_213 = arith.constant 1.000000e+00 : f32
    %642 = vector.broadcast %cst_213 : f32 to vector<8x128xf32>
    %643 = arith.addf %642, %641 : vector<8x128xf32>
    %644 = arith.divf %642, %643 : vector<8x128xf32>
    %645 = vector.extract_strided_slice %607 {offsets = [0, 256], sizes = [8, 128], strides = [1, 1]} : vector<8x512xf32> to vector<8x128xf32>
    %646 = math.tanh %645 : vector<8x128xf32>
    %647 = vector.extract_strided_slice %607 {offsets = [0, 384], sizes = [8, 128], strides = [1, 1]} : vector<8x512xf32> to vector<8x128xf32>
    %648 = arith.negf %647 : vector<8x128xf32>
    %649 = math.exp %648 : vector<8x128xf32>
    %cst_214 = arith.constant 1.000000e+00 : f32
    %650 = vector.broadcast %cst_214 : f32 to vector<8x128xf32>
    %651 = arith.addf %650, %649 : vector<8x128xf32>
    %652 = arith.divf %650, %651 : vector<8x128xf32>
    %653 = arith.mulf %644, %591 : vector<8x128xf32>
    %654 = arith.mulf %638, %646 : vector<8x128xf32>
    %655 = arith.addf %653, %654 : vector<8x128xf32>
    %656 = math.tanh %655 : vector<8x128xf32>
    %657 = arith.mulf %652, %656 : vector<8x128xf32>
    %c1_215 = arith.constant 1 : index
    %c0_216 = arith.constant 0 : index
    %c0_217 = arith.constant 0 : index
    %658 = vector.load %arg19[%c1_215, %c0_216, %c0_217] : memref<8x8x256xf32, #tpu.memory_space<vmem>>, vector<1x8x128xf32>
    %659 = vector.shape_cast %658 : vector<1x8x128xf32> to vector<8x128xf32>
    %660 = vector.shape_cast %632 : vector<8x128xf32> to vector<1x8x128xf32>
    tpu.vector_store %arg19[%c1_215, %c0_216, %c0_217], %660 {strides = array<i32>} : memref<8x8x256xf32, #tpu.memory_space<vmem>>, vector<1x8x128xf32>,
    %c6_218 = arith.constant 6 : index
    %c0_219 = arith.constant 0 : index
    %c128_220 = arith.constant 128 : index
    %661 = vector.load %arg19[%c6_218, %c0_219, %c128_220] : memref<8x8x256xf32, #tpu.memory_space<vmem>>, vector<1x8x128xf32>
    %662 = vector.shape_cast %661 : vector<1x8x128xf32> to vector<8x128xf32>
    %663 = vector.shape_cast %657 : vector<8x128xf32> to vector<1x8x128xf32>
    tpu.vector_store %arg19[%c6_218, %c0_219, %c128_220], %663 {strides = array<i32>} : memref<8x8x256xf32, #tpu.memory_space<vmem>>, vector<1x8x128xf32>,
    %c2_221 = arith.constant 2 : index
    %c0_222 = arith.constant 0 : index
    %c0_223 = arith.constant 0 : index
    %664 = vector.load %arg17[%c2_221, %c0_222, %c0_223] : memref<8x8x1024xf32, #tpu.memory_space<vmem>>, vector<1x8x512xf32>
    %665 = vector.shape_cast %664 : vector<1x8x512xf32> to vector<8x512xf32>
    %cst_224 = arith.constant dense<0.000000e+00> : vector<8x512xf32>
    %666 = tpu.matmul %632, %533, %cst_224 {dimension_numbers = #tpu.dot_dimension_numbers<[1], [0], [0], [1], [0, 0, 1, 1], [], []>} : vector<8x128xf32>, vector<128x512xf32>, vector<8x512xf32> -> vector<8x512xf32>
    %667 = arith.addf %665, %666 : vector<8x512xf32>
    %c5_225 = arith.constant 5 : index
    %c0_226 = arith.constant 0 : index
    %c512_227 = arith.constant 512 : index
    %668 = vector.load %arg17[%c5_225, %c0_226, %c512_227] : memref<8x8x1024xf32, #tpu.memory_space<vmem>>, vector<1x8x512xf32>
    %669 = vector.shape_cast %668 : vector<1x8x512xf32> to vector<8x512xf32>
    %cst_228 = arith.constant dense<0.000000e+00> : vector<8x512xf32>
    %670 = tpu.matmul %657, %534, %cst_228 {dimension_numbers = #tpu.dot_dimension_numbers<[1], [0], [0], [1], [0, 0, 1, 1], [], []>} : vector<8x128xf32>, vector<128x512xf32>, vector<8x512xf32> -> vector<8x512xf32>
    %671 = arith.addf %669, %670 : vector<8x512xf32>
    %672 = vector.extract_strided_slice %667 {offsets = [0, 0], sizes = [8, 128], strides = [1, 1]} : vector<8x512xf32> to vector<8x128xf32>
    %673 = arith.negf %672 : vector<8x128xf32>
    %674 = math.exp %673 : vector<8x128xf32>
    %cst_229 = arith.constant 1.000000e+00 : f32
    %675 = vector.broadcast %cst_229 : f32 to vector<8x128xf32>
    %676 = arith.addf %675, %674 : vector<8x128xf32>
    %677 = arith.divf %675, %676 : vector<8x128xf32>
    %678 = vector.extract_strided_slice %667 {offsets = [0, 128], sizes = [8, 128], strides = [1, 1]} : vector<8x512xf32> to vector<8x128xf32>
    %679 = arith.negf %678 : vector<8x128xf32>
    %680 = math.exp %679 : vector<8x128xf32>
    %cst_230 = arith.constant 1.000000e+00 : f32
    %681 = vector.broadcast %cst_230 : f32 to vector<8x128xf32>
    %682 = arith.addf %681, %680 : vector<8x128xf32>
    %683 = arith.divf %681, %682 : vector<8x128xf32>
    %684 = vector.extract_strided_slice %667 {offsets = [0, 256], sizes = [8, 128], strides = [1, 1]} : vector<8x512xf32> to vector<8x128xf32>
    %685 = math.tanh %684 : vector<8x128xf32>
    %686 = vector.extract_strided_slice %667 {offsets = [0, 384], sizes = [8, 128], strides = [1, 1]} : vector<8x512xf32> to vector<8x128xf32>
    %687 = arith.negf %686 : vector<8x128xf32>
    %688 = math.exp %687 : vector<8x128xf32>
    %cst_231 = arith.constant 1.000000e+00 : f32
    %689 = vector.broadcast %cst_231 : f32 to vector<8x128xf32>
    %690 = arith.addf %689, %688 : vector<8x128xf32>
    %691 = arith.divf %689, %690 : vector<8x128xf32>
    %692 = arith.mulf %683, %630 : vector<8x128xf32>
    %693 = arith.mulf %677, %685 : vector<8x128xf32>
    %694 = arith.addf %692, %693 : vector<8x128xf32>
    %695 = math.tanh %694 : vector<8x128xf32>
    %696 = arith.mulf %691, %695 : vector<8x128xf32>
    %697 = vector.extract_strided_slice %671 {offsets = [0, 0], sizes = [8, 128], strides = [1, 1]} : vector<8x512xf32> to vector<8x128xf32>
    %698 = arith.negf %697 : vector<8x128xf32>
    %699 = math.exp %698 : vector<8x128xf32>
    %cst_232 = arith.constant 1.000000e+00 : f32
    %700 = vector.broadcast %cst_232 : f32 to vector<8x128xf32>
    %701 = arith.addf %700, %699 : vector<8x128xf32>
    %702 = arith.divf %700, %701 : vector<8x128xf32>
    %703 = vector.extract_strided_slice %671 {offsets = [0, 128], sizes = [8, 128], strides = [1, 1]} : vector<8x512xf32> to vector<8x128xf32>
    %704 = arith.negf %703 : vector<8x128xf32>
    %705 = math.exp %704 : vector<8x128xf32>
    %cst_233 = arith.constant 1.000000e+00 : f32
    %706 = vector.broadcast %cst_233 : f32 to vector<8x128xf32>
    %707 = arith.addf %706, %705 : vector<8x128xf32>
    %708 = arith.divf %706, %707 : vector<8x128xf32>
    %709 = vector.extract_strided_slice %671 {offsets = [0, 256], sizes = [8, 128], strides = [1, 1]} : vector<8x512xf32> to vector<8x128xf32>
    %710 = math.tanh %709 : vector<8x128xf32>
    %711 = vector.extract_strided_slice %671 {offsets = [0, 384], sizes = [8, 128], strides = [1, 1]} : vector<8x512xf32> to vector<8x128xf32>
    %712 = arith.negf %711 : vector<8x128xf32>
    %713 = math.exp %712 : vector<8x128xf32>
    %cst_234 = arith.constant 1.000000e+00 : f32
    %714 = vector.broadcast %cst_234 : f32 to vector<8x128xf32>
    %715 = arith.addf %714, %713 : vector<8x128xf32>
    %716 = arith.divf %714, %715 : vector<8x128xf32>
    %717 = arith.mulf %708, %655 : vector<8x128xf32>
    %718 = arith.mulf %702, %710 : vector<8x128xf32>
    %719 = arith.addf %717, %718 : vector<8x128xf32>
    %720 = math.tanh %719 : vector<8x128xf32>
    %721 = arith.mulf %716, %720 : vector<8x128xf32>
    %c2_235 = arith.constant 2 : index
    %c0_236 = arith.constant 0 : index
    %c0_237 = arith.constant 0 : index
    %722 = vector.load %arg19[%c2_235, %c0_236, %c0_237] : memref<8x8x256xf32, #tpu.memory_space<vmem>>, vector<1x8x128xf32>
    %723 = vector.shape_cast %722 : vector<1x8x128xf32> to vector<8x128xf32>
    %724 = vector.shape_cast %696 : vector<8x128xf32> to vector<1x8x128xf32>
    tpu.vector_store %arg19[%c2_235, %c0_236, %c0_237], %724 {strides = array<i32>} : memref<8x8x256xf32, #tpu.memory_space<vmem>>, vector<1x8x128xf32>,
    %c5_238 = arith.constant 5 : index
    %c0_239 = arith.constant 0 : index
    %c128_240 = arith.constant 128 : index
    %725 = vector.load %arg19[%c5_238, %c0_239, %c128_240] : memref<8x8x256xf32, #tpu.memory_space<vmem>>, vector<1x8x128xf32>
    %726 = vector.shape_cast %725 : vector<1x8x128xf32> to vector<8x128xf32>
    %727 = vector.shape_cast %721 : vector<8x128xf32> to vector<1x8x128xf32>
    tpu.vector_store %arg19[%c5_238, %c0_239, %c128_240], %727 {strides = array<i32>} : memref<8x8x256xf32, #tpu.memory_space<vmem>>, vector<1x8x128xf32>,
    %c3_241 = arith.constant 3 : index
    %c0_242 = arith.constant 0 : index
    %c0_243 = arith.constant 0 : index
    %728 = vector.load %arg17[%c3_241, %c0_242, %c0_243] : memref<8x8x1024xf32, #tpu.memory_space<vmem>>, vector<1x8x512xf32>
    %729 = vector.shape_cast %728 : vector<1x8x512xf32> to vector<8x512xf32>
    %cst_244 = arith.constant dense<0.000000e+00> : vector<8x512xf32>
    %730 = tpu.matmul %696, %533, %cst_244 {dimension_numbers = #tpu.dot_dimension_numbers<[1], [0], [0], [1], [0, 0, 1, 1], [], []>} : vector<8x128xf32>, vector<128x512xf32>, vector<8x512xf32> -> vector<8x512xf32>
    %731 = arith.addf %729, %730 : vector<8x512xf32>
    %c4_245 = arith.constant 4 : index
    %c0_246 = arith.constant 0 : index
    %c512_247 = arith.constant 512 : index
    %732 = vector.load %arg17[%c4_245, %c0_246, %c512_247] : memref<8x8x1024xf32, #tpu.memory_space<vmem>>, vector<1x8x512xf32>
    %733 = vector.shape_cast %732 : vector<1x8x512xf32> to vector<8x512xf32>
    %cst_248 = arith.constant dense<0.000000e+00> : vector<8x512xf32>
    %734 = tpu.matmul %721, %534, %cst_248 {dimension_numbers = #tpu.dot_dimension_numbers<[1], [0], [0], [1], [0, 0, 1, 1], [], []>} : vector<8x128xf32>, vector<128x512xf32>, vector<8x512xf32> -> vector<8x512xf32>
    %735 = arith.addf %733, %734 : vector<8x512xf32>
    %736 = vector.extract_strided_slice %731 {offsets = [0, 0], sizes = [8, 128], strides = [1, 1]} : vector<8x512xf32> to vector<8x128xf32>
    %737 = arith.negf %736 : vector<8x128xf32>
    %738 = math.exp %737 : vector<8x128xf32>
    %cst_249 = arith.constant 1.000000e+00 : f32
    %739 = vector.broadcast %cst_249 : f32 to vector<8x128xf32>
    %740 = arith.addf %739, %738 : vector<8x128xf32>
    %741 = arith.divf %739, %740 : vector<8x128xf32>
    %742 = vector.extract_strided_slice %731 {offsets = [0, 128], sizes = [8, 128], strides = [1, 1]} : vector<8x512xf32> to vector<8x128xf32>
    %743 = arith.negf %742 : vector<8x128xf32>
    %744 = math.exp %743 : vector<8x128xf32>
    %cst_250 = arith.constant 1.000000e+00 : f32
    %745 = vector.broadcast %cst_250 : f32 to vector<8x128xf32>
    %746 = arith.addf %745, %744 : vector<8x128xf32>
    %747 = arith.divf %745, %746 : vector<8x128xf32>
    %748 = vector.extract_strided_slice %731 {offsets = [0, 256], sizes = [8, 128], strides = [1, 1]} : vector<8x512xf32> to vector<8x128xf32>
    %749 = math.tanh %748 : vector<8x128xf32>
    %750 = vector.extract_strided_slice %731 {offsets = [0, 384], sizes = [8, 128], strides = [1, 1]} : vector<8x512xf32> to vector<8x128xf32>
    %751 = arith.negf %750 : vector<8x128xf32>
    %752 = math.exp %751 : vector<8x128xf32>
    %cst_251 = arith.constant 1.000000e+00 : f32
    %753 = vector.broadcast %cst_251 : f32 to vector<8x128xf32>
    %754 = arith.addf %753, %752 : vector<8x128xf32>
    %755 = arith.divf %753, %754 : vector<8x128xf32>
    %756 = arith.mulf %747, %694 : vector<8x128xf32>
    %757 = arith.mulf %741, %749 : vector<8x128xf32>
    %758 = arith.addf %756, %757 : vector<8x128xf32>
    %759 = math.tanh %758 : vector<8x128xf32>
    %760 = arith.mulf %755, %759 : vector<8x128xf32>
    %761 = vector.extract_strided_slice %735 {offsets = [0, 0], sizes = [8, 128], strides = [1, 1]} : vector<8x512xf32> to vector<8x128xf32>
    %762 = arith.negf %761 : vector<8x128xf32>
    %763 = math.exp %762 : vector<8x128xf32>
    %cst_252 = arith.constant 1.000000e+00 : f32
    %764 = vector.broadcast %cst_252 : f32 to vector<8x128xf32>
    %765 = arith.addf %764, %763 : vector<8x128xf32>
    %766 = arith.divf %764, %765 : vector<8x128xf32>
    %767 = vector.extract_strided_slice %735 {offsets = [0, 128], sizes = [8, 128], strides = [1, 1]} : vector<8x512xf32> to vector<8x128xf32>
    %768 = arith.negf %767 : vector<8x128xf32>
    %769 = math.exp %768 : vector<8x128xf32>
    %cst_253 = arith.constant 1.000000e+00 : f32
    %770 = vector.broadcast %cst_253 : f32 to vector<8x128xf32>
    %771 = arith.addf %770, %769 : vector<8x128xf32>
    %772 = arith.divf %770, %771 : vector<8x128xf32>
    %773 = vector.extract_strided_slice %735 {offsets = [0, 256], sizes = [8, 128], strides = [1, 1]} : vector<8x512xf32> to vector<8x128xf32>
    %774 = math.tanh %773 : vector<8x128xf32>
    %775 = vector.extract_strided_slice %735 {offsets = [0, 384], sizes = [8, 128], strides = [1, 1]} : vector<8x512xf32> to vector<8x128xf32>
    %776 = arith.negf %775 : vector<8x128xf32>
    %777 = math.exp %776 : vector<8x128xf32>
    %cst_254 = arith.constant 1.000000e+00 : f32
    %778 = vector.broadcast %cst_254 : f32 to vector<8x128xf32>
    %779 = arith.addf %778, %777 : vector<8x128xf32>
    %780 = arith.divf %778, %779 : vector<8x128xf32>
    %781 = arith.mulf %772, %719 : vector<8x128xf32>
    %782 = arith.mulf %766, %774 : vector<8x128xf32>
    %783 = arith.addf %781, %782 : vector<8x128xf32>
    %784 = math.tanh %783 : vector<8x128xf32>
    %785 = arith.mulf %780, %784 : vector<8x128xf32>
    %c3_255 = arith.constant 3 : index
    %c0_256 = arith.constant 0 : index
    %c0_257 = arith.constant 0 : index
    %786 = vector.load %arg19[%c3_255, %c0_256, %c0_257] : memref<8x8x256xf32, #tpu.memory_space<vmem>>, vector<1x8x128xf32>
    %787 = vector.shape_cast %786 : vector<1x8x128xf32> to vector<8x128xf32>
    %788 = vector.shape_cast %760 : vector<8x128xf32> to vector<1x8x128xf32>
    tpu.vector_store %arg19[%c3_255, %c0_256, %c0_257], %788 {strides = array<i32>} : memref<8x8x256xf32, #tpu.memory_space<vmem>>, vector<1x8x128xf32>,
    %c4_258 = arith.constant 4 : index
    %c0_259 = arith.constant 0 : index
    %c128_260 = arith.constant 128 : index
    %789 = vector.load %arg19[%c4_258, %c0_259, %c128_260] : memref<8x8x256xf32, #tpu.memory_space<vmem>>, vector<1x8x128xf32>
    %790 = vector.shape_cast %789 : vector<1x8x128xf32> to vector<8x128xf32>
    %791 = vector.shape_cast %785 : vector<8x128xf32> to vector<1x8x128xf32>
    tpu.vector_store %arg19[%c4_258, %c0_259, %c128_260], %791 {strides = array<i32>} : memref<8x8x256xf32, #tpu.memory_space<vmem>>, vector<1x8x128xf32>,
    %c4_261 = arith.constant 4 : index
    %c0_262 = arith.constant 0 : index
    %c0_263 = arith.constant 0 : index
    %792 = vector.load %arg17[%c4_261, %c0_262, %c0_263] : memref<8x8x1024xf32, #tpu.memory_space<vmem>>, vector<1x8x512xf32>
    %793 = vector.shape_cast %792 : vector<1x8x512xf32> to vector<8x512xf32>
    %cst_264 = arith.constant dense<0.000000e+00> : vector<8x512xf32>
    %794 = tpu.matmul %760, %533, %cst_264 {dimension_numbers = #tpu.dot_dimension_numbers<[1], [0], [0], [1], [0, 0, 1, 1], [], []>} : vector<8x128xf32>, vector<128x512xf32>, vector<8x512xf32> -> vector<8x512xf32>
    %795 = arith.addf %793, %794 : vector<8x512xf32>
    %c3_265 = arith.constant 3 : index
    %c0_266 = arith.constant 0 : index
    %c512_267 = arith.constant 512 : index
    %796 = vector.load %arg17[%c3_265, %c0_266, %c512_267] : memref<8x8x1024xf32, #tpu.memory_space<vmem>>, vector<1x8x512xf32>
    %797 = vector.shape_cast %796 : vector<1x8x512xf32> to vector<8x512xf32>
    %cst_268 = arith.constant dense<0.000000e+00> : vector<8x512xf32>
    %798 = tpu.matmul %785, %534, %cst_268 {dimension_numbers = #tpu.dot_dimension_numbers<[1], [0], [0], [1], [0, 0, 1, 1], [], []>} : vector<8x128xf32>, vector<128x512xf32>, vector<8x512xf32> -> vector<8x512xf32>
    %799 = arith.addf %797, %798 : vector<8x512xf32>
    %800 = vector.extract_strided_slice %795 {offsets = [0, 0], sizes = [8, 128], strides = [1, 1]} : vector<8x512xf32> to vector<8x128xf32>
    %801 = arith.negf %800 : vector<8x128xf32>
    %802 = math.exp %801 : vector<8x128xf32>
    %cst_269 = arith.constant 1.000000e+00 : f32
    %803 = vector.broadcast %cst_269 : f32 to vector<8x128xf32>
    %804 = arith.addf %803, %802 : vector<8x128xf32>
    %805 = arith.divf %803, %804 : vector<8x128xf32>
    %806 = vector.extract_strided_slice %795 {offsets = [0, 128], sizes = [8, 128], strides = [1, 1]} : vector<8x512xf32> to vector<8x128xf32>
    %807 = arith.negf %806 : vector<8x128xf32>
    %808 = math.exp %807 : vector<8x128xf32>
    %cst_270 = arith.constant 1.000000e+00 : f32
    %809 = vector.broadcast %cst_270 : f32 to vector<8x128xf32>
    %810 = arith.addf %809, %808 : vector<8x128xf32>
    %811 = arith.divf %809, %810 : vector<8x128xf32>
    %812 = vector.extract_strided_slice %795 {offsets = [0, 256], sizes = [8, 128], strides = [1, 1]} : vector<8x512xf32> to vector<8x128xf32>
    %813 = math.tanh %812 : vector<8x128xf32>
    %814 = vector.extract_strided_slice %795 {offsets = [0, 384], sizes = [8, 128], strides = [1, 1]} : vector<8x512xf32> to vector<8x128xf32>
    %815 = arith.negf %814 : vector<8x128xf32>
    %816 = math.exp %815 : vector<8x128xf32>
    %cst_271 = arith.constant 1.000000e+00 : f32
    %817 = vector.broadcast %cst_271 : f32 to vector<8x128xf32>
    %818 = arith.addf %817, %816 : vector<8x128xf32>
    %819 = arith.divf %817, %818 : vector<8x128xf32>
    %820 = arith.mulf %811, %758 : vector<8x128xf32>
    %821 = arith.mulf %805, %813 : vector<8x128xf32>
    %822 = arith.addf %820, %821 : vector<8x128xf32>
    %823 = math.tanh %822 : vector<8x128xf32>
    %824 = arith.mulf %819, %823 : vector<8x128xf32>
    %825 = vector.extract_strided_slice %799 {offsets = [0, 0], sizes = [8, 128], strides = [1, 1]} : vector<8x512xf32> to vector<8x128xf32>
    %826 = arith.negf %825 : vector<8x128xf32>
    %827 = math.exp %826 : vector<8x128xf32>
    %cst_272 = arith.constant 1.000000e+00 : f32
    %828 = vector.broadcast %cst_272 : f32 to vector<8x128xf32>
    %829 = arith.addf %828, %827 : vector<8x128xf32>
    %830 = arith.divf %828, %829 : vector<8x128xf32>
    %831 = vector.extract_strided_slice %799 {offsets = [0, 128], sizes = [8, 128], strides = [1, 1]} : vector<8x512xf32> to vector<8x128xf32>
    %832 = arith.negf %831 : vector<8x128xf32>
    %833 = math.exp %832 : vector<8x128xf32>
    %cst_273 = arith.constant 1.000000e+00 : f32
    %834 = vector.broadcast %cst_273 : f32 to vector<8x128xf32>
    %835 = arith.addf %834, %833 : vector<8x128xf32>
    %836 = arith.divf %834, %835 : vector<8x128xf32>
    %837 = vector.extract_strided_slice %799 {offsets = [0, 256], sizes = [8, 128], strides = [1, 1]} : vector<8x512xf32> to vector<8x128xf32>
    %838 = math.tanh %837 : vector<8x128xf32>
    %839 = vector.extract_strided_slice %799 {offsets = [0, 384], sizes = [8, 128], strides = [1, 1]} : vector<8x512xf32> to vector<8x128xf32>
    %840 = arith.negf %839 : vector<8x128xf32>
    %841 = math.exp %840 : vector<8x128xf32>
    %cst_274 = arith.constant 1.000000e+00 : f32
    %842 = vector.broadcast %cst_274 : f32 to vector<8x128xf32>
    %843 = arith.addf %842, %841 : vector<8x128xf32>
    %844 = arith.divf %842, %843 : vector<8x128xf32>
    %845 = arith.mulf %836, %783 : vector<8x128xf32>
    %846 = arith.mulf %830, %838 : vector<8x128xf32>
    %847 = arith.addf %845, %846 : vector<8x128xf32>
    %848 = math.tanh %847 : vector<8x128xf32>
    %849 = arith.mulf %844, %848 : vector<8x128xf32>
    %c4_275 = arith.constant 4 : index
    %c0_276 = arith.constant 0 : index
    %c0_277 = arith.constant 0 : index
    %850 = vector.load %arg19[%c4_275, %c0_276, %c0_277] : memref<8x8x256xf32, #tpu.memory_space<vmem>>, vector<1x8x128xf32>
    %851 = vector.shape_cast %850 : vector<1x8x128xf32> to vector<8x128xf32>
    %852 = vector.shape_cast %824 : vector<8x128xf32> to vector<1x8x128xf32>
    tpu.vector_store %arg19[%c4_275, %c0_276, %c0_277], %852 {strides = array<i32>} : memref<8x8x256xf32, #tpu.memory_space<vmem>>, vector<1x8x128xf32>,
    %c3_278 = arith.constant 3 : index
    %c0_279 = arith.constant 0 : index
    %c128_280 = arith.constant 128 : index
    %853 = vector.load %arg19[%c3_278, %c0_279, %c128_280] : memref<8x8x256xf32, #tpu.memory_space<vmem>>, vector<1x8x128xf32>
    %854 = vector.shape_cast %853 : vector<1x8x128xf32> to vector<8x128xf32>
    %855 = vector.shape_cast %849 : vector<8x128xf32> to vector<1x8x128xf32>
    tpu.vector_store %arg19[%c3_278, %c0_279, %c128_280], %855 {strides = array<i32>} : memref<8x8x256xf32, #tpu.memory_space<vmem>>, vector<1x8x128xf32>,
    %c5_281 = arith.constant 5 : index
    %c0_282 = arith.constant 0 : index
    %c0_283 = arith.constant 0 : index
    %856 = vector.load %arg17[%c5_281, %c0_282, %c0_283] : memref<8x8x1024xf32, #tpu.memory_space<vmem>>, vector<1x8x512xf32>
    %857 = vector.shape_cast %856 : vector<1x8x512xf32> to vector<8x512xf32>
    %cst_284 = arith.constant dense<0.000000e+00> : vector<8x512xf32>
    %858 = tpu.matmul %824, %533, %cst_284 {dimension_numbers = #tpu.dot_dimension_numbers<[1], [0], [0], [1], [0, 0, 1, 1], [], []>} : vector<8x128xf32>, vector<128x512xf32>, vector<8x512xf32> -> vector<8x512xf32>
    %859 = arith.addf %857, %858 : vector<8x512xf32>
    %c2_285 = arith.constant 2 : index
    %c0_286 = arith.constant 0 : index
    %c512_287 = arith.constant 512 : index
    %860 = vector.load %arg17[%c2_285, %c0_286, %c512_287] : memref<8x8x1024xf32, #tpu.memory_space<vmem>>, vector<1x8x512xf32>
    %861 = vector.shape_cast %860 : vector<1x8x512xf32> to vector<8x512xf32>
    %cst_288 = arith.constant dense<0.000000e+00> : vector<8x512xf32>
    %862 = tpu.matmul %849, %534, %cst_288 {dimension_numbers = #tpu.dot_dimension_numbers<[1], [0], [0], [1], [0, 0, 1, 1], [], []>} : vector<8x128xf32>, vector<128x512xf32>, vector<8x512xf32> -> vector<8x512xf32>
    %863 = arith.addf %861, %862 : vector<8x512xf32>
    %864 = vector.extract_strided_slice %859 {offsets = [0, 0], sizes = [8, 128], strides = [1, 1]} : vector<8x512xf32> to vector<8x128xf32>
    %865 = arith.negf %864 : vector<8x128xf32>
    %866 = math.exp %865 : vector<8x128xf32>
    %cst_289 = arith.constant 1.000000e+00 : f32
    %867 = vector.broadcast %cst_289 : f32 to vector<8x128xf32>
    %868 = arith.addf %867, %866 : vector<8x128xf32>
    %869 = arith.divf %867, %868 : vector<8x128xf32>
    %870 = vector.extract_strided_slice %859 {offsets = [0, 128], sizes = [8, 128], strides = [1, 1]} : vector<8x512xf32> to vector<8x128xf32>
    %871 = arith.negf %870 : vector<8x128xf32>
    %872 = math.exp %871 : vector<8x128xf32>
    %cst_290 = arith.constant 1.000000e+00 : f32
    %873 = vector.broadcast %cst_290 : f32 to vector<8x128xf32>
    %874 = arith.addf %873, %872 : vector<8x128xf32>
    %875 = arith.divf %873, %874 : vector<8x128xf32>
    %876 = vector.extract_strided_slice %859 {offsets = [0, 256], sizes = [8, 128], strides = [1, 1]} : vector<8x512xf32> to vector<8x128xf32>
    %877 = math.tanh %876 : vector<8x128xf32>
    %878 = vector.extract_strided_slice %859 {offsets = [0, 384], sizes = [8, 128], strides = [1, 1]} : vector<8x512xf32> to vector<8x128xf32>
    %879 = arith.negf %878 : vector<8x128xf32>
    %880 = math.exp %879 : vector<8x128xf32>
    %cst_291 = arith.constant 1.000000e+00 : f32
    %881 = vector.broadcast %cst_291 : f32 to vector<8x128xf32>
    %882 = arith.addf %881, %880 : vector<8x128xf32>
    %883 = arith.divf %881, %882 : vector<8x128xf32>
    %884 = arith.mulf %875, %822 : vector<8x128xf32>
    %885 = arith.mulf %869, %877 : vector<8x128xf32>
    %886 = arith.addf %884, %885 : vector<8x128xf32>
    %887 = math.tanh %886 : vector<8x128xf32>
    %888 = arith.mulf %883, %887 : vector<8x128xf32>
    %889 = vector.extract_strided_slice %863 {offsets = [0, 0], sizes = [8, 128], strides = [1, 1]} : vector<8x512xf32> to vector<8x128xf32>
    %890 = arith.negf %889 : vector<8x128xf32>
    %891 = math.exp %890 : vector<8x128xf32>
    %cst_292 = arith.constant 1.000000e+00 : f32
    %892 = vector.broadcast %cst_292 : f32 to vector<8x128xf32>
    %893 = arith.addf %892, %891 : vector<8x128xf32>
    %894 = arith.divf %892, %893 : vector<8x128xf32>
    %895 = vector.extract_strided_slice %863 {offsets = [0, 128], sizes = [8, 128], strides = [1, 1]} : vector<8x512xf32> to vector<8x128xf32>
    %896 = arith.negf %895 : vector<8x128xf32>
    %897 = math.exp %896 : vector<8x128xf32>
    %cst_293 = arith.constant 1.000000e+00 : f32
    %898 = vector.broadcast %cst_293 : f32 to vector<8x128xf32>
    %899 = arith.addf %898, %897 : vector<8x128xf32>
    %900 = arith.divf %898, %899 : vector<8x128xf32>
    %901 = vector.extract_strided_slice %863 {offsets = [0, 256], sizes = [8, 128], strides = [1, 1]} : vector<8x512xf32> to vector<8x128xf32>
    %902 = math.tanh %901 : vector<8x128xf32>
    %903 = vector.extract_strided_slice %863 {offsets = [0, 384], sizes = [8, 128], strides = [1, 1]} : vector<8x512xf32> to vector<8x128xf32>
    %904 = arith.negf %903 : vector<8x128xf32>
    %905 = math.exp %904 : vector<8x128xf32>
    %cst_294 = arith.constant 1.000000e+00 : f32
    %906 = vector.broadcast %cst_294 : f32 to vector<8x128xf32>
    %907 = arith.addf %906, %905 : vector<8x128xf32>
    %908 = arith.divf %906, %907 : vector<8x128xf32>
    %909 = arith.mulf %900, %847 : vector<8x128xf32>
    %910 = arith.mulf %894, %902 : vector<8x128xf32>
    %911 = arith.addf %909, %910 : vector<8x128xf32>
    %912 = math.tanh %911 : vector<8x128xf32>
    %913 = arith.mulf %908, %912 : vector<8x128xf32>
    %c5_295 = arith.constant 5 : index
    %c0_296 = arith.constant 0 : index
    %c0_297 = arith.constant 0 : index
    %914 = vector.load %arg19[%c5_295, %c0_296, %c0_297] : memref<8x8x256xf32, #tpu.memory_space<vmem>>, vector<1x8x128xf32>
    %915 = vector.shape_cast %914 : vector<1x8x128xf32> to vector<8x128xf32>
    %916 = vector.shape_cast %888 : vector<8x128xf32> to vector<1x8x128xf32>
    tpu.vector_store %arg19[%c5_295, %c0_296, %c0_297], %916 {strides = array<i32>} : memref<8x8x256xf32, #tpu.memory_space<vmem>>, vector<1x8x128xf32>,
    %c2_298 = arith.constant 2 : index
    %c0_299 = arith.constant 0 : index
    %c128_300 = arith.constant 128 : index
    %917 = vector.load %arg19[%c2_298, %c0_299, %c128_300] : memref<8x8x256xf32, #tpu.memory_space<vmem>>, vector<1x8x128xf32>
    %918 = vector.shape_cast %917 : vector<1x8x128xf32> to vector<8x128xf32>
    %919 = vector.shape_cast %913 : vector<8x128xf32> to vector<1x8x128xf32>
    tpu.vector_store %arg19[%c2_298, %c0_299, %c128_300], %919 {strides = array<i32>} : memref<8x8x256xf32, #tpu.memory_space<vmem>>, vector<1x8x128xf32>,
    %c6_301 = arith.constant 6 : index
    %c0_302 = arith.constant 0 : index
    %c0_303 = arith.constant 0 : index
    %920 = vector.load %arg17[%c6_301, %c0_302, %c0_303] : memref<8x8x1024xf32, #tpu.memory_space<vmem>>, vector<1x8x512xf32>
    %921 = vector.shape_cast %920 : vector<1x8x512xf32> to vector<8x512xf32>
    %cst_304 = arith.constant dense<0.000000e+00> : vector<8x512xf32>
    %922 = tpu.matmul %888, %533, %cst_304 {dimension_numbers = #tpu.dot_dimension_numbers<[1], [0], [0], [1], [0, 0, 1, 1], [], []>} : vector<8x128xf32>, vector<128x512xf32>, vector<8x512xf32> -> vector<8x512xf32>
    %923 = arith.addf %921, %922 : vector<8x512xf32>
    %c1_305 = arith.constant 1 : index
    %c0_306 = arith.constant 0 : index
    %c512_307 = arith.constant 512 : index
    %924 = vector.load %arg17[%c1_305, %c0_306, %c512_307] : memref<8x8x1024xf32, #tpu.memory_space<vmem>>, vector<1x8x512xf32>
    %925 = vector.shape_cast %924 : vector<1x8x512xf32> to vector<8x512xf32>
    %cst_308 = arith.constant dense<0.000000e+00> : vector<8x512xf32>
    %926 = tpu.matmul %913, %534, %cst_308 {dimension_numbers = #tpu.dot_dimension_numbers<[1], [0], [0], [1], [0, 0, 1, 1], [], []>} : vector<8x128xf32>, vector<128x512xf32>, vector<8x512xf32> -> vector<8x512xf32>
    %927 = arith.addf %925, %926 : vector<8x512xf32>
    %928 = vector.extract_strided_slice %923 {offsets = [0, 0], sizes = [8, 128], strides = [1, 1]} : vector<8x512xf32> to vector<8x128xf32>
    %929 = arith.negf %928 : vector<8x128xf32>
    %930 = math.exp %929 : vector<8x128xf32>
    %cst_309 = arith.constant 1.000000e+00 : f32
    %931 = vector.broadcast %cst_309 : f32 to vector<8x128xf32>
    %932 = arith.addf %931, %930 : vector<8x128xf32>
    %933 = arith.divf %931, %932 : vector<8x128xf32>
    %934 = vector.extract_strided_slice %923 {offsets = [0, 128], sizes = [8, 128], strides = [1, 1]} : vector<8x512xf32> to vector<8x128xf32>
    %935 = arith.negf %934 : vector<8x128xf32>
    %936 = math.exp %935 : vector<8x128xf32>
    %cst_310 = arith.constant 1.000000e+00 : f32
    %937 = vector.broadcast %cst_310 : f32 to vector<8x128xf32>
    %938 = arith.addf %937, %936 : vector<8x128xf32>
    %939 = arith.divf %937, %938 : vector<8x128xf32>
    %940 = vector.extract_strided_slice %923 {offsets = [0, 256], sizes = [8, 128], strides = [1, 1]} : vector<8x512xf32> to vector<8x128xf32>
    %941 = math.tanh %940 : vector<8x128xf32>
    %942 = vector.extract_strided_slice %923 {offsets = [0, 384], sizes = [8, 128], strides = [1, 1]} : vector<8x512xf32> to vector<8x128xf32>
    %943 = arith.negf %942 : vector<8x128xf32>
    %944 = math.exp %943 : vector<8x128xf32>
    %cst_311 = arith.constant 1.000000e+00 : f32
    %945 = vector.broadcast %cst_311 : f32 to vector<8x128xf32>
    %946 = arith.addf %945, %944 : vector<8x128xf32>
    %947 = arith.divf %945, %946 : vector<8x128xf32>
    %948 = arith.mulf %939, %886 : vector<8x128xf32>
    %949 = arith.mulf %933, %941 : vector<8x128xf32>
    %950 = arith.addf %948, %949 : vector<8x128xf32>
    %951 = math.tanh %950 : vector<8x128xf32>
    %952 = arith.mulf %947, %951 : vector<8x128xf32>
    %953 = vector.extract_strided_slice %927 {offsets = [0, 0], sizes = [8, 128], strides = [1, 1]} : vector<8x512xf32> to vector<8x128xf32>
    %954 = arith.negf %953 : vector<8x128xf32>
    %955 = math.exp %954 : vector<8x128xf32>
    %cst_312 = arith.constant 1.000000e+00 : f32
    %956 = vector.broadcast %cst_312 : f32 to vector<8x128xf32>
    %957 = arith.addf %956, %955 : vector<8x128xf32>
    %958 = arith.divf %956, %957 : vector<8x128xf32>
    %959 = vector.extract_strided_slice %927 {offsets = [0, 128], sizes = [8, 128], strides = [1, 1]} : vector<8x512xf32> to vector<8x128xf32>
    %960 = arith.negf %959 : vector<8x128xf32>
    %961 = math.exp %960 : vector<8x128xf32>
    %cst_313 = arith.constant 1.000000e+00 : f32
    %962 = vector.broadcast %cst_313 : f32 to vector<8x128xf32>
    %963 = arith.addf %962, %961 : vector<8x128xf32>
    %964 = arith.divf %962, %963 : vector<8x128xf32>
    %965 = vector.extract_strided_slice %927 {offsets = [0, 256], sizes = [8, 128], strides = [1, 1]} : vector<8x512xf32> to vector<8x128xf32>
    %966 = math.tanh %965 : vector<8x128xf32>
    %967 = vector.extract_strided_slice %927 {offsets = [0, 384], sizes = [8, 128], strides = [1, 1]} : vector<8x512xf32> to vector<8x128xf32>
    %968 = arith.negf %967 : vector<8x128xf32>
    %969 = math.exp %968 : vector<8x128xf32>
    %cst_314 = arith.constant 1.000000e+00 : f32
    %970 = vector.broadcast %cst_314 : f32 to vector<8x128xf32>
    %971 = arith.addf %970, %969 : vector<8x128xf32>
    %972 = arith.divf %970, %971 : vector<8x128xf32>
    %973 = arith.mulf %964, %911 : vector<8x128xf32>
    %974 = arith.mulf %958, %966 : vector<8x128xf32>
    %975 = arith.addf %973, %974 : vector<8x128xf32>
    %976 = math.tanh %975 : vector<8x128xf32>
    %977 = arith.mulf %972, %976 : vector<8x128xf32>
    %c6_315 = arith.constant 6 : index
    %c0_316 = arith.constant 0 : index
    %c0_317 = arith.constant 0 : index
    %978 = vector.load %arg19[%c6_315, %c0_316, %c0_317] : memref<8x8x256xf32, #tpu.memory_space<vmem>>, vector<1x8x128xf32>
    %979 = vector.shape_cast %978 : vector<1x8x128xf32> to vector<8x128xf32>
    %980 = vector.shape_cast %952 : vector<8x128xf32> to vector<1x8x128xf32>
    tpu.vector_store %arg19[%c6_315, %c0_316, %c0_317], %980 {strides = array<i32>} : memref<8x8x256xf32, #tpu.memory_space<vmem>>, vector<1x8x128xf32>,
    %c1_318 = arith.constant 1 : index
    %c0_319 = arith.constant 0 : index
    %c128_320 = arith.constant 128 : index
    %981 = vector.load %arg19[%c1_318, %c0_319, %c128_320] : memref<8x8x256xf32, #tpu.memory_space<vmem>>, vector<1x8x128xf32>
    %982 = vector.shape_cast %981 : vector<1x8x128xf32> to vector<8x128xf32>
    %983 = vector.shape_cast %977 : vector<8x128xf32> to vector<1x8x128xf32>
    tpu.vector_store %arg19[%c1_318, %c0_319, %c128_320], %983 {strides = array<i32>} : memref<8x8x256xf32, #tpu.memory_space<vmem>>, vector<1x8x128xf32>,
    %c7_321 = arith.constant 7 : index
    %c0_322 = arith.constant 0 : index
    %c0_323 = arith.constant 0 : index
    %984 = vector.load %arg17[%c7_321, %c0_322, %c0_323] : memref<8x8x1024xf32, #tpu.memory_space<vmem>>, vector<1x8x512xf32>
    %985 = vector.shape_cast %984 : vector<1x8x512xf32> to vector<8x512xf32>
    %cst_324 = arith.constant dense<0.000000e+00> : vector<8x512xf32>
    %986 = tpu.matmul %952, %533, %cst_324 {dimension_numbers = #tpu.dot_dimension_numbers<[1], [0], [0], [1], [0, 0, 1, 1], [], []>} : vector<8x128xf32>, vector<128x512xf32>, vector<8x512xf32> -> vector<8x512xf32>
    %987 = arith.addf %985, %986 : vector<8x512xf32>
    %c0_325 = arith.constant 0 : index
    %c0_326 = arith.constant 0 : index
    %c512_327 = arith.constant 512 : index
    %988 = vector.load %arg17[%c0_325, %c0_326, %c512_327] : memref<8x8x1024xf32, #tpu.memory_space<vmem>>, vector<1x8x512xf32>
    %989 = vector.shape_cast %988 : vector<1x8x512xf32> to vector<8x512xf32>
    %cst_328 = arith.constant dense<0.000000e+00> : vector<8x512xf32>
    %990 = tpu.matmul %977, %534, %cst_328 {dimension_numbers = #tpu.dot_dimension_numbers<[1], [0], [0], [1], [0, 0, 1, 1], [], []>} : vector<8x128xf32>, vector<128x512xf32>, vector<8x512xf32> -> vector<8x512xf32>
    %991 = arith.addf %989, %990 : vector<8x512xf32>
    %992 = vector.extract_strided_slice %987 {offsets = [0, 0], sizes = [8, 128], strides = [1, 1]} : vector<8x512xf32> to vector<8x128xf32>
    %993 = arith.negf %992 : vector<8x128xf32>
    %994 = math.exp %993 : vector<8x128xf32>
    %cst_329 = arith.constant 1.000000e+00 : f32
    %995 = vector.broadcast %cst_329 : f32 to vector<8x128xf32>
    %996 = arith.addf %995, %994 : vector<8x128xf32>
    %997 = arith.divf %995, %996 : vector<8x128xf32>
    %998 = vector.extract_strided_slice %987 {offsets = [0, 128], sizes = [8, 128], strides = [1, 1]} : vector<8x512xf32> to vector<8x128xf32>
    %999 = arith.negf %998 : vector<8x128xf32>
    %1000 = math.exp %999 : vector<8x128xf32>
    %cst_330 = arith.constant 1.000000e+00 : f32
    %1001 = vector.broadcast %cst_330 : f32 to vector<8x128xf32>
    %1002 = arith.addf %1001, %1000 : vector<8x128xf32>
    %1003 = arith.divf %1001, %1002 : vector<8x128xf32>
    %1004 = vector.extract_strided_slice %987 {offsets = [0, 256], sizes = [8, 128], strides = [1, 1]} : vector<8x512xf32> to vector<8x128xf32>
    %1005 = math.tanh %1004 : vector<8x128xf32>
    %1006 = vector.extract_strided_slice %987 {offsets = [0, 384], sizes = [8, 128], strides = [1, 1]} : vector<8x512xf32> to vector<8x128xf32>
    %1007 = arith.negf %1006 : vector<8x128xf32>
    %1008 = math.exp %1007 : vector<8x128xf32>
    %cst_331 = arith.constant 1.000000e+00 : f32
    %1009 = vector.broadcast %cst_331 : f32 to vector<8x128xf32>
    %1010 = arith.addf %1009, %1008 : vector<8x128xf32>
    %1011 = arith.divf %1009, %1010 : vector<8x128xf32>
    %1012 = arith.mulf %1003, %950 : vector<8x128xf32>
    %1013 = arith.mulf %997, %1005 : vector<8x128xf32>
    %1014 = arith.addf %1012, %1013 : vector<8x128xf32>
    %1015 = math.tanh %1014 : vector<8x128xf32>
    %1016 = arith.mulf %1011, %1015 : vector<8x128xf32>
    %1017 = vector.extract_strided_slice %991 {offsets = [0, 0], sizes = [8, 128], strides = [1, 1]} : vector<8x512xf32> to vector<8x128xf32>
    %1018 = arith.negf %1017 : vector<8x128xf32>
    %1019 = math.exp %1018 : vector<8x128xf32>
    %cst_332 = arith.constant 1.000000e+00 : f32
    %1020 = vector.broadcast %cst_332 : f32 to vector<8x128xf32>
    %1021 = arith.addf %1020, %1019 : vector<8x128xf32>
    %1022 = arith.divf %1020, %1021 : vector<8x128xf32>
    %1023 = vector.extract_strided_slice %991 {offsets = [0, 128], sizes = [8, 128], strides = [1, 1]} : vector<8x512xf32> to vector<8x128xf32>
    %1024 = arith.negf %1023 : vector<8x128xf32>
    %1025 = math.exp %1024 : vector<8x128xf32>
    %cst_333 = arith.constant 1.000000e+00 : f32
    %1026 = vector.broadcast %cst_333 : f32 to vector<8x128xf32>
    %1027 = arith.addf %1026, %1025 : vector<8x128xf32>
    %1028 = arith.divf %1026, %1027 : vector<8x128xf32>
    %1029 = vector.extract_strided_slice %991 {offsets = [0, 256], sizes = [8, 128], strides = [1, 1]} : vector<8x512xf32> to vector<8x128xf32>
    %1030 = math.tanh %1029 : vector<8x128xf32>
    %1031 = vector.extract_strided_slice %991 {offsets = [0, 384], sizes = [8, 128], strides = [1, 1]} : vector<8x512xf32> to vector<8x128xf32>
    %1032 = arith.negf %1031 : vector<8x128xf32>
    %1033 = math.exp %1032 : vector<8x128xf32>
    %cst_334 = arith.constant 1.000000e+00 : f32
    %1034 = vector.broadcast %cst_334 : f32 to vector<8x128xf32>
    %1035 = arith.addf %1034, %1033 : vector<8x128xf32>
    %1036 = arith.divf %1034, %1035 : vector<8x128xf32>
    %1037 = arith.mulf %1028, %975 : vector<8x128xf32>
    %1038 = arith.mulf %1022, %1030 : vector<8x128xf32>
    %1039 = arith.addf %1037, %1038 : vector<8x128xf32>
    %1040 = math.tanh %1039 : vector<8x128xf32>
    %1041 = arith.mulf %1036, %1040 : vector<8x128xf32>
    %c7_335 = arith.constant 7 : index
    %c0_336 = arith.constant 0 : index
    %c0_337 = arith.constant 0 : index
    %1042 = vector.load %arg19[%c7_335, %c0_336, %c0_337] : memref<8x8x256xf32, #tpu.memory_space<vmem>>, vector<1x8x128xf32>
    %1043 = vector.shape_cast %1042 : vector<1x8x128xf32> to vector<8x128xf32>
    %1044 = vector.shape_cast %1016 : vector<8x128xf32> to vector<1x8x128xf32>
    tpu.vector_store %arg19[%c7_335, %c0_336, %c0_337], %1044 {strides = array<i32>} : memref<8x8x256xf32, #tpu.memory_space<vmem>>, vector<1x8x128xf32>,
    %c0_338 = arith.constant 0 : index
    %c0_339 = arith.constant 0 : index
    %c128_340 = arith.constant 128 : index
    %1045 = vector.load %arg19[%c0_338, %c0_339, %c128_340] : memref<8x8x256xf32, #tpu.memory_space<vmem>>, vector<1x8x128xf32>
    %1046 = vector.shape_cast %1045 : vector<1x8x128xf32> to vector<8x128xf32>
    %1047 = vector.shape_cast %1041 : vector<8x128xf32> to vector<1x8x128xf32>
    tpu.vector_store %arg19[%c0_338, %c0_339, %c128_340], %1047 {strides = array<i32>} : memref<8x8x256xf32, #tpu.memory_space<vmem>>, vector<1x8x128xf32>,
    %c0_341 = arith.constant 0 : index
    %c0_342 = arith.constant 0 : index
    %c0_343 = arith.constant 0 : index
    %1048 = vector.load %arg19[%c0_341, %c0_342, %c0_343] : memref<8x8x256xf32, #tpu.memory_space<vmem>>, vector<8x8x256xf32>
    %1049 = vector.shape_cast %1048 : vector<8x8x256xf32> to vector<64x256xf32>
    %c0_344 = arith.constant 0 : index
    %c0_345 = arith.constant 0 : index
    %1050 = vector.load %arg10[%c0_344, %c0_345] : memref<256x1xf32, #tpu.memory_space<vmem>>, vector<256x1xf32>
    %cst_346 = arith.constant dense<0.000000e+00> : vector<64x1xf32>
    %1051 = tpu.matmul %1049, %1050, %cst_346 {dimension_numbers = #tpu.dot_dimension_numbers<[1], [0], [0], [1], [0, 0, 1, 1], [], []>} : vector<64x256xf32>, vector<256x1xf32>, vector<64x1xf32> -> vector<64x1xf32>
    %c0_347 = arith.constant 0 : index
    %c0_348 = arith.constant 0 : index
    %1052 = vector.load %arg11[%c0_347, %c0_348] : memref<1x1xf32, #tpu.memory_space<vmem>>, vector<1x1xf32>
    %1053 = vector.broadcast %1052 : vector<1x1xf32> to vector<64x1xf32>
    %1054 = arith.addf %1051, %1053 : vector<64x1xf32>
    %1055 = math.tanh %1054 : vector<64x1xf32>
    %1056 = vector.shape_cast %1055 : vector<64x1xf32> to vector<8x8x1xf32>
    %cst_349 = arith.constant dense<0xFF800000> : vector<8x1xf32>
    %1057 = vector.multi_reduction <maximumf>, %1056, %cst_349 [0] : vector<8x8x1xf32> to vector<8x1xf32>
    %1058 = vector.shape_cast %1057 : vector<8x1xf32> to vector<1x8x1xf32>
    %1059 = vector.broadcast %1058 : vector<1x8x1xf32> to vector<8x8x1xf32>
    %1060 = arith.subf %1056, %1059 : vector<8x8x1xf32>
    %1061 = math.exp %1060 : vector<8x8x1xf32>
    %cst_350 = arith.constant dense<0.000000e+00> : vector<8x1xf32>
    %1062 = vector.multi_reduction <add>, %1061, %cst_350 [0] : vector<8x8x1xf32> to vector<8x1xf32>
    %1063 = vector.shape_cast %1062 : vector<8x1xf32> to vector<1x8x1xf32>
    %1064 = vector.broadcast %1063 : vector<1x8x1xf32> to vector<8x8x1xf32>
    %1065 = arith.divf %1061, %1064 : vector<8x8x1xf32>
    %1066 = vector.broadcast %1065 : vector<8x8x1xf32> to vector<8x8x256xf32>
    %1067 = arith.mulf %1066, %1048 : vector<8x8x256xf32>
    %cst_351 = arith.constant dense<0.000000e+00> : vector<8x256xf32>
    %1068 = vector.multi_reduction <add>, %1067, %cst_351 [0] : vector<8x8x256xf32> to vector<8x256xf32>
    %c0_352 = arith.constant 0 : index
    %c0_353 = arith.constant 0 : index
    %1069 = vector.load %arg12[%c0_352, %c0_353] : memref<256x128xf32, #tpu.memory_space<vmem>>, vector<256x128xf32>
    %cst_354 = arith.constant dense<0.000000e+00> : vector<8x128xf32>
    %1070 = tpu.matmul %1068, %1069, %cst_354 {dimension_numbers = #tpu.dot_dimension_numbers<[1], [0], [0], [1], [0, 0, 1, 1], [], []>} : vector<8x256xf32>, vector<256x128xf32>, vector<8x128xf32> -> vector<8x128xf32>
    %c0_355 = arith.constant 0 : index
    %c0_356 = arith.constant 0 : index
    %1071 = vector.load %arg13[%c0_355, %c0_356] : memref<1x128xf32, #tpu.memory_space<vmem>>, vector<1x128xf32>
    %1072 = vector.broadcast %1071 : vector<1x128xf32> to vector<8x128xf32>
    %1073 = arith.addf %1070, %1072 : vector<8x128xf32>
    %cst_357 = arith.constant 0.000000e+00 : f32
    %1074 = vector.broadcast %cst_357 : f32 to vector<8x128xf32>
    %1075 = arith.maximumf %1073, %1074 : vector<8x128xf32>
    %c0_358 = arith.constant 0 : index
    %c0_359 = arith.constant 0 : index
    %1076 = vector.load %arg14[%c0_358, %c0_359] : memref<128x1xf32, #tpu.memory_space<vmem>>, vector<128x1xf32>
    %cst_360 = arith.constant dense<0.000000e+00> : vector<8x1xf32>
    %1077 = tpu.matmul %1075, %1076, %cst_360 {dimension_numbers = #tpu.dot_dimension_numbers<[1], [0], [0], [1], [0, 0, 1, 1], [], []>} : vector<8x128xf32>, vector<128x1xf32>, vector<8x1xf32> -> vector<8x1xf32>
    %c0_361 = arith.constant 0 : index
    %c0_362 = arith.constant 0 : index
    %1078 = vector.load %arg15[%c0_361, %c0_362] : memref<1x1xf32, #tpu.memory_space<vmem>>, vector<1x1xf32>
    %1079 = vector.broadcast %1078 : vector<1x1xf32> to vector<8x1xf32>
    %1080 = arith.addf %1077, %1079 : vector<8x1xf32>
    %1081 = arith.negf %1080 : vector<8x1xf32>
    %1082 = math.exp %1081 : vector<8x1xf32>
    %cst_363 = arith.constant 1.000000e+00 : f32
    %1083 = vector.broadcast %cst_363 : f32 to vector<8x1xf32>
    %1084 = arith.addf %1083, %1082 : vector<8x1xf32>
    %1085 = arith.divf %1083, %1084 : vector<8x1xf32>
    %c0_364 = arith.constant 0 : index
    %c0_365 = arith.constant 0 : index
    %1086 = vector.load %arg16[%c0_364, %c0_365] : memref<8x1xf32, #tpu.memory_space<vmem>>, vector<8x1xf32>
    tpu.vector_store %arg16[%c0_364, %c0_365], %1085 {strides = array<i32>} : memref<8x1xf32, #tpu.memory_space<vmem>>, vector<8x1xf32>,
    return
  }
  func.func @transform_0(%arg0: i32) -> (i32, i32, i32) {
    %c0_i32 = arith.constant 0 : i32
    %c0_i32_0 = arith.constant 0 : i32
    %c0_i32_1 = arith.constant 0 : i32
    return %c0_i32, %arg0, %c0_i32_0 : i32, i32, i32
  }
  func.func @transform_1(%arg0: i32) -> (i32, i32) {
    %c0_i32 = arith.constant 0 : i32
    %c0_i32_0 = arith.constant 0 : i32
    %c0_i32_1 = arith.constant 0 : i32
    return %c0_i32, %c0_i32_0 : i32, i32
  }
  func.func @transform_2(%arg0: i32) -> (i32, i32) {
    %c0_i32 = arith.constant 0 : i32
    %c0_i32_0 = arith.constant 0 : i32
    %c0_i32_1 = arith.constant 0 : i32
    return %c0_i32, %c0_i32_0 : i32, i32
  }
  func.func @transform_3(%arg0: i32) -> (i32, i32) {
    %c0_i32 = arith.constant 0 : i32
    %c0_i32_0 = arith.constant 0 : i32
    %c0_i32_1 = arith.constant 0 : i32
    return %c0_i32, %c0_i32_0 : i32, i32
  }
  func.func @transform_4(%arg0: i32) -> (i32, i32) {
    %c0_i32 = arith.constant 0 : i32
    %c0_i32_0 = arith.constant 0 : i32
    %c0_i32_1 = arith.constant 0 : i32
    return %c0_i32, %c0_i32_0 : i32, i32
  }
  func.func @transform_5(%arg0: i32) -> (i32, i32) {
    %c0_i32 = arith.constant 0 : i32
    %c0_i32_0 = arith.constant 0 : i32
    %c0_i32_1 = arith.constant 0 : i32
    return %c0_i32, %c0_i32_0 : i32, i32
  }
  func.func @transform_6(%arg0: i32) -> (i32, i32) {
    %c0_i32 = arith.constant 0 : i32
    %c0_i32_0 = arith.constant 0 : i32
    %c0_i32_1 = arith.constant 0 : i32
    return %c0_i32, %c0_i32_0 : i32, i32
  }
  func.func @transform_7(%arg0: i32) -> (i32, i32) {
    %c0_i32 = arith.constant 0 : i32
    %c0_i32_0 = arith.constant 0 : i32
    %c0_i32_1 = arith.constant 0 : i32
    return %c0_i32, %c0_i32_0 : i32, i32
  }
  func.func @transform_8(%arg0: i32) -> (i32, i32) {
    %c0_i32 = arith.constant 0 : i32
    %c0_i32_0 = arith.constant 0 : i32
    %c0_i32_1 = arith.constant 0 : i32
    return %c0_i32, %c0_i32_0 : i32, i32
  }
  func.func @transform_9(%arg0: i32) -> (i32, i32) {
    %c0_i32 = arith.constant 0 : i32
    %c0_i32_0 = arith.constant 0 : i32
    %c0_i32_1 = arith.constant 0 : i32
    return %c0_i32, %c0_i32_0 : i32, i32
  }
  func.func @transform_10(%arg0: i32) -> (i32, i32) {
    %c0_i32 = arith.constant 0 : i32
    %c0_i32_0 = arith.constant 0 : i32
    %c0_i32_1 = arith.constant 0 : i32
    return %c0_i32, %c0_i32_0 : i32, i32
  }
  func.func @transform_11(%arg0: i32) -> (i32, i32) {
    %c0_i32 = arith.constant 0 : i32
    %c0_i32_0 = arith.constant 0 : i32
    %c0_i32_1 = arith.constant 0 : i32
    return %c0_i32, %c0_i32_0 : i32, i32
  }
  func.func @transform_12(%arg0: i32) -> (i32, i32) {
    %c0_i32 = arith.constant 0 : i32
    %c0_i32_0 = arith.constant 0 : i32
    %c0_i32_1 = arith.constant 0 : i32
    return %c0_i32, %c0_i32_0 : i32, i32
  }
  func.func @transform_13(%arg0: i32) -> (i32, i32) {
    %c0_i32 = arith.constant 0 : i32
    %c0_i32_0 = arith.constant 0 : i32
    %c0_i32_1 = arith.constant 0 : i32
    return %c0_i32, %c0_i32_0 : i32, i32
  }
  func.func @transform_14(%arg0: i32) -> (i32, i32) {
    %c0_i32 = arith.constant 0 : i32
    %c0_i32_0 = arith.constant 0 : i32
    %c0_i32_1 = arith.constant 0 : i32
    return %c0_i32, %c0_i32_0 : i32, i32
  }
  func.func @transform_15(%arg0: i32) -> (i32, i32) {
    %c0_i32 = arith.constant 0 : i32
    %c0_i32_0 = arith.constant 0 : i32
    return %arg0, %c0_i32 : i32, i32
  }
}

</mosaic_0001>

<bundles_post_ra>
// kernel: tpu_custom_call.1
= control target key start
LH: loop header
LB: loop body
LE: loop exit
PB: predicated region body
PF: predicated region fallthrough
CT: control target
= control target key end

     0   :  { %s14230_s0 = inlined_call_operand.vmem [shape: f32[8,8,128], index: 0, kind: input, shape index: {}]   ;;  %s14231_s1 = inlined_call_operand.hbm [shape: f32[128,1024], index: 1, kind: input, shape index: {}]   ;;  %s14232_s2 = inlined_call_operand.vmem [shape: f32[1,1024], index: 2, kind: input, shape index: {}]   ;;  %s14233_s3 = inlined_call_operand.hbm [shape: f32[128,512], index: 3, kind: input, shape index: {}]   ;;  %s14234_s4 = inlined_call_operand.hbm [shape: f32[128,512], index: 4, kind: input, shape index: {}]   ;;  %s14235_s5 = inlined_call_operand.hbm [shape: f32[256,1024], index: 5, kind: input, shape index: {}]   ;;  %s14236_s6 = inlined_call_operand.vmem [shape: f32[1,1024], index: 6, kind: input, shape index: {}]   ;;  %s14237_s7 = inlined_call_operand.hbm [shape: f32[128,512], index: 7, kind: input, shape index: {}]   ;;  %s14238_s8 = inlined_call_operand.hbm [shape: f32[128,512], index: 8, kind: input, shape index: {}]   ;;  %s14239_s9 = inlined_call_operand.vmem [shape: f32[256,1], index: 9, kind: input, shape index: {}]   ;;  %s14240_s10 = inlined_call_operand.<no memory space> [shape: f32[1,1], index: 10, kind: input, shape index: {}]   ;;  %s14241_s11 = inlined_call_operand.vmem [shape: f32[256,128], index: 11, kind: input, shape index: {}]   ;;  %s14242_s12 = inlined_call_operand.vmem [shape: f32[1,128], index: 12, kind: input, shape index: {}]   ;;  %s14243_s13 = inlined_call_operand.vmem [shape: f32[128,1], index: 13, kind: input, shape index: {}]   ;;  %s14244_s15 = inlined_call_operand.vmem [shape: f32[8,1], index: 15, kind: output, shape index: {}]   ;;  %s14245_s14 = inlined_call_operand.<no memory space> [shape: f32[1,1], index: 14, kind: input, shape index: {}]  }
   0x1   :  { %v20_v0 = vstv %s14240_s10  ;;  %v22_v1 = vstv %s14245_s14 }
   0x2   :  { %21 = vst [vmem:[#allocation5] sm:$0x1] %v20_v0  ;;  %23 = vst [vmem:[#allocation6] sm:$0x1] %v22_v1 }
   0x3   :  { %24 = vsyncpa [#allocation8], 0 }
   0x4   :  { %25 = vsyncpa [#allocation10], 0 }
   0x5   :  { %26 = vsyncpa [#allocation13], 0 }
   0x6   :  { %27 = vsyncpa [#allocation16], 0  ;;  %s11782_s22 = smov [#allocation9]   ;;  %s11642_s26 = scalar_lea.hbm %s14233_s3, 8192 }
   0x7   :  { %s49_s23 = sshll.u32 %s11782_s22, 4  ;;  %p11643_p0 = scmp.ne.s32.totalorder %s14233_s3, %s11642_s26  ;;  %s50_s23 = int_to_ptr.vmem [resolvable:$true] %s49_s23 }
   0x8   :  { %p11646_p1 = scmp.lt.u32.totalorder %s11642_s26, %s14233_s3 }
   0xa   :  { %p11648_p2 = pnand %p11646_p1, %p11643_p0 }
   0xc   :  { %11651 = shalt.err (!%p11648_p2)
}
   0xd   :  { %s11652_s14 = scalar_lea.vmem %s50_s23, 8192  ;;  %p11657_p4 = scmp.lt.s32.totalorder %s50_s23, %s50_s23 }
   0xe   :  { %p11653_p3 = scmp.ne.s32.totalorder %s50_s23, %s11652_s14  ;;  %p11658_p5 = scmp.lt.s32.totalorder %s11652_s14, %s11652_s14 }
  0x10   :  { %p11659_p6 = por %p11658_p5, %p11657_p4 }
  0x12   :  { %p11660_p7 = pnand %p11659_p6, %p11653_p3 }
  0x14   :  { %11663 = shalt.err (!%p11660_p7)
}
  0x15   :  { %s11783_s30 = smov 512   ;;  %s11784_s16 = smov 32  }
  0x16   :  { %55 = dma.hbm_to_vmem [thread:$0]  %s14233_s3, 8192, %s50_s23, [#allocation10], %s11783_s30, %s11783_s30, %s11784_s16  }
  0x17   :  { %s11785_s19 = smov [#allocation12]   ;;  %s11786_s21 = smov [#allocation7]  }
  0x18   :  { %s73_s20 = sshll.u32 %s11785_s19, 4  ;;  %s35_s22 = sshll.u32 %s11786_s21, 4  ;;  %s74_s20 = int_to_ptr.vmem [resolvable:$true] %s73_s20  ;;  %s36_s22 = int_to_ptr.vmem [resolvable:$true] %s35_s22 }
  0x19   :  { %s11664_s26 = scalar_lea.hbm %s14235_s5, 32768 }
  0x1a   :  { %p11665_p8 = scmp.ne.s32.totalorder %s14235_s5, %s11664_s26  ;;  %p11668_p9 = scmp.lt.u32.totalorder %s11664_s26, %s14235_s5 }
  0x1c   :  { %p11670_p10 = pnand %p11668_p9, %p11665_p8 }
  0x1e   :  { %11673 = shalt.err (!%p11670_p10)
}
  0x1f   :  { %s11674_s3 = scalar_lea.vmem %s74_s20, 32768  ;;  %p11679_p12 = scmp.lt.s32.totalorder %s74_s20, %s74_s20 }
  0x20   :  { %p11675_p11 = scmp.ne.s32.totalorder %s74_s20, %s11674_s3  ;;  %p11680_p13 = scmp.lt.s32.totalorder %s11674_s3, %s11674_s3 }
  0x22   :  { %p11681_p0 = por %p11680_p13, %p11679_p12 }
  0x24   :  { %p11682_p1 = pnand %p11681_p0, %p11675_p11 }
  0x26   :  { %11685 = shalt.err (!%p11682_p1)
}
  0x27   :  { %s11787_s23 = smov 1024   ;;  %s11788_s14 = smov 64  }
  0x28   :  { %79 = dma.hbm_to_vmem [thread:$0]  %s14235_s5, 32768, %s74_s20, [#allocation13], %s11787_s23, %s11787_s23, %s11788_s14  }
  0x29   :  { %s11686_s24 = scalar_lea.hbm %s14231_s1, 16384 }
  0x2a   :  { %p11687_p2 = scmp.ne.s32.totalorder %s14231_s1, %s11686_s24  ;;  %p11690_p3 = scmp.lt.u32.totalorder %s11686_s24, %s14231_s1 }
  0x2c   :  { %p11692_p4 = pnand %p11690_p3, %p11687_p2 }
  0x2e   :  { %11695 = shalt.err (!%p11692_p4)
}
  0x2f   :  { %s11696_s10 = scalar_lea.vmem %s36_s22, 16384  ;;  %p11701_p6 = scmp.lt.s32.totalorder %s36_s22, %s36_s22 }
  0x30   :  { %p11697_p5 = scmp.ne.s32.totalorder %s36_s22, %s11696_s10  ;;  %p11702_p7 = scmp.lt.s32.totalorder %s11696_s10, %s11696_s10 }
  0x32   :  { %p11703_p8 = por %p11702_p7, %p11701_p6 }
  0x34   :  { %p11704_p9 = pnand %p11703_p8, %p11697_p5 }
  0x36   :  { %11707 = shalt.err (!%p11704_p9)
}
  0x37   :  { %41 = dma.hbm_to_vmem [thread:$0]  %s14231_s1, 16384, %s36_s22, [#allocation8], %s11787_s23, %s11787_s23, %s11788_s14  }
  0x38   :  { %s11789_s29 = smov [#allocation11]   ;;  %s11790_s17 = smov [#allocation14]  }
  0x39   :  { %s61_s3 = sshll.u32 %s11789_s29, 4  ;;  %s87_s18 = sshll.u32 %s11790_s17, 4  ;;  %s62_s3 = int_to_ptr.vmem [resolvable:$true] %s61_s3  ;;  %s88_s18 = int_to_ptr.vmem [resolvable:$true] %s87_s18 }
  0x3a   :  { %s11708_s24 = scalar_lea.hbm %s14234_s4, 8192 }
  0x3b   :  { %p11709_p10 = scmp.ne.s32.totalorder %s14234_s4, %s11708_s24  ;;  %p11712_p11 = scmp.lt.u32.totalorder %s11708_s24, %s14234_s4 }
  0x3d   :  { %p11714_p12 = pnand %p11712_p11, %p11709_p10 }
  0x3f   :  { %11717 = shalt.err (!%p11714_p12)
}
  0x40   :  { %s11718_s1 = scalar_lea.vmem %s62_s3, 8192  ;;  %p11723_p0 = scmp.lt.s32.totalorder %s62_s3, %s62_s3 }
  0x41   :  { %p11719_p13 = scmp.ne.s32.totalorder %s62_s3, %s11718_s1  ;;  %p11724_p1 = scmp.lt.s32.totalorder %s11718_s1, %s11718_s1 }
  0x43   :  { %p11725_p2 = por %p11724_p1, %p11723_p0 }
  0x45   :  { %p11726_p3 = pnand %p11725_p2, %p11719_p13 }
  0x47   :  { %11729 = shalt.err (!%p11726_p3)
}
  0x48   :  { %67 = dma.hbm_to_vmem [thread:$0]  %s14234_s4, 8192, %s62_s3, [#allocation10], %s11783_s30, %s11783_s30, %s11784_s16  }
  0x49   :  { %s11730_s5 = scalar_lea.hbm %s14237_s7, 8192 }
  0x4a   :  { %p11731_p4 = scmp.ne.s32.totalorder %s14237_s7, %s11730_s5  ;;  %p11734_p5 = scmp.lt.u32.totalorder %s11730_s5, %s14237_s7 }
  0x4c   :  { %p11736_p6 = pnand %p11734_p5, %p11731_p4 }
  0x4e   :  { %11739 = shalt.err (!%p11736_p6)
}
  0x4f   :  { %s11740_s21 = scalar_lea.vmem %s88_s18, 8192  ;;  %p11745_p8 = scmp.lt.s32.totalorder %s88_s18, %s88_s18 }
  0x50   :  { %p11741_p7 = scmp.ne.s32.totalorder %s88_s18, %s11740_s21  ;;  %p11746_p9 = scmp.lt.s32.totalorder %s11740_s21, %s11740_s21 }
  0x52   :  { %p11747_p10 = por %p11746_p9, %p11745_p8 }
  0x54   :  { %p11748_p11 = pnand %p11747_p10, %p11741_p7 }
  0x56   :  { %11751 = shalt.err (!%p11748_p11)
}
  0x57   :  { %93 = dma.hbm_to_vmem [thread:$0]  %s14237_s7, 8192, %s88_s18, [#allocation13], %s11783_s30, %s11783_s30, %s11784_s16  }
  0x58   :  { %s11791_s24 = smov [#allocation15]   ;;  %s11752_s28 = scalar_lea.hbm %s14238_s8, 8192 }
  0x59   :  { %s99_s25 = sshll.u32 %s11791_s24, 4  ;;  %p11753_p12 = scmp.ne.s32.totalorder %s14238_s8, %s11752_s28  ;;  %s100_s25 = int_to_ptr.vmem [resolvable:$true] %s99_s25 }
  0x5a   :  { %p11756_p13 = scmp.lt.u32.totalorder %s11752_s28, %s14238_s8 }
  0x5c   :  { %p11758_p0 = pnand %p11756_p13, %p11753_p12 }
  0x5e   :  { %11761 = shalt.err (!%p11758_p0)
}
  0x5f   :  { %s11762_s10 = scalar_lea.vmem %s100_s25, 8192  ;;  %p11767_p2 = scmp.lt.s32.totalorder %s100_s25, %s100_s25 }
  0x60   :  { %p11763_p1 = scmp.ne.s32.totalorder %s100_s25, %s11762_s10  ;;  %p11768_p3 = scmp.lt.s32.totalorder %s11762_s10, %s11762_s10 }
  0x62   :  { %p11769_p4 = por %p11768_p3, %p11767_p2 }
  0x64   :  { %p11770_p5 = pnand %p11769_p4, %p11763_p1 }
  0x66   :  { %11773 = shalt.err (!%p11770_p5)
}
  0x67   :  { %105 = dma.hbm_to_vmem [thread:$0]  %s14238_s8, 8192, %s100_s25, [#allocation16], %s11783_s30, %s11783_s30, %s11784_s16  }
  0x68   :  { %11774 = dma.done.wait [#allocation8], 16384  }
  0x69   :  { %11775 = vsyncadd [#allocation8], 4294950912 }
  0x6a   :  { %11776 = dma.done.wait [#allocation10], 16384  }
  0x6b   :  { %11777 = vsyncadd [#allocation10], 4294950912 }
  0x6c   :  { %11778 = dma.done.wait [#allocation13], 40960  }
  0x6d   :  { %11779 = vsyncadd [#allocation13], 4294926336 }
  0x6e   :  { %11780 = dma.done.wait [#allocation16], 8192  }
  0x6f   :  { %11781 = vsyncadd [#allocation16], 4294959104  ;;  %v14246_v2 = vmov 0.0   ;;  %v145_v3 = vld [vmem:[#allocation7 + $0x8] sm:$0xff]  ;;  %v147_v5 = vld [vmem:[#allocation7 + $0x18] sm:$0xff]  ;;  %vm7705_vm0 = vcmask 7168  }
  0x70   :  { %378 = vmatprep.mubr.f32.mxu0 %v14246_v2  ;;  %491 = vmatprep.mubr.f32.mxu1 %v14246_v2  ;;  %v153_v4 = vld [vmem:[#allocation7 + $0x48] sm:$0xff]  ;;  %v155_v7 = vld [vmem:[#allocation7 + $0x58] sm:$0xff]  ;;  %v144_v8 = vld [vmem:[#allocation7] sm:$0xff]  ;;  %vm11795_vm1 = vmmov 0  }
  0x71   :  { %v8300_v6 = vpack.c.bf16 %v153_v4, %v145_v3  ;;  %v152_v9 = vld [vmem:[#allocation7 + $0x40] sm:$0xff]  ;;  %v8332_v10 = vpack.c.bf16 %v155_v7, %v147_v5  ;;  %v146_v12 = vld [vmem:[#allocation7 + $0x10] sm:$0xff]  ;;  %v161_v14 = vld [vmem:[#allocation7 + $0x88] sm:$0xff] }
  0x72   :  { %v8302_v11 = vpack.c.bf16 %v152_v9, %v144_v8  ;;  %v154_v13 = vld [vmem:[#allocation7 + $0x50] sm:$0xff]  ;;  %v169_v16 = vld [vmem:[#allocation7 + $0xc8] sm:$0xff]  ;;  %v163_v17 = vld [vmem:[#allocation7 + $0x98] sm:$0xff] }
  0x73   :  { %8301 = vmatprep.subr.bf16.mxu0 %v8300_v6  ;;  %v8334_v15 = vpack.c.bf16 %v154_v13, %v146_v12  ;;  %v171_v18 = vld [vmem:[#allocation7 + $0xd8] sm:$0xff]  ;;  %8333 = vmatprep.subr.bf16.mxu1 %v8332_v10  ;;  %v8304_v19 = vpack.c.bf16 %v169_v16, %v161_v14  ;;  %v160_v21 = vld [vmem:[#allocation7 + $0x80] sm:$0xff]  ;;  %v162_v23 = vld [vmem:[#allocation7 + $0x90] sm:$0xff] }
  0x74   :  { %8303 = vmatpush1.bf16.msra.mxu0 %v8302_v11  ;;  %v8336_v20 = vpack.c.bf16 %v171_v18, %v163_v17  ;;  %v168_v22 = vld [vmem:[#allocation7 + $0xc0] sm:$0xff]  ;;  %v170_v25 = vld [vmem:[#allocation7 + $0xd0] sm:$0xff]  ;;  %v177_v26 = vld [vmem:[#allocation7 + $0x108] sm:$0xff] }
  0x75   :  { %8335 = vmatpush1.bf16.msra.mxu1 %v8334_v15  ;;  %v8306_v24 = vpack.c.bf16 %v168_v22, %v160_v21  ;;  %v185_v27 = vld [vmem:[#allocation7 + $0x148] sm:$0xff]  ;;  %8305 = vmatprep.subr.bf16.mxu0 %v8304_v19  ;;  %v8338_v28 = vpack.c.bf16 %v170_v25, %v162_v23  ;;  %v179_v30 = vld [vmem:[#allocation7 + $0x118] sm:$0xff]  ;;  %v176_v32 = vld [vmem:[#allocation7 + $0x100] sm:$0xff] }
  0x76   :  { %8337 = vmatprep.subr.bf16.mxu1 %v8336_v20  ;;  %v8308_v29 = vpack.c.bf16 %v185_v27, %v177_v26  ;;  %v187_v31 = vld [vmem:[#allocation7 + $0x158] sm:$0xff]  ;;  %v184_v34 = vld [vmem:[#allocation7 + $0x140] sm:$0xff]  ;;  %v178_v35 = vld [vmem:[#allocation7 + $0x110] sm:$0xff] }
  0x77   :  { %v8340_v33 = vpack.c.bf16 %v187_v31, %v179_v30  ;;  %v186_v36 = vld [vmem:[#allocation7 + $0x150] sm:$0xff]  ;;  %v8310_v37 = vpack.c.bf16 %v184_v34, %v176_v32  ;;  %v193_v38 = vld [vmem:[#allocation7 + $0x188] sm:$0xff]  ;;  %v195_v40 = vld [vmem:[#allocation7 + $0x198] sm:$0xff] }
  0x78   :  { %8307 = vmatpush1.bf16.msra.mxu0 %v8306_v24  ;;  %v201_v39 = vld [vmem:[#allocation7 + $0x1c8] sm:$0xff]  ;;  %v8342_v41 = vpack.c.bf16 %v186_v36, %v178_v35  ;;  %v203_v43 = vld [vmem:[#allocation7 + $0x1d8] sm:$0xff]  ;;  %v192_v44 = vld [vmem:[#allocation7 + $0x180] sm:$0xff] }
  0x79   :  { %8339 = vmatpush1.bf16.msra.mxu1 %v8338_v28  ;;  %8309 = vmatprep.subr.bf16.mxu0 %v8308_v29  ;;  %v8312_v42 = vpack.c.bf16 %v201_v39, %v193_v38  ;;  %v200_v45 = vld [vmem:[#allocation7 + $0x1c0] sm:$0xff]  ;;  %v8344_v46 = vpack.c.bf16 %v203_v43, %v195_v40  ;;  %v194_v47 = vld [vmem:[#allocation7 + $0x190] sm:$0xff]  ;;  %v209_v49 = vld [vmem:[#allocation7 + $0x208] sm:$0xff] }
  0x7a   :  { %8341 = vmatprep.subr.bf16.mxu1 %v8340_v33  ;;  %v202_v48 = vld [vmem:[#allocation7 + $0x1d0] sm:$0xff]  ;;  %v217_v50 = vld [vmem:[#allocation7 + $0x248] sm:$0xff]  ;;  %v211_v51 = vld [vmem:[#allocation7 + $0x218] sm:$0xff]  ;;  %v8314_v53 = vpack.c.bf16 %v200_v45, %v192_v44 }
  0x7b   :  { %v219_v52 = vld [vmem:[#allocation7 + $0x258] sm:$0xff]  ;;  %v8346_v54 = vpack.c.bf16 %v202_v48, %v194_v47  ;;  %v8316_v55 = vpack.c.bf16 %v217_v50, %v209_v49  ;;  %v208_v56 = vld [vmem:[#allocation7 + $0x200] sm:$0xff]  ;;  %v210_v58 = vld [vmem:[#allocation7 + $0x210] sm:$0xff] }
  0x7c   :  { %8311 = vmatpush1.bf16.msra.mxu0 %v8310_v37  ;;  %v216_v57 = vld [vmem:[#allocation7 + $0x240] sm:$0xff]  ;;  %v8348_v59 = vpack.c.bf16 %v219_v52, %v211_v51  ;;  %v218_v60 = vld [vmem:[#allocation7 + $0x250] sm:$0xff]  ;;  %v225_v61 = vld [vmem:[#allocation7 + $0x288] sm:$0xff] }
  0x7d   :  { %8343 = vmatpush1.bf16.msra.mxu1 %v8342_v41  ;;  %8313 = vmatprep.subr.bf16.mxu0 %v8312_v42  ;;  %v233_v62 = vld [vmem:[#allocation7 + $0x2c8] sm:$0xff]  ;;  %v227_v63 = vld [vmem:[#allocation7 + $0x298] sm:$0xff]  ;;  %v8318_v1 = vpack.c.bf16 %v216_v57, %v208_v56  ;;  %v8350_v3 = vpack.c.bf16 %v218_v60, %v210_v58  ;;  %v224_v5 = vld [vmem:[#allocation7 + $0x280] sm:$0xff] }
  0x7e   :  { %8345 = vmatprep.subr.bf16.mxu1 %v8344_v46  ;;  %v235_v0 = vld [vmem:[#allocation7 + $0x2d8] sm:$0xff]  ;;  %v8320_v4 = vpack.c.bf16 %v233_v62, %v225_v61  ;;  %v232_v6 = vld [vmem:[#allocation7 + $0x2c0] sm:$0xff]  ;;  %v226_v7 = vld [vmem:[#allocation7 + $0x290] sm:$0xff] }
  0x7f   :  { %v8352_v8 = vpack.c.bf16 %v235_v0, %v227_v63  ;;  %v234_v9 = vld [vmem:[#allocation7 + $0x2d0] sm:$0xff]  ;;  %v241_v10 = vld [vmem:[#allocation7 + $0x308] sm:$0xff]  ;;  %v243_v12 = vld [vmem:[#allocation7 + $0x318] sm:$0xff]  ;;  %v8322_v14 = vpack.c.bf16 %v232_v6, %v224_v5 }
  0x80   :  { %8315 = vmatpush1.bf16.msra.mxu0 %v8314_v53  ;;  %v249_v11 = vld [vmem:[#allocation7 + $0x348] sm:$0xff]  ;;  %v251_v13 = vld [vmem:[#allocation7 + $0x358] sm:$0xff]  ;;  %v8354_v15 = vpack.c.bf16 %v234_v9, %v226_v7  ;;  %v240_v17 = vld [vmem:[#allocation7 + $0x300] sm:$0xff] }
  0x81   :  { %8347 = vmatpush1.bf16.msra.mxu1 %v8346_v54  ;;  %8317 = vmatprep.subr.bf16.mxu0 %v8316_v55  ;;  %v8324_v16 = vpack.c.bf16 %v249_v11, %v241_v10  ;;  %v248_v18 = vld [vmem:[#allocation7 + $0x340] sm:$0xff]  ;;  %v242_v19 = vld [vmem:[#allocation7 + $0x310] sm:$0xff]  ;;  %v8356_v20 = vpack.c.bf16 %v251_v13, %v243_v12  ;;  %v257_v22 = vld [vmem:[#allocation7 + $0x388] sm:$0xff] }
  0x82   :  { %8349 = vmatprep.subr.bf16.mxu1 %v8348_v59  ;;  %v250_v21 = vld [vmem:[#allocation7 + $0x350] sm:$0xff]  ;;  %v265_v23 = vld [vmem:[#allocation7 + $0x3c8] sm:$0xff]  ;;  %v259_v24 = vld [vmem:[#allocation7 + $0x398] sm:$0xff]  ;;  %v8326_v26 = vpack.c.bf16 %v248_v18, %v240_v17 }
  0x83   :  { %v267_v25 = vld [vmem:[#allocation7 + $0x3d8] sm:$0xff]  ;;  %v8358_v27 = vpack.c.bf16 %v250_v21, %v242_v19  ;;  %v8328_v28 = vpack.c.bf16 %v265_v23, %v257_v22  ;;  %v256_v29 = vld [vmem:[#allocation7 + $0x380] sm:$0xff]  ;;  %v258_v31 = vld [vmem:[#allocation7 + $0x390] sm:$0xff] }
  0x84   :  { %8319 = vmatpush1.bf16.msra.mxu0 %v8318_v1  ;;  %v264_v30 = vld [vmem:[#allocation7 + $0x3c0] sm:$0xff]  ;;  %v8360_v32 = vpack.c.bf16 %v267_v25, %v259_v24  ;;  %v266_v33 = vld [vmem:[#allocation7 + $0x3d0] sm:$0xff]  ;;  %v149_v34 = vld [vmem:[#allocation7 + $0x28] sm:$0xff] }
  0x85   :  { %8351 = vmatpush1.bf16.msra.mxu1 %v8350_v3  ;;  %8321 = vmatprep.subr.bf16.mxu0 %v8320_v4  ;;  %v157_v35 = vld [vmem:[#allocation7 + $0x68] sm:$0xff]  ;;  %v151_v36 = vld [vmem:[#allocation7 + $0x38] sm:$0xff]  ;;  %v8330_v38 = vpack.c.bf16 %v264_v30, %v256_v29  ;;  %v8362_v39 = vpack.c.bf16 %v266_v33, %v258_v31  ;;  %v148_v41 = vld [vmem:[#allocation7 + $0x20] sm:$0xff] }
  0x86   :  { %8353 = vmatprep.subr.bf16.mxu1 %v8352_v8  ;;  %v159_v37 = vld [vmem:[#allocation7 + $0x78] sm:$0xff]  ;;  %v8364_v40 = vpack.c.bf16 %v157_v35, %v149_v34  ;;  %v156_v42 = vld [vmem:[#allocation7 + $0x60] sm:$0xff]  ;;  %v150_v44 = vld [vmem:[#allocation7 + $0x30] sm:$0xff] }
  0x87   :  { %v8396_v43 = vpack.c.bf16 %v159_v37, %v151_v36  ;;  %v158_v45 = vld [vmem:[#allocation7 + $0x70] sm:$0xff]  ;;  %v165_v46 = vld [vmem:[#allocation7 + $0xa8] sm:$0xff]  ;;  %v11971_v48 = vld [vmem:[%s14230_s0] sm:$0xff]  ;;  %v8366_v49 = vpack.c.bf16 %v156_v42, %v148_v41 }
  0x88   :  { %8323 = vmatpush1.bf16.msra.mxu0 %v8322_v14  ;;  %v173_v47 = vld [vmem:[#allocation7 + $0xe8] sm:$0xff]  ;;  %v167_v50 = vld [vmem:[#allocation7 + $0xb8] sm:$0xff]  ;;  %v8398_v52 = vpack.c.bf16 %v158_v45, %v150_v44  ;;  %v164_v53 = vld [vmem:[#allocation7 + $0xa0] sm:$0xff] }
  0x89   :  { %8355 = vmatpush1.bf16.msra.mxu1 %v8354_v15  ;;  %8325 = vmatprep.subr.bf16.mxu0 %v8324_v16  ;;  %v175_v51 = vld [vmem:[#allocation7 + $0xf8] sm:$0xff]  ;;  %v172_v54 = vld [vmem:[#allocation7 + $0xe0] sm:$0xff]  ;;  %v8368_v55 = vpack.c.bf16 %v173_v47, %v165_v46  ;;  %v166_v56 = vld [vmem:[#allocation7 + $0xb0] sm:$0xff] }
  0x8a   :  { %8357 = vmatprep.subr.bf16.mxu1 %v8356_v20  ;;  %v174_v57 = vld [vmem:[#allocation7 + $0xf0] sm:$0xff]  ;;  %v8400_v58 = vpack.c.bf16 %v175_v51, %v167_v50  ;;  %v181_v59 = vld [vmem:[#allocation7 + $0x128] sm:$0xff]  ;;  %v8370_v62 = vpack.c.bf16 %v172_v54, %v164_v53  ;;  %v183_v63 = vld [vmem:[#allocation7 + $0x138] sm:$0xff] }
  0x8b   :  { %v189_v60 = vld [vmem:[#allocation7 + $0x168] sm:$0xff]  ;;  %v191_v0 = vld [vmem:[#allocation7 + $0x178] sm:$0xff]  ;;  %v8402_v1 = vpack.c.bf16 %v174_v57, %v166_v56  ;;  %v180_v3 = vld [vmem:[#allocation7 + $0x120] sm:$0xff] }
  0x8c   :  { %8327 = vmatpush1.bf16.msra.mxu0 %v8326_v26  ;;  %v11978_v61 = vld [vmem:[%s14230_s0 + $0x8] sm:$0xff]  ;;  %v8372_v5 = vpack.c.bf16 %v189_v60, %v181_v59  ;;  %v182_v6 = vld [vmem:[#allocation7 + $0x130] sm:$0xff]  ;;  %v8404_v8 = vpack.c.bf16 %v191_v0, %v183_v63  ;;  %v199_v13 = vld [vmem:[#allocation7 + $0x1b8] sm:$0xff] }
  0x8d   :  { %8359 = vmatpush1.bf16.msra.mxu1 %v8358_v27  ;;  %8329 = vmatprep.subr.bf16.mxu0 %v8328_v28  ;;  %v188_v4 = vld [vmem:[#allocation7 + $0x160] sm:$0xff]  ;;  %v190_v7 = vld [vmem:[#allocation7 + $0x170] sm:$0xff]  ;;  %v197_v9 = vld [vmem:[#allocation7 + $0x1a8] sm:$0xff] }
  0x8e   :  { %8361 = vmatprep.subr.bf16.mxu1 %v8360_v32  ;;  %v205_v10 = vld [vmem:[#allocation7 + $0x1e8] sm:$0xff]  ;;  %v8374_v12 = vpack.c.bf16 %v188_v4, %v180_v3  ;;  %v207_v14 = vld [vmem:[#allocation7 + $0x1f8] sm:$0xff]  ;;  %v8406_v15 = vpack.c.bf16 %v190_v7, %v182_v6  ;;  %v196_v16 = vld [vmem:[#allocation7 + $0x1a0] sm:$0xff] }
  0x8f   :  { %v11987_v11 = vld [vmem:[%s14230_s0 + $0x10] sm:$0xff]  ;;  %v204_v17 = vld [vmem:[#allocation7 + $0x1e0] sm:$0xff]  ;;  %v8376_v18 = vpack.c.bf16 %v205_v10, %v197_v9  ;;  %v8408_v21 = vpack.c.bf16 %v207_v14, %v199_v13  ;;  %v11996_v24 = vld [vmem:[%s14230_s0 + $0x18] sm:$0xff] }
  0x90   :  { %8331 = vmatpush1.bf16.msra.mxu0 %v8330_v38  ;;  %v198_v19 = vld [vmem:[#allocation7 + $0x1b0] sm:$0xff]  ;;  %v213_v22 = vld [vmem:[#allocation7 + $0x228] sm:$0xff]  ;;  %v8378_v25 = vpack.c.bf16 %v204_v17, %v196_v16  ;;  %v215_v26 = vld [vmem:[#allocation7 + $0x238] sm:$0xff] }
  0x91   :  { %8363 = vmatpush1.bf16.msra.mxu1 %v8362_v39  ;;  %8365 = vmatprep.subr.bf16.mxu0 %v8364_v40  ;;  %v206_v20 = vld [vmem:[#allocation7 + $0x1f0] sm:$0xff]  ;;  %v221_v23 = vld [vmem:[#allocation7 + $0x268] sm:$0xff]  ;;  %v223_v27 = vld [vmem:[#allocation7 + $0x278] sm:$0xff] }
  0x92   :  { %8397 = vmatprep.subr.bf16.mxu1 %v8396_v43  ;;  %v8410_v28 = vpack.c.bf16 %v206_v20, %v198_v19  ;;  %v212_v29 = vld [vmem:[#allocation7 + $0x220] sm:$0xff]  ;;  %v8380_v31 = vpack.c.bf16 %v221_v23, %v213_v22  ;;  %v214_v32 = vld [vmem:[#allocation7 + $0x230] sm:$0xff]  ;;  %v8412_v34 = vpack.c.bf16 %v223_v27, %v215_v26  ;;  %v229_v35 = vld [vmem:[#allocation7 + $0x2a8] sm:$0xff] }
  0x93   :  { %379 = vmatmul.mubr.f32.vlgmr.msra.gmra.mrb[0].mxu0 %v11971_v48  ;;  %v220_v30 = vld [vmem:[#allocation7 + $0x260] sm:$0xff]  ;;  %v222_v33 = vld [vmem:[#allocation7 + $0x270] sm:$0xff]  ;;  %v237_v36 = vld [vmem:[#allocation7 + $0x2e8] sm:$0xff] }
  0x94   :  { %492 = vmatmul.mubr.f32.vlgmr.msra.gmra.mrb[0].mxu1 %v11971_v48  ;;  %8367 = vmatpush1.bf16.msra.mxu0 %v8366_v49  ;;  %v12005_v37 = vld [vmem:[%s14230_s0 + $0x20] sm:$0xff]  ;;  %v8382_v38 = vpack.c.bf16 %v220_v30, %v212_v29  ;;  %v8414_v41 = vpack.c.bf16 %v222_v33, %v214_v32  ;;  %v8384_v44 = vpack.c.bf16 %v237_v36, %v229_v35  ;;  %v230_v45 = vld [vmem:[#allocation7 + $0x2b0] sm:$0xff]  ;;  %v245_v49 = vld [vmem:[#allocation7 + $0x328] sm:$0xff] }
  0x95   :  { %8399 = vmatpush1.bf16.msra.mxu1 %v8398_v52  ;;  %384 = vmatprep.mubr.f32.mxu0 %v14246_v2  ;;  %v231_v39 = vld [vmem:[#allocation7 + $0x2b8] sm:$0xff]  ;;  %v228_v42 = vld [vmem:[#allocation7 + $0x2a0] sm:$0xff]  ;;  %v238_v46 = vld [vmem:[#allocation7 + $0x2f0] sm:$0xff] }
  0x96   :  { %497 = vmatprep.mubr.f32.mxu1 %v14246_v2  ;;  %8369 = vmatprep.subr.bf16.mxu0 %v8368_v55  ;;  %v239_v40 = vld [vmem:[#allocation7 + $0x2f8] sm:$0xff]  ;;  %v236_v43 = vld [vmem:[#allocation7 + $0x2e0] sm:$0xff]  ;;  %v253_v50 = vld [vmem:[#allocation7 + $0x368] sm:$0xff]  ;;  %v8418_v55 = vpack.c.bf16 %v238_v46, %v230_v45 }
  0x97   :  { %385 = vmatmul.mubr.f32.gmra.mrb[2].mxu0 %v11978_v61  ;;  %8401 = vmatprep.subr.bf16.mxu1 %v8400_v58  ;;  %v8416_v47 = vpack.c.bf16 %v239_v40, %v231_v39  ;;  %v12014_v51 = vld [vmem:[%s14230_s0 + $0x28] sm:$0xff]  ;;  %v8386_v52 = vpack.c.bf16 %v236_v43, %v228_v42  ;;  %v247_v53 = vld [vmem:[#allocation7 + $0x338] sm:$0xff]  ;;  %v8388_v58 = vpack.c.bf16 %v253_v50, %v245_v49  ;;  %v246_v59 = vld [vmem:[#allocation7 + $0x330] sm:$0xff] }
  0x98   :  { %498 = vmatmul.mubr.f32.gmra.mrb[2].mxu1 %v11978_v61  ;;  %8371 = vmatpush1.bf16.msra.mxu0 %v8370_v62  ;;  %v255_v54 = vld [vmem:[#allocation7 + $0x378] sm:$0xff]  ;;  %v244_v56 = vld [vmem:[#allocation7 + $0x320] sm:$0xff]  ;;  %v254_v60 = vld [vmem:[#allocation7 + $0x370] sm:$0xff] }
  0x99   :  { %8403 = vmatpush1.bf16.msra.mxu1 %v8402_v1  ;;  %390 = vmatprep.mubr.f32.mxu0 %v14246_v2  ;;  %v252_v57 = vld [vmem:[#allocation7 + $0x360] sm:$0xff]  ;;  %v8420_v62 = vpack.c.bf16 %v255_v54, %v247_v53  ;;  %v261_v63 = vld [vmem:[#allocation7 + $0x3a8] sm:$0xff]  ;;  %v263_v4 = vld [vmem:[#allocation7 + $0x3b8] sm:$0xff]  ;;  %v8422_v6 = vpack.c.bf16 %v254_v60, %v246_v59 }
  0x9a   :  { %503 = vmatprep.mubr.f32.mxu1 %v14246_v2  ;;  %8373 = vmatprep.subr.bf16.mxu0 %v8372_v5  ;;  %v269_v0 = vld [vmem:[#allocation7 + $0x3e8] sm:$0xff]  ;;  %v8390_v3 = vpack.c.bf16 %v252_v57, %v244_v56  ;;  %v271_v5 = vld [vmem:[#allocation7 + $0x3f8] sm:$0xff]  ;;  %v260_v7 = vld [vmem:[#allocation7 + $0x3a0] sm:$0xff] }
  0x9b   :  { %391 = vmatmul.mubr.f32.gmra.mrb[4].mxu0 %v11987_v11  ;;  %8405 = vmatprep.subr.bf16.mxu1 %v8404_v8  ;;  %v12023_v1 = vld [vmem:[%s14230_s0 + $0x30] sm:$0xff]  ;;  %v268_v8 = vld [vmem:[#allocation7 + $0x3e0] sm:$0xff]  ;;  %v8392_v9 = vpack.c.bf16 %v269_v0, %v261_v63  ;;  %v8424_v13 = vpack.c.bf16 %v271_v5, %v263_v4  ;;  %v12032_v16 = vld [vmem:[%s14230_s0 + $0x38] sm:$0xff] }
  0x9c   :  { %504 = vmatmul.mubr.f32.gmra.mrb[4].mxu1 %v11987_v11  ;;  %8375 = vmatpush1.bf16.msra.mxu0 %v8374_v12  ;;  %v262_v10 = vld [vmem:[#allocation7 + $0x3b0] sm:$0xff]  ;;  %v831_v14 = vld [vmem:[#allocation9 + $0x8] sm:$0xff]  ;;  %v8394_v17 = vpack.c.bf16 %v268_v8, %v260_v7  ;;  %v837_v19 = vld [vmem:[#allocation9 + $0x38] sm:$0xff] }
  0x9d   :  { %8407 = vmatpush1.bf16.msra.mxu1 %v8406_v15  ;;  %396 = vmatprep.mubr.f32.mxu0 %v14246_v2  ;;  %v270_v12 = vld [vmem:[#allocation7 + $0x3f0] sm:$0xff]  ;;  %v835_v15 = vld [vmem:[#allocation9 + $0x28] sm:$0xff]  ;;  %v834_v22 = vld [vmem:[#allocation9 + $0x20] sm:$0xff] }
  0x9e   :  { %509 = vmatprep.mubr.f32.mxu1 %v14246_v2  ;;  %8377 = vmatprep.subr.bf16.mxu0 %v8376_v18  ;;  %v833_v18 = vld [vmem:[#allocation9 + $0x18] sm:$0xff]  ;;  %v8426_v20 = vpack.c.bf16 %v270_v12, %v262_v10  ;;  %v12036_v23 = vpack.c.bf16 %v835_v15, %v831_v14  ;;  %v836_v26 = vld [vmem:[#allocation9 + $0x30] sm:$0xff]  ;;  %v843_v29 = vld [vmem:[#allocation9 + $0x68] sm:$0xff] }
  0x9f   :  { %397 = vmatmul.mubr.f32.gmra.mrb[6].mxu0 %v11996_v24  ;;  %8409 = vmatprep.subr.bf16.mxu1 %v8408_v21  ;;  %v830_v21 = vld [vmem:[#allocation9] sm:$0xff]  ;;  %v12039_v27 = vpack.c.bf16 %v837_v19, %v833_v18  ;;  %v845_v32 = vld [vmem:[#allocation9 + $0x78] sm:$0xff]  ;;  %v844_v39 = vld [vmem:[#allocation9 + $0x70] sm:$0xff] }
  0xa0   :  { %510 = vmatmul.mubr.f32.gmra.mrb[6].mxu1 %v11996_v24  ;;  %8379 = vmatpush1.bf16.msra.mxu0 %v8378_v25  ;;  %v832_v25 = vld [vmem:[#allocation9 + $0x10] sm:$0xff]  ;;  %v12042_v30 = vpack.c.bf16 %v834_v22, %v830_v21  ;;  %v842_v35 = vld [vmem:[#allocation9 + $0x60] sm:$0xff]  ;;  %v851_v42 = vld [vmem:[#allocation9 + $0xa8] sm:$0xff] }
  0xa1   :  { %8411 = vmatpush1.bf16.msra.mxu1 %v8410_v28  ;;  %402 = vmatprep.mubr.f32.mxu0 %v14246_v2  ;;  %v839_v28 = vld [vmem:[#allocation9 + $0x48] sm:$0xff]  ;;  %v12045_v33 = vpack.c.bf16 %v836_v26, %v832_v25  ;;  %v853_v45 = vld [vmem:[#allocation9 + $0xb8] sm:$0xff]  ;;  %v850_v49 = vld [vmem:[#allocation9 + $0xa0] sm:$0xff] }
  0xa2   :  { %515 = vmatprep.mubr.f32.mxu1 %v14246_v2  ;;  %8381 = vmatprep.subr.bf16.mxu0 %v8380_v31  ;;  %v841_v31 = vld [vmem:[#allocation9 + $0x58] sm:$0xff]  ;;  %v12049_v36 = vpack.c.bf16 %v843_v29, %v839_v28  ;;  %v855_v54 = vld [vmem:[#allocation9 + $0xc8] sm:$0xff]  ;;  %v854_v60 = vld [vmem:[#allocation9 + $0xc0] sm:$0xff] }
  0xa3   :  { %403 = vmatmul.mubr.f32.gmra.mrb[8].mxu0 %v12005_v37  ;;  %8413 = vmatprep.subr.bf16.mxu1 %v8412_v34  ;;  %v838_v34 = vld [vmem:[#allocation9 + $0x40] sm:$0xff]  ;;  %v12053_v40 = vpack.c.bf16 %v845_v32, %v841_v31  ;;  %v857_v57 = vld [vmem:[#allocation9 + $0xd8] sm:$0xff]  ;;  %v860_v0 = vld [vmem:[#allocation9 + $0xf0] sm:$0xff] }
  0xa4   :  { %516 = vmatmul.mubr.f32.gmra.mrb[8].mxu1 %v12005_v37  ;;  %8383 = vmatpush1.bf16.msra.mxu0 %v8382_v38  ;;  %v840_v38 = vld [vmem:[#allocation9 + $0x50] sm:$0xff]  ;;  %v12057_v43 = vpack.c.bf16 %v842_v35, %v838_v34  ;;  %v863_v4 = vld [vmem:[#allocation9 + $0x108] sm:$0xff]  ;;  %v865_v7 = vld [vmem:[#allocation9 + $0x118] sm:$0xff] }
  0xa5   :  { %8415 = vmatpush1.bf16.msra.mxu1 %v8414_v41  ;;  %408 = vmatprep.mubr.f32.mxu0 %v14246_v2  ;;  %v847_v41 = vld [vmem:[#allocation9 + $0x88] sm:$0xff]  ;;  %v12061_v46 = vpack.c.bf16 %v844_v39, %v840_v38  ;;  %v869_v8 = vld [vmem:[#allocation9 + $0x138] sm:$0xff]  ;;  %v862_v10 = vld [vmem:[#allocation9 + $0x100] sm:$0xff] }
  0xa6   :  { %521 = vmatprep.mubr.f32.mxu1 %v14246_v2  ;;  %8385 = vmatprep.subr.bf16.mxu0 %v8384_v44  ;;  %v849_v44 = vld [vmem:[#allocation9 + $0x98] sm:$0xff]  ;;  %v12065_v50 = vpack.c.bf16 %v851_v42, %v847_v41  ;;  %v867_v5 = vld [vmem:[#allocation9 + $0x128] sm:$0xff]  ;;  %v866_v12 = vld [vmem:[#allocation9 + $0x120] sm:$0xff]  ;;  %v12101_v15 = vpack.c.bf16 %v869_v8, %v865_v7 }
  0xa7   :  { %409 = vmatmul.mubr.f32.gmra.mrb[10].mxu0 %v12014_v51  ;;  %8417 = vmatprep.subr.bf16.mxu1 %v8416_v47  ;;  %v846_v47 = vld [vmem:[#allocation9 + $0x80] sm:$0xff]  ;;  %v12069_v53 = vpack.c.bf16 %v853_v45, %v849_v44  ;;  %v868_v14 = vld [vmem:[#allocation9 + $0x130] sm:$0xff]  ;;  %v875_v18 = vld [vmem:[#allocation9 + $0x168] sm:$0xff]  ;;  %v12105_v19 = vpack.c.bf16 %v866_v12, %v862_v10 }
  0xa8   :  { %522 = vmatmul.mubr.f32.gmra.mrb[10].mxu1 %v12014_v51  ;;  %8387 = vmatpush1.bf16.msra.mxu0 %v8386_v52  ;;  %14467 = vst [vmem:[#allocation21_spill] sm:$0xff] %v12065_v50  ;;  %v852_v52 = vld [vmem:[#allocation9 + $0xb0] sm:$0xff]  ;;  %v12073_v56 = vpack.c.bf16 %v850_v49, %v846_v47  ;;  %14476 = vst [vmem:[#allocation30_spill] sm:$0xff] %v12101_v15  ;;  %v877_v21 = vld [vmem:[#allocation9 + $0x178] sm:$0xff] }
  0xa9   :  { %8419 = vmatpush1.bf16.msra.mxu1 %v8418_v55  ;;  %414 = vmatprep.mubr.f32.mxu0 %v14246_v2  ;;  %14468 = vst [vmem:[#allocation22_spill] sm:$0xff] %v12069_v53  ;;  %v859_v55 = vld [vmem:[#allocation9 + $0xe8] sm:$0xff]  ;;  %14477 = vst [vmem:[#allocation31_spill] sm:$0xff] %v12105_v19  ;;  %v870_v25 = vld [vmem:[#allocation9 + $0x140] sm:$0xff] }
  0xaa   :  { %527 = vmatprep.mubr.f32.mxu1 %v14246_v2  ;;  %8389 = vmatprep.subr.bf16.mxu0 %v8388_v58  ;;  %14469 = vst [vmem:[#allocation23_spill] sm:$0xff] %v12073_v56  ;;  %v861_v58 = vld [vmem:[#allocation9 + $0xf8] sm:$0xff]  ;;  %v12081_v63 = vpack.c.bf16 %v859_v55, %v855_v54  ;;  %v874_v26 = vld [vmem:[#allocation9 + $0x160] sm:$0xff]  ;;  %v876_v29 = vld [vmem:[#allocation9 + $0x170] sm:$0xff] }
  0xab   :  { %415 = vmatmul.mubr.f32.gmra.mrb[12].mxu0 %v12023_v1  ;;  %8421 = vmatprep.subr.bf16.mxu1 %v8420_v62  ;;  %v858_v62 = vld [vmem:[#allocation9 + $0xe0] sm:$0xff]  ;;  %v879_v32 = vld [vmem:[#allocation9 + $0x188] sm:$0xff]  ;;  %v12121_v35 = vpack.c.bf16 %v874_v26, %v870_v25  ;;  %v881_v38 = vld [vmem:[#allocation9 + $0x198] sm:$0xff] }
  0xac   :  { %528 = vmatmul.mubr.f32.gmra.mrb[12].mxu1 %v12023_v1  ;;  %8391 = vmatpush1.bf16.msra.mxu0 %v8390_v3  ;;  %14471 = vst [vmem:[#allocation25_spill] sm:$0xff] %v12081_v63  ;;  %v12085_v3 = vpack.c.bf16 %v861_v58, %v857_v57  ;;  %v883_v34 = vld [vmem:[#allocation9 + $0x1a8] sm:$0xff]  ;;  %v885_v39 = vld [vmem:[#allocation9 + $0x1b8] sm:$0xff]  ;;  %v878_v42 = vld [vmem:[#allocation9 + $0x180] sm:$0xff] }
  0xad   :  { %8423 = vmatpush1.bf16.msra.mxu1 %v8422_v6  ;;  %420 = vmatprep.mubr.f32.mxu0 %v14246_v2  ;;  %v12089_v6 = vpack.c.bf16 %v858_v62, %v854_v60  ;;  %14481 = vst [vmem:[#allocation35_spill] sm:$0xff] %v12121_v35  ;;  %v882_v44 = vld [vmem:[#allocation9 + $0x1a0] sm:$0xff]  ;;  %v12129_v45 = vpack.c.bf16 %v883_v34, %v879_v32  ;;  %v884_v47 = vld [vmem:[#allocation9 + $0x1b0] sm:$0xff]  ;;  %v889_v55 = vld [vmem:[#allocation9 + $0x1d8] sm:$0xff] }
  0xae   :  { %533 = vmatprep.mubr.f32.mxu1 %v14246_v2  ;;  %8393 = vmatprep.subr.bf16.mxu0 %v8392_v9  ;;  %14472 = vst [vmem:[#allocation26_spill] sm:$0xff] %v12085_v3  ;;  %v12133_v49 = vpack.c.bf16 %v885_v39, %v881_v38  ;;  %v12137_v54 = vpack.c.bf16 %v882_v44, %v878_v42  ;;  %v893_v57 = vld [vmem:[#allocation9 + $0x1f8] sm:$0xff]  ;;  %v886_v60 = vld [vmem:[#allocation9 + $0x1c0] sm:$0xff]  ;;  %v899_v7 = vld [vmem:[#allocation11 + $0x28] sm:$0xff] }
  0xaf   :  { %421 = vmatmul.mubr.f32.gmra.mrb[14].mxu0 %v12032_v16  ;;  %8425 = vmatprep.subr.bf16.mxu1 %v8424_v13  ;;  %14473 = vst [vmem:[#allocation27_spill] sm:$0xff] %v12089_v6  ;;  %v12097_v13 = vpack.c.bf16 %v867_v5, %v863_v4  ;;  %14483 = vst [vmem:[#allocation37_spill] sm:$0xff] %v12129_v45  ;;  %v890_v62 = vld [vmem:[#allocation9 + $0x1e0] sm:$0xff]  ;;  %v12149_v4 = vpack.c.bf16 %v893_v57, %v889_v55  ;;  %v895_v5 = vld [vmem:[#allocation11 + $0x8] sm:$0xff] }
  0xb0   :  { %534 = vmatmul.mubr.f32.gmra.mrb[14].mxu1 %v12032_v16  ;;  %8395 = vmatpush1.bf16.msra.mxu0 %v8394_v17  ;;  %v871_v17 = vld [vmem:[#allocation9 + $0x148] sm:$0xff]  ;;  %14484 = vst [vmem:[#allocation38_spill] sm:$0xff] %v12133_v49  ;;  %14485 = vst [vmem:[#allocation39_spill] sm:$0xff] %v12137_v54  ;;  %v12153_v8 = vpack.c.bf16 %v890_v62, %v886_v60  ;;  %v897_v10 = vld [vmem:[#allocation11 + $0x18] sm:$0xff] }
  0xb1   :  { %8427 = vmatpush1.bf16.msra.mxu1 %v8426_v20  ;;  %604 = vmatprep.mubr.f32.mxu0 %v14246_v2  ;;  %14475 = vst [vmem:[#allocation29_spill] sm:$0xff] %v12097_v13  ;;  %v873_v20 = vld [vmem:[#allocation9 + $0x158] sm:$0xff]  ;;  %v12113_v28 = vpack.c.bf16 %v875_v18, %v871_v17  ;;  %14488 = vst [vmem:[#allocation42_spill] sm:$0xff] %v12149_v4  ;;  %v898_v17 = vld [vmem:[#allocation11 + $0x20] sm:$0xff] }
  0xb2   :  { %717 = vmatprep.mubr.f32.mxu1 %v14246_v2  ;;  %8429 = vmatprep.subr.bf16.mxu0 %v12036_v23  ;;  %v12117_v31 = vpack.c.bf16 %v877_v21, %v873_v20  ;;  %14489 = vst [vmem:[#allocation43_spill] sm:$0xff] %v12153_v8  ;;  %v901_v12 = vld [vmem:[#allocation11 + $0x38] sm:$0xff]  ;;  %v896_v18 = vld [vmem:[#allocation11 + $0x10] sm:$0xff]  ;;  %v903_v21 = vld [vmem:[#allocation11 + $0x48] sm:$0xff] }
  0xb3   :  { %605 = vmatmul.mubr.f32.vlgmr.msra.gmra.mrb[16].mxu0 %v11971_v48  ;;  %8461 = vmatprep.subr.bf16.mxu1 %v12039_v27  ;;  %14479 = vst [vmem:[#allocation33_spill] sm:$0xff] %v12113_v28  ;;  %v900_v20 = vld [vmem:[#allocation11 + $0x30] sm:$0xff]  ;;  %v907_v25 = vld [vmem:[#allocation11 + $0x68] sm:$0xff]  ;;  %v12165_v26 = vpack.c.bf16 %v901_v12, %v897_v10  ;;  %v902_v39 = vld [vmem:[#allocation11 + $0x40] sm:$0xff] }
  0xb4   :  { %718 = vmatmul.mubr.f32.vlgmr.msra.gmra.mrb[16].mxu1 %v11971_v48  ;;  %8431 = vmatpush1.bf16.msra.mxu0 %v12042_v30  ;;  %v848_v48 = vld [vmem:[#allocation9 + $0x90] sm:$0xff]  ;;  %14480 = vst [vmem:[#allocation34_spill] sm:$0xff] %v12117_v31  ;;  %v12173_v34 = vpack.c.bf16 %v900_v20, %v896_v18  ;;  %v12175_v38 = vpack.c.bf16 %v907_v25, %v903_v21  ;;  %v906_v42 = vld [vmem:[#allocation11 + $0x60] sm:$0xff]  ;;  %v917_v55 = vld [vmem:[#allocation11 + $0xb8] sm:$0xff] }
  0xb5   :  { %8463 = vmatpush1.bf16.msra.mxu1 %v12045_v33  ;;  %610 = vmatprep.mubr.f32.mxu0 %v14246_v2  ;;  %v12077_v59 = vpack.c.bf16 %v852_v52, %v848_v48  ;;  %v887_v48 = vld [vmem:[#allocation9 + $0x1c8] sm:$0xff]  ;;  %14492 = vst [vmem:[#allocation46_spill] sm:$0xff] %v12165_v26  ;;  %v904_v44 = vld [vmem:[#allocation11 + $0x50] sm:$0xff]  ;;  %v12185_v57 = vpack.c.bf16 %v906_v42, %v902_v39  ;;  %v925_v18 = vld [vmem:[#allocation11 + $0xf8] sm:$0xff] }
  0xb6   :  { %723 = vmatprep.mubr.f32.mxu1 %v14246_v2  ;;  %8433 = vmatprep.subr.bf16.mxu0 %v12049_v36  ;;  %v891_v52 = vld [vmem:[#allocation9 + $0x1e8] sm:$0xff]  ;;  %v916_v10 = vld [vmem:[#allocation11 + $0xb0] sm:$0xff] }
  0xb7   :  { %611 = vmatmul.mubr.f32.gmra.mrb[18].mxu0 %v11978_v61  ;;  %8465 = vmatprep.subr.bf16.mxu1 %v12053_v40  ;;  %14470 = vst [vmem:[#allocation24_spill] sm:$0xff] %v12077_v59  ;;  %v919_v12 = vld [vmem:[#allocation11 + $0xc8] sm:$0xff]  ;;  %v920_v39 = vld [vmem:[#allocation11 + $0xd0] sm:$0xff] }
  0xb8   :  { %724 = vmatmul.mubr.f32.gmra.mrb[18].mxu1 %v11978_v61  ;;  %8435 = vmatpush1.bf16.msra.mxu0 %v12057_v43  ;;  %v856_v61 = vld [vmem:[#allocation9 + $0xd0] sm:$0xff] }
  0xb9   :  { %8467 = vmatpush1.bf16.msra.mxu1 %v12061_v46  ;;  %616 = vmatprep.mubr.f32.mxu0 %v14246_v2  ;;  %v12093_v9 = vpack.c.bf16 %v860_v0, %v856_v61  ;;  %v12145_v61 = vpack.c.bf16 %v891_v52, %v887_v48  ;;  %v892_v0 = vld [vmem:[#allocation9 + $0x1f0] sm:$0xff]  ;;  %v915_v48 = vld [vmem:[#allocation11 + $0xa8] sm:$0xff]  ;;  %v913_v52 = vld [vmem:[#allocation11 + $0x98] sm:$0xff] }
  0xba   :  { %729 = vmatprep.mubr.f32.mxu1 %v14246_v2  ;;  %8437 = vmatprep.subr.bf16.mxu0 %v12065_v50 }
  0xbb   :  { %617 = vmatmul.mubr.f32.gmra.mrb[20].mxu0 %v11987_v11  ;;  %8469 = vmatprep.subr.bf16.mxu1 %v12069_v53  ;;  %14474 = vst [vmem:[#allocation28_spill] sm:$0xff] %v12093_v9  ;;  %14487 = vst [vmem:[#allocation41_spill] sm:$0xff] %v12145_v61 }
  0xbc   :  { %730 = vmatmul.mubr.f32.gmra.mrb[20].mxu1 %v11987_v11  ;;  %8439 = vmatpush1.bf16.msra.mxu0 %v12073_v56  ;;  %v864_v11 = vld [vmem:[#allocation9 + $0x110] sm:$0xff] }
  0xbd   :  { %8471 = vmatpush1.bf16.msra.mxu1 %v12077_v59  ;;  %622 = vmatprep.mubr.f32.mxu0 %v14246_v2  ;;  %v12109_v22 = vpack.c.bf16 %v868_v14, %v864_v11  ;;  %v894_v14 = vld [vmem:[#allocation11] sm:$0xff] }
  0xbe   :  { %735 = vmatprep.mubr.f32.mxu1 %v14246_v2  ;;  %8441 = vmatprep.subr.bf16.mxu0 %v12081_v63  ;;  %v12169_v32 = vpack.c.bf16 %v898_v17, %v894_v14  ;;  %v923_v14 = vld [vmem:[#allocation11 + $0xe8] sm:$0xff]  ;;  %v921_v17 = vld [vmem:[#allocation11 + $0xd8] sm:$0xff] }
  0xbf   :  { %623 = vmatmul.mubr.f32.gmra.mrb[22].mxu0 %v11996_v24  ;;  %8473 = vmatprep.subr.bf16.mxu1 %v12085_v3  ;;  %14478 = vst [vmem:[#allocation32_spill] sm:$0xff] %v12109_v22  ;;  %v12205_v25 = vpack.c.bf16 %v923_v14, %v919_v12  ;;  %v12208_v42 = vpack.c.bf16 %v925_v18, %v921_v17  ;;  %v928_v12 = vld [vmem:[#allocation11 + $0x110] sm:$0xff]  ;;  %v935_v18 = vld [vmem:[#allocation11 + $0x148] sm:$0xff] }
  0xc0   :  { %736 = vmatmul.mubr.f32.gmra.mrb[22].mxu1 %v11996_v24  ;;  %8443 = vmatpush1.bf16.msra.mxu0 %v12089_v6  ;;  %v872_v24 = vld [vmem:[#allocation9 + $0x150] sm:$0xff] }
  0xc1   :  { %8475 = vmatpush1.bf16.msra.mxu1 %v12093_v9  ;;  %628 = vmatprep.mubr.f32.mxu0 %v14246_v2  ;;  %v12125_v41 = vpack.c.bf16 %v876_v29, %v872_v24  ;;  %v905_v24 = vld [vmem:[#allocation11 + $0x58] sm:$0xff]  ;;  %14494 = vst [vmem:[#allocation48_spill] sm:$0xff] %v12205_v25  ;;  %14495 = vst [vmem:[#allocation49_spill] sm:$0xff] %v12208_v42  ;;  %v932_v17 = vld [vmem:[#allocation11 + $0x130] sm:$0xff] }
  0xc2   :  { %741 = vmatprep.mubr.f32.mxu1 %v14246_v2  ;;  %8445 = vmatprep.subr.bf16.mxu0 %v12097_v13  ;;  %v909_v29 = vld [vmem:[#allocation11 + $0x78] sm:$0xff] }
  0xc3   :  { %629 = vmatmul.mubr.f32.gmra.mrb[24].mxu0 %v12005_v37  ;;  %8477 = vmatprep.subr.bf16.mxu1 %v12101_v15  ;;  %14482 = vst [vmem:[#allocation36_spill] sm:$0xff] %v12125_v41 }
  0xc4   :  { %742 = vmatmul.mubr.f32.gmra.mrb[24].mxu1 %v12005_v37  ;;  %8447 = vmatpush1.bf16.msra.mxu0 %v12105_v19  ;;  %v880_v37 = vld [vmem:[#allocation9 + $0x190] sm:$0xff] }
  0xc5   :  { %8479 = vmatpush1.bf16.msra.mxu1 %v12109_v22  ;;  %634 = vmatprep.mubr.f32.mxu0 %v14246_v2  ;;  %v12141_v58 = vpack.c.bf16 %v884_v47, %v880_v37  ;;  %v908_v37 = vld [vmem:[#allocation11 + $0x70] sm:$0xff]  ;;  %v911_v47 = vld [vmem:[#allocation11 + $0x88] sm:$0xff] }
  0xc6   :  { %747 = vmatprep.mubr.f32.mxu1 %v14246_v2  ;;  %8449 = vmatprep.subr.bf16.mxu0 %v12113_v28  ;;  %v12189_v60 = vpack.c.bf16 %v908_v37, %v904_v44  ;;  %v12191_v62 = vpack.c.bf16 %v915_v48, %v911_v47  ;;  %v924_v44 = vld [vmem:[#allocation11 + $0xf0] sm:$0xff]  ;;  %v927_v37 = vld [vmem:[#allocation11 + $0x108] sm:$0xff]  ;;  %v929_v48 = vld [vmem:[#allocation11 + $0x118] sm:$0xff] }
  0xc7   :  { %635 = vmatmul.mubr.f32.gmra.mrb[26].mxu0 %v12014_v51  ;;  %8481 = vmatprep.subr.bf16.mxu1 %v12117_v31  ;;  %14486 = vst [vmem:[#allocation40_spill] sm:$0xff] %v12141_v58  ;;  %v931_v47 = vld [vmem:[#allocation11 + $0x128] sm:$0xff] }
  0xc8   :  { %748 = vmatmul.mubr.f32.gmra.mrb[26].mxu1 %v12014_v51  ;;  %8451 = vmatpush1.bf16.msra.mxu0 %v12121_v35  ;;  %v888_v51 = vld [vmem:[#allocation9 + $0x1d0] sm:$0xff] }
  0xc9   :  { %8483 = vmatpush1.bf16.msra.mxu1 %v12125_v41  ;;  %640 = vmatprep.mubr.f32.mxu0 %v14246_v2  ;;  %v12157_v11 = vpack.c.bf16 %v892_v0, %v888_v51  ;;  %v910_v51 = vld [vmem:[#allocation11 + $0x80] sm:$0xff] }
  0xca   :  { %753 = vmatprep.mubr.f32.mxu1 %v14246_v2  ;;  %8453 = vmatprep.subr.bf16.mxu0 %v12129_v45  ;;  %v914_v0 = vld [vmem:[#allocation11 + $0xa0] sm:$0xff] }
  0xcb   :  { %641 = vmatmul.mubr.f32.gmra.mrb[28].mxu0 %v12023_v1  ;;  %8485 = vmatprep.subr.bf16.mxu1 %v12133_v49  ;;  %14490 = vst [vmem:[#allocation44_spill] sm:$0xff] %v12157_v11  ;;  %v12199_v20 = vpack.c.bf16 %v914_v0, %v910_v51  ;;  %v12215_v51 = vpack.c.bf16 %v924_v44, %v920_v39 }
  0xcc   :  { %754 = vmatmul.mubr.f32.gmra.mrb[28].mxu1 %v12023_v1  ;;  %8455 = vmatpush1.bf16.msra.mxu0 %v12137_v54  ;;  %v12161_v1 = vpack.c.bf16 %v899_v7, %v895_v5  ;;  %v912_v5 = vld [vmem:[#allocation11 + $0x90] sm:$0xff]  ;;  %v12194_v7 = vpack.c.bf16 %v917_v55, %v913_v52  ;;  %v933_v52 = vld [vmem:[#allocation11 + $0x138] sm:$0xff]  ;;  %v12217_v0 = vpack.c.bf16 %v931_v47, %v927_v37  ;;  %v934_v37 = vld [vmem:[#allocation11 + $0x140] sm:$0xff] }
  0xcd   :  { %8487 = vmatpush1.bf16.msra.mxu1 %v12141_v58  ;;  %646 = vmatprep.mubr.f32.mxu0 %v14246_v2  ;;  %v12203_v21 = vpack.c.bf16 %v916_v10, %v912_v5  ;;  %14497 = vst [vmem:[#allocation51_spill] sm:$0xff] %v12215_v51  ;;  %v926_v5 = vld [vmem:[#allocation11 + $0x100] sm:$0xff]  ;;  %v12220_v14 = vpack.c.bf16 %v933_v52, %v929_v48  ;;  %v936_v48 = vld [vmem:[#allocation11 + $0x150] sm:$0xff] }
  0xce   :  { %759 = vmatprep.mubr.f32.mxu1 %v14246_v2  ;;  %8457 = vmatprep.subr.bf16.mxu0 %v12145_v61  ;;  %14491 = vst [vmem:[#allocation45_spill] sm:$0xff] %v12161_v1  ;;  %14498 = vst [vmem:[#allocation52_spill] sm:$0xff] %v12217_v0  ;;  %v930_v10 = vld [vmem:[#allocation11 + $0x120] sm:$0xff]  ;;  %v12227_v39 = vpack.c.bf16 %v932_v17, %v928_v12 }
  0xcf   :  { %647 = vmatmul.mubr.f32.gmra.mrb[30].mxu0 %v12032_v16  ;;  %8489 = vmatprep.subr.bf16.mxu1 %v12149_v4  ;;  %14493 = vst [vmem:[#allocation47_spill] sm:$0xff] %v12203_v21  ;;  %14499 = vst [vmem:[#allocation53_spill] sm:$0xff] %v12220_v14  ;;  %v938_v47 = vld [vmem:[#allocation11 + $0x160] sm:$0xff] }
  0xd0   :  { %760 = vmatmul.mubr.f32.gmra.mrb[30].mxu1 %v12032_v16  ;;  %8459 = vmatpush1.bf16.msra.mxu0 %v12153_v8  ;;  %v12179_v16 = vpack.c.bf16 %v909_v29, %v905_v24  ;;  %v918_v24 = vld [vmem:[#allocation11 + $0xc0] sm:$0xff]  ;;  %14501 = vst [vmem:[#allocation55_spill] sm:$0xff] %v12227_v39 }
  0xd1   :  { %8491 = vmatpush1.bf16.msra.mxu1 %v12157_v11  ;;  %1026 = vmatprep.mubr.f32.mxu0 %v14246_v2  ;;  %v922_v29 = vld [vmem:[#allocation11 + $0xe0] sm:$0xff] }
  0xd2   :  { %1097 = vmatprep.mubr.f32.mxu1 %v14246_v2  ;;  %8493 = vmatprep.subr.bf16.mxu0 %v12161_v1  ;;  %v12211_v55 = vpack.c.bf16 %v922_v29, %v918_v24  ;;  %v937_v24 = vld [vmem:[#allocation11 + $0x158] sm:$0xff]  ;;  %v942_v17 = vld [vmem:[#allocation11 + $0x180] sm:$0xff] }
  0xd3   :  { %1027 = vmatmul.mubr.f32.vlgmr.msra.gmra.mrb[0].mxu0 %v14246_v2  ;;  %8525 = vmatprep.subr.bf16.mxu1 %v12165_v26  ;;  %v941_v29 = vld [vmem:[#allocation11 + $0x178] sm:$0xff] }
  0xd4   :  { %1098 = vmatmul.mubr.f32.vlgmr.msra.gmra.mrb[0].mxu1 %v14246_v2  ;;  %8495 = vmatpush1.bf16.msra.mxu0 %v12169_v32  ;;  %14496 = vst [vmem:[#allocation50_spill] sm:$0xff] %v12211_v55  ;;  %v12232_v52 = vpack.c.bf16 %v941_v29, %v937_v24  ;;  %v944_v24 = vld [vmem:[#allocation11 + $0x190] sm:$0xff] }
  0xd5   :  { %8527 = vmatpush1.bf16.msra.mxu1 %v12173_v34  ;;  %8497 = vmatprep.subr.bf16.mxu0 %v12175_v38 }
  0xd6   :  { %8529 = vmatprep.subr.bf16.mxu1 %v12179_v16  ;;  %1177 = vmatprep.mubr.f32.mxu0 %v14246_v2  ;;  %14502 = vst [vmem:[#allocation56_spill] sm:$0xff] %v12232_v52 }
  0xd7   :  { %1248 = vmatprep.mubr.f32.mxu1 %v14246_v2  ;;  %v939_v2 = vld [vmem:[#allocation11 + $0x168] sm:$0xff] }
  0xd8   :  { %8499 = vmatpush1.bf16.msra.mxu0 %v12185_v57  ;;  %v12229_v44 = vpack.c.bf16 %v939_v2, %v935_v18  ;;  %v946_v18 = vld [vmem:[#allocation11 + $0x1a0] sm:$0xff] }
  0xd9   :  { %8531 = vmatpush1.bf16.msra.mxu1 %v12189_v60  ;;  %8501 = vmatprep.subr.bf16.mxu0 %v12191_v62 }
  0xda   :  { %8533 = vmatprep.subr.bf16.mxu1 %v12194_v7 }
  0xdc   :  { %8503 = vmatpush1.bf16.msra.mxu0 %v12199_v20 }
  0xdd   :  { %8535 = vmatpush1.bf16.msra.mxu1 %v12203_v21  ;;  %8505 = vmatprep.subr.bf16.mxu0 %v12205_v25  ;;  %v12223_v21 = vpack.c.bf16 %v930_v10, %v926_v5  ;;  %v943_v25 = vld [vmem:[#allocation11 + $0x188] sm:$0xff]  ;;  %v945_v5 = vld [vmem:[#allocation11 + $0x198] sm:$0xff] }
  0xde   :  { %8537 = vmatprep.subr.bf16.mxu1 %v12208_v42  ;;  %v940_v42 = vld [vmem:[#allocation11 + $0x170] sm:$0xff]  ;;  %v949_v10 = vld [vmem:[#allocation11 + $0x1b8] sm:$0xff] }
  0xdf   :  { %14500 = vst [vmem:[#allocation54_spill] sm:$0xff] %v12223_v21  ;;  %v12239_v2 = vpack.c.bf16 %v940_v42, %v936_v48  ;;  %v12244_v29 = vpack.c.bf16 %v949_v10, %v945_v5  ;;  %v954_v48 = vld [vmem:[#allocation11 + $0x1e0] sm:$0xff]  ;;  %v952_v10 = vld [vmem:[#allocation11 + $0x1d0] sm:$0xff] }
  0xe0   :  { %8507 = vmatpush1.bf16.msra.mxu0 %v12211_v55  ;;  %v947_v55 = vld [vmem:[#allocation11 + $0x1a8] sm:$0xff] }
  0xe1   :  { %8539 = vmatpush1.bf16.msra.mxu1 %v12215_v51  ;;  %8509 = vmatprep.subr.bf16.mxu0 %v12217_v0  ;;  %v12235_v51 = vpack.c.bf16 %v938_v47, %v934_v37  ;;  %v12241_v12 = vpack.c.bf16 %v947_v55, %v943_v25  ;;  %v951_v0 = vld [vmem:[#allocation11 + $0x1c8] sm:$0xff]  ;;  %v953_v37 = vld [vmem:[#allocation11 + $0x1d8] sm:$0xff]  ;;  %v950_v55 = vld [vmem:[#allocation11 + $0x1c0] sm:$0xff] }
  0xe2   :  { %8541 = vmatprep.subr.bf16.mxu1 %v12220_v14  ;;  %v948_v14 = vld [vmem:[#allocation11 + $0x1b0] sm:$0xff]  ;;  %v957_v47 = vld [vmem:[#allocation11 + $0x1f8] sm:$0xff] }
  0xe3   :  { %v12251_v25 = vpack.c.bf16 %v948_v14, %v944_v24  ;;  %v12256_v5 = vpack.c.bf16 %v957_v47, %v953_v37  ;;  %v272_v24 = vld [vmem:[%s14232_s2] sm:$0xff] }
  0xe4   :  { %8511 = vmatpush1.bf16.msra.mxu0 %v12223_v21  ;;  %v955_v21 = vld [vmem:[#allocation11 + $0x1e8] sm:$0xff] }
  0xe5   :  { %8543 = vmatpush1.bf16.msra.mxu1 %v12227_v39  ;;  %8513 = vmatprep.subr.bf16.mxu0 %v12229_v44  ;;  %v12247_v39 = vpack.c.bf16 %v946_v18, %v942_v17  ;;  %v12253_v42 = vpack.c.bf16 %v955_v21, %v951_v0  ;;  %v12259_v17 = vpack.c.bf16 %v954_v48, %v950_v55  ;;  %v14503_v21 = vmov 0.0  }
  0xe6   :  { %8545 = vmatprep.subr.bf16.mxu1 %v12232_v52  ;;  %v956_v52 = vld [vmem:[#allocation11 + $0x1f0] sm:$0xff]  ;;  %v274_v0 = vlaneseq }
  0xe7   :  { %v12263_v14 = vpack.c.bf16 %v956_v52, %v952_v10 }
  0xe8   :  { %8515 = vmatpush1.bf16.msra.mxu0 %v12235_v51  ;;  %v12306_v52 = vshrl.u32 %v274_v0, 7 }
  0xe9   :  { %8547 = vmatpush1.bf16.msra.mxu1 %v12239_v2  ;;  %8517 = vmatprep.subr.bf16.mxu0 %v12241_v12 }
  0xea   :  { %8549 = vmatprep.subr.bf16.mxu1 %v12244_v29  ;;  %14504 = vst [vmem:[#allocation57_spill] sm:$0xff] %v12306_v52  ;;  %v14280_v18 = vsub.s32 0, %v12306_v52  ;;  %v14281_v37 = vsub.s32 1, %v12306_v52  ;;  %v14288_v10 = vsub.s32 3, %v12306_v52 }
  0xec   :  { %8519 = vmatpush1.bf16.msra.mxu0 %v12247_v39  ;;  %v12315_v47 = vrot.slane %v272_v24, %v14280_v18  ;;  %v12319_v55 = vrot.slane %v272_v24, %v14281_v37  ;;  %v12326_v18 = vrot.slane %v272_v24, %v14288_v10  ;;  %v14293_v37 = vsub.s32 2, %v12306_v52 }
  0xed   :  { %8551 = vmatpush1.bf16.msra.mxu1 %v12251_v25  ;;  %8521 = vmatprep.subr.bf16.mxu0 %v12253_v42 }
  0xee   :  { %8553 = vmatprep.subr.bf16.mxu1 %v12256_v5  ;;  %14505 = vst [vmem:[#allocation58_spill] sm:$0xff] %v12315_v47  ;;  %14506 = vst [vmem:[#allocation59_spill] sm:$0xff] %v12319_v55 }
  0xef   :  { %14507 = vst [vmem:[#allocation60_spill] sm:$0xff] %v12326_v18 }
  0xf0   :  { %8523 = vmatpush1.bf16.msra.mxu0 %v12259_v17 }
  0xf1   :  { %8555 = vmatpush1.bf16.msra.mxu1 %v12263_v14  ;;  %8557 = vmatprep.subr.bf16.mxu0 %v12036_v23 }
  0xf2   :  { %8589 = vmatprep.subr.bf16.mxu1 %v12039_v27 }
  0xf3   :  { %1178 = vmatmul.mubr.f32.vlgmr.msra.gmra.mrb[30].mxu0 %v14503_v21 }
  0xf4   :  { %1249 = vmatmul.mubr.f32.vlgmr.msra.gmra.mrb[30].mxu1 %v14503_v21  ;;  %8559 = vmatpush1.bf16.msra.mxu0 %v12042_v30 }
  0xf5   :  { %8591 = vmatpush1.bf16.msra.mxu1 %v12045_v33  ;;  %8561 = vmatprep.subr.bf16.mxu0 %v12049_v36 }
  0xf6   :  { %8593 = vmatprep.subr.bf16.mxu1 %v12053_v40  ;;  %1379 = vmatprep.mubr.f32.mxu0 %v14503_v21 }
  0xf7   :  { %1450 = vmatprep.mubr.f32.mxu1 %v14503_v21 }
  0xf8   :  { %8563 = vmatpush1.bf16.msra.mxu0 %v12057_v43 }
  0xf9   :  { %8595 = vmatpush1.bf16.msra.mxu1 %v12061_v46  ;;  %8565 = vmatprep.subr.bf16.mxu0 %v12065_v50 }
  0xfa   :  { %8597 = vmatprep.subr.bf16.mxu1 %v12069_v53 }
  0xfc   :  { %8567 = vmatpush1.bf16.msra.mxu0 %v12073_v56 }
  0xfd   :  { %8599 = vmatpush1.bf16.msra.mxu1 %v12077_v59  ;;  %8569 = vmatprep.subr.bf16.mxu0 %v12081_v63 }
  0xfe   :  { %8601 = vmatprep.subr.bf16.mxu1 %v12085_v3 }
 0x100   :  { %8571 = vmatpush1.bf16.msra.mxu0 %v12089_v6 }
 0x101   :  { %8603 = vmatpush1.bf16.msra.mxu1 %v12093_v9  ;;  %8573 = vmatprep.subr.bf16.mxu0 %v12097_v13 }
 0x102   :  { %8605 = vmatprep.subr.bf16.mxu1 %v12101_v15 }
 0x104   :  { %8575 = vmatpush1.bf16.msra.mxu0 %v12105_v19 }
 0x105   :  { %8607 = vmatpush1.bf16.msra.mxu1 %v12109_v22  ;;  %8577 = vmatprep.subr.bf16.mxu0 %v12113_v28 }
 0x106   :  { %8609 = vmatprep.subr.bf16.mxu1 %v12117_v31 }
 0x108   :  { %8579 = vmatpush1.bf16.msra.mxu0 %v12121_v35 }
 0x109   :  { %8611 = vmatpush1.bf16.msra.mxu1 %v12125_v41  ;;  %8581 = vmatprep.subr.bf16.mxu0 %v12129_v45 }
 0x10a   :  { %8613 = vmatprep.subr.bf16.mxu1 %v12133_v49 }
 0x10c   :  { %8583 = vmatpush1.bf16.msra.mxu0 %v12137_v54 }
 0x10d   :  { %8615 = vmatpush1.bf16.msra.mxu1 %v12141_v58  ;;  %8585 = vmatprep.subr.bf16.mxu0 %v12145_v61 }
 0x10e   :  { %8617 = vmatprep.subr.bf16.mxu1 %v12149_v4 }
 0x110   :  { %8587 = vmatpush1.bf16.msra.mxu0 %v12153_v8 }
 0x111   :  { %8619 = vmatpush1.bf16.msra.mxu1 %v12157_v11  ;;  %8621 = vmatprep.subr.bf16.mxu0 %v12161_v1 }
 0x112   :  { %8653 = vmatprep.subr.bf16.mxu1 %v12165_v26 }
 0x1a6   :  { %v1028_v48 = vpop.f32.mrb[0].mxu0 }
 0x1a7   :  { %v10820_v0 = vadd.f32 %v1028_v48, %v12315_v47  ;;  %v1099_v26 = vpop.f32.mrb[0].mxu1  ;;  %v1030_v1 = vpop.f32.mrb[1].mxu0  ;;  %v12332_v48 = vrot.slane %v272_v24, %v14293_v37 }
 0x1a8   :  { %v10821_v11 = vadd.f32 %v1030_v1, %v12319_v55  ;;  %v1101_v8 = vpop.f32.mrb[1].mxu1 }
 0x1a9   :  { %v8057_v4 = vmul.f32 -1.442695, %v10820_v0  ;;  %v10837_v58 = vadd.f32 %v1101_v8, %v12326_v18  ;;  %14508 = vst [vmem:[#allocation61_spill] sm:$0xff] %v12332_v48  ;;  %v10836_v1 = vadd.f32 %v1099_v26, %v12332_v48  ;;  %v14299_v8 = vsub.s32 5, %v12306_v52 }
 0x1aa   :  { %v8058_v61 = vmul.f32 -1.442695, %v10821_v11 }
 0x1ab   :  { %11092 = vpow2.f32 %v8057_v4  ;;  %v8059_v47 = vmul.f32 -1.442695, %v10837_v58  ;;  %v14298_v4 = vsub.s32 4, %v12306_v52 }
 0x1ac   :  { %11094 = vpow2.f32 %v8058_v61 }
 0x1ad   :  { %11096 = vpow2.f32 %v8059_v47  ;;  %v12339_v26 = vrot.slane %v272_v24, %v14298_v4  ;;  %v12343_v47 = vrot.slane %v272_v24, %v14299_v8 }
 0x1ae   :  { %11098 = vtanh.f32 %v10836_v1 }
 0x1af   :  { %14509 = vst [vmem:[#allocation62_spill] sm:$0xff] %v12339_v26  ;;  %14510 = vst [vmem:[#allocation63_spill] sm:$0xff] %v12343_v47 }
 0x1b5   :  { %v11093_v55 = vpop.eup %11092 }
 0x1b6   :  { %v11095_v0 = vpop.eup %11094  ;;  %v1262_v11 = vadd.f32 1.0, %v11093_v55 }
 0x1b7   :  { %v1268_v10 = vadd.f32 1.0, %v11095_v0  ;;  %v11097_v61 = vpop.eup %11096  ;;  %v14305_v0 = vsub.s32 7, %v12306_v52 }
 0x1b8   :  { %11100 = vrcp.f32 %v1262_v11  ;;  %v11099_v18 = vpop.eup %11098  ;;  %v1275_v58 = vadd.f32 1.0, %v11097_v61 }
 0x1b9   :  { %11102 = vrcp.f32 %v1268_v10  ;;  %v12353_v8 = vrot.slane %v272_v24, %v14305_v0  ;;  %v14518_v0 = vld [vmem:[#allocation53_spill] sm:$0xff] }
 0x1ba   :  { %11104 = vrcp.f32 %v1275_v58 }
 0x1c2   :  { %v11101_v54 = vpop.eup %11100 }
 0x1c3   :  { %v11103_v37 = vpop.eup %11102  ;;  %v1279_v49 = vmul.f32 %v11101_v54, %v11099_v18 }
 0x1c4   :  { %v1278_v55 = vmul.f32 0.0, %v11103_v37 }
 0x1c6   :  { %v12345_v10 = vadd.f32 %v1279_v49, %v1278_v55  ;;  %v1179_v1 = vpop.f32.mrb[30].mxu0  ;;  %v14304_v49 = vsub.s32 6, %v12306_v52 }
 0x1c7   :  { %v10866_v11 = vadd.f32 %v1179_v1, %v12339_v26  ;;  %v1250_v48 = vpop.f32.mrb[30].mxu1  ;;  %v1181_v54 = vpop.f32.mrb[31].mxu0 }
 0x1c8   :  { %11106 = vtanh.f32 %v12345_v10  ;;  %v10867_v18 = vadd.f32 %v1181_v54, %v12343_v47  ;;  %v1252_v61 = vpop.f32.mrb[31].mxu1  ;;  %v12359_v55 = vrot.slane %v272_v24, %v14304_v49  ;;  %v11105_v1 = vpop.eup %11104  ;;  %v14517_v49 = vld [vmem:[#allocation52_spill] sm:$0xff] }
 0x1c9   :  { %v8060_v37 = vmul.f32 -1.442695, %v10866_v11  ;;  %v10883_v58 = vadd.f32 %v1252_v61, %v12353_v8  ;;  %v14514_v61 = vld [vmem:[#allocation49_spill] sm:$0xff] }
 0x1ca   :  { %v8061_v4 = vmul.f32 -1.442695, %v10867_v18  ;;  %v10882_v11 = vadd.f32 %v1250_v48, %v12359_v55  ;;  %v14512_v48 = vld [vmem:[#allocation47_spill] sm:$0xff] }
 0x1cb   :  { %11108 = vpow2.f32 %v8060_v37  ;;  %v8062_v54 = vmul.f32 -1.442695, %v10883_v58 }
 0x1cc   :  { %11110 = vpow2.f32 %v8061_v4 }
 0x1cd   :  { %11112 = vpow2.f32 %v8062_v54 }
 0x1ce   :  { %11114 = vtanh.f32 %v10882_v11  ;;  %v14515_v11 = vld [vmem:[#allocation50_spill] sm:$0xff] }
 0x1d2   :  { %v11107_v26 = vpop.eup %11106 }
 0x1d3   :  { %v12361_v47 = vmul.f32 %v11107_v26, %v11105_v1  ;;  %v14513_v26 = vld [vmem:[#allocation48_spill] sm:$0xff] }
 0x1d5   :  { %14511 = vst [vmem:[#allocation64_spill] sm:$0xff] %v12361_v47  ;;  %v11109_v18 = vpop.eup %11108  ;;  %1380 = vmatmul.mubr.f32.vlgmr.msra.gmra.mrb[2].mxu0 %v12361_v47  ;;  %1451 = vmatmul.mubr.f32.vlgmr.msra.gmra.mrb[2].mxu1 %v12361_v47 }
 0x1d6   :  { %v11111_v37 = vpop.eup %11110  ;;  %v1286_v4 = vadd.f32 1.0, %v11109_v18  ;;  %8623 = vmatpush1.bf16.msra.mxu0 %v12169_v32  ;;  %8655 = vmatpush1.bf16.msra.mxu1 %v12173_v34  ;;  %v14516_v18 = vld [vmem:[#allocation51_spill] sm:$0xff] }
 0x1d7   :  { %v1292_v24 = vadd.f32 1.0, %v11111_v37  ;;  %8625 = vmatprep.subr.bf16.mxu0 %v12175_v38  ;;  %8657 = vmatprep.subr.bf16.mxu1 %v12179_v16  ;;  %v11113_v58 = vpop.eup %11112 }
 0x1d8   :  { %11116 = vrcp.f32 %v1286_v4  ;;  %1530 = vmatprep.mubr.f32.mxu0 %v14503_v21  ;;  %1601 = vmatprep.mubr.f32.mxu1 %v14503_v21  ;;  %v11115_v1 = vpop.eup %11114 }
 0x1d9   :  { %11118 = vrcp.f32 %v1292_v24  ;;  %v1299_v24 = vadd.f32 1.0, %v11113_v58 }
 0x1da   :  { %8627 = vmatpush1.bf16.msra.mxu0 %v12185_v57  ;;  %8659 = vmatpush1.bf16.msra.mxu1 %v12189_v60 }
 0x1db   :  { %8629 = vmatprep.subr.bf16.mxu0 %v12191_v62  ;;  %8661 = vmatprep.subr.bf16.mxu1 %v12194_v7  ;;  %11120 = vrcp.f32 %v1299_v24  ;;  %v14526_v24 = vld [vmem:[#allocation41_spill] sm:$0xff] }
 0x1de   :  { %8631 = vmatpush1.bf16.msra.mxu0 %v12199_v20  ;;  %8663 = vmatpush1.bf16.msra.mxu1 %v14512_v48 }
 0x1df   :  { %8633 = vmatprep.subr.bf16.mxu0 %v14513_v26  ;;  %8665 = vmatprep.subr.bf16.mxu1 %v14514_v61  ;;  %v14519_v26 = vld [vmem:[#allocation54_spill] sm:$0xff]  ;;  %v14520_v61 = vld [vmem:[#allocation55_spill] sm:$0xff] }
 0x1e2   :  { %v11117_v54 = vpop.eup %11116  ;;  %8635 = vmatpush1.bf16.msra.mxu0 %v14515_v11  ;;  %8667 = vmatpush1.bf16.msra.mxu1 %v14516_v18  ;;  %v14521_v11 = vld [vmem:[#allocation56_spill] sm:$0xff] }
 0x1e3   :  { %v11119_v37 = vpop.eup %11118  ;;  %v1303_v4 = vmul.f32 %v11117_v54, %v11115_v1  ;;  %8637 = vmatprep.subr.bf16.mxu0 %v14517_v49  ;;  %8669 = vmatprep.subr.bf16.mxu1 %v14518_v0  ;;  %v14523_v54 = vld [vmem:[#allocation38_spill] sm:$0xff] }
 0x1e4   :  { %v1302_v52 = vmul.f32 0.0, %v11119_v37  ;;  %v14524_v37 = vld [vmem:[#allocation39_spill] sm:$0xff] }
 0x1e6   :  { %v12384_v47 = vadd.f32 %v1303_v4, %v1302_v52  ;;  %8639 = vmatpush1.bf16.msra.mxu0 %v14519_v26  ;;  %8671 = vmatpush1.bf16.msra.mxu1 %v14520_v61  ;;  %v11121_v52 = vpop.eup %11120  ;;  %v14525_v4 = vld [vmem:[#allocation40_spill] sm:$0xff] }
 0x1e7   :  { %8641 = vmatprep.subr.bf16.mxu0 %v12229_v44  ;;  %8673 = vmatprep.subr.bf16.mxu1 %v14521_v11 }
 0x1e8   :  { %11122 = vtanh.f32 %v12384_v47 }
 0x1ea   :  { %8643 = vmatpush1.bf16.msra.mxu0 %v12235_v51  ;;  %8675 = vmatpush1.bf16.msra.mxu1 %v12239_v2 }
 0x1eb   :  { %8645 = vmatprep.subr.bf16.mxu0 %v12241_v12  ;;  %8677 = vmatprep.subr.bf16.mxu1 %v12244_v29 }
 0x1ee   :  { %8647 = vmatpush1.bf16.msra.mxu0 %v12247_v39  ;;  %8679 = vmatpush1.bf16.msra.mxu1 %v12251_v25 }
 0x1ef   :  { %8649 = vmatprep.subr.bf16.mxu0 %v12253_v42  ;;  %8681 = vmatprep.subr.bf16.mxu1 %v12256_v5 }
 0x1f2   :  { %v11123_v58 = vpop.eup %11122  ;;  %8651 = vmatpush1.bf16.msra.mxu0 %v12259_v17  ;;  %8683 = vmatpush1.bf16.msra.mxu1 %v12263_v14 }
 0x1f3   :  { %v12401_v1 = vmul.f32 %v11123_v58, %v11121_v52  ;;  %8685 = vmatprep.subr.bf16.mxu0 %v12036_v23  ;;  %8717 = vmatprep.subr.bf16.mxu1 %v12039_v27  ;;  %v14527_v52 = vld [vmem:[#allocation42_spill] sm:$0xff]  ;;  %v14528_v58 = vld [vmem:[#allocation43_spill] sm:$0xff] }
 0x1f5   :  { %14522 = vst [vmem:[#allocation47_spill] sm:$0xff] %v12401_v1  ;;  %1531 = vmatmul.mubr.f32.vlgmr.msra.gmra.mrb[28].mxu0 %v12401_v1  ;;  %1602 = vmatmul.mubr.f32.vlgmr.msra.gmra.mrb[28].mxu1 %v12401_v1  ;;  %v14529_v1 = vld [vmem:[#allocation44_spill] sm:$0xff] }
 0x1f6   :  { %8687 = vmatpush1.bf16.msra.mxu0 %v12042_v30  ;;  %8719 = vmatpush1.bf16.msra.mxu1 %v12045_v33 }
 0x1f7   :  { %8689 = vmatprep.subr.bf16.mxu0 %v12049_v36  ;;  %8721 = vmatprep.subr.bf16.mxu1 %v12053_v40 }
 0x1f8   :  { %1733 = vmatprep.mubr.f32.mxu0 %v14503_v21  ;;  %1804 = vmatprep.mubr.f32.mxu1 %v14503_v21 }
 0x1fa   :  { %8691 = vmatpush1.bf16.msra.mxu0 %v12057_v43  ;;  %8723 = vmatpush1.bf16.msra.mxu1 %v12061_v46 }
 0x1fb   :  { %8693 = vmatprep.subr.bf16.mxu0 %v12065_v50  ;;  %8725 = vmatprep.subr.bf16.mxu1 %v12069_v53 }
 0x1fe   :  { %8695 = vmatpush1.bf16.msra.mxu0 %v12073_v56  ;;  %8727 = vmatpush1.bf16.msra.mxu1 %v12077_v59 }
 0x1ff   :  { %8697 = vmatprep.subr.bf16.mxu0 %v12081_v63  ;;  %8729 = vmatprep.subr.bf16.mxu1 %v12085_v3 }
 0x202   :  { %8699 = vmatpush1.bf16.msra.mxu0 %v12089_v6  ;;  %8731 = vmatpush1.bf16.msra.mxu1 %v12093_v9 }
 0x203   :  { %8701 = vmatprep.subr.bf16.mxu0 %v12097_v13  ;;  %8733 = vmatprep.subr.bf16.mxu1 %v12101_v15 }
 0x206   :  { %8703 = vmatpush1.bf16.msra.mxu0 %v12105_v19  ;;  %8735 = vmatpush1.bf16.msra.mxu1 %v12109_v22  ;;  %v14533_v19 = vld [vmem:[#allocation59_spill] sm:$0xff] }
 0x207   :  { %8705 = vmatprep.subr.bf16.mxu0 %v12113_v28  ;;  %8737 = vmatprep.subr.bf16.mxu1 %v12117_v31  ;;  %v14530_v31 = vld [vmem:[#allocation45_spill] sm:$0xff]  ;;  %v14532_v28 = vld [vmem:[#allocation58_spill] sm:$0xff] }
 0x20a   :  { %8707 = vmatpush1.bf16.msra.mxu0 %v12121_v35  ;;  %8739 = vmatpush1.bf16.msra.mxu1 %v12125_v41  ;;  %v14531_v35 = vld [vmem:[#allocation46_spill] sm:$0xff] }
 0x20b   :  { %8709 = vmatprep.subr.bf16.mxu0 %v12129_v45  ;;  %8741 = vmatprep.subr.bf16.mxu1 %v14523_v54 }
 0x20e   :  { %8711 = vmatpush1.bf16.msra.mxu0 %v14524_v37  ;;  %8743 = vmatpush1.bf16.msra.mxu1 %v14525_v4 }
 0x20f   :  { %8713 = vmatprep.subr.bf16.mxu0 %v14526_v24  ;;  %8745 = vmatprep.subr.bf16.mxu1 %v14527_v52  ;;  %v14534_v52 = vld [vmem:[#allocation60_spill] sm:$0xff] }
 0x212   :  { %8715 = vmatpush1.bf16.msra.mxu0 %v14528_v58  ;;  %8747 = vmatpush1.bf16.msra.mxu1 %v14529_v1  ;;  %v14535_v1 = vld [vmem:[#allocation61_spill] sm:$0xff] }
 0x213   :  { %8749 = vmatprep.subr.bf16.mxu0 %v14530_v31  ;;  %8781 = vmatprep.subr.bf16.mxu1 %v14531_v35 }
 0x2a8   :  { %v1381_v41 = vpop.f32.mrb[2].mxu0  ;;  %v1452_v45 = vpop.f32.mrb[2].mxu1 }
 0x2a9   :  { %v10822_v54 = vadd.f32 %v1381_v41, %v14532_v28  ;;  %v1383_v22 = vpop.f32.mrb[3].mxu0  ;;  %v1454_v37 = vpop.f32.mrb[3].mxu1  ;;  %v10838_v9 = vadd.f32 %v1452_v45, %v14535_v1  ;;  %v14536_v1 = vld [vmem:[#allocation62_spill] sm:$0xff] }
 0x2aa   :  { %v10823_v4 = vadd.f32 %v1383_v22, %v14533_v19  ;;  %v10839_v58 = vadd.f32 %v1454_v37, %v14534_v52 }
 0x2ab   :  { %v8063_v15 = vmul.f32 -1.442695, %v10822_v54 }
 0x2ac   :  { %v8064_v24 = vmul.f32 -1.442695, %v10823_v4  ;;  %v8065_v13 = vmul.f32 -1.442695, %v10839_v58 }
 0x2ad   :  { %11124 = vpow2.f32 %v8063_v15 }
 0x2ae   :  { %11126 = vpow2.f32 %v8064_v24 }
 0x2af   :  { %11128 = vpow2.f32 %v8065_v13 }
 0x2b0   :  { %11130 = vtanh.f32 %v10838_v9 }
 0x2b7   :  { %v11125_v31 = vpop.eup %11124 }
 0x2b8   :  { %v11127_v6 = vpop.eup %11126  ;;  %v1615_v35 = vadd.f32 1.0, %v11125_v31 }
 0x2b9   :  { %v1621_v3 = vadd.f32 1.0, %v11127_v6  ;;  %v11129_v41 = vpop.eup %11128 }
 0x2ba   :  { %11132 = vrcp.f32 %v1615_v35  ;;  %v11131_v28 = vpop.eup %11130  ;;  %v1628_v15 = vadd.f32 1.0, %v11129_v41 }
 0x2bb   :  { %11134 = vrcp.f32 %v1621_v3  ;;  %v14537_v3 = vld [vmem:[#allocation63_spill] sm:$0xff] }
 0x2bc   :  { %11136 = vrcp.f32 %v1628_v15 }
 0x2c4   :  { %v11133_v22 = vpop.eup %11132 }
 0x2c5   :  { %v11135_v54 = vpop.eup %11134  ;;  %v1632_v4 = vmul.f32 %v11133_v22, %v11131_v28 }
 0x2c6   :  { %v1631_v24 = vmul.f32 %v11135_v54, %v12345_v10  ;;  %v11137_v10 = vpop.eup %11136 }
 0x2c8   :  { %v12446_v37 = vadd.f32 %v1632_v4, %v1631_v24  ;;  %v1532_v58 = vpop.f32.mrb[28].mxu0  ;;  %v1603_v45 = vpop.f32.mrb[28].mxu1 }
 0x2c9   :  { %v10864_v31 = vadd.f32 %v1532_v58, %v14536_v1  ;;  %v1534_v13 = vpop.f32.mrb[29].mxu0  ;;  %v1605_v9 = vpop.f32.mrb[29].mxu1  ;;  %v10880_v4 = vadd.f32 %v1603_v45, %v12359_v55  ;;  %v14539_v45 = vld [vmem:[#allocation48_spill] sm:$0xff] }
 0x2ca   :  { %11138 = vtanh.f32 %v12446_v37  ;;  %v10865_v6 = vadd.f32 %v1534_v13, %v14537_v3  ;;  %v10881_v28 = vadd.f32 %v1605_v9, %v12353_v8 }
 0x2cb   :  { %v8066_v35 = vmul.f32 -1.442695, %v10864_v31  ;;  %v14540_v31 = vld [vmem:[#allocation49_spill] sm:$0xff] }
 0x2cc   :  { %v8067_v52 = vmul.f32 -1.442695, %v10865_v6  ;;  %v8068_v22 = vmul.f32 -1.442695, %v10881_v28 }
 0x2cd   :  { %11140 = vpow2.f32 %v8066_v35  ;;  %v14541_v35 = vld [vmem:[#allocation50_spill] sm:$0xff] }
 0x2ce   :  { %11142 = vpow2.f32 %v8067_v52 }
 0x2cf   :  { %11144 = vpow2.f32 %v8068_v22 }
 0x2d0   :  { %11146 = vtanh.f32 %v10880_v4 }
 0x2d4   :  { %v11139_v41 = vpop.eup %11138 }
 0x2d5   :  { %v12452_v54 = vmul.f32 %v11139_v41, %v11137_v10 }
 0x2d7   :  { %14538 = vst [vmem:[#allocation51_spill] sm:$0xff] %v12452_v54  ;;  %v11141_v15 = vpop.eup %11140  ;;  %1734 = vmatmul.mubr.f32.vlgmr.msra.gmra.mrb[4].mxu0 %v12452_v54  ;;  %1805 = vmatmul.mubr.f32.vlgmr.msra.gmra.mrb[4].mxu1 %v12452_v54  ;;  %v14555_v54 = vld [vmem:[#allocation38_spill] sm:$0xff] }
 0x2d8   :  { %v11143_v24 = vpop.eup %11142  ;;  %v1639_v58 = vadd.f32 1.0, %v11141_v15  ;;  %8751 = vmatpush1.bf16.msra.mxu0 %v12169_v32  ;;  %8783 = vmatpush1.bf16.msra.mxu1 %v12173_v34 }
 0x2d9   :  { %v1645_v52 = vadd.f32 1.0, %v11143_v24  ;;  %8753 = vmatprep.subr.bf16.mxu0 %v12175_v38  ;;  %8785 = vmatprep.subr.bf16.mxu1 %v12179_v16  ;;  %v11145_v13 = vpop.eup %11144 }
 0x2da   :  { %11148 = vrcp.f32 %v1639_v58  ;;  %1884 = vmatprep.mubr.f32.mxu0 %v14503_v21  ;;  %1955 = vmatprep.mubr.f32.mxu1 %v14503_v21  ;;  %v11147_v9 = vpop.eup %11146  ;;  %v1652_v41 = vadd.f32 1.0, %v11145_v13  ;;  %v14543_v58 = vld [vmem:[#allocation26_spill] sm:$0xff]  ;;  %v14545_v13 = vld [vmem:[#allocation28_spill] sm:$0xff] }
 0x2db   :  { %11150 = vrcp.f32 %v1645_v52  ;;  %v14544_v52 = vld [vmem:[#allocation27_spill] sm:$0xff] }
 0x2dc   :  { %8755 = vmatpush1.bf16.msra.mxu0 %v12185_v57  ;;  %8787 = vmatpush1.bf16.msra.mxu1 %v12189_v60  ;;  %11152 = vrcp.f32 %v1652_v41  ;;  %v14550_v41 = vld [vmem:[#allocation33_spill] sm:$0xff] }
 0x2dd   :  { %8757 = vmatprep.subr.bf16.mxu0 %v12191_v62  ;;  %8789 = vmatprep.subr.bf16.mxu1 %v12194_v7 }
 0x2e0   :  { %8759 = vmatpush1.bf16.msra.mxu0 %v12199_v20  ;;  %8791 = vmatpush1.bf16.msra.mxu1 %v14512_v48 }
 0x2e1   :  { %8761 = vmatprep.subr.bf16.mxu0 %v14539_v45  ;;  %8793 = vmatprep.subr.bf16.mxu1 %v14540_v31 }
 0x2e4   :  { %v11149_v6 = vpop.eup %11148  ;;  %8763 = vmatpush1.bf16.msra.mxu0 %v14541_v35  ;;  %8795 = vmatpush1.bf16.msra.mxu1 %v14516_v18 }
 0x2e5   :  { %v11151_v28 = vpop.eup %11150  ;;  %v1656_v10 = vmul.f32 %v11149_v6, %v11147_v9  ;;  %8765 = vmatprep.subr.bf16.mxu0 %v14517_v49  ;;  %8797 = vmatprep.subr.bf16.mxu1 %v14518_v0  ;;  %v14546_v9 = vld [vmem:[#allocation29_spill] sm:$0xff]  ;;  %v14547_v6 = vld [vmem:[#allocation30_spill] sm:$0xff] }
 0x2e6   :  { %v1655_v22 = vmul.f32 %v11151_v28, %v12384_v47  ;;  %v11153_v47 = vpop.eup %11152  ;;  %v14548_v28 = vld [vmem:[#allocation31_spill] sm:$0xff] }
 0x2e8   :  { %v12476_v4 = vadd.f32 %v1656_v10, %v1655_v22  ;;  %8767 = vmatpush1.bf16.msra.mxu0 %v14519_v26  ;;  %8799 = vmatpush1.bf16.msra.mxu1 %v14520_v61  ;;  %v14549_v10 = vld [vmem:[#allocation32_spill] sm:$0xff]  ;;  %v14551_v22 = vld [vmem:[#allocation34_spill] sm:$0xff] }
 0x2e9   :  { %8769 = vmatprep.subr.bf16.mxu0 %v12229_v44  ;;  %8801 = vmatprep.subr.bf16.mxu1 %v14521_v11 }
 0x2ea   :  { %11154 = vtanh.f32 %v12476_v4 }
 0x2ec   :  { %8771 = vmatpush1.bf16.msra.mxu0 %v12235_v51  ;;  %8803 = vmatpush1.bf16.msra.mxu1 %v12239_v2 }
 0x2ed   :  { %8773 = vmatprep.subr.bf16.mxu0 %v12241_v12  ;;  %8805 = vmatprep.subr.bf16.mxu1 %v12244_v29 }
 0x2f0   :  { %8775 = vmatpush1.bf16.msra.mxu0 %v12247_v39  ;;  %8807 = vmatpush1.bf16.msra.mxu1 %v12251_v25 }
 0x2f1   :  { %8777 = vmatprep.subr.bf16.mxu0 %v12253_v42  ;;  %8809 = vmatprep.subr.bf16.mxu1 %v12256_v5 }
 0x2f4   :  { %v11155_v15 = vpop.eup %11154  ;;  %8779 = vmatpush1.bf16.msra.mxu0 %v12259_v17  ;;  %8811 = vmatpush1.bf16.msra.mxu1 %v12263_v14 }
 0x2f5   :  { %v12493_v24 = vmul.f32 %v11155_v15, %v11153_v47  ;;  %8813 = vmatprep.subr.bf16.mxu0 %v12036_v23  ;;  %8845 = vmatprep.subr.bf16.mxu1 %v12039_v27  ;;  %v14552_v47 = vld [vmem:[#allocation35_spill] sm:$0xff]  ;;  %v14553_v15 = vld [vmem:[#allocation36_spill] sm:$0xff] }
 0x2f7   :  { %14542 = vst [vmem:[#allocation52_spill] sm:$0xff] %v12493_v24  ;;  %1885 = vmatmul.mubr.f32.vlgmr.msra.gmra.mrb[26].mxu0 %v12493_v24  ;;  %1956 = vmatmul.mubr.f32.vlgmr.msra.gmra.mrb[26].mxu1 %v12493_v24  ;;  %v14554_v24 = vld [vmem:[#allocation37_spill] sm:$0xff] }
 0x2f8   :  { %8815 = vmatpush1.bf16.msra.mxu0 %v12042_v30  ;;  %8847 = vmatpush1.bf16.msra.mxu1 %v12045_v33 }
 0x2f9   :  { %8817 = vmatprep.subr.bf16.mxu0 %v12049_v36  ;;  %8849 = vmatprep.subr.bf16.mxu1 %v12053_v40 }
 0x2fa   :  { %2087 = vmatprep.mubr.f32.mxu0 %v14503_v21  ;;  %2158 = vmatprep.mubr.f32.mxu1 %v14503_v21 }
 0x2fc   :  { %8819 = vmatpush1.bf16.msra.mxu0 %v12057_v43  ;;  %8851 = vmatpush1.bf16.msra.mxu1 %v12061_v46 }
 0x2fd   :  { %8821 = vmatprep.subr.bf16.mxu0 %v12065_v50  ;;  %8853 = vmatprep.subr.bf16.mxu1 %v12069_v53 }
 0x300   :  { %8823 = vmatpush1.bf16.msra.mxu0 %v12073_v56  ;;  %8855 = vmatpush1.bf16.msra.mxu1 %v12077_v59 }
 0x301   :  { %8825 = vmatprep.subr.bf16.mxu0 %v12081_v63  ;;  %8857 = vmatprep.subr.bf16.mxu1 %v14543_v58 }
 0x304   :  { %8827 = vmatpush1.bf16.msra.mxu0 %v14544_v52  ;;  %8859 = vmatpush1.bf16.msra.mxu1 %v14545_v13  ;;  %v14556_v13 = vld [vmem:[#allocation39_spill] sm:$0xff]  ;;  %v14564_v52 = vld [vmem:[#allocation58_spill] sm:$0xff] }
 0x305   :  { %8829 = vmatprep.subr.bf16.mxu0 %v14546_v9  ;;  %8861 = vmatprep.subr.bf16.mxu1 %v14547_v6  ;;  %v14557_v9 = vld [vmem:[#allocation40_spill] sm:$0xff]  ;;  %v14558_v6 = vld [vmem:[#allocation41_spill] sm:$0xff] }
 0x308   :  { %8831 = vmatpush1.bf16.msra.mxu0 %v14548_v28  ;;  %8863 = vmatpush1.bf16.msra.mxu1 %v14549_v10  ;;  %v14559_v28 = vld [vmem:[#allocation42_spill] sm:$0xff]  ;;  %v14560_v10 = vld [vmem:[#allocation43_spill] sm:$0xff] }
 0x309   :  { %8833 = vmatprep.subr.bf16.mxu0 %v14550_v41  ;;  %8865 = vmatprep.subr.bf16.mxu1 %v14551_v22  ;;  %v14561_v41 = vld [vmem:[#allocation44_spill] sm:$0xff]  ;;  %v14562_v22 = vld [vmem:[#allocation45_spill] sm:$0xff] }
 0x30c   :  { %8835 = vmatpush1.bf16.msra.mxu0 %v14552_v47  ;;  %8867 = vmatpush1.bf16.msra.mxu1 %v14553_v15  ;;  %v14563_v47 = vld [vmem:[#allocation46_spill] sm:$0xff] }
 0x30d   :  { %8837 = vmatprep.subr.bf16.mxu0 %v14554_v24  ;;  %8869 = vmatprep.subr.bf16.mxu1 %v14555_v54 }
 0x310   :  { %8839 = vmatpush1.bf16.msra.mxu0 %v14556_v13  ;;  %8871 = vmatpush1.bf16.msra.mxu1 %v14557_v9 }
 0x311   :  { %8841 = vmatprep.subr.bf16.mxu0 %v14558_v6  ;;  %8873 = vmatprep.subr.bf16.mxu1 %v14559_v28  ;;  %v14565_v28 = vld [vmem:[#allocation60_spill] sm:$0xff] }
 0x314   :  { %8843 = vmatpush1.bf16.msra.mxu0 %v14560_v10  ;;  %8875 = vmatpush1.bf16.msra.mxu1 %v14561_v41  ;;  %v14566_v41 = vld [vmem:[#allocation61_spill] sm:$0xff] }
 0x315   :  { %8877 = vmatprep.subr.bf16.mxu0 %v14562_v22  ;;  %8909 = vmatprep.subr.bf16.mxu1 %v14563_v47 }
 0x3aa   :  { %v1735_v15 = vpop.f32.mrb[4].mxu0  ;;  %v1806_v24 = vpop.f32.mrb[4].mxu1 }
 0x3ab   :  { %v10824_v54 = vadd.f32 %v1735_v15, %v14564_v52  ;;  %v1737_v58 = vpop.f32.mrb[5].mxu0  ;;  %v1808_v13 = vpop.f32.mrb[5].mxu1  ;;  %v10840_v56 = vadd.f32 %v1806_v24, %v14566_v41 }
 0x3ac   :  { %v10825_v9 = vadd.f32 %v1737_v58, %v14533_v19  ;;  %v10841_v10 = vadd.f32 %v1808_v13, %v14565_v28 }
 0x3ad   :  { %v8069_v63 = vmul.f32 -1.442695, %v10824_v54 }
 0x3ae   :  { %v8070_v6 = vmul.f32 -1.442695, %v10825_v9  ;;  %v8071_v59 = vmul.f32 -1.442695, %v10841_v10 }
 0x3af   :  { %11156 = vpow2.f32 %v8069_v63 }
 0x3b0   :  { %11158 = vpow2.f32 %v8070_v6 }
 0x3b1   :  { %11160 = vpow2.f32 %v8071_v59 }
 0x3b2   :  { %11162 = vtanh.f32 %v10840_v56 }
 0x3b9   :  { %v11157_v22 = vpop.eup %11156 }
 0x3ba   :  { %v11159_v53 = vpop.eup %11158  ;;  %v1969_v47 = vadd.f32 1.0, %v11157_v22 }
 0x3bb   :  { %v1975_v50 = vadd.f32 1.0, %v11159_v53  ;;  %v11161_v15 = vpop.eup %11160 }
 0x3bc   :  { %11164 = vrcp.f32 %v1969_v47  ;;  %v11163_v52 = vpop.eup %11162  ;;  %v1982_v63 = vadd.f32 1.0, %v11161_v15 }
 0x3bd   :  { %11166 = vrcp.f32 %v1975_v50 }
 0x3be   :  { %11168 = vrcp.f32 %v1982_v63 }
 0x3c6   :  { %v11165_v58 = vpop.eup %11164 }
 0x3c7   :  { %v11167_v54 = vpop.eup %11166  ;;  %v1986_v9 = vmul.f32 %v11165_v58, %v11163_v52 }
 0x3c8   :  { %v1985_v6 = vmul.f32 %v11167_v54, %v12446_v37  ;;  %v11169_v37 = vpop.eup %11168 }
 0x3ca   :  { %v12538_v13 = vadd.f32 %v1986_v9, %v1985_v6  ;;  %v1886_v10 = vpop.f32.mrb[26].mxu0  ;;  %v1957_v24 = vpop.f32.mrb[26].mxu1 }
 0x3cb   :  { %v10862_v22 = vadd.f32 %v1886_v10, %v14536_v1  ;;  %v1888_v59 = vpop.f32.mrb[27].mxu0  ;;  %v1959_v56 = vpop.f32.mrb[27].mxu1  ;;  %v10878_v9 = vadd.f32 %v1957_v24, %v12359_v55 }
 0x3cc   :  { %11170 = vtanh.f32 %v12538_v13  ;;  %v10863_v50 = vadd.f32 %v1888_v59, %v14537_v3  ;;  %v10879_v52 = vadd.f32 %v1959_v56, %v12353_v8 }
 0x3cd   :  { %v8072_v53 = vmul.f32 -1.442695, %v10862_v22 }
 0x3ce   :  { %v8073_v47 = vmul.f32 -1.442695, %v10863_v50  ;;  %v8074_v58 = vmul.f32 -1.442695, %v10879_v52 }
 0x3cf   :  { %11172 = vpow2.f32 %v8072_v53 }
 0x3d0   :  { %11174 = vpow2.f32 %v8073_v47 }
 0x3d1   :  { %11176 = vpow2.f32 %v8074_v58 }
 0x3d2   :  { %11178 = vtanh.f32 %v10878_v9  ;;  %v14569_v9 = vld [vmem:[#allocation21_spill] sm:$0xff] }
 0x3d6   :  { %v11171_v15 = vpop.eup %11170 }
 0x3d7   :  { %v12544_v54 = vmul.f32 %v11171_v15, %v11169_v37 }
 0x3d9   :  { %14567 = vst [vmem:[#allocation53_spill] sm:$0xff] %v12544_v54  ;;  %v11173_v63 = vpop.eup %11172  ;;  %2088 = vmatmul.mubr.f32.vlgmr.msra.gmra.mrb[6].mxu0 %v12544_v54  ;;  %2159 = vmatmul.mubr.f32.vlgmr.msra.gmra.mrb[6].mxu1 %v12544_v54  ;;  %v14584_v54 = vld [vmem:[#allocation36_spill] sm:$0xff] }
 0x3da   :  { %v11175_v6 = vpop.eup %11174  ;;  %v1993_v10 = vadd.f32 1.0, %v11173_v63  ;;  %8879 = vmatpush1.bf16.msra.mxu0 %v12169_v32  ;;  %8911 = vmatpush1.bf16.msra.mxu1 %v12173_v34  ;;  %v14570_v63 = vld [vmem:[#allocation22_spill] sm:$0xff] }
 0x3db   :  { %v1999_v22 = vadd.f32 1.0, %v11175_v6  ;;  %8881 = vmatprep.subr.bf16.mxu0 %v12175_v38  ;;  %8913 = vmatprep.subr.bf16.mxu1 %v12179_v16  ;;  %v11177_v24 = vpop.eup %11176  ;;  %v14571_v6 = vld [vmem:[#allocation23_spill] sm:$0xff] }
 0x3dc   :  { %11180 = vrcp.f32 %v1993_v10  ;;  %2238 = vmatprep.mubr.f32.mxu0 %v14503_v21  ;;  %2309 = vmatprep.mubr.f32.mxu1 %v14503_v21  ;;  %v11179_v59 = vpop.eup %11178  ;;  %v2006_v47 = vadd.f32 1.0, %v11177_v24  ;;  %v14572_v10 = vld [vmem:[#allocation24_spill] sm:$0xff]  ;;  %v14574_v24 = vld [vmem:[#allocation26_spill] sm:$0xff] }
 0x3dd   :  { %11182 = vrcp.f32 %v1999_v22  ;;  %v14573_v22 = vld [vmem:[#allocation25_spill] sm:$0xff] }
 0x3de   :  { %8883 = vmatpush1.bf16.msra.mxu0 %v12185_v57  ;;  %8915 = vmatpush1.bf16.msra.mxu1 %v12189_v60  ;;  %11184 = vrcp.f32 %v2006_v47  ;;  %v14579_v47 = vld [vmem:[#allocation31_spill] sm:$0xff] }
 0x3df   :  { %8885 = vmatprep.subr.bf16.mxu0 %v12191_v62  ;;  %8917 = vmatprep.subr.bf16.mxu1 %v12194_v7 }
 0x3e2   :  { %8887 = vmatpush1.bf16.msra.mxu0 %v12199_v20  ;;  %8919 = vmatpush1.bf16.msra.mxu1 %v14512_v48 }
 0x3e3   :  { %8889 = vmatprep.subr.bf16.mxu0 %v14539_v45  ;;  %8921 = vmatprep.subr.bf16.mxu1 %v14540_v31 }
 0x3e6   :  { %v11181_v56 = vpop.eup %11180  ;;  %8891 = vmatpush1.bf16.msra.mxu0 %v14541_v35  ;;  %8923 = vmatpush1.bf16.msra.mxu1 %v14516_v18 }
 0x3e7   :  { %v11183_v50 = vpop.eup %11182  ;;  %v2010_v53 = vmul.f32 %v11181_v56, %v11179_v59  ;;  %8893 = vmatprep.subr.bf16.mxu0 %v14517_v49  ;;  %8925 = vmatprep.subr.bf16.mxu1 %v14518_v0  ;;  %v14575_v59 = vld [vmem:[#allocation27_spill] sm:$0xff]  ;;  %v14576_v56 = vld [vmem:[#allocation28_spill] sm:$0xff] }
 0x3e8   :  { %v2009_v52 = vmul.f32 %v11183_v50, %v12476_v4  ;;  %v11185_v4 = vpop.eup %11184  ;;  %v14577_v50 = vld [vmem:[#allocation29_spill] sm:$0xff] }
 0x3ea   :  { %v12568_v37 = vadd.f32 %v2010_v53, %v2009_v52  ;;  %8895 = vmatpush1.bf16.msra.mxu0 %v14519_v26  ;;  %8927 = vmatpush1.bf16.msra.mxu1 %v14520_v61  ;;  %v14578_v53 = vld [vmem:[#allocation30_spill] sm:$0xff]  ;;  %v14580_v52 = vld [vmem:[#allocation32_spill] sm:$0xff] }
 0x3eb   :  { %8897 = vmatprep.subr.bf16.mxu0 %v12229_v44  ;;  %8929 = vmatprep.subr.bf16.mxu1 %v14521_v11 }
 0x3ec   :  { %11186 = vtanh.f32 %v12568_v37 }
 0x3ee   :  { %8899 = vmatpush1.bf16.msra.mxu0 %v12235_v51  ;;  %8931 = vmatpush1.bf16.msra.mxu1 %v12239_v2 }
 0x3ef   :  { %8901 = vmatprep.subr.bf16.mxu0 %v12241_v12  ;;  %8933 = vmatprep.subr.bf16.mxu1 %v12244_v29 }
 0x3f2   :  { %8903 = vmatpush1.bf16.msra.mxu0 %v12247_v39  ;;  %8935 = vmatpush1.bf16.msra.mxu1 %v12251_v25 }
 0x3f3   :  { %8905 = vmatprep.subr.bf16.mxu0 %v12253_v42  ;;  %8937 = vmatprep.subr.bf16.mxu1 %v12256_v5 }
 0x3f6   :  { %v11187_v15 = vpop.eup %11186  ;;  %8907 = vmatpush1.bf16.msra.mxu0 %v12259_v17  ;;  %8939 = vmatpush1.bf16.msra.mxu1 %v12263_v14 }
 0x3f7   :  { %v12585_v58 = vmul.f32 %v11187_v15, %v11185_v4  ;;  %8941 = vmatprep.subr.bf16.mxu0 %v12036_v23  ;;  %8973 = vmatprep.subr.bf16.mxu1 %v12039_v27  ;;  %v14581_v4 = vld [vmem:[#allocation33_spill] sm:$0xff]  ;;  %v14582_v15 = vld [vmem:[#allocation34_spill] sm:$0xff] }
 0x3f9   :  { %14568 = vst [vmem:[#allocation54_spill] sm:$0xff] %v12585_v58  ;;  %2239 = vmatmul.mubr.f32.vlgmr.msra.gmra.mrb[24].mxu0 %v12585_v58  ;;  %2310 = vmatmul.mubr.f32.vlgmr.msra.gmra.mrb[24].mxu1 %v12585_v58  ;;  %v14583_v58 = vld [vmem:[#allocation35_spill] sm:$0xff] }
 0x3fa   :  { %8943 = vmatpush1.bf16.msra.mxu0 %v12042_v30  ;;  %8975 = vmatpush1.bf16.msra.mxu1 %v12045_v33 }
 0x3fb   :  { %8945 = vmatprep.subr.bf16.mxu0 %v12049_v36  ;;  %8977 = vmatprep.subr.bf16.mxu1 %v12053_v40 }
 0x3fc   :  { %2440 = vmatprep.mubr.f32.mxu0 %v14503_v21  ;;  %2511 = vmatprep.mubr.f32.mxu1 %v14503_v21 }
 0x3fe   :  { %8947 = vmatpush1.bf16.msra.mxu0 %v12057_v43  ;;  %8979 = vmatpush1.bf16.msra.mxu1 %v12061_v46 }
 0x3ff   :  { %8949 = vmatprep.subr.bf16.mxu0 %v14569_v9  ;;  %8981 = vmatprep.subr.bf16.mxu1 %v14570_v63 }
 0x402   :  { %8951 = vmatpush1.bf16.msra.mxu0 %v14571_v6  ;;  %8983 = vmatpush1.bf16.msra.mxu1 %v14572_v10 }
 0x403   :  { %8953 = vmatprep.subr.bf16.mxu0 %v14573_v22  ;;  %8985 = vmatprep.subr.bf16.mxu1 %v14574_v24  ;;  %v14585_v24 = vld [vmem:[#allocation37_spill] sm:$0xff]  ;;  %v14595_v22 = vld [vmem:[#allocation58_spill] sm:$0xff] }
 0x406   :  { %8955 = vmatpush1.bf16.msra.mxu0 %v14575_v59  ;;  %8987 = vmatpush1.bf16.msra.mxu1 %v14576_v56  ;;  %v14586_v59 = vld [vmem:[#allocation38_spill] sm:$0xff]  ;;  %v14587_v56 = vld [vmem:[#allocation39_spill] sm:$0xff] }
 0x407   :  { %8957 = vmatprep.subr.bf16.mxu0 %v14577_v50  ;;  %8989 = vmatprep.subr.bf16.mxu1 %v14578_v53  ;;  %v14588_v50 = vld [vmem:[#allocation40_spill] sm:$0xff]  ;;  %v14589_v53 = vld [vmem:[#allocation41_spill] sm:$0xff] }
 0x40a   :  { %8959 = vmatpush1.bf16.msra.mxu0 %v14579_v47  ;;  %8991 = vmatpush1.bf16.msra.mxu1 %v14580_v52  ;;  %v14590_v47 = vld [vmem:[#allocation42_spill] sm:$0xff]  ;;  %v14591_v52 = vld [vmem:[#allocation43_spill] sm:$0xff] }
 0x40b   :  { %8961 = vmatprep.subr.bf16.mxu0 %v14581_v4  ;;  %8993 = vmatprep.subr.bf16.mxu1 %v14582_v15  ;;  %v14592_v4 = vld [vmem:[#allocation44_spill] sm:$0xff]  ;;  %v14593_v15 = vld [vmem:[#allocation45_spill] sm:$0xff] }
 0x40e   :  { %8963 = vmatpush1.bf16.msra.mxu0 %v14583_v58  ;;  %8995 = vmatpush1.bf16.msra.mxu1 %v14584_v54  ;;  %v14594_v58 = vld [vmem:[#allocation46_spill] sm:$0xff] }
 0x40f   :  { %8965 = vmatprep.subr.bf16.mxu0 %v14585_v24  ;;  %8997 = vmatprep.subr.bf16.mxu1 %v14586_v59 }
 0x412   :  { %8967 = vmatpush1.bf16.msra.mxu0 %v14587_v56  ;;  %8999 = vmatpush1.bf16.msra.mxu1 %v14588_v50 }
 0x413   :  { %8969 = vmatprep.subr.bf16.mxu0 %v14589_v53  ;;  %9001 = vmatprep.subr.bf16.mxu1 %v14590_v47 }
 0x416   :  { %8971 = vmatpush1.bf16.msra.mxu0 %v14591_v52  ;;  %9003 = vmatpush1.bf16.msra.mxu1 %v14592_v4 }
 0x417   :  { %9005 = vmatprep.subr.bf16.mxu0 %v14593_v15  ;;  %9037 = vmatprep.subr.bf16.mxu1 %v14594_v58 }
 0x4ac   :  { %v2089_v54 = vpop.f32.mrb[6].mxu0  ;;  %v2160_v24 = vpop.f32.mrb[6].mxu1 }
 0x4ad   :  { %v10826_v59 = vadd.f32 %v2089_v54, %v14595_v22  ;;  %v2091_v10 = vpop.f32.mrb[7].mxu0  ;;  %v2162_v56 = vpop.f32.mrb[7].mxu1  ;;  %v10842_v4 = vadd.f32 %v2160_v24, %v14566_v41 }
 0x4ae   :  { %v10827_v50 = vadd.f32 %v2091_v10, %v14533_v19  ;;  %v10843_v52 = vadd.f32 %v2162_v56, %v14565_v28 }
 0x4af   :  { %v8075_v6 = vmul.f32 -1.442695, %v10826_v59 }
 0x4b0   :  { %v8076_v53 = vmul.f32 -1.442695, %v10827_v50  ;;  %v8077_v47 = vmul.f32 -1.442695, %v10843_v52 }
 0x4b1   :  { %11188 = vpow2.f32 %v8075_v6 }
 0x4b2   :  { %11190 = vpow2.f32 %v8076_v53 }
 0x4b3   :  { %11192 = vpow2.f32 %v8077_v47 }
 0x4b4   :  { %11194 = vtanh.f32 %v10842_v4 }
 0x4bb   :  { %v11189_v15 = vpop.eup %11188 }
 0x4bc   :  { %v11191_v63 = vpop.eup %11190  ;;  %v2323_v58 = vadd.f32 1.0, %v11189_v15 }
 0x4bd   :  { %v2329_v9 = vadd.f32 1.0, %v11191_v63  ;;  %v11193_v54 = vpop.eup %11192 }
 0x4be   :  { %11196 = vrcp.f32 %v2323_v58  ;;  %v11195_v22 = vpop.eup %11194  ;;  %v2336_v6 = vadd.f32 1.0, %v11193_v54 }
 0x4bf   :  { %11198 = vrcp.f32 %v2329_v9 }
 0x4c0   :  { %11200 = vrcp.f32 %v2336_v6 }
 0x4c8   :  { %v11197_v10 = vpop.eup %11196 }
 0x4c9   :  { %v11199_v59 = vpop.eup %11198  ;;  %v2340_v50 = vmul.f32 %v11197_v10, %v11195_v22 }
 0x4ca   :  { %v2339_v53 = vmul.f32 %v11199_v59, %v12538_v13  ;;  %v11201_v13 = vpop.eup %11200 }
 0x4cc   :  { %v12630_v56 = vadd.f32 %v2340_v50, %v2339_v53  ;;  %v2240_v52 = vpop.f32.mrb[24].mxu0  ;;  %v2311_v24 = vpop.f32.mrb[24].mxu1 }
 0x4cd   :  { %v10860_v15 = vadd.f32 %v2240_v52, %v14536_v1  ;;  %v2242_v47 = vpop.f32.mrb[25].mxu0  ;;  %v2313_v4 = vpop.f32.mrb[25].mxu1  ;;  %v10876_v50 = vadd.f32 %v2311_v24, %v12359_v55 }
 0x4ce   :  { %11202 = vtanh.f32 %v12630_v56  ;;  %v10861_v58 = vadd.f32 %v2242_v47, %v14537_v3  ;;  %v10877_v22 = vadd.f32 %v2313_v4, %v12353_v8 }
 0x4cf   :  { %v8078_v9 = vmul.f32 -1.442695, %v10860_v15 }
 0x4d0   :  { %v8079_v63 = vmul.f32 -1.442695, %v10861_v58  ;;  %v8080_v10 = vmul.f32 -1.442695, %v10877_v22 }
 0x4d1   :  { %11204 = vpow2.f32 %v8078_v9 }
 0x4d2   :  { %11206 = vpow2.f32 %v8079_v63 }
 0x4d3   :  { %11208 = vpow2.f32 %v8080_v10 }
 0x4d4   :  { %11210 = vtanh.f32 %v10876_v50  ;;  %v14598_v50 = vld [vmem:[#allocation21_spill] sm:$0xff] }
 0x4d8   :  { %v11203_v54 = vpop.eup %11202 }
 0x4d9   :  { %v12636_v59 = vmul.f32 %v11203_v54, %v11201_v13 }
 0x4db   :  { %14596 = vst [vmem:[#allocation55_spill] sm:$0xff] %v12636_v59  ;;  %v11205_v6 = vpop.eup %11204  ;;  %2441 = vmatmul.mubr.f32.vlgmr.msra.gmra.mrb[8].mxu0 %v12636_v59  ;;  %2512 = vmatmul.mubr.f32.vlgmr.msra.gmra.mrb[8].mxu1 %v12636_v59  ;;  %v14613_v59 = vld [vmem:[#allocation36_spill] sm:$0xff] }
 0x4dc   :  { %v11207_v53 = vpop.eup %11206  ;;  %v2347_v52 = vadd.f32 1.0, %v11205_v6  ;;  %9007 = vmatpush1.bf16.msra.mxu0 %v12169_v32  ;;  %9039 = vmatpush1.bf16.msra.mxu1 %v12173_v34  ;;  %v14599_v6 = vld [vmem:[#allocation22_spill] sm:$0xff] }
 0x4dd   :  { %v2353_v15 = vadd.f32 1.0, %v11207_v53  ;;  %9009 = vmatprep.subr.bf16.mxu0 %v12175_v38  ;;  %9041 = vmatprep.subr.bf16.mxu1 %v12179_v16  ;;  %v11209_v24 = vpop.eup %11208  ;;  %v14600_v53 = vld [vmem:[#allocation23_spill] sm:$0xff] }
 0x4de   :  { %11212 = vrcp.f32 %v2347_v52  ;;  %2590 = vmatprep.mubr.f32.mxu0 %v14503_v21  ;;  %2661 = vmatprep.mubr.f32.mxu1 %v14503_v21  ;;  %v11211_v47 = vpop.eup %11210  ;;  %v2360_v63 = vadd.f32 1.0, %v11209_v24  ;;  %v14601_v52 = vld [vmem:[#allocation24_spill] sm:$0xff]  ;;  %v14603_v24 = vld [vmem:[#allocation26_spill] sm:$0xff] }
 0x4df   :  { %11214 = vrcp.f32 %v2353_v15  ;;  %v14602_v15 = vld [vmem:[#allocation25_spill] sm:$0xff] }
 0x4e0   :  { %9011 = vmatpush1.bf16.msra.mxu0 %v12185_v57  ;;  %9043 = vmatpush1.bf16.msra.mxu1 %v12189_v60  ;;  %11216 = vrcp.f32 %v2360_v63  ;;  %v14608_v63 = vld [vmem:[#allocation31_spill] sm:$0xff] }
 0x4e1   :  { %9013 = vmatprep.subr.bf16.mxu0 %v12191_v62  ;;  %9045 = vmatprep.subr.bf16.mxu1 %v12194_v7 }
 0x4e4   :  { %9015 = vmatpush1.bf16.msra.mxu0 %v12199_v20  ;;  %9047 = vmatpush1.bf16.msra.mxu1 %v14512_v48 }
 0x4e5   :  { %9017 = vmatprep.subr.bf16.mxu0 %v14539_v45  ;;  %9049 = vmatprep.subr.bf16.mxu1 %v14540_v31 }
 0x4e8   :  { %v11213_v4 = vpop.eup %11212  ;;  %9019 = vmatpush1.bf16.msra.mxu0 %v14541_v35  ;;  %9051 = vmatpush1.bf16.msra.mxu1 %v14516_v18 }
 0x4e9   :  { %v11215_v58 = vpop.eup %11214  ;;  %v2364_v9 = vmul.f32 %v11213_v4, %v11211_v47  ;;  %9021 = vmatprep.subr.bf16.mxu0 %v14517_v49  ;;  %9053 = vmatprep.subr.bf16.mxu1 %v14518_v0  ;;  %v14604_v47 = vld [vmem:[#allocation27_spill] sm:$0xff]  ;;  %v14605_v4 = vld [vmem:[#allocation28_spill] sm:$0xff] }
 0x4ea   :  { %v2363_v22 = vmul.f32 %v11215_v58, %v12568_v37  ;;  %v11217_v37 = vpop.eup %11216  ;;  %v14606_v58 = vld [vmem:[#allocation29_spill] sm:$0xff] }
 0x4ec   :  { %v12660_v13 = vadd.f32 %v2364_v9, %v2363_v22  ;;  %9023 = vmatpush1.bf16.msra.mxu0 %v14519_v26  ;;  %9055 = vmatpush1.bf16.msra.mxu1 %v14520_v61  ;;  %v14607_v9 = vld [vmem:[#allocation30_spill] sm:$0xff]  ;;  %v14609_v22 = vld [vmem:[#allocation32_spill] sm:$0xff] }
 0x4ed   :  { %9025 = vmatprep.subr.bf16.mxu0 %v12229_v44  ;;  %9057 = vmatprep.subr.bf16.mxu1 %v14521_v11 }
 0x4ee   :  { %11218 = vtanh.f32 %v12660_v13 }
 0x4f0   :  { %9027 = vmatpush1.bf16.msra.mxu0 %v12235_v51  ;;  %9059 = vmatpush1.bf16.msra.mxu1 %v12239_v2 }
 0x4f1   :  { %9029 = vmatprep.subr.bf16.mxu0 %v12241_v12  ;;  %9061 = vmatprep.subr.bf16.mxu1 %v12244_v29 }
 0x4f4   :  { %9031 = vmatpush1.bf16.msra.mxu0 %v12247_v39  ;;  %9063 = vmatpush1.bf16.msra.mxu1 %v12251_v25 }
 0x4f5   :  { %9033 = vmatprep.subr.bf16.mxu0 %v12253_v42  ;;  %9065 = vmatprep.subr.bf16.mxu1 %v12256_v5 }
 0x4f8   :  { %v11219_v54 = vpop.eup %11218  ;;  %9035 = vmatpush1.bf16.msra.mxu0 %v12259_v17  ;;  %9067 = vmatpush1.bf16.msra.mxu1 %v12263_v14 }
 0x4f9   :  { %v12677_v10 = vmul.f32 %v11219_v54, %v11217_v37  ;;  %9069 = vmatprep.subr.bf16.mxu0 %v12036_v23  ;;  %9101 = vmatprep.subr.bf16.mxu1 %v12039_v27  ;;  %v14610_v37 = vld [vmem:[#allocation33_spill] sm:$0xff]  ;;  %v14611_v54 = vld [vmem:[#allocation34_spill] sm:$0xff] }
 0x4fb   :  { %14597 = vst [vmem:[#allocation56_spill] sm:$0xff] %v12677_v10  ;;  %2591 = vmatmul.mubr.f32.vlgmr.msra.gmra.mrb[22].mxu0 %v12677_v10  ;;  %2662 = vmatmul.mubr.f32.vlgmr.msra.gmra.mrb[22].mxu1 %v12677_v10  ;;  %v14612_v10 = vld [vmem:[#allocation35_spill] sm:$0xff] }
 0x4fc   :  { %9071 = vmatpush1.bf16.msra.mxu0 %v12042_v30  ;;  %9103 = vmatpush1.bf16.msra.mxu1 %v12045_v33 }
 0x4fd   :  { %9073 = vmatprep.subr.bf16.mxu0 %v12049_v36  ;;  %9105 = vmatprep.subr.bf16.mxu1 %v12053_v40 }
 0x4fe   :  { %2790 = vmatprep.mubr.f32.mxu0 %v14503_v21  ;;  %2861 = vmatprep.mubr.f32.mxu1 %v14503_v21 }
 0x500   :  { %9075 = vmatpush1.bf16.msra.mxu0 %v12057_v43  ;;  %9107 = vmatpush1.bf16.msra.mxu1 %v12061_v46 }
 0x501   :  { %9077 = vmatprep.subr.bf16.mxu0 %v14598_v50  ;;  %9109 = vmatprep.subr.bf16.mxu1 %v14599_v6 }
 0x504   :  { %9079 = vmatpush1.bf16.msra.mxu0 %v14600_v53  ;;  %9111 = vmatpush1.bf16.msra.mxu1 %v14601_v52 }
 0x505   :  { %9081 = vmatprep.subr.bf16.mxu0 %v14602_v15  ;;  %9113 = vmatprep.subr.bf16.mxu1 %v14603_v24  ;;  %v14614_v24 = vld [vmem:[#allocation37_spill] sm:$0xff]  ;;  %v14624_v15 = vld [vmem:[#allocation58_spill] sm:$0xff] }
 0x508   :  { %9083 = vmatpush1.bf16.msra.mxu0 %v14604_v47  ;;  %9115 = vmatpush1.bf16.msra.mxu1 %v14605_v4  ;;  %v14615_v47 = vld [vmem:[#allocation38_spill] sm:$0xff]  ;;  %v14616_v4 = vld [vmem:[#allocation39_spill] sm:$0xff] }
 0x509   :  { %9085 = vmatprep.subr.bf16.mxu0 %v14606_v58  ;;  %9117 = vmatprep.subr.bf16.mxu1 %v14607_v9  ;;  %v14617_v58 = vld [vmem:[#allocation40_spill] sm:$0xff]  ;;  %v14618_v9 = vld [vmem:[#allocation41_spill] sm:$0xff] }
 0x50c   :  { %9087 = vmatpush1.bf16.msra.mxu0 %v14608_v63  ;;  %9119 = vmatpush1.bf16.msra.mxu1 %v14609_v22  ;;  %v14619_v63 = vld [vmem:[#allocation42_spill] sm:$0xff]  ;;  %v14620_v22 = vld [vmem:[#allocation43_spill] sm:$0xff] }
 0x50d   :  { %9089 = vmatprep.subr.bf16.mxu0 %v14610_v37  ;;  %9121 = vmatprep.subr.bf16.mxu1 %v14611_v54  ;;  %v14621_v37 = vld [vmem:[#allocation44_spill] sm:$0xff]  ;;  %v14622_v54 = vld [vmem:[#allocation45_spill] sm:$0xff] }
 0x510   :  { %9091 = vmatpush1.bf16.msra.mxu0 %v14612_v10  ;;  %9123 = vmatpush1.bf16.msra.mxu1 %v14613_v59  ;;  %v14623_v10 = vld [vmem:[#allocation46_spill] sm:$0xff] }
 0x511   :  { %9093 = vmatprep.subr.bf16.mxu0 %v14614_v24  ;;  %9125 = vmatprep.subr.bf16.mxu1 %v14615_v47 }
 0x514   :  { %9095 = vmatpush1.bf16.msra.mxu0 %v14616_v4  ;;  %9127 = vmatpush1.bf16.msra.mxu1 %v14617_v58 }
 0x515   :  { %9097 = vmatprep.subr.bf16.mxu0 %v14618_v9  ;;  %9129 = vmatprep.subr.bf16.mxu1 %v14619_v63 }
 0x518   :  { %9099 = vmatpush1.bf16.msra.mxu0 %v14620_v22  ;;  %9131 = vmatpush1.bf16.msra.mxu1 %v14621_v37 }
 0x519   :  { %9133 = vmatprep.subr.bf16.mxu0 %v14622_v54  ;;  %9165 = vmatprep.subr.bf16.mxu1 %v14623_v10 }
 0x5ae   :  { %v2442_v59 = vpop.f32.mrb[8].mxu0  ;;  %v2513_v24 = vpop.f32.mrb[8].mxu1 }
 0x5af   :  { %v10828_v47 = vadd.f32 %v2442_v59, %v14624_v15  ;;  %v2444_v52 = vpop.f32.mrb[9].mxu0  ;;  %v2515_v4 = vpop.f32.mrb[9].mxu1  ;;  %v10844_v37 = vadd.f32 %v2513_v24, %v14566_v41 }
 0x5b0   :  { %v10829_v58 = vadd.f32 %v2444_v52, %v14533_v19  ;;  %v10845_v22 = vadd.f32 %v2515_v4, %v14565_v28 }
 0x5b1   :  { %v8081_v53 = vmul.f32 -1.442695, %v10828_v47 }
 0x5b2   :  { %v8082_v9 = vmul.f32 -1.442695, %v10829_v58  ;;  %v8083_v63 = vmul.f32 -1.442695, %v10845_v22 }
 0x5b3   :  { %11220 = vpow2.f32 %v8081_v53 }
 0x5b4   :  { %11222 = vpow2.f32 %v8082_v9 }
 0x5b5   :  { %11224 = vpow2.f32 %v8083_v63 }
 0x5b6   :  { %11226 = vtanh.f32 %v10844_v37 }
 0x5bd   :  { %v11221_v54 = vpop.eup %11220 }
 0x5be   :  { %v11223_v6 = vpop.eup %11222  ;;  %v2675_v10 = vadd.f32 1.0, %v11221_v54 }
 0x5bf   :  { %v2681_v50 = vadd.f32 1.0, %v11223_v6  ;;  %v11225_v59 = vpop.eup %11224 }
 0x5c0   :  { %11228 = vrcp.f32 %v2675_v10  ;;  %v11227_v15 = vpop.eup %11226  ;;  %v2688_v53 = vadd.f32 1.0, %v11225_v59 }
 0x5c1   :  { %11230 = vrcp.f32 %v2681_v50 }
 0x5c2   :  { %11232 = vrcp.f32 %v2688_v53 }
 0x5ca   :  { %v11229_v52 = vpop.eup %11228 }
 0x5cb   :  { %v11231_v47 = vpop.eup %11230  ;;  %v2692_v58 = vmul.f32 %v11229_v52, %v11227_v15 }
 0x5cc   :  { %v2691_v9 = vmul.f32 %v11231_v47, %v12630_v56  ;;  %v11233_v56 = vpop.eup %11232 }
 0x5ce   :  { %v12722_v4 = vadd.f32 %v2692_v58, %v2691_v9  ;;  %v2592_v22 = vpop.f32.mrb[22].mxu0  ;;  %v2663_v24 = vpop.f32.mrb[22].mxu1 }
 0x5cf   :  { %v10858_v54 = vadd.f32 %v2592_v22, %v14536_v1  ;;  %v2594_v63 = vpop.f32.mrb[23].mxu0  ;;  %v2665_v37 = vpop.f32.mrb[23].mxu1  ;;  %v10874_v58 = vadd.f32 %v2663_v24, %v12359_v55 }
 0x5d0   :  { %11234 = vtanh.f32 %v12722_v4  ;;  %v10859_v10 = vadd.f32 %v2594_v63, %v14537_v3  ;;  %v10875_v15 = vadd.f32 %v2665_v37, %v12353_v8 }
 0x5d1   :  { %v8084_v50 = vmul.f32 -1.442695, %v10858_v54 }
 0x5d2   :  { %v8085_v6 = vmul.f32 -1.442695, %v10859_v10  ;;  %v8086_v52 = vmul.f32 -1.442695, %v10875_v15 }
 0x5d3   :  { %11236 = vpow2.f32 %v8084_v50 }
 0x5d4   :  { %11238 = vpow2.f32 %v8085_v6 }
 0x5d5   :  { %11240 = vpow2.f32 %v8086_v52 }
 0x5d6   :  { %11242 = vtanh.f32 %v10874_v58  ;;  %v14627_v58 = vld [vmem:[#allocation21_spill] sm:$0xff] }
 0x5da   :  { %v11235_v59 = vpop.eup %11234 }
 0x5db   :  { %v12728_v47 = vmul.f32 %v11235_v59, %v11233_v56 }
 0x5dd   :  { %14625 = vst [vmem:[#allocation59_spill] sm:$0xff] %v12728_v47  ;;  %v11237_v53 = vpop.eup %11236  ;;  %2791 = vmatmul.mubr.f32.vlgmr.msra.gmra.mrb[10].mxu0 %v12728_v47  ;;  %2862 = vmatmul.mubr.f32.vlgmr.msra.gmra.mrb[10].mxu1 %v12728_v47  ;;  %v14641_v47 = vld [vmem:[#allocation35_spill] sm:$0xff] }
 0x5de   :  { %v11239_v9 = vpop.eup %11238  ;;  %v2699_v22 = vadd.f32 1.0, %v11237_v53  ;;  %9135 = vmatpush1.bf16.msra.mxu0 %v12169_v32  ;;  %9167 = vmatpush1.bf16.msra.mxu1 %v12173_v34  ;;  %v14628_v53 = vld [vmem:[#allocation22_spill] sm:$0xff] }
 0x5df   :  { %v2705_v54 = vadd.f32 1.0, %v11239_v9  ;;  %9137 = vmatprep.subr.bf16.mxu0 %v12175_v38  ;;  %9169 = vmatprep.subr.bf16.mxu1 %v12179_v16  ;;  %v11241_v24 = vpop.eup %11240  ;;  %v14629_v9 = vld [vmem:[#allocation23_spill] sm:$0xff] }
 0x5e0   :  { %11244 = vrcp.f32 %v2699_v22  ;;  %2940 = vmatprep.mubr.f32.mxu0 %v14503_v21  ;;  %3011 = vmatprep.mubr.f32.mxu1 %v14503_v21  ;;  %v11243_v63 = vpop.eup %11242  ;;  %v2712_v6 = vadd.f32 1.0, %v11241_v24  ;;  %v14630_v22 = vld [vmem:[#allocation24_spill] sm:$0xff]  ;;  %v14632_v24 = vld [vmem:[#allocation26_spill] sm:$0xff] }
 0x5e1   :  { %11246 = vrcp.f32 %v2705_v54  ;;  %v14631_v54 = vld [vmem:[#allocation25_spill] sm:$0xff] }
 0x5e2   :  { %9139 = vmatpush1.bf16.msra.mxu0 %v12185_v57  ;;  %9171 = vmatpush1.bf16.msra.mxu1 %v12189_v60  ;;  %11248 = vrcp.f32 %v2712_v6  ;;  %v14637_v6 = vld [vmem:[#allocation31_spill] sm:$0xff] }
 0x5e3   :  { %9141 = vmatprep.subr.bf16.mxu0 %v12191_v62  ;;  %9173 = vmatprep.subr.bf16.mxu1 %v12194_v7 }
 0x5e6   :  { %9143 = vmatpush1.bf16.msra.mxu0 %v12199_v20  ;;  %9175 = vmatpush1.bf16.msra.mxu1 %v14512_v48 }
 0x5e7   :  { %9145 = vmatprep.subr.bf16.mxu0 %v14539_v45  ;;  %9177 = vmatprep.subr.bf16.mxu1 %v14540_v31 }
 0x5ea   :  { %v11245_v37 = vpop.eup %11244  ;;  %9147 = vmatpush1.bf16.msra.mxu0 %v14541_v35  ;;  %9179 = vmatpush1.bf16.msra.mxu1 %v14516_v18 }
 0x5eb   :  { %v11247_v10 = vpop.eup %11246  ;;  %v2716_v50 = vmul.f32 %v11245_v37, %v11243_v63  ;;  %9149 = vmatprep.subr.bf16.mxu0 %v14517_v49  ;;  %9181 = vmatprep.subr.bf16.mxu1 %v14518_v0  ;;  %v14633_v63 = vld [vmem:[#allocation27_spill] sm:$0xff]  ;;  %v14634_v37 = vld [vmem:[#allocation28_spill] sm:$0xff] }
 0x5ec   :  { %v2715_v15 = vmul.f32 %v11247_v10, %v12660_v13  ;;  %v11249_v13 = vpop.eup %11248  ;;  %v14635_v10 = vld [vmem:[#allocation29_spill] sm:$0xff] }
 0x5ee   :  { %v12752_v56 = vadd.f32 %v2716_v50, %v2715_v15  ;;  %9151 = vmatpush1.bf16.msra.mxu0 %v14519_v26  ;;  %9183 = vmatpush1.bf16.msra.mxu1 %v14520_v61  ;;  %v14636_v50 = vld [vmem:[#allocation30_spill] sm:$0xff]  ;;  %v14638_v15 = vld [vmem:[#allocation32_spill] sm:$0xff] }
 0x5ef   :  { %9153 = vmatprep.subr.bf16.mxu0 %v12229_v44  ;;  %9185 = vmatprep.subr.bf16.mxu1 %v14521_v11 }
 0x5f0   :  { %11250 = vtanh.f32 %v12752_v56 }
 0x5f2   :  { %9155 = vmatpush1.bf16.msra.mxu0 %v12235_v51  ;;  %9187 = vmatpush1.bf16.msra.mxu1 %v12239_v2 }
 0x5f3   :  { %9157 = vmatprep.subr.bf16.mxu0 %v12241_v12  ;;  %9189 = vmatprep.subr.bf16.mxu1 %v12244_v29 }
 0x5f6   :  { %9159 = vmatpush1.bf16.msra.mxu0 %v12247_v39  ;;  %9191 = vmatpush1.bf16.msra.mxu1 %v12251_v25 }
 0x5f7   :  { %9161 = vmatprep.subr.bf16.mxu0 %v12253_v42  ;;  %9193 = vmatprep.subr.bf16.mxu1 %v12256_v5 }
 0x5fa   :  { %v11251_v59 = vpop.eup %11250  ;;  %9163 = vmatpush1.bf16.msra.mxu0 %v12259_v17  ;;  %9195 = vmatpush1.bf16.msra.mxu1 %v12263_v14 }
 0x5fb   :  { %v12769_v52 = vmul.f32 %v11251_v59, %v11249_v13  ;;  %9197 = vmatprep.subr.bf16.mxu0 %v12036_v23  ;;  %9229 = vmatprep.subr.bf16.mxu1 %v12039_v27  ;;  %v14639_v13 = vld [vmem:[#allocation33_spill] sm:$0xff]  ;;  %v14640_v59 = vld [vmem:[#allocation34_spill] sm:$0xff] }
 0x5fd   :  { %14626 = vst [vmem:[#allocation62_spill] sm:$0xff] %v12769_v52  ;;  %2941 = vmatmul.mubr.f32.vlgmr.msra.gmra.mrb[20].mxu0 %v12769_v52  ;;  %3012 = vmatmul.mubr.f32.vlgmr.msra.gmra.mrb[20].mxu1 %v12769_v52  ;;  %v14642_v52 = vld [vmem:[#allocation36_spill] sm:$0xff] }
 0x5fe   :  { %9199 = vmatpush1.bf16.msra.mxu0 %v12042_v30  ;;  %9231 = vmatpush1.bf16.msra.mxu1 %v12045_v33 }
 0x5ff   :  { %9201 = vmatprep.subr.bf16.mxu0 %v12049_v36  ;;  %9233 = vmatprep.subr.bf16.mxu1 %v12053_v40 }
 0x600   :  { %3140 = vmatprep.mubr.f32.mxu0 %v14503_v21  ;;  %3211 = vmatprep.mubr.f32.mxu1 %v14503_v21 }
 0x602   :  { %9203 = vmatpush1.bf16.msra.mxu0 %v12057_v43  ;;  %9235 = vmatpush1.bf16.msra.mxu1 %v12061_v46 }
 0x603   :  { %9205 = vmatprep.subr.bf16.mxu0 %v14627_v58  ;;  %9237 = vmatprep.subr.bf16.mxu1 %v14628_v53 }
 0x606   :  { %9207 = vmatpush1.bf16.msra.mxu0 %v14629_v9  ;;  %9239 = vmatpush1.bf16.msra.mxu1 %v14630_v22 }
 0x607   :  { %9209 = vmatprep.subr.bf16.mxu0 %v14631_v54  ;;  %9241 = vmatprep.subr.bf16.mxu1 %v14632_v24  ;;  %v14643_v24 = vld [vmem:[#allocation37_spill] sm:$0xff]  ;;  %v14653_v54 = vld [vmem:[#allocation58_spill] sm:$0xff] }
 0x60a   :  { %9211 = vmatpush1.bf16.msra.mxu0 %v14633_v63  ;;  %9243 = vmatpush1.bf16.msra.mxu1 %v14634_v37  ;;  %v14644_v63 = vld [vmem:[#allocation38_spill] sm:$0xff]  ;;  %v14645_v37 = vld [vmem:[#allocation39_spill] sm:$0xff] }
 0x60b   :  { %9213 = vmatprep.subr.bf16.mxu0 %v14635_v10  ;;  %9245 = vmatprep.subr.bf16.mxu1 %v14636_v50  ;;  %v14646_v10 = vld [vmem:[#allocation40_spill] sm:$0xff]  ;;  %v14647_v50 = vld [vmem:[#allocation41_spill] sm:$0xff] }
 0x60e   :  { %9215 = vmatpush1.bf16.msra.mxu0 %v14637_v6  ;;  %9247 = vmatpush1.bf16.msra.mxu1 %v14638_v15  ;;  %v14648_v6 = vld [vmem:[#allocation42_spill] sm:$0xff]  ;;  %v14649_v15 = vld [vmem:[#allocation43_spill] sm:$0xff] }
 0x60f   :  { %9217 = vmatprep.subr.bf16.mxu0 %v14639_v13  ;;  %9249 = vmatprep.subr.bf16.mxu1 %v14640_v59  ;;  %v14650_v13 = vld [vmem:[#allocation44_spill] sm:$0xff]  ;;  %v14651_v59 = vld [vmem:[#allocation45_spill] sm:$0xff] }
 0x612   :  { %9219 = vmatpush1.bf16.msra.mxu0 %v14641_v47  ;;  %9251 = vmatpush1.bf16.msra.mxu1 %v14642_v52  ;;  %v14652_v47 = vld [vmem:[#allocation46_spill] sm:$0xff] }
 0x613   :  { %9221 = vmatprep.subr.bf16.mxu0 %v14643_v24  ;;  %9253 = vmatprep.subr.bf16.mxu1 %v14644_v63 }
 0x616   :  { %9223 = vmatpush1.bf16.msra.mxu0 %v14645_v37  ;;  %9255 = vmatpush1.bf16.msra.mxu1 %v14646_v10 }
 0x617   :  { %9225 = vmatprep.subr.bf16.mxu0 %v14647_v50  ;;  %9257 = vmatprep.subr.bf16.mxu1 %v14648_v6 }
 0x61a   :  { %9227 = vmatpush1.bf16.msra.mxu0 %v14649_v15  ;;  %9259 = vmatpush1.bf16.msra.mxu1 %v14650_v13 }
 0x61b   :  { %9261 = vmatprep.subr.bf16.mxu0 %v14651_v59  ;;  %9293 = vmatprep.subr.bf16.mxu1 %v14652_v47 }
 0x6b0   :  { %v2792_v52 = vpop.f32.mrb[10].mxu0  ;;  %v2863_v24 = vpop.f32.mrb[10].mxu1 }
 0x6b1   :  { %v10830_v63 = vadd.f32 %v2792_v52, %v14653_v54  ;;  %v2794_v22 = vpop.f32.mrb[11].mxu0  ;;  %v2865_v37 = vpop.f32.mrb[11].mxu1  ;;  %v10846_v13 = vadd.f32 %v2863_v24, %v14566_v41 }
 0x6b2   :  { %v10831_v10 = vadd.f32 %v2794_v22, %v14533_v19  ;;  %v10847_v15 = vadd.f32 %v2865_v37, %v14565_v28 }
 0x6b3   :  { %v8087_v9 = vmul.f32 -1.442695, %v10830_v63 }
 0x6b4   :  { %v8088_v50 = vmul.f32 -1.442695, %v10831_v10  ;;  %v8089_v6 = vmul.f32 -1.442695, %v10847_v15 }
 0x6b5   :  { %11252 = vpow2.f32 %v8087_v9 }
 0x6b6   :  { %11254 = vpow2.f32 %v8088_v50 }
 0x6b7   :  { %11256 = vpow2.f32 %v8089_v6 }
 0x6b8   :  { %11258 = vtanh.f32 %v10846_v13 }
 0x6bf   :  { %v11253_v59 = vpop.eup %11252 }
 0x6c0   :  { %v11255_v53 = vpop.eup %11254  ;;  %v3025_v47 = vadd.f32 1.0, %v11253_v59 }
 0x6c1   :  { %v3031_v58 = vadd.f32 1.0, %v11255_v53  ;;  %v11257_v52 = vpop.eup %11256 }
 0x6c2   :  { %11260 = vrcp.f32 %v3025_v47  ;;  %v11259_v54 = vpop.eup %11258  ;;  %v3038_v9 = vadd.f32 1.0, %v11257_v52 }
 0x6c3   :  { %11262 = vrcp.f32 %v3031_v58 }
 0x6c4   :  { %11264 = vrcp.f32 %v3038_v9 }
 0x6cc   :  { %v11261_v22 = vpop.eup %11260 }
 0x6cd   :  { %v11263_v63 = vpop.eup %11262  ;;  %v3042_v10 = vmul.f32 %v11261_v22, %v11259_v54 }
 0x6ce   :  { %v3041_v50 = vmul.f32 %v11263_v63, %v12722_v4  ;;  %v11265_v4 = vpop.eup %11264 }
 0x6d0   :  { %v12814_v37 = vadd.f32 %v3042_v10, %v3041_v50  ;;  %v2942_v15 = vpop.f32.mrb[20].mxu0  ;;  %v3013_v24 = vpop.f32.mrb[20].mxu1 }
 0x6d1   :  { %v10856_v59 = vadd.f32 %v2942_v15, %v14536_v1  ;;  %v2944_v6 = vpop.f32.mrb[21].mxu0  ;;  %v3015_v13 = vpop.f32.mrb[21].mxu1  ;;  %v10872_v10 = vadd.f32 %v3013_v24, %v12359_v55 }
 0x6d2   :  { %11266 = vtanh.f32 %v12814_v37  ;;  %v10857_v47 = vadd.f32 %v2944_v6, %v14537_v3  ;;  %v10873_v54 = vadd.f32 %v3015_v13, %v12353_v8 }
 0x6d3   :  { %v8090_v58 = vmul.f32 -1.442695, %v10856_v59 }
 0x6d4   :  { %v8091_v53 = vmul.f32 -1.442695, %v10857_v47  ;;  %v8092_v22 = vmul.f32 -1.442695, %v10873_v54 }
 0x6d5   :  { %11268 = vpow2.f32 %v8090_v58 }
 0x6d6   :  { %11270 = vpow2.f32 %v8091_v53 }
 0x6d7   :  { %11272 = vpow2.f32 %v8092_v22 }
 0x6d8   :  { %11274 = vtanh.f32 %v10872_v10  ;;  %v14656_v10 = vld [vmem:[#allocation23_spill] sm:$0xff] }
 0x6dc   :  { %v11267_v52 = vpop.eup %11266 }
 0x6dd   :  { %v12820_v63 = vmul.f32 %v11267_v52, %v11265_v4 }
 0x6df   :  { %v11269_v9 = vpop.eup %11268  ;;  %3141 = vmatmul.mubr.f32.vlgmr.msra.gmra.mrb[12].mxu0 %v12820_v63  ;;  %3212 = vmatmul.mubr.f32.vlgmr.msra.gmra.mrb[12].mxu1 %v12820_v63 }
 0x6e0   :  { %v11271_v50 = vpop.eup %11270  ;;  %v3049_v15 = vadd.f32 1.0, %v11269_v9  ;;  %9263 = vmatpush1.bf16.msra.mxu0 %v12169_v32  ;;  %9295 = vmatpush1.bf16.msra.mxu1 %v12173_v34  ;;  %v14661_v9 = vld [vmem:[#allocation28_spill] sm:$0xff] }
 0x6e1   :  { %v3055_v59 = vadd.f32 1.0, %v11271_v50  ;;  %9265 = vmatprep.subr.bf16.mxu0 %v12175_v38  ;;  %9297 = vmatprep.subr.bf16.mxu1 %v12179_v16  ;;  %v11273_v24 = vpop.eup %11272  ;;  %v14662_v50 = vld [vmem:[#allocation29_spill] sm:$0xff] }
 0x6e2   :  { %11276 = vrcp.f32 %v3049_v15  ;;  %3290 = vmatprep.mubr.f32.mxu0 %v14503_v21  ;;  %3361 = vmatprep.mubr.f32.mxu1 %v14503_v21  ;;  %v11275_v6 = vpop.eup %11274  ;;  %v3062_v53 = vadd.f32 1.0, %v11273_v24  ;;  %v14665_v15 = vld [vmem:[#allocation32_spill] sm:$0xff]  ;;  %v14667_v24 = vld [vmem:[#allocation34_spill] sm:$0xff] }
 0x6e3   :  { %11278 = vrcp.f32 %v3055_v59  ;;  %v14666_v59 = vld [vmem:[#allocation33_spill] sm:$0xff] }
 0x6e4   :  { %9267 = vmatpush1.bf16.msra.mxu0 %v12185_v57  ;;  %9299 = vmatpush1.bf16.msra.mxu1 %v12189_v60  ;;  %11280 = vrcp.f32 %v3062_v53  ;;  %v14672_v53 = vld [vmem:[#allocation39_spill] sm:$0xff] }
 0x6e5   :  { %9269 = vmatprep.subr.bf16.mxu0 %v12191_v62  ;;  %9301 = vmatprep.subr.bf16.mxu1 %v12194_v7 }
 0x6e8   :  { %9271 = vmatpush1.bf16.msra.mxu0 %v12199_v20  ;;  %9303 = vmatpush1.bf16.msra.mxu1 %v14512_v48 }
 0x6e9   :  { %9273 = vmatprep.subr.bf16.mxu0 %v14539_v45  ;;  %9305 = vmatprep.subr.bf16.mxu1 %v14540_v31 }
 0x6ec   :  { %v11277_v13 = vpop.eup %11276  ;;  %9275 = vmatpush1.bf16.msra.mxu0 %v14541_v35  ;;  %9307 = vmatpush1.bf16.msra.mxu1 %v14516_v18 }
 0x6ed   :  { %v11279_v47 = vpop.eup %11278  ;;  %v3066_v58 = vmul.f32 %v11277_v13, %v11275_v6  ;;  %9277 = vmatprep.subr.bf16.mxu0 %v14517_v49  ;;  %9309 = vmatprep.subr.bf16.mxu1 %v14518_v0  ;;  %v14668_v6 = vld [vmem:[#allocation35_spill] sm:$0xff]  ;;  %v14669_v13 = vld [vmem:[#allocation36_spill] sm:$0xff] }
 0x6ee   :  { %v3065_v54 = vmul.f32 %v11279_v47, %v12752_v56  ;;  %v11281_v56 = vpop.eup %11280  ;;  %v14670_v47 = vld [vmem:[#allocation37_spill] sm:$0xff] }
 0x6f0   :  { %v12844_v4 = vadd.f32 %v3066_v58, %v3065_v54  ;;  %9279 = vmatpush1.bf16.msra.mxu0 %v14519_v26  ;;  %9311 = vmatpush1.bf16.msra.mxu1 %v14520_v61  ;;  %v14671_v58 = vld [vmem:[#allocation38_spill] sm:$0xff]  ;;  %v14673_v54 = vld [vmem:[#allocation40_spill] sm:$0xff] }
 0x6f1   :  { %9281 = vmatprep.subr.bf16.mxu0 %v12229_v44  ;;  %9313 = vmatprep.subr.bf16.mxu1 %v14521_v11 }
 0x6f2   :  { %11282 = vtanh.f32 %v12844_v4 }
 0x6f4   :  { %9283 = vmatpush1.bf16.msra.mxu0 %v12235_v51  ;;  %9315 = vmatpush1.bf16.msra.mxu1 %v12239_v2 }
 0x6f5   :  { %9285 = vmatprep.subr.bf16.mxu0 %v12241_v12  ;;  %9317 = vmatprep.subr.bf16.mxu1 %v12244_v29 }
 0x6f8   :  { %9287 = vmatpush1.bf16.msra.mxu0 %v12247_v39  ;;  %9319 = vmatpush1.bf16.msra.mxu1 %v12251_v25 }
 0x6f9   :  { %9289 = vmatprep.subr.bf16.mxu0 %v12253_v42  ;;  %9321 = vmatprep.subr.bf16.mxu1 %v12256_v5 }
 0x6fc   :  { %v11283_v52 = vpop.eup %11282  ;;  %9291 = vmatpush1.bf16.msra.mxu0 %v12259_v17  ;;  %9323 = vmatpush1.bf16.msra.mxu1 %v12263_v14 }
 0x6fd   :  { %v12861_v22 = vmul.f32 %v11283_v52, %v11281_v56  ;;  %9325 = vmatprep.subr.bf16.mxu0 %v12036_v23  ;;  %9357 = vmatprep.subr.bf16.mxu1 %v12039_v27  ;;  %v14654_v23 = vld [vmem:[#allocation21_spill] sm:$0xff]  ;;  %v14655_v27 = vld [vmem:[#allocation22_spill] sm:$0xff] }
 0x6fe   :  { %v14674_v56 = vld [vmem:[#allocation41_spill] sm:$0xff]  ;;  %v14675_v52 = vld [vmem:[#allocation42_spill] sm:$0xff] }
 0x6ff   :  { %3291 = vmatmul.mubr.f32.vlgmr.msra.gmra.mrb[18].mxu0 %v12861_v22  ;;  %3362 = vmatmul.mubr.f32.vlgmr.msra.gmra.mrb[18].mxu1 %v12861_v22 }
 0x700   :  { %9327 = vmatpush1.bf16.msra.mxu0 %v12042_v30  ;;  %9359 = vmatpush1.bf16.msra.mxu1 %v12045_v33  ;;  %v14657_v30 = vld [vmem:[#allocation24_spill] sm:$0xff]  ;;  %v14658_v33 = vld [vmem:[#allocation25_spill] sm:$0xff] }
 0x701   :  { %9329 = vmatprep.subr.bf16.mxu0 %v12049_v36  ;;  %9361 = vmatprep.subr.bf16.mxu1 %v12053_v40  ;;  %v14659_v36 = vld [vmem:[#allocation26_spill] sm:$0xff]  ;;  %v14660_v40 = vld [vmem:[#allocation27_spill] sm:$0xff] }
 0x702   :  { %3490 = vmatprep.mubr.f32.mxu0 %v14503_v21  ;;  %3561 = vmatprep.mubr.f32.mxu1 %v14503_v21 }
 0x704   :  { %9331 = vmatpush1.bf16.msra.mxu0 %v12057_v43  ;;  %9363 = vmatpush1.bf16.msra.mxu1 %v12061_v46  ;;  %v14663_v43 = vld [vmem:[#allocation30_spill] sm:$0xff]  ;;  %v14664_v46 = vld [vmem:[#allocation31_spill] sm:$0xff] }
 0x705   :  { %9333 = vmatprep.subr.bf16.mxu0 %v14654_v23  ;;  %9365 = vmatprep.subr.bf16.mxu1 %v14655_v27  ;;  %v14676_v23 = vld [vmem:[#allocation43_spill] sm:$0xff]  ;;  %v14677_v27 = vld [vmem:[#allocation44_spill] sm:$0xff] }
 0x708   :  { %9335 = vmatpush1.bf16.msra.mxu0 %v14656_v10  ;;  %9367 = vmatpush1.bf16.msra.mxu1 %v14657_v30  ;;  %v14678_v10 = vld [vmem:[#allocation45_spill] sm:$0xff]  ;;  %v14679_v30 = vld [vmem:[#allocation46_spill] sm:$0xff] }
 0x709   :  { %9337 = vmatprep.subr.bf16.mxu0 %v14658_v33  ;;  %9369 = vmatprep.subr.bf16.mxu1 %v14659_v36 }
 0x70c   :  { %9339 = vmatpush1.bf16.msra.mxu0 %v14660_v40  ;;  %9371 = vmatpush1.bf16.msra.mxu1 %v14661_v9  ;;  %v14680_v40 = vld [vmem:[#allocation58_spill] sm:$0xff] }
 0x70d   :  { %9341 = vmatprep.subr.bf16.mxu0 %v14662_v50  ;;  %9373 = vmatprep.subr.bf16.mxu1 %v14663_v43 }
 0x710   :  { %9343 = vmatpush1.bf16.msra.mxu0 %v14664_v46  ;;  %9375 = vmatpush1.bf16.msra.mxu1 %v14665_v15 }
 0x711   :  { %9345 = vmatprep.subr.bf16.mxu0 %v14666_v59  ;;  %9377 = vmatprep.subr.bf16.mxu1 %v14667_v24 }
 0x714   :  { %9347 = vmatpush1.bf16.msra.mxu0 %v14668_v6  ;;  %9379 = vmatpush1.bf16.msra.mxu1 %v14669_v13 }
 0x715   :  { %9349 = vmatprep.subr.bf16.mxu0 %v14670_v47  ;;  %9381 = vmatprep.subr.bf16.mxu1 %v14671_v58 }
 0x718   :  { %9351 = vmatpush1.bf16.msra.mxu0 %v14672_v53  ;;  %9383 = vmatpush1.bf16.msra.mxu1 %v14673_v54 }
 0x719   :  { %9353 = vmatprep.subr.bf16.mxu0 %v14674_v56  ;;  %9385 = vmatprep.subr.bf16.mxu1 %v14675_v52 }
 0x71c   :  { %9355 = vmatpush1.bf16.msra.mxu0 %v14676_v23  ;;  %9387 = vmatpush1.bf16.msra.mxu1 %v14677_v27 }
 0x71d   :  { %9389 = vmatprep.subr.bf16.mxu0 %v14678_v10  ;;  %9421 = vmatprep.subr.bf16.mxu1 %v14679_v30 }
 0x7b2   :  { %v3142_v33 = vpop.f32.mrb[12].mxu0  ;;  %v3213_v36 = vpop.f32.mrb[12].mxu1 }
 0x7b3   :  { %v10832_v9 = vadd.f32 %v3142_v33, %v14680_v40  ;;  %v3144_v50 = vpop.f32.mrb[13].mxu0  ;;  %v3215_v43 = vpop.f32.mrb[13].mxu1  ;;  %v10848_v13 = vadd.f32 %v3213_v36, %v14566_v41 }
 0x7b4   :  { %v10833_v46 = vadd.f32 %v3144_v50, %v14533_v19  ;;  %v10849_v24 = vadd.f32 %v3215_v43, %v14565_v28 }
 0x7b5   :  { %v8093_v15 = vmul.f32 -1.442695, %v10832_v9 }
 0x7b6   :  { %v8094_v59 = vmul.f32 -1.442695, %v10833_v46  ;;  %v8095_v6 = vmul.f32 -1.442695, %v10849_v24 }
 0x7b7   :  { %11284 = vpow2.f32 %v8093_v15 }
 0x7b8   :  { %11286 = vpow2.f32 %v8094_v59 }
 0x7b9   :  { %11288 = vpow2.f32 %v8095_v6 }
 0x7ba   :  { %11290 = vtanh.f32 %v10848_v13 }
 0x7c1   :  { %v11285_v47 = vpop.eup %11284 }
 0x7c2   :  { %v11287_v58 = vpop.eup %11286  ;;  %v3375_v53 = vadd.f32 1.0, %v11285_v47 }
 0x7c3   :  { %v3381_v54 = vadd.f32 1.0, %v11287_v58  ;;  %v11289_v56 = vpop.eup %11288 }
 0x7c4   :  { %11292 = vrcp.f32 %v3375_v53  ;;  %v11291_v52 = vpop.eup %11290  ;;  %v3388_v30 = vadd.f32 1.0, %v11289_v56 }
 0x7c5   :  { %11294 = vrcp.f32 %v3381_v54 }
 0x7c6   :  { %11296 = vrcp.f32 %v3388_v30  ;;  %v3806_v30 = vld [vmem:[#allocation12 + $0x90] sm:$0xff] }
 0x7ce   :  { %v11293_v23 = vpop.eup %11292 }
 0x7cf   :  { %v11295_v27 = vpop.eup %11294  ;;  %v3392_v10 = vmul.f32 %v11293_v23, %v11291_v52 }
 0x7d0   :  { %v3391_v33 = vmul.f32 %v11295_v27, %v12814_v37  ;;  %v11297_v37 = vpop.eup %11296 }
 0x7d2   :  { %v12906_v9 = vadd.f32 %v3392_v10, %v3391_v33  ;;  %v3292_v50 = vpop.f32.mrb[18].mxu0  ;;  %v3363_v36 = vpop.f32.mrb[18].mxu1  ;;  %v3814_v33 = vld [vmem:[#allocation12 + $0xd0] sm:$0xff] }
 0x7d3   :  { %v10854_v43 = vadd.f32 %v3292_v50, %v14536_v1  ;;  %v3294_v46 = vpop.f32.mrb[19].mxu0  ;;  %v3365_v15 = vpop.f32.mrb[19].mxu1  ;;  %v10870_v54 = vadd.f32 %v3363_v36, %v12359_v55  ;;  %v9522_v50 = vpack.c.bf16 %v3814_v33, %v3806_v30  ;;  %v3821_v36 = vld [vmem:[#allocation12 + $0x108] sm:$0xff]  ;;  %v3878_v30 = vld [vmem:[#allocation12 + $0x2d0] sm:$0xff] }
 0x7d4   :  { %11298 = vtanh.f32 %v12906_v9  ;;  %v10855_v59 = vadd.f32 %v3294_v46, %v14537_v3  ;;  %v10871_v13 = vadd.f32 %v3365_v15, %v12353_v8  ;;  %v3823_v46 = vld [vmem:[#allocation12 + $0x118] sm:$0xff] }
 0x7d5   :  { %v8096_v24 = vmul.f32 -1.442695, %v10854_v43  ;;  %v3829_v43 = vld [vmem:[#allocation12 + $0x148] sm:$0xff] }
 0x7d6   :  { %v8097_v6 = vmul.f32 -1.442695, %v10855_v59  ;;  %v8098_v58 = vmul.f32 -1.442695, %v10871_v13  ;;  %v9460_v15 = vpack.c.bf16 %v3829_v43, %v3821_v36  ;;  %v3831_v59 = vld [vmem:[#allocation12 + $0x158] sm:$0xff]  ;;  %v3893_v36 = vld [vmem:[#allocation12 + $0x348] sm:$0xff] }
 0x7d7   :  { %11300 = vpow2.f32 %v8096_v24  ;;  %v3820_v24 = vld [vmem:[#allocation12 + $0x100] sm:$0xff]  ;;  %v9524_v13 = vpack.c.bf16 %v3831_v59, %v3823_v46  ;;  %v3887_v43 = vld [vmem:[#allocation12 + $0x318] sm:$0xff] }
 0x7d8   :  { %11302 = vpow2.f32 %v8097_v6  ;;  %v3828_v6 = vld [vmem:[#allocation12 + $0x140] sm:$0xff] }
 0x7d9   :  { %11304 = vpow2.f32 %v8098_v58  ;;  %v3830_v58 = vld [vmem:[#allocation12 + $0x150] sm:$0xff]  ;;  %v3884_v59 = vld [vmem:[#allocation12 + $0x300] sm:$0xff] }
 0x7da   :  { %11306 = vtanh.f32 %v10870_v54 }
 0x7de   :  { %v11299_v47 = vpop.eup %11298 }
 0x7df   :  { %v12912_v53 = vmul.f32 %v11299_v47, %v11297_v37  ;;  %v9462_v37 = vpack.c.bf16 %v3828_v6, %v3820_v24  ;;  %v3822_v47 = vld [vmem:[#allocation12 + $0x110] sm:$0xff]  ;;  %v3892_v24 = vld [vmem:[#allocation12 + $0x340] sm:$0xff] }
 0x7e0   :  { %v9526_v54 = vpack.c.bf16 %v3830_v58, %v3822_v47  ;;  %v3894_v47 = vld [vmem:[#allocation12 + $0x350] sm:$0xff] }
 0x7e1   :  { %v11301_v56 = vpop.eup %11300  ;;  %3491 = vmatmul.mubr.f32.vlgmr.msra.gmra.mrb[14].mxu0 %v12912_v53  ;;  %3562 = vmatmul.mubr.f32.vlgmr.msra.gmra.mrb[14].mxu1 %v12912_v53 }
 0x7e2   :  { %v11303_v52 = vpop.eup %11302  ;;  %v3399_v23 = vadd.f32 1.0, %v11301_v56  ;;  %9391 = vmatpush1.bf16.msra.mxu0 %v12169_v32  ;;  %9423 = vmatpush1.bf16.msra.mxu1 %v12173_v34  ;;  %v3837_v56 = vld [vmem:[#allocation12 + $0x188] sm:$0xff] }
 0x7e3   :  { %v3405_v27 = vadd.f32 1.0, %v11303_v52  ;;  %9393 = vmatprep.subr.bf16.mxu0 %v12175_v38  ;;  %9425 = vmatprep.subr.bf16.mxu1 %v12179_v16  ;;  %v11305_v32 = vpop.eup %11304  ;;  %v3845_v52 = vld [vmem:[#allocation12 + $0x1c8] sm:$0xff] }
 0x7e4   :  { %11308 = vrcp.f32 %v3399_v23  ;;  %3640 = vmatprep.mubr.f32.mxu0 %v14503_v21  ;;  %3711 = vmatprep.mubr.f32.mxu1 %v14503_v21  ;;  %v11307_v34 = vpop.eup %11306  ;;  %v3839_v23 = vld [vmem:[#allocation12 + $0x198] sm:$0xff] }
 0x7e5   :  { %11310 = vrcp.f32 %v3405_v27  ;;  %v9464_v27 = vpack.c.bf16 %v3845_v52, %v3837_v56  ;;  %v3909_v56 = vld [vmem:[#allocation12 + $0x3c8] sm:$0xff]  ;;  %v3903_v52 = vld [vmem:[#allocation12 + $0x398] sm:$0xff] }
 0x7e6   :  { %9395 = vmatpush1.bf16.msra.mxu0 %v12185_v57  ;;  %9427 = vmatpush1.bf16.msra.mxu1 %v12189_v60  ;;  %v3412_v60 = vadd.f32 1.0, %v11305_v32  ;;  %v3847_v32 = vld [vmem:[#allocation12 + $0x1d8] sm:$0xff] }
 0x7e7   :  { %9397 = vmatprep.subr.bf16.mxu0 %v12191_v62  ;;  %9429 = vmatprep.subr.bf16.mxu1 %v12194_v7 }
 0x7e8   :  { %11312 = vrcp.f32 %v3412_v60  ;;  %v3838_v60 = vld [vmem:[#allocation12 + $0x190] sm:$0xff] }
 0x7ea   :  { %9399 = vmatpush1.bf16.msra.mxu0 %v12199_v20  ;;  %9431 = vmatpush1.bf16.msra.mxu1 %v14512_v48  ;;  %v3790_v48 = vld [vmem:[#allocation12 + $0x10] sm:$0xff] }
 0x7eb   :  { %9401 = vmatprep.subr.bf16.mxu0 %v14539_v45  ;;  %9433 = vmatprep.subr.bf16.mxu1 %v14540_v31  ;;  %v3815_v45 = vld [vmem:[#allocation12 + $0xd8] sm:$0xff]  ;;  %v3804_v31 = vld [vmem:[#allocation12 + $0x80] sm:$0xff] }
 0x7ee   :  { %v11309_v38 = vpop.eup %11308  ;;  %9403 = vmatpush1.bf16.msra.mxu0 %v14541_v35  ;;  %9435 = vmatpush1.bf16.msra.mxu1 %v14516_v18  ;;  %v3812_v35 = vld [vmem:[#allocation12 + $0xc0] sm:$0xff] }
 0x7ef   :  { %v11311_v16 = vpop.eup %11310  ;;  %v3416_v57 = vmul.f32 %v11309_v38, %v11307_v34  ;;  %9405 = vmatprep.subr.bf16.mxu0 %v14517_v49  ;;  %9437 = vmatprep.subr.bf16.mxu1 %v14518_v0  ;;  %v3796_v0 = vld [vmem:[#allocation12 + $0x40] sm:$0xff]  ;;  %v9458_v10 = vpack.c.bf16 %v3812_v35, %v3804_v31 }
 0x7f0   :  { %v3415_v62 = vmul.f32 %v11311_v16, %v12844_v4  ;;  %v3836_v34 = vld [vmem:[#allocation12 + $0x180] sm:$0xff]  ;;  %v9528_v16 = vpack.c.bf16 %v3847_v32, %v3839_v23 }
 0x7f1   :  { %v3844_v38 = vld [vmem:[#allocation12 + $0x1c0] sm:$0xff] }
 0x7f2   :  { %v12936_v7 = vadd.f32 %v3416_v57, %v3415_v62  ;;  %9407 = vmatpush1.bf16.msra.mxu0 %v14519_v26  ;;  %9439 = vmatpush1.bf16.msra.mxu1 %v14520_v61  ;;  %v11313_v20 = vpop.eup %11312  ;;  %v3798_v26 = vld [vmem:[#allocation12 + $0x50] sm:$0xff]  ;;  %v3813_v61 = vld [vmem:[#allocation12 + $0xc8] sm:$0xff]  ;;  %v9466_v57 = vpack.c.bf16 %v3844_v38, %v3836_v34  ;;  %v3876_v31 = vld [vmem:[#allocation12 + $0x2c0] sm:$0xff] }
 0x7f3   :  { %9409 = vmatprep.subr.bf16.mxu0 %v12229_v44  ;;  %9441 = vmatprep.subr.bf16.mxu1 %v14521_v11  ;;  %v3807_v11 = vld [vmem:[#allocation12 + $0x98] sm:$0xff]  ;;  %v3846_v62 = vld [vmem:[#allocation12 + $0x1d0] sm:$0xff]  ;;  %v3900_v32 = vld [vmem:[#allocation12 + $0x380] sm:$0xff] }
 0x7f4   :  { %11314 = vtanh.f32 %v12936_v7  ;;  %v9520_v4 = vpack.c.bf16 %v3815_v45, %v3807_v11  ;;  %v3868_v45 = vld [vmem:[#allocation12 + $0x280] sm:$0xff] }
 0x7f5   :  { %v3908_v34 = vld [vmem:[#allocation12 + $0x3c0] sm:$0xff] }
 0x7f6   :  { %9411 = vmatpush1.bf16.msra.mxu0 %v12235_v51  ;;  %9443 = vmatpush1.bf16.msra.mxu1 %v12239_v2  ;;  %v3789_v2 = vld [vmem:[#allocation12 + $0x8] sm:$0xff] }
 0x7f7   :  { %9413 = vmatprep.subr.bf16.mxu0 %v12241_v12  ;;  %9445 = vmatprep.subr.bf16.mxu1 %v12244_v29  ;;  %v3791_v12 = vld [vmem:[#allocation12 + $0x18] sm:$0xff] }
 0x7fa   :  { %9415 = vmatpush1.bf16.msra.mxu0 %v12247_v39  ;;  %9447 = vmatpush1.bf16.msra.mxu1 %v12251_v25  ;;  %v3797_v39 = vld [vmem:[#allocation12 + $0x48] sm:$0xff]  ;;  %v3799_v25 = vld [vmem:[#allocation12 + $0x58] sm:$0xff] }
 0x7fb   :  { %9417 = vmatprep.subr.bf16.mxu0 %v12253_v42  ;;  %9449 = vmatprep.subr.bf16.mxu1 %v12256_v5  ;;  %v9452_v29 = vpack.c.bf16 %v3797_v39, %v3789_v2  ;;  %v3788_v42 = vld [vmem:[#allocation12] sm:$0xff]  ;;  %v9516_v5 = vpack.c.bf16 %v3799_v25, %v3791_v12  ;;  %v3861_v2 = vld [vmem:[#allocation12 + $0x248] sm:$0xff]  ;;  %v3855_v39 = vld [vmem:[#allocation12 + $0x218] sm:$0xff] }
 0x7fc   :  { %v9454_v49 = vpack.c.bf16 %v3796_v0, %v3788_v42  ;;  %v3852_v25 = vld [vmem:[#allocation12 + $0x200] sm:$0xff] }
 0x7fd   :  { %v3860_v42 = vld [vmem:[#allocation12 + $0x240] sm:$0xff] }
 0x7fe   :  { %v11315_v44 = vpop.eup %11314  ;;  %9419 = vmatpush1.bf16.msra.mxu0 %v12259_v17  ;;  %9451 = vmatpush1.bf16.msra.mxu1 %v12263_v14  ;;  %v9518_v17 = vpack.c.bf16 %v3798_v26, %v3790_v48  ;;  %v3805_v14 = vld [vmem:[#allocation12 + $0x88] sm:$0xff]  ;;  %v3862_v48 = vld [vmem:[#allocation12 + $0x250] sm:$0xff] }
 0x7ff   :  { %v12953_v51 = vmul.f32 %v11315_v44, %v11313_v20  ;;  %9453 = vmatprep.subr.bf16.mxu0 %v9452_v29  ;;  %9517 = vmatprep.subr.bf16.mxu1 %v9516_v5  ;;  %v9456_v18 = vpack.c.bf16 %v3813_v61, %v3805_v14  ;;  %v9530_v20 = vpack.c.bf16 %v3846_v62, %v3838_v60  ;;  %v3853_v44 = vld [vmem:[#allocation12 + $0x208] sm:$0xff]  ;;  %v3863_v29 = vld [vmem:[#allocation12 + $0x258] sm:$0xff]  ;;  %v3910_v60 = vld [vmem:[#allocation12 + $0x3d0] sm:$0xff] }
 0x800   :  { %v9468_v12 = vpack.c.bf16 %v3861_v2, %v3853_v44  ;;  %v9532_v0 = vpack.c.bf16 %v3863_v29, %v3855_v39  ;;  %v9470_v5 = vpack.c.bf16 %v3860_v42, %v3852_v25  ;;  %v3877_v14 = vld [vmem:[#allocation12 + $0x2c8] sm:$0xff]  ;;  %v3871_v61 = vld [vmem:[#allocation12 + $0x298] sm:$0xff]  ;;  %v3916_v29 = vld [vmem:[#allocation12 + $0x400] sm:$0xff] }
 0x801   :  { %3641 = vmatmul.mubr.f32.vlgmr.msra.gmra.mrb[16].mxu0 %v12953_v51  ;;  %3712 = vmatmul.mubr.f32.vlgmr.msra.gmra.mrb[16].mxu1 %v12953_v51  ;;  %v3925_v44 = vld [vmem:[#allocation12 + $0x448] sm:$0xff]  ;;  %v3919_v2 = vld [vmem:[#allocation12 + $0x418] sm:$0xff]  ;;  %v3924_v25 = vld [vmem:[#allocation12 + $0x440] sm:$0xff] }
 0x802   :  { %9455 = vmatpush1.bf16.msra.mxu0 %v9454_v49  ;;  %9519 = vmatpush1.bf16.msra.mxu1 %v9518_v17  ;;  %v3854_v49 = vld [vmem:[#allocation12 + $0x210] sm:$0xff]  ;;  %v3869_v17 = vld [vmem:[#allocation12 + $0x288] sm:$0xff] }
 0x803   :  { %9457 = vmatprep.subr.bf16.mxu0 %v9456_v18  ;;  %9521 = vmatprep.subr.bf16.mxu1 %v9520_v4  ;;  %v9534_v26 = vpack.c.bf16 %v3862_v48, %v3854_v49  ;;  %v9472_v11 = vpack.c.bf16 %v3877_v14, %v3869_v17  ;;  %v3879_v18 = vld [vmem:[#allocation12 + $0x2d8] sm:$0xff]  ;;  %v9474_v4 = vpack.c.bf16 %v3876_v31, %v3868_v45  ;;  %v3926_v49 = vld [vmem:[#allocation12 + $0x450] sm:$0xff]  ;;  %v3941_v17 = vld [vmem:[#allocation12 + $0x4c8] sm:$0xff] }
 0x804   :  { %v9536_v35 = vpack.c.bf16 %v3879_v18, %v3871_v61  ;;  %v3935_v14 = vld [vmem:[#allocation12 + $0x498] sm:$0xff]  ;;  %v3932_v18 = vld [vmem:[#allocation12 + $0x480] sm:$0xff] }
 0x805   :  { %v3940_v45 = vld [vmem:[#allocation12 + $0x4c0] sm:$0xff] }
 0x806   :  { %9459 = vmatpush1.bf16.msra.mxu0 %v9458_v10  ;;  %9523 = vmatpush1.bf16.msra.mxu1 %v9522_v50  ;;  %v3870_v10 = vld [vmem:[#allocation12 + $0x290] sm:$0xff]  ;;  %v3885_v50 = vld [vmem:[#allocation12 + $0x308] sm:$0xff] }
 0x807   :  { %9461 = vmatprep.subr.bf16.mxu0 %v9460_v15  ;;  %9525 = vmatprep.subr.bf16.mxu1 %v9524_v13  ;;  %v9538_v33 = vpack.c.bf16 %v3878_v30, %v3870_v10  ;;  %v9476_v46 = vpack.c.bf16 %v3893_v36, %v3885_v50  ;;  %v3895_v15 = vld [vmem:[#allocation12 + $0x358] sm:$0xff]  ;;  %v9478_v13 = vpack.c.bf16 %v3892_v24, %v3884_v59  ;;  %v3942_v10 = vld [vmem:[#allocation12 + $0x4d0] sm:$0xff]  ;;  %v3957_v50 = vld [vmem:[#allocation12 + $0x548] sm:$0xff] }
 0x808   :  { %v9540_v6 = vpack.c.bf16 %v3895_v15, %v3887_v43  ;;  %v3951_v36 = vld [vmem:[#allocation12 + $0x518] sm:$0xff]  ;;  %v3948_v15 = vld [vmem:[#allocation12 + $0x500] sm:$0xff] }
 0x809   :  { %v3956_v59 = vld [vmem:[#allocation12 + $0x540] sm:$0xff] }
 0x80a   :  { %9463 = vmatpush1.bf16.msra.mxu0 %v9462_v37  ;;  %9527 = vmatpush1.bf16.msra.mxu1 %v9526_v54  ;;  %v3886_v37 = vld [vmem:[#allocation12 + $0x310] sm:$0xff]  ;;  %v3901_v54 = vld [vmem:[#allocation12 + $0x388] sm:$0xff] }
 0x80b   :  { %9465 = vmatprep.subr.bf16.mxu0 %v9464_v27  ;;  %9529 = vmatprep.subr.bf16.mxu1 %v9528_v16  ;;  %v9542_v58 = vpack.c.bf16 %v3894_v47, %v3886_v37  ;;  %v9480_v23 = vpack.c.bf16 %v3909_v56, %v3901_v54  ;;  %v3911_v27 = vld [vmem:[#allocation12 + $0x3d8] sm:$0xff]  ;;  %v9482_v16 = vpack.c.bf16 %v3908_v34, %v3900_v32  ;;  %v3958_v37 = vld [vmem:[#allocation12 + $0x550] sm:$0xff]  ;;  %v3973_v54 = vld [vmem:[#allocation12 + $0x5c8] sm:$0xff] }
 0x80c   :  { %v9544_v38 = vpack.c.bf16 %v3911_v27, %v3903_v52  ;;  %v3967_v56 = vld [vmem:[#allocation12 + $0x598] sm:$0xff]  ;;  %v3964_v27 = vld [vmem:[#allocation12 + $0x580] sm:$0xff] }
 0x80d   :  { %v3972_v32 = vld [vmem:[#allocation12 + $0x5c0] sm:$0xff] }
 0x80e   :  { %9467 = vmatpush1.bf16.msra.mxu0 %v9466_v57  ;;  %9531 = vmatpush1.bf16.msra.mxu1 %v9530_v20  ;;  %v3902_v57 = vld [vmem:[#allocation12 + $0x390] sm:$0xff]  ;;  %v3917_v20 = vld [vmem:[#allocation12 + $0x408] sm:$0xff] }
 0x80f   :  { %9469 = vmatprep.subr.bf16.mxu0 %v9468_v12  ;;  %9533 = vmatprep.subr.bf16.mxu1 %v9532_v0  ;;  %v9546_v62 = vpack.c.bf16 %v3910_v60, %v3902_v57  ;;  %v9484_v39 = vpack.c.bf16 %v3925_v44, %v3917_v20  ;;  %v3927_v12 = vld [vmem:[#allocation12 + $0x458] sm:$0xff]  ;;  %v9486_v0 = vpack.c.bf16 %v3924_v25, %v3916_v29  ;;  %v3974_v57 = vld [vmem:[#allocation12 + $0x5d0] sm:$0xff]  ;;  %v3989_v20 = vld [vmem:[#allocation12 + $0x648] sm:$0xff] }
 0x810   :  { %v9548_v42 = vpack.c.bf16 %v3927_v12, %v3919_v2  ;;  %v3983_v44 = vld [vmem:[#allocation12 + $0x618] sm:$0xff]  ;;  %v3980_v12 = vld [vmem:[#allocation12 + $0x600] sm:$0xff] }
 0x811   :  { %v3988_v29 = vld [vmem:[#allocation12 + $0x640] sm:$0xff] }
 0x812   :  { %9471 = vmatpush1.bf16.msra.mxu0 %v9470_v5  ;;  %9535 = vmatpush1.bf16.msra.mxu1 %v9534_v26  ;;  %v3918_v5 = vld [vmem:[#allocation12 + $0x410] sm:$0xff]  ;;  %v3933_v26 = vld [vmem:[#allocation12 + $0x488] sm:$0xff] }
 0x813   :  { %9473 = vmatprep.subr.bf16.mxu0 %v9472_v11  ;;  %9537 = vmatprep.subr.bf16.mxu1 %v9536_v35  ;;  %v9550_v48 = vpack.c.bf16 %v3926_v49, %v3918_v5  ;;  %v9488_v61 = vpack.c.bf16 %v3941_v17, %v3933_v26  ;;  %v3943_v11 = vld [vmem:[#allocation12 + $0x4d8] sm:$0xff]  ;;  %v9490_v35 = vpack.c.bf16 %v3940_v45, %v3932_v18  ;;  %v3990_v5 = vld [vmem:[#allocation12 + $0x650] sm:$0xff]  ;;  %v4005_v26 = vld [vmem:[#allocation12 + $0x6c8] sm:$0xff] }
 0x814   :  { %v9552_v31 = vpack.c.bf16 %v3943_v11, %v3935_v14  ;;  %v3999_v17 = vld [vmem:[#allocation12 + $0x698] sm:$0xff]  ;;  %v3996_v11 = vld [vmem:[#allocation12 + $0x680] sm:$0xff] }
 0x815   :  { %v4004_v18 = vld [vmem:[#allocation12 + $0x6c0] sm:$0xff] }
 0x816   :  { %9475 = vmatpush1.bf16.msra.mxu0 %v9474_v4  ;;  %9539 = vmatpush1.bf16.msra.mxu1 %v9538_v33  ;;  %v3934_v4 = vld [vmem:[#allocation12 + $0x490] sm:$0xff]  ;;  %v3949_v33 = vld [vmem:[#allocation12 + $0x508] sm:$0xff] }
 0x817   :  { %9477 = vmatprep.subr.bf16.mxu0 %v9476_v46  ;;  %9541 = vmatprep.subr.bf16.mxu1 %v9540_v6  ;;  %v9554_v30 = vpack.c.bf16 %v3942_v10, %v3934_v4  ;;  %v9492_v43 = vpack.c.bf16 %v3957_v50, %v3949_v33  ;;  %v3959_v46 = vld [vmem:[#allocation12 + $0x558] sm:$0xff]  ;;  %v9494_v6 = vpack.c.bf16 %v3956_v59, %v3948_v15  ;;  %v4006_v4 = vld [vmem:[#allocation12 + $0x6d0] sm:$0xff]  ;;  %v4013_v10 = vld [vmem:[#allocation12 + $0x708] sm:$0xff] }
 0x818   :  { %v9556_v24 = vpack.c.bf16 %v3959_v46, %v3951_v36  ;;  %v4021_v33 = vld [vmem:[#allocation12 + $0x748] sm:$0xff]  ;;  %v4015_v50 = vld [vmem:[#allocation12 + $0x718] sm:$0xff]  ;;  %v4012_v15 = vld [vmem:[#allocation12 + $0x700] sm:$0xff] }
 0x819   :  { %v4023_v36 = vld [vmem:[#allocation12 + $0x758] sm:$0xff]  ;;  %v4020_v59 = vld [vmem:[#allocation12 + $0x740] sm:$0xff] }
 0x81a   :  { %9479 = vmatpush1.bf16.msra.mxu0 %v9478_v13  ;;  %9543 = vmatpush1.bf16.msra.mxu1 %v9542_v58  ;;  %v3950_v13 = vld [vmem:[#allocation12 + $0x510] sm:$0xff]  ;;  %v3965_v58 = vld [vmem:[#allocation12 + $0x588] sm:$0xff]  ;;  %v9572_v46 = vpack.c.bf16 %v4023_v36, %v4015_v50 }
 0x81b   :  { %9481 = vmatprep.subr.bf16.mxu0 %v9480_v23  ;;  %9545 = vmatprep.subr.bf16.mxu1 %v9544_v38  ;;  %v9558_v47 = vpack.c.bf16 %v3958_v37, %v3950_v13  ;;  %v9496_v52 = vpack.c.bf16 %v3973_v54, %v3965_v58  ;;  %v3975_v23 = vld [vmem:[#allocation12 + $0x5d8] sm:$0xff]  ;;  %v9498_v38 = vpack.c.bf16 %v3972_v32, %v3964_v27  ;;  %v4022_v13 = vld [vmem:[#allocation12 + $0x750] sm:$0xff]  ;;  %v4029_v37 = vld [vmem:[#allocation12 + $0x788] sm:$0xff] }
 0x81c   :  { %v9560_v34 = vpack.c.bf16 %v3975_v23, %v3967_v56  ;;  %v4031_v56 = vld [vmem:[#allocation12 + $0x798] sm:$0xff]  ;;  %v4028_v23 = vld [vmem:[#allocation12 + $0x780] sm:$0xff] }
 0x81d   :  { %v4036_v32 = vld [vmem:[#allocation12 + $0x7c0] sm:$0xff] }
 0x81e   :  { %9483 = vmatpush1.bf16.msra.mxu0 %v9482_v16  ;;  %9547 = vmatpush1.bf16.msra.mxu1 %v9546_v62  ;;  %v3966_v16 = vld [vmem:[#allocation12 + $0x590] sm:$0xff]  ;;  %v3981_v62 = vld [vmem:[#allocation12 + $0x608] sm:$0xff] }
 0x81f   :  { %9485 = vmatprep.subr.bf16.mxu0 %v9484_v39  ;;  %9549 = vmatprep.subr.bf16.mxu1 %v9548_v42  ;;  %v9562_v60 = vpack.c.bf16 %v3974_v57, %v3966_v16  ;;  %v9500_v2 = vpack.c.bf16 %v3989_v20, %v3981_v62  ;;  %v3991_v39 = vld [vmem:[#allocation12 + $0x658] sm:$0xff]  ;;  %v9502_v42 = vpack.c.bf16 %v3988_v29, %v3980_v12  ;;  %v3801_v62 = vld [vmem:[#allocation12 + $0x68] sm:$0xff] }
 0x820   :  { %v9564_v25 = vpack.c.bf16 %v3991_v39, %v3983_v44  ;;  %v9514_v16 = vpack.c.bf16 %v4036_v32, %v4028_v23  ;;  %v3795_v20 = vld [vmem:[#allocation12 + $0x38] sm:$0xff] }
 0x822   :  { %9487 = vmatpush1.bf16.msra.mxu0 %v9486_v0  ;;  %9551 = vmatpush1.bf16.msra.mxu1 %v9550_v48  ;;  %v3982_v0 = vld [vmem:[#allocation12 + $0x610] sm:$0xff]  ;;  %v3997_v48 = vld [vmem:[#allocation12 + $0x688] sm:$0xff] }
 0x823   :  { %9489 = vmatprep.subr.bf16.mxu0 %v9488_v61  ;;  %9553 = vmatprep.subr.bf16.mxu1 %v9552_v31  ;;  %v9566_v49 = vpack.c.bf16 %v3990_v5, %v3982_v0  ;;  %v9504_v14 = vpack.c.bf16 %v4005_v26, %v3997_v48  ;;  %v4007_v61 = vld [vmem:[#allocation12 + $0x6d8] sm:$0xff]  ;;  %v9506_v31 = vpack.c.bf16 %v4004_v18, %v3996_v11 }
 0x824   :  { %v9568_v45 = vpack.c.bf16 %v4007_v61, %v3999_v17 }
 0x826   :  { %9491 = vmatpush1.bf16.msra.mxu0 %v9490_v35  ;;  %9555 = vmatpush1.bf16.msra.mxu1 %v9554_v30  ;;  %v3998_v35 = vld [vmem:[#allocation12 + $0x690] sm:$0xff] }
 0x827   :  { %9493 = vmatprep.subr.bf16.mxu0 %v9492_v43  ;;  %9557 = vmatprep.subr.bf16.mxu1 %v9556_v24  ;;  %v9570_v30 = vpack.c.bf16 %v4006_v4, %v3998_v35  ;;  %v9508_v43 = vpack.c.bf16 %v4021_v33, %v4013_v10  ;;  %v4014_v24 = vld [vmem:[#allocation12 + $0x710] sm:$0xff] }
 0x828   :  { %v9574_v58 = vpack.c.bf16 %v4022_v13, %v4014_v24 }
 0x82a   :  { %9495 = vmatpush1.bf16.msra.mxu0 %v9494_v6  ;;  %9559 = vmatpush1.bf16.msra.mxu1 %v9558_v47  ;;  %v9510_v6 = vpack.c.bf16 %v4020_v59, %v4012_v15  ;;  %v4037_v47 = vld [vmem:[#allocation12 + $0x7c8] sm:$0xff] }
 0x82b   :  { %9497 = vmatprep.subr.bf16.mxu0 %v9496_v52  ;;  %9561 = vmatprep.subr.bf16.mxu1 %v9560_v34  ;;  %v9512_v54 = vpack.c.bf16 %v4037_v47, %v4029_v37  ;;  %v4039_v52 = vld [vmem:[#allocation12 + $0x7d8] sm:$0xff]  ;;  %v4030_v34 = vld [vmem:[#allocation12 + $0x790] sm:$0xff] }
 0x82c   :  { %v9576_v27 = vpack.c.bf16 %v4039_v52, %v4031_v56 }
 0x82e   :  { %9499 = vmatpush1.bf16.msra.mxu0 %v9498_v38  ;;  %9563 = vmatpush1.bf16.msra.mxu1 %v9562_v60  ;;  %v4038_v38 = vld [vmem:[#allocation12 + $0x7d0] sm:$0xff]  ;;  %v3793_v60 = vld [vmem:[#allocation12 + $0x28] sm:$0xff] }
 0x82f   :  { %9501 = vmatprep.subr.bf16.mxu0 %v9500_v2  ;;  %9565 = vmatprep.subr.bf16.mxu1 %v9564_v25  ;;  %v9578_v57 = vpack.c.bf16 %v4038_v38, %v4030_v34  ;;  %v9580_v44 = vpack.c.bf16 %v3801_v62, %v3793_v60  ;;  %v3803_v2 = vld [vmem:[#allocation12 + $0x78] sm:$0xff]  ;;  %v3802_v60 = vld [vmem:[#allocation12 + $0x70] sm:$0xff] }
 0x830   :  { %v9644_v39 = vpack.c.bf16 %v3803_v2, %v3795_v20  ;;  %v3809_v20 = vld [vmem:[#allocation12 + $0xa8] sm:$0xff] }
 0x831   :  { %v3817_v2 = vld [vmem:[#allocation12 + $0xe8] sm:$0xff] }
 0x832   :  { %9503 = vmatpush1.bf16.msra.mxu0 %v9502_v42  ;;  %9567 = vmatpush1.bf16.msra.mxu1 %v9566_v49 }
 0x833   :  { %9505 = vmatprep.subr.bf16.mxu0 %v9504_v14  ;;  %9569 = vmatprep.subr.bf16.mxu1 %v9568_v45 }
 0x836   :  { %9507 = vmatpush1.bf16.msra.mxu0 %v9506_v31  ;;  %9571 = vmatpush1.bf16.msra.mxu1 %v9570_v30 }
 0x837   :  { %9509 = vmatprep.subr.bf16.mxu0 %v9508_v43  ;;  %9573 = vmatprep.subr.bf16.mxu1 %v9572_v46 }
 0x83a   :  { %9511 = vmatpush1.bf16.msra.mxu0 %v9510_v6  ;;  %9575 = vmatpush1.bf16.msra.mxu1 %v9574_v58 }
 0x83b   :  { %9513 = vmatprep.subr.bf16.mxu0 %v9512_v54  ;;  %9577 = vmatprep.subr.bf16.mxu1 %v9576_v27 }
 0x83e   :  { %9515 = vmatpush1.bf16.msra.mxu0 %v9514_v16  ;;  %9579 = vmatpush1.bf16.msra.mxu1 %v9578_v57  ;;  %v3800_v16 = vld [vmem:[#allocation12 + $0x60] sm:$0xff]  ;;  %v3794_v57 = vld [vmem:[#allocation12 + $0x30] sm:$0xff] }
 0x83f   :  { %9581 = vmatprep.subr.bf16.mxu0 %v9580_v44  ;;  %9645 = vmatprep.subr.bf16.mxu1 %v9644_v39  ;;  %v3811_v39 = vld [vmem:[#allocation12 + $0xb8] sm:$0xff] }
 0x8b4   :  { %v3492_v12 = vpop.f32.mrb[14].mxu0  ;;  %v3563_v29 = vpop.f32.mrb[14].mxu1 }
 0x8b5   :  { %v10834_v25 = vadd.f32 %v3492_v12, %v14680_v40  ;;  %v3494_v42 = vpop.f32.mrb[15].mxu0  ;;  %v3565_v0 = vpop.f32.mrb[15].mxu1  ;;  %v10850_v14 = vadd.f32 %v3563_v29, %v14566_v41  ;;  %v3819_v12 = vld [vmem:[#allocation12 + $0xf8] sm:$0xff] }
 0x8b6   :  { %v10835_v5 = vadd.f32 %v3494_v42, %v14533_v19  ;;  %v10851_v26 = vadd.f32 %v3565_v0, %v14565_v28  ;;  %v9646_v42 = vpack.c.bf16 %v3802_v60, %v3794_v57  ;;  %v3808_v0 = vld [vmem:[#allocation12 + $0xa0] sm:$0xff]  ;;  %v14685_v57 = vld [vmem:[#allocation55_spill] sm:$0xff]  ;;  %v3881_v60 = vld [vmem:[#allocation12 + $0x2e8] sm:$0xff] }
 0x8b7   :  { %v8099_v49 = vmul.f32 -1.442695, %v10834_v25 }
 0x8b8   :  { %v8100_v48 = vmul.f32 -1.442695, %v10835_v5  ;;  %v8101_v17 = vmul.f32 -1.442695, %v10851_v26  ;;  %v3816_v5 = vld [vmem:[#allocation12 + $0xe0] sm:$0xff]  ;;  %v9648_v26 = vpack.c.bf16 %v3819_v12, %v3811_v39  ;;  %v14686_v12 = vld [vmem:[#allocation56_spill] sm:$0xff] }
 0x8b9   :  { %11316 = vpow2.f32 %v8099_v49  ;;  %v3818_v49 = vld [vmem:[#allocation12 + $0xf0] sm:$0xff]  ;;  %v3872_v39 = vld [vmem:[#allocation12 + $0x2a0] sm:$0xff] }
 0x8ba   :  { %11318 = vpow2.f32 %v8100_v48  ;;  %v9584_v48 = vpack.c.bf16 %v3817_v2, %v3809_v20  ;;  %v3883_v20 = vld [vmem:[#allocation12 + $0x2f8] sm:$0xff] }
 0x8bb   :  { %11320 = vpow2.f32 %v8101_v17  ;;  %v3825_v17 = vld [vmem:[#allocation12 + $0x128] sm:$0xff] }
 0x8bc   :  { %11322 = vtanh.f32 %v10850_v14  ;;  %v14681_v14 = vld [vmem:[#allocation64_spill] sm:$0xff] }
 0x8c3   :  { %v11317_v61 = vpop.eup %11316 }
 0x8c4   :  { %v11319_v11 = vpop.eup %11318  ;;  %v3725_v18 = vadd.f32 1.0, %v11317_v61  ;;  %v3833_v61 = vld [vmem:[#allocation12 + $0x168] sm:$0xff] }
 0x8c5   :  { %v3731_v45 = vadd.f32 1.0, %v11319_v11  ;;  %v11321_v40 = vpop.eup %11320  ;;  %v3827_v11 = vld [vmem:[#allocation12 + $0x138] sm:$0xff] }
 0x8c6   :  { %11324 = vrcp.f32 %v3725_v18  ;;  %v11323_v31 = vpop.eup %11322  ;;  %v3738_v10 = vadd.f32 1.0, %v11321_v40  ;;  %v3835_v18 = vld [vmem:[#allocation12 + $0x178] sm:$0xff] }
 0x8c7   :  { %11326 = vrcp.f32 %v3731_v45  ;;  %v9586_v45 = vpack.c.bf16 %v3816_v5, %v3808_v0  ;;  %v3882_v0 = vld [vmem:[#allocation12 + $0x2f0] sm:$0xff] }
 0x8c8   :  { %11328 = vrcp.f32 %v3738_v10  ;;  %v9588_v10 = vpack.c.bf16 %v3833_v61, %v3825_v17  ;;  %v3891_v17 = vld [vmem:[#allocation12 + $0x338] sm:$0xff] }
 0x8c9   :  { %v3899_v61 = vld [vmem:[#allocation12 + $0x378] sm:$0xff] }
 0x8d0   :  { %v11325_v19 = vpop.eup %11324 }
 0x8d1   :  { %v11327_v35 = vpop.eup %11326  ;;  %v3742_v4 = vmul.f32 %v11325_v19, %v11323_v31  ;;  %v3824_v31 = vld [vmem:[#allocation12 + $0x120] sm:$0xff] }
 0x8d2   :  { %v3741_v30 = vmul.f32 %v11327_v35, %v12906_v9  ;;  %v11329_v6 = vpop.eup %11328  ;;  %v3832_v19 = vld [vmem:[#allocation12 + $0x160] sm:$0xff]  ;;  %v3826_v35 = vld [vmem:[#allocation12 + $0x130] sm:$0xff] }
 0x8d4   :  { %v3743_v28 = vadd.f32 %v3742_v4, %v3741_v30  ;;  %v3642_v33 = vpop.f32.mrb[16].mxu0  ;;  %v3713_v50 = vpop.f32.mrb[16].mxu1  ;;  %v3834_v4 = vld [vmem:[#allocation12 + $0x170] sm:$0xff]  ;;  %v9652_v30 = vpack.c.bf16 %v3835_v18, %v3827_v11 }
 0x8d5   :  { %v10852_v41 = vadd.f32 %v3642_v33, %v14536_v1  ;;  %v3644_v36 = vpop.f32.mrb[17].mxu0  ;;  %v3715_v43 = vpop.f32.mrb[17].mxu1  ;;  %v10868_v37 = vadd.f32 %v3713_v50, %v12359_v55  ;;  %v3792_v55 = vld [vmem:[#allocation12 + $0x20] sm:$0xff]  ;;  %v14682_v33 = vld [vmem:[#allocation51_spill] sm:$0xff]  ;;  %v3849_v50 = vld [vmem:[#allocation12 + $0x1e8] sm:$0xff] }
 0x8d6   :  { %11330 = vtanh.f32 %v3743_v28  ;;  %v10853_v46 = vadd.f32 %v3644_v36, %v14537_v3  ;;  %v10869_v24 = vadd.f32 %v3715_v43, %v12353_v8  ;;  %v9582_v25 = vpack.c.bf16 %v3800_v16, %v3792_v55  ;;  %v3841_v28 = vld [vmem:[#allocation12 + $0x1a8] sm:$0xff]  ;;  %v3851_v36 = vld [vmem:[#allocation12 + $0x1f8] sm:$0xff] }
 0x8d7   :  { %v8102_v15 = vmul.f32 -1.442695, %v10852_v41  ;;  %v3843_v41 = vld [vmem:[#allocation12 + $0x1b8] sm:$0xff]  ;;  %v9590_v43 = vpack.c.bf16 %v3832_v19, %v3824_v31  ;;  %v3873_v16 = vld [vmem:[#allocation12 + $0x2a8] sm:$0xff]  ;;  %v3896_v31 = vld [vmem:[#allocation12 + $0x360] sm:$0xff] }
 0x8d8   :  { %v8103_v59 = vmul.f32 -1.442695, %v10853_v46  ;;  %v8104_v9 = vmul.f32 -1.442695, %v10869_v24  ;;  %v9654_v46 = vpack.c.bf16 %v3834_v4, %v3826_v35  ;;  %v3842_v24 = vld [vmem:[#allocation12 + $0x1b0] sm:$0xff]  ;;  %v9600_v5 = vpack.c.bf16 %v3881_v60, %v3873_v16 }
 0x8d9   :  { %11332 = vpow2.f32 %v8102_v15  ;;  %v3840_v15 = vld [vmem:[#allocation12 + $0x1a0] sm:$0xff]  ;;  %v3890_v19 = vld [vmem:[#allocation12 + $0x330] sm:$0xff] }
 0x8da   :  { %11334 = vpow2.f32 %v8103_v59  ;;  %v3848_v59 = vld [vmem:[#allocation12 + $0x1e0] sm:$0xff]  ;;  %v3898_v35 = vld [vmem:[#allocation12 + $0x370] sm:$0xff] }
 0x8db   :  { %11336 = vpow2.f32 %v8104_v9  ;;  %v9656_v9 = vpack.c.bf16 %v3851_v36, %v3843_v41  ;;  %v3915_v41 = vld [vmem:[#allocation12 + $0x3f8] sm:$0xff] }
 0x8dc   :  { %11338 = vtanh.f32 %v10868_v37  ;;  %v3857_v37 = vld [vmem:[#allocation12 + $0x228] sm:$0xff] }
 0x8e0   :  { %v11331_v13 = vpop.eup %11330 }
 0x8e1   :  { %v12966_v47 = vmul.f32 %v11331_v13, %v11329_v6  ;;  %v3850_v6 = vld [vmem:[#allocation12 + $0x1f0] sm:$0xff]  ;;  %v9592_v13 = vpack.c.bf16 %v3849_v50, %v3841_v28  ;;  %v3913_v28 = vld [vmem:[#allocation12 + $0x3e8] sm:$0xff]  ;;  %v3907_v50 = vld [vmem:[#allocation12 + $0x3b8] sm:$0xff] }
 0x8e3   :  { %v11333_v58 = vpop.eup %11332 }
 0x8e4   :  { %v11335_v1 = vpop.eup %11334  ;;  %v3749_v54 = vadd.f32 1.0, %v11333_v58  ;;  %v14683_v58 = vld [vmem:[#allocation53_spill] sm:$0xff] }
 0x8e5   :  { %v3755_v56 = vadd.f32 1.0, %v11335_v1  ;;  %v11337_v3 = vpop.eup %11336  ;;  %v3865_v1 = vld [vmem:[#allocation12 + $0x268] sm:$0xff] }
 0x8e6   :  { %11340 = vrcp.f32 %v3749_v54  ;;  %v11339_v52 = vpop.eup %11338  ;;  %v3762_v32 = vadd.f32 1.0, %v11337_v3  ;;  %v3859_v54 = vld [vmem:[#allocation12 + $0x238] sm:$0xff]  ;;  %v9594_v3 = vpack.c.bf16 %v3848_v59, %v3840_v15  ;;  %v3912_v59 = vld [vmem:[#allocation12 + $0x3e0] sm:$0xff] }
 0x8e7   :  { %11342 = vrcp.f32 %v3755_v56  ;;  %v3867_v56 = vld [vmem:[#allocation12 + $0x278] sm:$0xff] }
 0x8e8   :  { %11344 = vrcp.f32 %v3762_v32  ;;  %v3858_v32 = vld [vmem:[#allocation12 + $0x230] sm:$0xff]  ;;  %v9660_v55 = vpack.c.bf16 %v3867_v56, %v3859_v54  ;;  %v14689_v15 = vld [vmem:[#allocation52_spill] sm:$0xff] }
 0x8e9   :  { %v3923_v54 = vld [vmem:[#allocation12 + $0x438] sm:$0xff] }
 0x8ea   :  { %v3931_v56 = vld [vmem:[#allocation12 + $0x478] sm:$0xff] }
 0x8eb   :  { %v9676_v60 = vpack.c.bf16 %v3931_v56, %v3923_v54  ;;  %v3987_v54 = vld [vmem:[#allocation12 + $0x638] sm:$0xff] }
 0x8ec   :  { %v3995_v56 = vld [vmem:[#allocation12 + $0x678] sm:$0xff] }
 0x8f0   :  { %v11341_v23 = vpop.eup %11340 }
 0x8f1   :  { %v11343_v27 = vpop.eup %11342  ;;  %v3766_v8 = vmul.f32 %v11341_v23, %v11339_v52  ;;  %v9658_v52 = vpack.c.bf16 %v3850_v6, %v3842_v24  ;;  %v3856_v23 = vld [vmem:[#allocation12 + $0x220] sm:$0xff]  ;;  %v3906_v24 = vld [vmem:[#allocation12 + $0x3b0] sm:$0xff] }
 0x8f2   :  { %v3765_v34 = vmul.f32 %v11343_v27, %v12936_v7  ;;  %v11345_v62 = vpop.eup %11344  ;;  %v3810_v7 = vld [vmem:[#allocation12 + $0xb0] sm:$0xff]  ;;  %v14684_v27 = vld [vmem:[#allocation62_spill] sm:$0xff] }
 0x8f3   :  { %v9650_v40 = vpack.c.bf16 %v3818_v49, %v3810_v7  ;;  %v3889_v49 = vld [vmem:[#allocation12 + $0x328] sm:$0xff]  ;;  %v3914_v6 = vld [vmem:[#allocation12 + $0x3f0] sm:$0xff] }
 0x8f4   :  { %v3767_v38 = vadd.f32 %v3766_v8, %v3765_v34  ;;  %v3864_v8 = vld [vmem:[#allocation12 + $0x260] sm:$0xff]  ;;  %v3866_v34 = vld [vmem:[#allocation12 + $0x270] sm:$0xff] }
 0x8f5   :  { %v9662_v2 = vpack.c.bf16 %v3866_v34, %v3858_v32  ;;  %v14690_v32 = vld [vmem:[#allocation47_spill] sm:$0xff] }
 0x8f6   :  { %11346 = vtanh.f32 %v3767_v38  ;;  %v9596_v38 = vpack.c.bf16 %v3865_v1, %v3857_v37  ;;  %v3921_v37 = vld [vmem:[#allocation12 + $0x428] sm:$0xff]  ;;  %v3922_v34 = vld [vmem:[#allocation12 + $0x430] sm:$0xff] }
 0x8f7   :  { %v3929_v1 = vld [vmem:[#allocation12 + $0x468] sm:$0xff] }
 0x8f8   :  { %v9612_v16 = vpack.c.bf16 %v3929_v1, %v3921_v37  ;;  %v3985_v37 = vld [vmem:[#allocation12 + $0x628] sm:$0xff] }
 0x8f9   :  { %v3993_v1 = vld [vmem:[#allocation12 + $0x668] sm:$0xff] }
 0x900   :  { %v11347_v44 = vpop.eup %11346 }
 0x901   :  { %v12969_v29 = vmul.f32 %v11347_v44, %v11345_v62  ;;  %v3875_v62 = vld [vmem:[#allocation12 + $0x2b8] sm:$0xff]  ;;  %v9598_v44 = vpack.c.bf16 %v3864_v8, %v3856_v23  ;;  %v3920_v23 = vld [vmem:[#allocation12 + $0x420] sm:$0xff] }
 0x902   :  { %v9664_v7 = vpack.c.bf16 %v3883_v20, %v3875_v62  ;;  %v3928_v8 = vld [vmem:[#allocation12 + $0x460] sm:$0xff]  ;;  %v3945_v62 = vld [vmem:[#allocation12 + $0x4e8] sm:$0xff]  ;;  %v3939_v20 = vld [vmem:[#allocation12 + $0x4b8] sm:$0xff] }
 0x903   :  { %4150 = vmatprep.mubr.f32.mxu0 %v12969_v29  ;;  %4263 = vmatprep.mubr.f32.mxu1 %v12969_v29 }
 0x904   :  { %4151 = vmatmul.mubr.f32.vlgmr.msra.gmra.mrb[32].mxu0 %v14681_v14  ;;  %4264 = vmatmul.mubr.f32.vlgmr.msra.gmra.mrb[32].mxu1 %v14681_v14 }
 0x905   :  { %9583 = vmatpush1.bf16.msra.mxu0 %v9582_v25  ;;  %9647 = vmatpush1.bf16.msra.mxu1 %v9646_v42  ;;  %v3880_v25 = vld [vmem:[#allocation12 + $0x2e0] sm:$0xff]  ;;  %v3874_v42 = vld [vmem:[#allocation12 + $0x2b0] sm:$0xff] }
 0x906   :  { %4156 = vmatprep.mubr.f32.mxu0 %v12953_v51  ;;  %4269 = vmatprep.mubr.f32.mxu1 %v12953_v51  ;;  %v9602_v11 = vpack.c.bf16 %v3880_v25, %v3872_v39  ;;  %v9666_v18 = vpack.c.bf16 %v3882_v0, %v3874_v42  ;;  %v3936_v25 = vld [vmem:[#allocation12 + $0x4a0] sm:$0xff] }
 0x907   :  { %9585 = vmatprep.subr.bf16.mxu0 %v9584_v48  ;;  %9649 = vmatprep.subr.bf16.mxu1 %v9648_v26  ;;  %v14687_v48 = vld [vmem:[#allocation59_spill] sm:$0xff]  ;;  %v3897_v26 = vld [vmem:[#allocation12 + $0x368] sm:$0xff]  ;;  %v3944_v42 = vld [vmem:[#allocation12 + $0x4e0] sm:$0xff] }
 0x908   :  { %4157 = vmatmul.mubr.f32.gmra.mrb[34].mxu0 %v14682_v33  ;;  %4270 = vmatmul.mubr.f32.gmra.mrb[34].mxu1 %v14682_v33  ;;  %v9604_v4 = vpack.c.bf16 %v3897_v26, %v3889_v49  ;;  %v3946_v49 = vld [vmem:[#allocation12 + $0x4f0] sm:$0xff]  ;;  %v3953_v26 = vld [vmem:[#allocation12 + $0x528] sm:$0xff] }
 0x909   :  { %9587 = vmatpush1.bf16.msra.mxu0 %v9586_v45  ;;  %9651 = vmatpush1.bf16.msra.mxu1 %v9650_v40  ;;  %v3888_v45 = vld [vmem:[#allocation12 + $0x320] sm:$0xff]  ;;  %v14688_v40 = vld [vmem:[#allocation54_spill] sm:$0xff] }
 0x90a   :  { %4162 = vmatprep.mubr.f32.mxu0 %v12861_v22  ;;  %4275 = vmatprep.mubr.f32.mxu1 %v12861_v22  ;;  %v9606_v36 = vpack.c.bf16 %v3896_v31, %v3888_v45  ;;  %v3952_v31 = vld [vmem:[#allocation12 + $0x520] sm:$0xff] }
 0x90b   :  { %9589 = vmatprep.subr.bf16.mxu0 %v9588_v10  ;;  %9653 = vmatprep.subr.bf16.mxu1 %v9652_v30  ;;  %v9668_v10 = vpack.c.bf16 %v3899_v61, %v3891_v17  ;;  %v3905_v30 = vld [vmem:[#allocation12 + $0x3a8] sm:$0xff]  ;;  %v3955_v61 = vld [vmem:[#allocation12 + $0x538] sm:$0xff] }
 0x90c   :  { %4163 = vmatmul.mubr.f32.gmra.mrb[36].mxu0 %v14683_v58  ;;  %4276 = vmatmul.mubr.f32.gmra.mrb[36].mxu1 %v14683_v58  ;;  %v3961_v17 = vld [vmem:[#allocation12 + $0x568] sm:$0xff] }
 0x90d   :  { %9591 = vmatpush1.bf16.msra.mxu0 %v9590_v43  ;;  %9655 = vmatpush1.bf16.msra.mxu1 %v9654_v46  ;;  %v9670_v43 = vpack.c.bf16 %v3898_v35, %v3890_v19  ;;  %v3904_v46 = vld [vmem:[#allocation12 + $0x3a0] sm:$0xff]  ;;  %v9620_v35 = vpack.c.bf16 %v3961_v17, %v3953_v26  ;;  %v4017_v26 = vld [vmem:[#allocation12 + $0x728] sm:$0xff] }
 0x90e   :  { %4168 = vmatprep.mubr.f32.mxu0 %v14684_v27  ;;  %4281 = vmatprep.mubr.f32.mxu1 %v14684_v27  ;;  %v3960_v19 = vld [vmem:[#allocation12 + $0x560] sm:$0xff]  ;;  %v4025_v17 = vld [vmem:[#allocation12 + $0x768] sm:$0xff] }
 0x90f   :  { %9593 = vmatprep.subr.bf16.mxu0 %v9592_v13  ;;  %9657 = vmatprep.subr.bf16.mxu1 %v9656_v9  ;;  %v9608_v13 = vpack.c.bf16 %v3913_v28, %v3905_v30  ;;  %v9672_v9 = vpack.c.bf16 %v3915_v41, %v3907_v50  ;;  %v3969_v30 = vld [vmem:[#allocation12 + $0x5a8] sm:$0xff]  ;;  %v3971_v50 = vld [vmem:[#allocation12 + $0x5b8] sm:$0xff] }
 0x910   :  { %4169 = vmatmul.mubr.f32.gmra.mrb[38].mxu0 %v14685_v57  ;;  %4282 = vmatmul.mubr.f32.gmra.mrb[38].mxu1 %v14685_v57  ;;  %v3977_v28 = vld [vmem:[#allocation12 + $0x5e8] sm:$0xff]  ;;  %v3979_v41 = vld [vmem:[#allocation12 + $0x5f8] sm:$0xff] }
 0x911   :  { %9595 = vmatpush1.bf16.msra.mxu0 %v9594_v3  ;;  %9659 = vmatpush1.bf16.msra.mxu1 %v9658_v52  ;;  %v9610_v3 = vpack.c.bf16 %v3912_v59, %v3904_v46  ;;  %v9674_v52 = vpack.c.bf16 %v3914_v6, %v3906_v24  ;;  %v3968_v46 = vld [vmem:[#allocation12 + $0x5a0] sm:$0xff]  ;;  %v9624_v24 = vpack.c.bf16 %v3977_v28, %v3969_v30  ;;  %v4033_v30 = vld [vmem:[#allocation12 + $0x7a8] sm:$0xff] }
 0x912   :  { %4174 = vmatprep.mubr.f32.mxu0 %v14686_v12  ;;  %4287 = vmatprep.mubr.f32.mxu1 %v14686_v12  ;;  %v3976_v59 = vld [vmem:[#allocation12 + $0x5e0] sm:$0xff]  ;;  %v9688_v6 = vpack.c.bf16 %v3979_v41, %v3971_v50  ;;  %v4041_v28 = vld [vmem:[#allocation12 + $0x7e8] sm:$0xff]  ;;  %v4035_v50 = vld [vmem:[#allocation12 + $0x7b8] sm:$0xff] }
 0x913   :  { %9597 = vmatprep.subr.bf16.mxu0 %v9596_v38  ;;  %9661 = vmatprep.subr.bf16.mxu1 %v9660_v55  ;;  %v3930_v38 = vld [vmem:[#allocation12 + $0x470] sm:$0xff]  ;;  %v3937_v55 = vld [vmem:[#allocation12 + $0x4a8] sm:$0xff]  ;;  %v4043_v41 = vld [vmem:[#allocation12 + $0x7f8] sm:$0xff] }
 0x914   :  { %4175 = vmatmul.mubr.f32.gmra.mrb[40].mxu0 %v14687_v48  ;;  %4288 = vmatmul.mubr.f32.gmra.mrb[40].mxu1 %v14687_v48  ;;  %v9678_v39 = vpack.c.bf16 %v3930_v38, %v3922_v34  ;;  %v9616_v0 = vpack.c.bf16 %v3945_v62, %v3937_v55  ;;  %v9628_v34 = vpack.c.bf16 %v3993_v1, %v3985_v37  ;;  %v3986_v55 = vld [vmem:[#allocation12 + $0x630] sm:$0xff]  ;;  %v4009_v62 = vld [vmem:[#allocation12 + $0x6e8] sm:$0xff] }
 0x915   :  { %9599 = vmatpush1.bf16.msra.mxu0 %v9598_v44  ;;  %9663 = vmatpush1.bf16.msra.mxu1 %v9662_v2  ;;  %v3947_v44 = vld [vmem:[#allocation12 + $0x4f8] sm:$0xff]  ;;  %v9614_v2 = vpack.c.bf16 %v3928_v8, %v3920_v23  ;;  %v3984_v23 = vld [vmem:[#allocation12 + $0x620] sm:$0xff]  ;;  %v9692_v38 = vpack.c.bf16 %v3995_v56, %v3987_v54  ;;  %v4603_v37 = vld [vmem:[#allocation14 + $0x8] sm:$0xff] }
 0x916   :  { %4180 = vmatprep.mubr.f32.mxu0 %v14688_v40  ;;  %4293 = vmatprep.mubr.f32.mxu1 %v14688_v40  ;;  %v3992_v8 = vld [vmem:[#allocation12 + $0x660] sm:$0xff]  ;;  %v4607_v1 = vld [vmem:[#allocation14 + $0x28] sm:$0xff]  ;;  %v4605_v54 = vld [vmem:[#allocation14 + $0x18] sm:$0xff] }
 0x917   :  { %9601 = vmatprep.subr.bf16.mxu0 %v9600_v5  ;;  %9665 = vmatprep.subr.bf16.mxu1 %v9664_v7  ;;  %v9680_v5 = vpack.c.bf16 %v3947_v44, %v3939_v20  ;;  %v3938_v7 = vld [vmem:[#allocation12 + $0x4b0] sm:$0xff]  ;;  %v4003_v20 = vld [vmem:[#allocation12 + $0x6b8] sm:$0xff] }
 0x918   :  { %4181 = vmatmul.mubr.f32.gmra.mrb[42].mxu0 %v12820_v63  ;;  %4294 = vmatmul.mubr.f32.gmra.mrb[42].mxu1 %v12820_v63  ;;  %v9682_v45 = vpack.c.bf16 %v3946_v49, %v3938_v7  ;;  %v4011_v44 = vld [vmem:[#allocation12 + $0x6f8] sm:$0xff]  ;;  %v4002_v7 = vld [vmem:[#allocation12 + $0x6b0] sm:$0xff] }
 0x919   :  { %9603 = vmatpush1.bf16.msra.mxu0 %v9602_v11  ;;  %9667 = vmatpush1.bf16.msra.mxu1 %v9666_v18  ;;  %v3963_v11 = vld [vmem:[#allocation12 + $0x578] sm:$0xff]  ;;  %v9618_v18 = vpack.c.bf16 %v3944_v42, %v3936_v25  ;;  %v4000_v25 = vld [vmem:[#allocation12 + $0x6a0] sm:$0xff]  ;;  %v4010_v49 = vld [vmem:[#allocation12 + $0x6f0] sm:$0xff] }
 0x91a   :  { %4186 = vmatprep.mubr.f32.mxu0 %v14689_v15  ;;  %4299 = vmatprep.mubr.f32.mxu1 %v14689_v15  ;;  %v4008_v42 = vld [vmem:[#allocation12 + $0x6e0] sm:$0xff]  ;;  %v4609_v56 = vld [vmem:[#allocation14 + $0x38] sm:$0xff] }
 0x91b   :  { %9605 = vmatprep.subr.bf16.mxu0 %v9604_v4  ;;  %9669 = vmatprep.subr.bf16.mxu1 %v9668_v10  ;;  %v3954_v4 = vld [vmem:[#allocation12 + $0x530] sm:$0xff] }
 0x91c   :  { %4187 = vmatmul.mubr.f32.gmra.mrb[44].mxu0 %v12912_v53  ;;  %4300 = vmatmul.mubr.f32.gmra.mrb[44].mxu1 %v12912_v53  ;;  %v3962_v10 = vld [vmem:[#allocation12 + $0x570] sm:$0xff] }
 0x91d   :  { %9607 = vmatpush1.bf16.msra.mxu0 %v9606_v36  ;;  %9671 = vmatpush1.bf16.msra.mxu1 %v9670_v43  ;;  %v9622_v36 = vpack.c.bf16 %v3960_v19, %v3952_v31  ;;  %v9686_v43 = vpack.c.bf16 %v3962_v10, %v3954_v4  ;;  %v4016_v31 = vld [vmem:[#allocation12 + $0x720] sm:$0xff]  ;;  %v4018_v4 = vld [vmem:[#allocation12 + $0x730] sm:$0xff] }
 0x91e   :  { %4192 = vmatprep.mubr.f32.mxu0 %v14690_v32  ;;  %4305 = vmatprep.mubr.f32.mxu1 %v14690_v32  ;;  %v4024_v19 = vld [vmem:[#allocation12 + $0x760] sm:$0xff]  ;;  %v4026_v10 = vld [vmem:[#allocation12 + $0x770] sm:$0xff] }
 0x91f   :  { %9609 = vmatprep.subr.bf16.mxu0 %v9608_v13  ;;  %9673 = vmatprep.subr.bf16.mxu1 %v9672_v9  ;;  %v3970_v13 = vld [vmem:[#allocation12 + $0x5b0] sm:$0xff] }
 0x920   :  { %4193 = vmatmul.mubr.f32.gmra.mrb[46].mxu0 %v12966_v47  ;;  %4306 = vmatmul.mubr.f32.gmra.mrb[46].mxu1 %v12966_v47  ;;  %v3978_v9 = vld [vmem:[#allocation12 + $0x5f0] sm:$0xff] }
 0x921   :  { %9611 = vmatpush1.bf16.msra.mxu0 %v9610_v3  ;;  %9675 = vmatpush1.bf16.msra.mxu1 %v9674_v52  ;;  %v9626_v3 = vpack.c.bf16 %v3976_v59, %v3968_v46  ;;  %v9690_v52 = vpack.c.bf16 %v3978_v9, %v3970_v13  ;;  %v4032_v46 = vld [vmem:[#allocation12 + $0x7a0] sm:$0xff]  ;;  %v4034_v13 = vld [vmem:[#allocation12 + $0x7b0] sm:$0xff] }
 0x922   :  { %4376 = vmatprep.mubr.f32.mxu0 %v12969_v29  ;;  %4489 = vmatprep.mubr.f32.mxu1 %v12969_v29  ;;  %v9684_v29 = vpack.c.bf16 %v3963_v11, %v3955_v61  ;;  %v4019_v61 = vld [vmem:[#allocation12 + $0x738] sm:$0xff]  ;;  %v4040_v59 = vld [vmem:[#allocation12 + $0x7e0] sm:$0xff]  ;;  %v4042_v9 = vld [vmem:[#allocation12 + $0x7f0] sm:$0xff] }
 0x923   :  { %9613 = vmatprep.subr.bf16.mxu0 %v9612_v16  ;;  %9677 = vmatprep.subr.bf16.mxu1 %v9676_v60  ;;  %v3994_v16 = vld [vmem:[#allocation12 + $0x670] sm:$0xff]  ;;  %v4001_v60 = vld [vmem:[#allocation12 + $0x6a8] sm:$0xff]  ;;  %v4027_v11 = vld [vmem:[#allocation12 + $0x778] sm:$0xff] }
 0x925   :  { %9615 = vmatpush1.bf16.msra.mxu0 %v9614_v2  ;;  %9679 = vmatpush1.bf16.msra.mxu1 %v9678_v39  ;;  %v9630_v2 = vpack.c.bf16 %v3992_v8, %v3984_v23  ;;  %v9694_v39 = vpack.c.bf16 %v3994_v16, %v3986_v55  ;;  %v13005_v23 = vpack.c.bf16 %v4607_v1, %v4603_v37  ;;  %v4604_v55 = vld [vmem:[#allocation14 + $0x10] sm:$0xff] }
 0x926   :  { %9617 = vmatprep.subr.bf16.mxu0 %v9616_v0  ;;  %9681 = vmatprep.subr.bf16.mxu1 %v9680_v5  ;;  %v9632_v0 = vpack.c.bf16 %v4009_v62, %v4001_v60  ;;  %v9696_v5 = vpack.c.bf16 %v4011_v44, %v4003_v20  ;;  %v13007_v8 = vpack.c.bf16 %v4609_v56, %v4605_v54  ;;  %v4608_v16 = vld [vmem:[#allocation14 + $0x30] sm:$0xff]  ;;  %v4611_v60 = vld [vmem:[#allocation14 + $0x48] sm:$0xff]  ;;  %v4613_v20 = vld [vmem:[#allocation14 + $0x58] sm:$0xff] }
 0x927   :  { %v4615_v62 = vld [vmem:[#allocation14 + $0x68] sm:$0xff]  ;;  %v4617_v44 = vld [vmem:[#allocation14 + $0x78] sm:$0xff]  ;;  %v4634_v54 = vld [vmem:[#allocation14 + $0x100] sm:$0xff] }
 0x928   :  { %v4638_v56 = vld [vmem:[#allocation14 + $0x120] sm:$0xff] }
 0x929   :  { %9619 = vmatpush1.bf16.msra.mxu0 %v9618_v18  ;;  %9683 = vmatpush1.bf16.msra.mxu1 %v9682_v45  ;;  %v9634_v18 = vpack.c.bf16 %v4008_v42, %v4000_v25  ;;  %v9698_v45 = vpack.c.bf16 %v4010_v49, %v4002_v7  ;;  %v4610_v25 = vld [vmem:[#allocation14 + $0x40] sm:$0xff]  ;;  %v4612_v7 = vld [vmem:[#allocation14 + $0x50] sm:$0xff] }
 0x92a   :  { %9621 = vmatprep.subr.bf16.mxu0 %v9620_v35  ;;  %9685 = vmatprep.subr.bf16.mxu1 %v9684_v29  ;;  %v9636_v35 = vpack.c.bf16 %v4025_v17, %v4017_v26  ;;  %v9700_v29 = vpack.c.bf16 %v4027_v11, %v4019_v61  ;;  %v4614_v42 = vld [vmem:[#allocation14 + $0x60] sm:$0xff]  ;;  %v4616_v49 = vld [vmem:[#allocation14 + $0x70] sm:$0xff]  ;;  %v4619_v26 = vld [vmem:[#allocation14 + $0x88] sm:$0xff] }
 0x92b   :  { %v4623_v17 = vld [vmem:[#allocation14 + $0xa8] sm:$0xff]  ;;  %v4621_v61 = vld [vmem:[#allocation14 + $0x98] sm:$0xff] }
 0x92c   :  { %v4625_v11 = vld [vmem:[#allocation14 + $0xb8] sm:$0xff] }
 0x92d   :  { %9623 = vmatpush1.bf16.msra.mxu0 %v9622_v36  ;;  %9687 = vmatpush1.bf16.msra.mxu1 %v9686_v43  ;;  %v9638_v36 = vpack.c.bf16 %v4024_v19, %v4016_v31  ;;  %v9702_v43 = vpack.c.bf16 %v4026_v10, %v4018_v4  ;;  %v4618_v31 = vld [vmem:[#allocation14 + $0x80] sm:$0xff]  ;;  %v4627_v4 = vld [vmem:[#allocation14 + $0xc8] sm:$0xff] }
 0x92e   :  { %9625 = vmatprep.subr.bf16.mxu0 %v9624_v24  ;;  %9689 = vmatprep.subr.bf16.mxu1 %v9688_v6  ;;  %v9640_v24 = vpack.c.bf16 %v4041_v28, %v4033_v30  ;;  %v9704_v6 = vpack.c.bf16 %v4043_v41, %v4035_v50  ;;  %v4622_v19 = vld [vmem:[#allocation14 + $0xa0] sm:$0xff]  ;;  %v4631_v10 = vld [vmem:[#allocation14 + $0xe8] sm:$0xff]  ;;  %v4629_v30 = vld [vmem:[#allocation14 + $0xd8] sm:$0xff] }
 0x92f   :  { %v4633_v28 = vld [vmem:[#allocation14 + $0xf8] sm:$0xff]  ;;  %v13041_v50 = vpack.c.bf16 %v4622_v19, %v4618_v31  ;;  %v4650_v31 = vld [vmem:[#allocation14 + $0x180] sm:$0xff] }
 0x930   :  { %v4654_v19 = vld [vmem:[#allocation14 + $0x1a0] sm:$0xff] }
 0x931   :  { %9627 = vmatpush1.bf16.msra.mxu0 %v9626_v3  ;;  %9691 = vmatpush1.bf16.msra.mxu1 %v9690_v52  ;;  %v9642_v3 = vpack.c.bf16 %v4040_v59, %v4032_v46  ;;  %v9706_v52 = vpack.c.bf16 %v4042_v9, %v4034_v13  ;;  %14693 = vst [vmem:[#allocation49_spill] sm:$0xff] %v13041_v50  ;;  %v4628_v59 = vld [vmem:[#allocation14 + $0xd0] sm:$0xff]  ;;  %v4637_v13 = vld [vmem:[#allocation14 + $0x118] sm:$0xff] }
 0x932   :  { %9629 = vmatprep.subr.bf16.mxu0 %v9628_v34  ;;  %9693 = vmatprep.subr.bf16.mxu1 %v9692_v38  ;;  %v4602_v34 = vld [vmem:[#allocation14] sm:$0xff]  ;;  %v13049_v46 = vpack.c.bf16 %v4633_v28, %v4629_v30  ;;  %v4641_v9 = vld [vmem:[#allocation14 + $0x138] sm:$0xff] }
 0x933   :  { %v4606_v38 = vld [vmem:[#allocation14 + $0x20] sm:$0xff]  ;;  %v4661_v30 = vld [vmem:[#allocation14 + $0x1d8] sm:$0xff] }
 0x934   :  { %14696 = vst [vmem:[#allocation61_spill] sm:$0xff] %v13049_v46  ;;  %v4665_v28 = vld [vmem:[#allocation14 + $0x1f8] sm:$0xff] }
 0x935   :  { %9631 = vmatpush1.bf16.msra.mxu0 %v9630_v2  ;;  %9695 = vmatpush1.bf16.msra.mxu1 %v9694_v39  ;;  %v13011_v2 = vpack.c.bf16 %v4606_v38, %v4602_v34  ;;  %v13013_v39 = vpack.c.bf16 %v4608_v16, %v4604_v55  ;;  %v4643_v34 = vld [vmem:[#allocation14 + $0x148] sm:$0xff]  ;;  %v4645_v55 = vld [vmem:[#allocation14 + $0x158] sm:$0xff] }
 0x936   :  { %9633 = vmatprep.subr.bf16.mxu0 %v9632_v0  ;;  %9697 = vmatprep.subr.bf16.mxu1 %v9696_v5  ;;  %v13015_v0 = vpack.c.bf16 %v4615_v62, %v4611_v60  ;;  %v13017_v5 = vpack.c.bf16 %v4617_v44, %v4613_v20  ;;  %v4647_v38 = vld [vmem:[#allocation14 + $0x168] sm:$0xff]  ;;  %v4649_v16 = vld [vmem:[#allocation14 + $0x178] sm:$0xff]  ;;  %v13073_v60 = vpack.c.bf16 %v4638_v56, %v4634_v54  ;;  %v4642_v20 = vld [vmem:[#allocation14 + $0x140] sm:$0xff] }
 0x937   :  { %v4646_v44 = vld [vmem:[#allocation14 + $0x160] sm:$0xff]  ;;  %v4669_v54 = vld [vmem:[#allocation15 + $0x18] sm:$0xff] }
 0x938   :  { %14701 = vst [vmem:[#allocation25_spill] sm:$0xff] %v13073_v60  ;;  %v4673_v56 = vld [vmem:[#allocation15 + $0x38] sm:$0xff] }
 0x939   :  { %9635 = vmatpush1.bf16.msra.mxu0 %v9634_v18  ;;  %9699 = vmatpush1.bf16.msra.mxu1 %v9698_v45  ;;  %v13025_v18 = vpack.c.bf16 %v4614_v42, %v4610_v25  ;;  %v13027_v45 = vpack.c.bf16 %v4616_v49, %v4612_v7  ;;  %v13081_v25 = vpack.c.bf16 %v4649_v16, %v4645_v55  ;;  %v4644_v42 = vld [vmem:[#allocation14 + $0x150] sm:$0xff]  ;;  %v4651_v7 = vld [vmem:[#allocation14 + $0x188] sm:$0xff] }
 0x93a   :  { %9637 = vmatprep.subr.bf16.mxu0 %v9636_v35  ;;  %9701 = vmatprep.subr.bf16.mxu1 %v9700_v29  ;;  %v13033_v35 = vpack.c.bf16 %v4625_v11, %v4621_v61  ;;  %v4620_v29 = vld [vmem:[#allocation14 + $0x90] sm:$0xff]  ;;  %v4655_v49 = vld [vmem:[#allocation14 + $0x1a8] sm:$0xff]  ;;  %v13089_v61 = vpack.c.bf16 %v4646_v44, %v4642_v20  ;;  %v13129_v55 = vpack.c.bf16 %v4673_v56, %v4669_v54 }
 0x93b   :  { %14704 = vst [vmem:[#allocation28_spill] sm:$0xff] %v13081_v25  ;;  %v4668_v16 = vld [vmem:[#allocation15 + $0x10] sm:$0xff]  ;;  %v4675_v20 = vld [vmem:[#allocation15 + $0x48] sm:$0xff] }
 0x93c   :  { %14692 = vst [vmem:[#allocation48_spill] sm:$0xff] %v13033_v35  ;;  %14705 = vst [vmem:[#allocation29_spill] sm:$0xff] %v13089_v61  ;;  %v4679_v44 = vld [vmem:[#allocation15 + $0x68] sm:$0xff]  ;;  %v4688_v54 = vld [vmem:[#allocation15 + $0xb0] sm:$0xff] }
 0x93d   :  { %9639 = vmatpush1.bf16.msra.mxu0 %v9638_v36  ;;  %9703 = vmatpush1.bf16.msra.mxu1 %v9702_v43  ;;  %v4626_v36 = vld [vmem:[#allocation14 + $0xc0] sm:$0xff]  ;;  %14716 = vst [vmem:[#allocation40_spill] sm:$0xff] %v13129_v55  ;;  %v4691_v56 = vld [vmem:[#allocation15 + $0xc8] sm:$0xff] }
 0x93e   :  { %9641 = vmatprep.subr.bf16.mxu0 %v9640_v24  ;;  %9705 = vmatprep.subr.bf16.mxu1 %v9704_v6  ;;  %v4630_v43 = vld [vmem:[#allocation14 + $0xe0] sm:$0xff]  ;;  %v4635_v24 = vld [vmem:[#allocation14 + $0x108] sm:$0xff] }
 0x93f   :  { %v4639_v6 = vld [vmem:[#allocation14 + $0x128] sm:$0xff]  ;;  %v13057_v37 = vpack.c.bf16 %v4630_v43, %v4626_v36  ;;  %v13105_v36 = vpack.c.bf16 %v4654_v19, %v4650_v31  ;;  %v4676_v19 = vld [vmem:[#allocation15 + $0x50] sm:$0xff] }
 0x941   :  { %9643 = vmatpush1.bf16.msra.mxu0 %v9642_v3  ;;  %9707 = vmatpush1.bf16.msra.mxu1 %v9706_v52  ;;  %14697 = vst [vmem:[#allocation21_spill] sm:$0xff] %v13057_v37  ;;  %v13065_v3 = vpack.c.bf16 %v4641_v9, %v4637_v13  ;;  %v4636_v52 = vld [vmem:[#allocation14 + $0x110] sm:$0xff]  ;;  %14709 = vst [vmem:[#allocation33_spill] sm:$0xff] %v13105_v36  ;;  %v4667_v13 = vld [vmem:[#allocation15 + $0x8] sm:$0xff] }
 0x942   :  { %9709 = vmatprep.subr.bf16.mxu0 %v13005_v23  ;;  %9741 = vmatprep.subr.bf16.mxu1 %v13007_v8  ;;  %v4671_v9 = vld [vmem:[#allocation15 + $0x28] sm:$0xff] }
 0x943   :  { %14700 = vst [vmem:[#allocation24_spill] sm:$0xff] %v13065_v3 }
 0x944   :  { %4377 = vmatmul.mubr.f32.vlgmr.msra.gmra.mrb[48].mxu0 %v14681_v14  ;;  %4490 = vmatmul.mubr.f32.vlgmr.msra.gmra.mrb[48].mxu1 %v14681_v14  ;;  %v13031_v14 = vpack.c.bf16 %v4623_v17, %v4619_v26  ;;  %v4653_v26 = vld [vmem:[#allocation14 + $0x198] sm:$0xff] }
 0x945   :  { %4382 = vmatprep.mubr.f32.mxu0 %v12953_v51  ;;  %4495 = vmatprep.mubr.f32.mxu1 %v12953_v51  ;;  %v4624_v51 = vld [vmem:[#allocation14 + $0xb0] sm:$0xff]  ;;  %v4657_v17 = vld [vmem:[#allocation14 + $0x1b8] sm:$0xff] }
 0x946   :  { %9711 = vmatpush1.bf16.msra.mxu0 %v13011_v2  ;;  %9743 = vmatpush1.bf16.msra.mxu1 %v13013_v39  ;;  %14691 = vst [vmem:[#allocation63_spill] sm:$0xff] %v13031_v14  ;;  %v13043_v41 = vpack.c.bf16 %v4624_v51, %v4620_v29  ;;  %v13097_v29 = vpack.c.bf16 %v4657_v17, %v4653_v26  ;;  %v4652_v51 = vld [vmem:[#allocation14 + $0x190] sm:$0xff]  ;;  %v4674_v26 = vld [vmem:[#allocation15 + $0x40] sm:$0xff] }
 0x947   :  { %9713 = vmatprep.subr.bf16.mxu0 %v13015_v0  ;;  %9745 = vmatprep.subr.bf16.mxu1 %v13017_v5  ;;  %v4678_v17 = vld [vmem:[#allocation15 + $0x60] sm:$0xff] }
 0x948   :  { %4383 = vmatmul.mubr.f32.gmra.mrb[50].mxu0 %v14682_v33  ;;  %4496 = vmatmul.mubr.f32.gmra.mrb[50].mxu1 %v14682_v33  ;;  %14694 = vst [vmem:[#allocation50_spill] sm:$0xff] %v13043_v41  ;;  %v13047_v33 = vpack.c.bf16 %v4631_v10, %v4627_v4  ;;  %14708 = vst [vmem:[#allocation32_spill] sm:$0xff] %v13097_v29  ;;  %v4659_v4 = vld [vmem:[#allocation14 + $0x1c8] sm:$0xff] }
 0x949   :  { %4388 = vmatprep.mubr.f32.mxu0 %v12861_v22  ;;  %4501 = vmatprep.mubr.f32.mxu1 %v12861_v22  ;;  %v4632_v22 = vld [vmem:[#allocation14 + $0xf0] sm:$0xff]  ;;  %v4663_v10 = vld [vmem:[#allocation14 + $0x1e8] sm:$0xff] }
 0x94a   :  { %9715 = vmatpush1.bf16.msra.mxu0 %v13025_v18  ;;  %9747 = vmatpush1.bf16.msra.mxu1 %v13027_v45  ;;  %14695 = vst [vmem:[#allocation60_spill] sm:$0xff] %v13047_v33  ;;  %v13059_v1 = vpack.c.bf16 %v4632_v22, %v4628_v59  ;;  %v4658_v59 = vld [vmem:[#allocation14 + $0x1c0] sm:$0xff] }
 0x94b   :  { %9717 = vmatprep.subr.bf16.mxu0 %v13031_v14  ;;  %9749 = vmatprep.subr.bf16.mxu1 %v13033_v35  ;;  %v4662_v22 = vld [vmem:[#allocation14 + $0x1e0] sm:$0xff] }
 0x94c   :  { %4389 = vmatmul.mubr.f32.gmra.mrb[52].mxu0 %v14683_v58  ;;  %4502 = vmatmul.mubr.f32.gmra.mrb[52].mxu1 %v14683_v58  ;;  %14698 = vst [vmem:[#allocation22_spill] sm:$0xff] %v13059_v1  ;;  %v13063_v58 = vpack.c.bf16 %v4639_v6, %v4635_v24  ;;  %v13113_v24 = vpack.c.bf16 %v4665_v28, %v4661_v30  ;;  %v4660_v6 = vld [vmem:[#allocation14 + $0x1d0] sm:$0xff]  ;;  %v4689_v30 = vld [vmem:[#allocation15 + $0xb8] sm:$0xff] }
 0x94d   :  { %4394 = vmatprep.mubr.f32.mxu0 %v14684_v27  ;;  %4507 = vmatprep.mubr.f32.mxu1 %v14684_v27  ;;  %v4640_v27 = vld [vmem:[#allocation14 + $0x130] sm:$0xff]  ;;  %v13151_v28 = vpack.c.bf16 %v4678_v17, %v4674_v26 }
 0x94e   :  { %9719 = vmatpush1.bf16.msra.mxu0 %v13041_v50  ;;  %9751 = vmatpush1.bf16.msra.mxu1 %v13043_v41  ;;  %14699 = vst [vmem:[#allocation23_spill] sm:$0xff] %v13063_v58  ;;  %v13075_v62 = vpack.c.bf16 %v4640_v27, %v4636_v52  ;;  %14712 = vst [vmem:[#allocation36_spill] sm:$0xff] %v13113_v24  ;;  %v13121_v52 = vpack.c.bf16 %v4662_v22, %v4658_v59  ;;  %v4682_v22 = vld [vmem:[#allocation15 + $0x80] sm:$0xff]  ;;  %v4692_v17 = vld [vmem:[#allocation15 + $0xd0] sm:$0xff] }
 0x94f   :  { %9721 = vmatprep.subr.bf16.mxu0 %v13047_v33  ;;  %9753 = vmatprep.subr.bf16.mxu1 %v13049_v46 }
 0x950   :  { %4395 = vmatmul.mubr.f32.gmra.mrb[54].mxu0 %v14685_v57  ;;  %4508 = vmatmul.mubr.f32.gmra.mrb[54].mxu1 %v14685_v57  ;;  %14702 = vst [vmem:[#allocation26_spill] sm:$0xff] %v13075_v62  ;;  %v13079_v57 = vpack.c.bf16 %v4647_v38, %v4643_v34  ;;  %14713 = vst [vmem:[#allocation37_spill] sm:$0xff] %v13121_v52  ;;  %v4666_v34 = vld [vmem:[#allocation15] sm:$0xff] }
 0x951   :  { %4400 = vmatprep.mubr.f32.mxu0 %v14686_v12  ;;  %4513 = vmatprep.mubr.f32.mxu1 %v14686_v12  ;;  %v4648_v12 = vld [vmem:[#allocation14 + $0x170] sm:$0xff]  ;;  %v4670_v38 = vld [vmem:[#allocation15 + $0x20] sm:$0xff] }
 0x952   :  { %9723 = vmatpush1.bf16.msra.mxu0 %v13057_v37  ;;  %9755 = vmatpush1.bf16.msra.mxu1 %v13059_v1  ;;  %14703 = vst [vmem:[#allocation27_spill] sm:$0xff] %v13079_v57  ;;  %v13091_v11 = vpack.c.bf16 %v4648_v12, %v4644_v42  ;;  %v4677_v42 = vld [vmem:[#allocation15 + $0x58] sm:$0xff] }
 0x953   :  { %9725 = vmatprep.subr.bf16.mxu0 %v13063_v58  ;;  %9757 = vmatprep.subr.bf16.mxu1 %v13065_v3  ;;  %v4681_v12 = vld [vmem:[#allocation15 + $0x78] sm:$0xff] }
 0x954   :  { %4401 = vmatmul.mubr.f32.gmra.mrb[56].mxu0 %v14687_v48  ;;  %4514 = vmatmul.mubr.f32.gmra.mrb[56].mxu1 %v14687_v48  ;;  %14706 = vst [vmem:[#allocation30_spill] sm:$0xff] %v13091_v11  ;;  %v13095_v48 = vpack.c.bf16 %v4655_v49, %v4651_v7  ;;  %v13137_v7 = vpack.c.bf16 %v4670_v38, %v4666_v34  ;;  %v4695_v34 = vld [vmem:[#allocation15 + $0xe8] sm:$0xff]  ;;  %v4693_v38 = vld [vmem:[#allocation15 + $0xd8] sm:$0xff] }
 0x955   :  { %4406 = vmatprep.mubr.f32.mxu0 %v14688_v40  ;;  %4519 = vmatprep.mubr.f32.mxu1 %v14688_v40  ;;  %v4656_v40 = vld [vmem:[#allocation14 + $0x1b0] sm:$0xff]  ;;  %v13145_v31 = vpack.c.bf16 %v4681_v12, %v4677_v42  ;;  %v4694_v42 = vld [vmem:[#allocation15 + $0xe0] sm:$0xff]  ;;  %v13171_v12 = vpack.c.bf16 %v4695_v34, %v4691_v56 }
 0x956   :  { %9727 = vmatpush1.bf16.msra.mxu0 %v13073_v60  ;;  %9759 = vmatpush1.bf16.msra.mxu1 %v13075_v62  ;;  %14707 = vst [vmem:[#allocation31_spill] sm:$0xff] %v13095_v48  ;;  %v13107_v43 = vpack.c.bf16 %v4656_v40, %v4652_v51  ;;  %v4680_v51 = vld [vmem:[#allocation15 + $0x70] sm:$0xff]  ;;  %v4683_v40 = vld [vmem:[#allocation15 + $0x88] sm:$0xff] }
 0x957   :  { %9729 = vmatprep.subr.bf16.mxu0 %v13079_v57  ;;  %9761 = vmatprep.subr.bf16.mxu1 %v13081_v25  ;;  %v13153_v59 = vpack.c.bf16 %v4680_v51, %v4676_v19  ;;  %14720 = vst [vmem:[#allocation44_spill] sm:$0xff] %v13171_v12  ;;  %v4696_v19 = vld [vmem:[#allocation15 + $0xf0] sm:$0xff]  ;;  %v4699_v51 = vld [vmem:[#allocation15 + $0x108] sm:$0xff] }
 0x958   :  { %4407 = vmatmul.mubr.f32.gmra.mrb[58].mxu0 %v12820_v63  ;;  %4520 = vmatmul.mubr.f32.gmra.mrb[58].mxu1 %v12820_v63  ;;  %14710 = vst [vmem:[#allocation34_spill] sm:$0xff] %v13107_v43  ;;  %v13111_v63 = vpack.c.bf16 %v4663_v10, %v4659_v4  ;;  %v4687_v4 = vld [vmem:[#allocation15 + $0xa8] sm:$0xff]  ;;  %v4685_v10 = vld [vmem:[#allocation15 + $0x98] sm:$0xff]  ;;  %v4700_v34 = vld [vmem:[#allocation15 + $0x110] sm:$0xff] }
 0x959   :  { %4412 = vmatprep.mubr.f32.mxu0 %v14689_v15  ;;  %4525 = vmatprep.mubr.f32.mxu1 %v14689_v15  ;;  %v4664_v15 = vld [vmem:[#allocation14 + $0x1f0] sm:$0xff] }
 0x95a   :  { %9731 = vmatpush1.bf16.msra.mxu0 %v13089_v61  ;;  %9763 = vmatpush1.bf16.msra.mxu1 %v13091_v11  ;;  %14711 = vst [vmem:[#allocation35_spill] sm:$0xff] %v13111_v63  ;;  %v13123_v27 = vpack.c.bf16 %v4664_v15, %v4660_v6  ;;  %v4686_v6 = vld [vmem:[#allocation15 + $0xa0] sm:$0xff]  ;;  %v13157_v15 = vpack.c.bf16 %v4687_v4, %v4683_v40  ;;  %v4703_v40 = vld [vmem:[#allocation15 + $0x128] sm:$0xff]  ;;  %v4701_v4 = vld [vmem:[#allocation15 + $0x118] sm:$0xff] }
 0x95b   :  { %9733 = vmatprep.subr.bf16.mxu0 %v13095_v48  ;;  %9765 = vmatprep.subr.bf16.mxu1 %v13097_v29 }
 0x95c   :  { %4413 = vmatmul.mubr.f32.gmra.mrb[60].mxu0 %v12912_v53  ;;  %4526 = vmatmul.mubr.f32.gmra.mrb[60].mxu1 %v12912_v53  ;;  %14714 = vst [vmem:[#allocation38_spill] sm:$0xff] %v13123_v27  ;;  %v13127_v53 = vpack.c.bf16 %v4671_v9, %v4667_v13  ;;  %v13159_v13 = vpack.c.bf16 %v4689_v30, %v4685_v10  ;;  %v4684_v9 = vld [vmem:[#allocation15 + $0x90] sm:$0xff]  ;;  %v4705_v10 = vld [vmem:[#allocation15 + $0x138] sm:$0xff] }
 0x95d   :  { %4418 = vmatprep.mubr.f32.mxu0 %v14690_v32  ;;  %4531 = vmatprep.mubr.f32.mxu1 %v14690_v32  ;;  %v4672_v32 = vld [vmem:[#allocation15 + $0x30] sm:$0xff]  ;;  %v13185_v56 = vpack.c.bf16 %v4705_v10, %v4701_v4 }
 0x95e   :  { %9735 = vmatpush1.bf16.msra.mxu0 %v13105_v36  ;;  %9767 = vmatpush1.bf16.msra.mxu1 %v13107_v43  ;;  %14715 = vst [vmem:[#allocation39_spill] sm:$0xff] %v13127_v53  ;;  %v13139_v49 = vpack.c.bf16 %v4672_v32, %v4668_v16  ;;  %14717 = vst [vmem:[#allocation41_spill] sm:$0xff] %v13159_v13  ;;  %v4697_v16 = vld [vmem:[#allocation15 + $0xf8] sm:$0xff]  ;;  %v13165_v32 = vpack.c.bf16 %v4686_v6, %v4682_v22  ;;  %v4698_v6 = vld [vmem:[#allocation15 + $0x100] sm:$0xff] }
 0x95f   :  { %9737 = vmatprep.subr.bf16.mxu0 %v13111_v63  ;;  %9769 = vmatprep.subr.bf16.mxu1 %v13113_v24  ;;  %v13173_v26 = vpack.c.bf16 %v4697_v16, %v4693_v38  ;;  %v13179_v22 = vpack.c.bf16 %v4696_v19, %v4692_v17  ;;  %14725 = vst [vmem:[#allocation51_spill] sm:$0xff] %v13185_v56  ;;  %v4704_v38 = vld [vmem:[#allocation15 + $0x130] sm:$0xff]  ;;  %v4707_v16 = vld [vmem:[#allocation15 + $0x148] sm:$0xff]  ;;  %v4706_v17 = vld [vmem:[#allocation15 + $0x140] sm:$0xff] }
 0x960   :  { %4419 = vmatmul.mubr.f32.gmra.mrb[62].mxu0 %v12966_v47  ;;  %4532 = vmatmul.mubr.f32.gmra.mrb[62].mxu1 %v12966_v47  ;;  %v13143_v47 = vpack.c.bf16 %v4679_v44, %v4675_v20  ;;  %14718 = vst [vmem:[#allocation42_spill] sm:$0xff] %v13165_v32  ;;  %v13167_v20 = vpack.c.bf16 %v4688_v54, %v4684_v9  ;;  %v4690_v44 = vld [vmem:[#allocation15 + $0xc0] sm:$0xff]  ;;  %v4708_v4 = vld [vmem:[#allocation15 + $0x150] sm:$0xff] }
 0x961   :  { %4798 = vmatprep.mubr.f32.mxu0 %v14503_v21  ;;  %4869 = vmatprep.mubr.f32.mxu1 %v14503_v21  ;;  %14721 = vst [vmem:[#allocation45_spill] sm:$0xff] %v13173_v26  ;;  %v13177_v30 = vpack.c.bf16 %v4694_v42, %v4690_v44  ;;  %14723 = vst [vmem:[#allocation58_spill] sm:$0xff] %v13179_v22  ;;  %v4702_v9 = vld [vmem:[#allocation15 + $0x120] sm:$0xff]  ;;  %v13183_v54 = vpack.c.bf16 %v4703_v40, %v4699_v51  ;;  %v4712_v10 = vld [vmem:[#allocation15 + $0x170] sm:$0xff] }
 0x962   :  { %9739 = vmatpush1.bf16.msra.mxu0 %v13121_v52  ;;  %9771 = vmatpush1.bf16.msra.mxu1 %v13123_v27  ;;  %14719 = vst [vmem:[#allocation43_spill] sm:$0xff] %v13167_v20  ;;  %v13189_v44 = vpack.c.bf16 %v4702_v9, %v4698_v6  ;;  %v13191_v42 = vpack.c.bf16 %v4704_v38, %v4700_v34  ;;  %v4710_v19 = vld [vmem:[#allocation15 + $0x160] sm:$0xff] }
 0x963   :  { %9773 = vmatprep.subr.bf16.mxu0 %v13127_v53  ;;  %9805 = vmatprep.subr.bf16.mxu1 %v13129_v55  ;;  %14722 = vst [vmem:[#allocation46_spill] sm:$0xff] %v13177_v30  ;;  %14724 = vst [vmem:[#allocation64_spill] sm:$0xff] %v13183_v54  ;;  %v13201_v6 = vpack.c.bf16 %v4710_v19, %v4706_v17  ;;  %v13203_v9 = vpack.c.bf16 %v4712_v10, %v4708_v4  ;;  %v4714_v34 = vld [vmem:[#allocation15 + $0x180] sm:$0xff]  ;;  %v4728_v10 = vld [vmem:[#allocation15 + $0x1f0] sm:$0xff] }
 0x964   :  { %14726 = vst [vmem:[#allocation53_spill] sm:$0xff] %v13189_v44  ;;  %14727 = vst [vmem:[#allocation62_spill] sm:$0xff] %v13191_v42  ;;  %v4718_v38 = vld [vmem:[#allocation15 + $0x1a0] sm:$0xff] }
 0x965   :  { %4799 = vmatmul.mubr.f32.vlgmr.msra.gmra.mrb[32].mxu0 %v14503_v21  ;;  %4870 = vmatmul.mubr.f32.vlgmr.msra.gmra.mrb[32].mxu1 %v14503_v21  ;;  %v13213_v17 = vpack.c.bf16 %v4718_v38, %v4714_v34  ;;  %v4722_v4 = vld [vmem:[#allocation15 + $0x1c0] sm:$0xff] }
 0x966   :  { %9775 = vmatpush1.bf16.msra.mxu0 %v13137_v7  ;;  %9807 = vmatpush1.bf16.msra.mxu1 %v13139_v49 }
 0x967   :  { %9777 = vmatprep.subr.bf16.mxu0 %v13143_v47  ;;  %9809 = vmatprep.subr.bf16.mxu1 %v13145_v31 }
 0x968   :  { %4948 = vmatprep.mubr.f32.mxu0 %v14503_v21  ;;  %5019 = vmatprep.mubr.f32.mxu1 %v14503_v21 }
 0x96a   :  { %9779 = vmatpush1.bf16.msra.mxu0 %v13151_v28  ;;  %9811 = vmatpush1.bf16.msra.mxu1 %v13153_v59 }
 0x96b   :  { %9781 = vmatprep.subr.bf16.mxu0 %v13157_v15  ;;  %9813 = vmatprep.subr.bf16.mxu1 %v13159_v13  ;;  %v4709_v13 = vld [vmem:[#allocation15 + $0x158] sm:$0xff] }
 0x96e   :  { %9783 = vmatpush1.bf16.msra.mxu0 %v13165_v32  ;;  %9815 = vmatpush1.bf16.msra.mxu1 %v13167_v20  ;;  %v4711_v32 = vld [vmem:[#allocation15 + $0x168] sm:$0xff]  ;;  %v4713_v20 = vld [vmem:[#allocation15 + $0x178] sm:$0xff] }
 0x96f   :  { %9785 = vmatprep.subr.bf16.mxu0 %v13171_v12  ;;  %9817 = vmatprep.subr.bf16.mxu1 %v13173_v26  ;;  %v13195_v51 = vpack.c.bf16 %v4711_v32, %v4707_v16  ;;  %v13197_v40 = vpack.c.bf16 %v4713_v20, %v4709_v13  ;;  %v4715_v26 = vld [vmem:[#allocation15 + $0x188] sm:$0xff]  ;;  %v4717_v12 = vld [vmem:[#allocation15 + $0x198] sm:$0xff]  ;;  %v4716_v20 = vld [vmem:[#allocation15 + $0x190] sm:$0xff] }
 0x970   :  { %v4720_v16 = vld [vmem:[#allocation15 + $0x1b0] sm:$0xff] }
 0x971   :  { %v13215_v19 = vpack.c.bf16 %v4720_v16, %v4716_v20 }
 0x972   :  { %9787 = vmatpush1.bf16.msra.mxu0 %v13177_v30  ;;  %9819 = vmatpush1.bf16.msra.mxu1 %v13179_v22  ;;  %v4719_v30 = vld [vmem:[#allocation15 + $0x1a8] sm:$0xff]  ;;  %v4721_v22 = vld [vmem:[#allocation15 + $0x1b8] sm:$0xff] }
 0x973   :  { %9789 = vmatprep.subr.bf16.mxu0 %v13183_v54  ;;  %9821 = vmatprep.subr.bf16.mxu1 %v13185_v56  ;;  %v13207_v13 = vpack.c.bf16 %v4719_v30, %v4715_v26  ;;  %v13209_v32 = vpack.c.bf16 %v4721_v22, %v4717_v12  ;;  %v4723_v56 = vld [vmem:[#allocation15 + $0x1c8] sm:$0xff]  ;;  %v4725_v54 = vld [vmem:[#allocation15 + $0x1d8] sm:$0xff]  ;;  %v4726_v30 = vld [vmem:[#allocation15 + $0x1e0] sm:$0xff] }
 0x974   :  { %v4724_v22 = vld [vmem:[#allocation15 + $0x1d0] sm:$0xff]  ;;  %v13225_v34 = vpack.c.bf16 %v4726_v30, %v4722_v4 }
 0x975   :  { %v13227_v38 = vpack.c.bf16 %v4728_v10, %v4724_v22 }
 0x976   :  { %9791 = vmatpush1.bf16.msra.mxu0 %v13189_v44  ;;  %9823 = vmatpush1.bf16.msra.mxu1 %v13191_v42  ;;  %v4727_v44 = vld [vmem:[#allocation15 + $0x1e8] sm:$0xff]  ;;  %v4729_v42 = vld [vmem:[#allocation15 + $0x1f8] sm:$0xff] }
 0x977   :  { %9793 = vmatprep.subr.bf16.mxu0 %v13195_v51  ;;  %9825 = vmatprep.subr.bf16.mxu1 %v13197_v40  ;;  %v13219_v12 = vpack.c.bf16 %v4727_v44, %v4723_v56  ;;  %v13221_v26 = vpack.c.bf16 %v4729_v42, %v4725_v54  ;;  %v4044_v54 = vld [vmem:[%s14236_s6] sm:$0xff] }
 0x978   :  { %v14728_v56 = vld [vmem:[#allocation57_spill] sm:$0xff] }
 0x979   :  { %v14729_v44 = vsub.s32 0, %v14728_v56  ;;  %v14731_v20 = vsub.s32 1, %v14728_v56 }
 0x97a   :  { %9795 = vmatpush1.bf16.msra.mxu0 %v13201_v6  ;;  %9827 = vmatpush1.bf16.msra.mxu1 %v13203_v9 }
 0x97b   :  { %9797 = vmatprep.subr.bf16.mxu0 %v13207_v13  ;;  %9829 = vmatprep.subr.bf16.mxu1 %v13209_v32  ;;  %v13276_v42 = vrot.slane %v4044_v54, %v14729_v44  ;;  %v13280_v16 = vrot.slane %v4044_v54, %v14731_v20  ;;  %v14735_v20 = vsub.s32 2, %v14728_v56 }
 0x97d   :  { %14730 = vst [vmem:[#allocation55_spill] sm:$0xff] %v13276_v42  ;;  %14732 = vst [vmem:[#allocation56_spill] sm:$0xff] %v13280_v16 }
 0x97e   :  { %9799 = vmatpush1.bf16.msra.mxu0 %v13213_v17  ;;  %9831 = vmatpush1.bf16.msra.mxu1 %v13215_v19 }
 0x97f   :  { %9801 = vmatprep.subr.bf16.mxu0 %v13219_v12  ;;  %9833 = vmatprep.subr.bf16.mxu1 %v13221_v26 }
 0x982   :  { %9803 = vmatpush1.bf16.msra.mxu0 %v13225_v34  ;;  %9835 = vmatpush1.bf16.msra.mxu1 %v13227_v38 }
 0x983   :  { %9837 = vmatprep.subr.bf16.mxu0 %v13005_v23  ;;  %9869 = vmatprep.subr.bf16.mxu1 %v13007_v8 }
 0x985   :  { %4949 = vmatmul.mubr.f32.vlgmr.msra.gmra.mrb[62].mxu0 %v14503_v21  ;;  %5020 = vmatmul.mubr.f32.vlgmr.msra.gmra.mrb[62].mxu1 %v14503_v21 }
 0x986   :  { %9839 = vmatpush1.bf16.msra.mxu0 %v13011_v2  ;;  %9871 = vmatpush1.bf16.msra.mxu1 %v13013_v39 }
 0x987   :  { %9841 = vmatprep.subr.bf16.mxu0 %v13015_v0  ;;  %9873 = vmatprep.subr.bf16.mxu1 %v13017_v5 }
 0x988   :  { %5149 = vmatprep.mubr.f32.mxu0 %v14503_v21  ;;  %5220 = vmatprep.mubr.f32.mxu1 %v14503_v21 }
 0x98a   :  { %9843 = vmatpush1.bf16.msra.mxu0 %v13025_v18  ;;  %9875 = vmatpush1.bf16.msra.mxu1 %v13027_v45 }
 0x98b   :  { %9845 = vmatprep.subr.bf16.mxu0 %v13031_v14  ;;  %9877 = vmatprep.subr.bf16.mxu1 %v13033_v35 }
 0x98e   :  { %9847 = vmatpush1.bf16.msra.mxu0 %v13041_v50  ;;  %9879 = vmatpush1.bf16.msra.mxu1 %v13043_v41 }
 0x98f   :  { %9849 = vmatprep.subr.bf16.mxu0 %v13047_v33  ;;  %9881 = vmatprep.subr.bf16.mxu1 %v13049_v46 }
 0x992   :  { %9851 = vmatpush1.bf16.msra.mxu0 %v13057_v37  ;;  %9883 = vmatpush1.bf16.msra.mxu1 %v13059_v1 }
 0x993   :  { %9853 = vmatprep.subr.bf16.mxu0 %v13063_v58  ;;  %9885 = vmatprep.subr.bf16.mxu1 %v13065_v3 }
 0x996   :  { %9855 = vmatpush1.bf16.msra.mxu0 %v13073_v60  ;;  %9887 = vmatpush1.bf16.msra.mxu1 %v13075_v62 }
 0x997   :  { %9857 = vmatprep.subr.bf16.mxu0 %v13079_v57  ;;  %9889 = vmatprep.subr.bf16.mxu1 %v13081_v25 }
 0x99a   :  { %9859 = vmatpush1.bf16.msra.mxu0 %v13089_v61  ;;  %9891 = vmatpush1.bf16.msra.mxu1 %v13091_v11 }
 0x99b   :  { %9861 = vmatprep.subr.bf16.mxu0 %v13095_v48  ;;  %9893 = vmatprep.subr.bf16.mxu1 %v13097_v29 }
 0x99e   :  { %9863 = vmatpush1.bf16.msra.mxu0 %v13105_v36  ;;  %9895 = vmatpush1.bf16.msra.mxu1 %v13107_v43  ;;  %v13291_v43 = vrot.slane %v4044_v54, %v14735_v20  ;;  %v14737_v20 = vsub.s32 4, %v14728_v56 }
 0x99f   :  { %9865 = vmatprep.subr.bf16.mxu0 %v13111_v63  ;;  %9897 = vmatprep.subr.bf16.mxu1 %v13113_v24  ;;  %v14733_v24 = vsub.s32 3, %v14728_v56 }
 0x9a0   :  { %14736 = vst [vmem:[#allocation54_spill] sm:$0xff] %v13291_v43 }
 0x9a1   :  { %v13286_v63 = vrot.slane %v4044_v54, %v14733_v24 }
 0x9a2   :  { %9867 = vmatpush1.bf16.msra.mxu0 %v13121_v52  ;;  %9899 = vmatpush1.bf16.msra.mxu1 %v13123_v27 }
 0x9a3   :  { %9901 = vmatprep.subr.bf16.mxu0 %v13127_v53  ;;  %9933 = vmatprep.subr.bf16.mxu1 %v13129_v55  ;;  %14734 = vst [vmem:[#allocation59_spill] sm:$0xff] %v13286_v63 }
 0xa38   :  { %v4800_v4 = vpop.f32.mrb[32].mxu0  ;;  %v4871_v30 = vpop.f32.mrb[32].mxu1 }
 0xa39   :  { %v10884_v22 = vadd.f32 %v4800_v4, %v13276_v42  ;;  %v4802_v10 = vpop.f32.mrb[33].mxu0  ;;  %v4873_v53 = vpop.f32.mrb[33].mxu1  ;;  %v10900_v4 = vadd.f32 %v4871_v30, %v13291_v43  ;;  %v14739_v30 = vsub.s32 5, %v14728_v56 }
 0xa3a   :  { %v10885_v55 = vadd.f32 %v4802_v10, %v13280_v16  ;;  %v10901_v44 = vadd.f32 %v4873_v53, %v13286_v63  ;;  %v13296_v16 = vrot.slane %v4044_v54, %v14737_v20 }
 0xa3b   :  { %v8105_v27 = vmul.f32 -1.442695, %v10884_v22  ;;  %v13300_v43 = vrot.slane %v4044_v54, %v14739_v30 }
 0xa3c   :  { %v8106_v52 = vmul.f32 -1.442695, %v10885_v55  ;;  %v8107_v36 = vmul.f32 -1.442695, %v10901_v44  ;;  %14738 = vst [vmem:[#allocation52_spill] sm:$0xff] %v13296_v16 }
 0xa3d   :  { %11348 = vpow2.f32 %v8105_v27 }
 0xa3e   :  { %11350 = vpow2.f32 %v8106_v52 }
 0xa3f   :  { %11352 = vpow2.f32 %v8107_v36 }
 0xa40   :  { %11354 = vtanh.f32 %v10900_v4 }
 0xa47   :  { %v11349_v42 = vpop.eup %11348 }
 0xa48   :  { %v11351_v29 = vpop.eup %11350  ;;  %v5033_v10 = vadd.f32 1.0, %v11349_v42 }
 0xa49   :  { %v5039_v55 = vadd.f32 1.0, %v11351_v29  ;;  %v11353_v24 = vpop.eup %11352 }
 0xa4a   :  { %11356 = vrcp.f32 %v5033_v10  ;;  %v11355_v27 = vpop.eup %11354  ;;  %v5046_v63 = vadd.f32 1.0, %v11353_v24 }
 0xa4b   :  { %11358 = vrcp.f32 %v5039_v55 }
 0xa4c   :  { %11360 = vrcp.f32 %v5046_v63  ;;  %v14742_v63 = vsub.s32 6, %v14728_v56 }
 0xa54   :  { %v11357_v52 = vpop.eup %11356 }
 0xa55   :  { %v11359_v22 = vpop.eup %11358  ;;  %v5050_v53 = vmul.f32 %v11357_v52, %v11355_v27 }
 0xa56   :  { %v5049_v44 = vmul.f32 0.0, %v11359_v22  ;;  %v14741_v22 = vsub.s32 7, %v14728_v56  ;;  %v11361_v30 = vpop.eup %11360  ;;  %v14744_v56 = vld [vmem:[#allocation41_spill] sm:$0xff] }
 0xa58   :  { %v13302_v36 = vadd.f32 %v5050_v53, %v5049_v44  ;;  %v4950_v29 = vpop.f32.mrb[62].mxu0  ;;  %v5021_v42 = vpop.f32.mrb[62].mxu1  ;;  %v13309_v20 = vrot.slane %v4044_v54, %v14741_v22  ;;  %v13314_v44 = vrot.slane %v4044_v54, %v14742_v63  ;;  %v14749_v63 = vld [vmem:[#allocation46_spill] sm:$0xff] }
 0xa59   :  { %v10930_v4 = vadd.f32 %v4950_v29, %v13296_v16  ;;  %v4952_v10 = vpop.f32.mrb[63].mxu0  ;;  %v5023_v55 = vpop.f32.mrb[63].mxu1 }
 0xa5a   :  { %14740 = vst [vmem:[#allocation47_spill] sm:$0xff] %v13302_v36  ;;  %11362 = vtanh.f32 %v13302_v36  ;;  %v10931_v24 = vadd.f32 %v4952_v10, %v13300_v43  ;;  %v10947_v53 = vadd.f32 %v5023_v55, %v13309_v20  ;;  %v10946_v36 = vadd.f32 %v5021_v42, %v13314_v44  ;;  %v14747_v42 = vld [vmem:[#allocation44_spill] sm:$0xff]  ;;  %v14748_v55 = vld [vmem:[#allocation45_spill] sm:$0xff] }
 0xa5b   :  { %v8108_v27 = vmul.f32 -1.442695, %v10930_v4 }
 0xa5c   :  { %v8109_v52 = vmul.f32 -1.442695, %v10931_v24  ;;  %v8110_v16 = vmul.f32 -1.442695, %v10947_v53 }
 0xa5d   :  { %11364 = vpow2.f32 %v8108_v27 }
 0xa5e   :  { %11366 = vpow2.f32 %v8109_v52 }
 0xa5f   :  { %11368 = vpow2.f32 %v8110_v16  ;;  %v14745_v16 = vld [vmem:[#allocation42_spill] sm:$0xff] }
 0xa60   :  { %11370 = vtanh.f32 %v10946_v36  ;;  %v14746_v36 = vld [vmem:[#allocation43_spill] sm:$0xff] }
 0xa64   :  { %v11363_v29 = vpop.eup %11362 }
 0xa65   :  { %v13317_v10 = vmul.f32 %v11363_v29, %v11361_v30  ;;  %v14750_v30 = vld [vmem:[#allocation58_spill] sm:$0xff] }
 0xa67   :  { %14743 = vst [vmem:[#allocation57_spill] sm:$0xff] %v13317_v10  ;;  %v11365_v4 = vpop.eup %11364  ;;  %5150 = vmatmul.mubr.f32.vlgmr.msra.gmra.mrb[34].mxu0 %v13317_v10  ;;  %5221 = vmatmul.mubr.f32.vlgmr.msra.gmra.mrb[34].mxu1 %v13317_v10 }
 0xa68   :  { %v11367_v24 = vpop.eup %11366  ;;  %v5057_v27 = vadd.f32 1.0, %v11365_v4  ;;  %9903 = vmatpush1.bf16.msra.mxu0 %v13137_v7  ;;  %9935 = vmatpush1.bf16.msra.mxu1 %v13139_v49 }
 0xa69   :  { %v5063_v54 = vadd.f32 1.0, %v11367_v24  ;;  %9905 = vmatprep.subr.bf16.mxu0 %v13143_v47  ;;  %9937 = vmatprep.subr.bf16.mxu1 %v13145_v31  ;;  %v11369_v52 = vpop.eup %11368 }
 0xa6a   :  { %11372 = vrcp.f32 %v5057_v27  ;;  %5299 = vmatprep.mubr.f32.mxu0 %v14503_v21  ;;  %5370 = vmatprep.mubr.f32.mxu1 %v14503_v21  ;;  %v11371_v22 = vpop.eup %11370  ;;  %v5070_v24 = vadd.f32 1.0, %v11369_v52  ;;  %v14751_v27 = vld [vmem:[#allocation64_spill] sm:$0xff] }
 0xa6b   :  { %11374 = vrcp.f32 %v5063_v54  ;;  %v14752_v54 = vld [vmem:[#allocation51_spill] sm:$0xff] }
 0xa6c   :  { %9907 = vmatpush1.bf16.msra.mxu0 %v13151_v28  ;;  %9939 = vmatpush1.bf16.msra.mxu1 %v13153_v59  ;;  %11376 = vrcp.f32 %v5070_v24  ;;  %v14759_v24 = vld [vmem:[#allocation35_spill] sm:$0xff] }
 0xa6d   :  { %9909 = vmatprep.subr.bf16.mxu0 %v13157_v15  ;;  %9941 = vmatprep.subr.bf16.mxu1 %v14744_v56 }
 0xa70   :  { %9911 = vmatpush1.bf16.msra.mxu0 %v14745_v16  ;;  %9943 = vmatpush1.bf16.msra.mxu1 %v14746_v36 }
 0xa71   :  { %9913 = vmatprep.subr.bf16.mxu0 %v14747_v42  ;;  %9945 = vmatprep.subr.bf16.mxu1 %v14748_v55  ;;  %v14753_v42 = vld [vmem:[#allocation53_spill] sm:$0xff]  ;;  %v14754_v55 = vld [vmem:[#allocation62_spill] sm:$0xff] }
 0xa74   :  { %v11373_v53 = vpop.eup %11372  ;;  %9915 = vmatpush1.bf16.msra.mxu0 %v14749_v63  ;;  %9947 = vmatpush1.bf16.msra.mxu1 %v14750_v30 }
 0xa75   :  { %v11375_v29 = vpop.eup %11374  ;;  %v5074_v4 = vmul.f32 %v11373_v53, %v11371_v22  ;;  %9917 = vmatprep.subr.bf16.mxu0 %v14751_v27  ;;  %9949 = vmatprep.subr.bf16.mxu1 %v14752_v54  ;;  %v14756_v53 = vld [vmem:[#allocation32_spill] sm:$0xff] }
 0xa76   :  { %v5073_v10 = vmul.f32 0.0, %v11375_v29  ;;  %v14757_v29 = vld [vmem:[#allocation33_spill] sm:$0xff] }
 0xa78   :  { %v13339_v36 = vadd.f32 %v5074_v4, %v5073_v10  ;;  %9919 = vmatpush1.bf16.msra.mxu0 %v14753_v42  ;;  %9951 = vmatpush1.bf16.msra.mxu1 %v14754_v55  ;;  %v11377_v10 = vpop.eup %11376  ;;  %v14758_v4 = vld [vmem:[#allocation34_spill] sm:$0xff] }
 0xa79   :  { %9921 = vmatprep.subr.bf16.mxu0 %v13195_v51  ;;  %9953 = vmatprep.subr.bf16.mxu1 %v13197_v40 }
 0xa7a   :  { %11378 = vtanh.f32 %v13339_v36 }
 0xa7c   :  { %9923 = vmatpush1.bf16.msra.mxu0 %v13201_v6  ;;  %9955 = vmatpush1.bf16.msra.mxu1 %v13203_v9 }
 0xa7d   :  { %9925 = vmatprep.subr.bf16.mxu0 %v13207_v13  ;;  %9957 = vmatprep.subr.bf16.mxu1 %v13209_v32 }
 0xa80   :  { %9927 = vmatpush1.bf16.msra.mxu0 %v13213_v17  ;;  %9959 = vmatpush1.bf16.msra.mxu1 %v13215_v19 }
 0xa81   :  { %9929 = vmatprep.subr.bf16.mxu0 %v13219_v12  ;;  %9961 = vmatprep.subr.bf16.mxu1 %v13221_v26 }
 0xa84   :  { %v11379_v52 = vpop.eup %11378  ;;  %9931 = vmatpush1.bf16.msra.mxu0 %v13225_v34  ;;  %9963 = vmatpush1.bf16.msra.mxu1 %v13227_v38 }
 0xa85   :  { %v13356_v22 = vmul.f32 %v11379_v52, %v11377_v10  ;;  %9965 = vmatprep.subr.bf16.mxu0 %v13005_v23  ;;  %9997 = vmatprep.subr.bf16.mxu1 %v13007_v8  ;;  %v14760_v10 = vld [vmem:[#allocation36_spill] sm:$0xff]  ;;  %v14761_v52 = vld [vmem:[#allocation37_spill] sm:$0xff] }
 0xa87   :  { %14755 = vst [vmem:[#allocation41_spill] sm:$0xff] %v13356_v22  ;;  %5300 = vmatmul.mubr.f32.vlgmr.msra.gmra.mrb[60].mxu0 %v13356_v22  ;;  %5371 = vmatmul.mubr.f32.vlgmr.msra.gmra.mrb[60].mxu1 %v13356_v22  ;;  %v14762_v22 = vld [vmem:[#allocation38_spill] sm:$0xff] }
 0xa88   :  { %9967 = vmatpush1.bf16.msra.mxu0 %v13011_v2  ;;  %9999 = vmatpush1.bf16.msra.mxu1 %v13013_v39 }
 0xa89   :  { %9969 = vmatprep.subr.bf16.mxu0 %v13015_v0  ;;  %10001 = vmatprep.subr.bf16.mxu1 %v13017_v5 }
 0xa8a   :  { %5501 = vmatprep.mubr.f32.mxu0 %v14503_v21  ;;  %5572 = vmatprep.mubr.f32.mxu1 %v14503_v21 }
 0xa8c   :  { %9971 = vmatpush1.bf16.msra.mxu0 %v13025_v18  ;;  %10003 = vmatpush1.bf16.msra.mxu1 %v13027_v45 }
 0xa8d   :  { %9973 = vmatprep.subr.bf16.mxu0 %v13031_v14  ;;  %10005 = vmatprep.subr.bf16.mxu1 %v13033_v35 }
 0xa90   :  { %9975 = vmatpush1.bf16.msra.mxu0 %v13041_v50  ;;  %10007 = vmatpush1.bf16.msra.mxu1 %v13043_v41 }
 0xa91   :  { %9977 = vmatprep.subr.bf16.mxu0 %v13047_v33  ;;  %10009 = vmatprep.subr.bf16.mxu1 %v13049_v46 }
 0xa94   :  { %9979 = vmatpush1.bf16.msra.mxu0 %v13057_v37  ;;  %10011 = vmatpush1.bf16.msra.mxu1 %v13059_v1 }
 0xa95   :  { %9981 = vmatprep.subr.bf16.mxu0 %v13063_v58  ;;  %10013 = vmatprep.subr.bf16.mxu1 %v13065_v3 }
 0xa98   :  { %9983 = vmatpush1.bf16.msra.mxu0 %v13073_v60  ;;  %10015 = vmatpush1.bf16.msra.mxu1 %v13075_v62  ;;  %v14766_v60 = vld [vmem:[#allocation56_spill] sm:$0xff] }
 0xa99   :  { %9985 = vmatprep.subr.bf16.mxu0 %v13079_v57  ;;  %10017 = vmatprep.subr.bf16.mxu1 %v13081_v25  ;;  %v14763_v25 = vld [vmem:[#allocation39_spill] sm:$0xff] }
 0xa9a   :  { %v14765_v57 = vld [vmem:[#allocation55_spill] sm:$0xff] }
 0xa9c   :  { %9987 = vmatpush1.bf16.msra.mxu0 %v13089_v61  ;;  %10019 = vmatpush1.bf16.msra.mxu1 %v13091_v11  ;;  %v14764_v61 = vld [vmem:[#allocation40_spill] sm:$0xff] }
 0xa9d   :  { %9989 = vmatprep.subr.bf16.mxu0 %v13095_v48  ;;  %10021 = vmatprep.subr.bf16.mxu1 %v14756_v53 }
 0xaa0   :  { %9991 = vmatpush1.bf16.msra.mxu0 %v14757_v29  ;;  %10023 = vmatpush1.bf16.msra.mxu1 %v14758_v4 }
 0xaa1   :  { %9993 = vmatprep.subr.bf16.mxu0 %v14759_v24  ;;  %10025 = vmatprep.subr.bf16.mxu1 %v14760_v10  ;;  %v14767_v10 = vld [vmem:[#allocation59_spill] sm:$0xff] }
 0xaa4   :  { %9995 = vmatpush1.bf16.msra.mxu0 %v14761_v52  ;;  %10027 = vmatpush1.bf16.msra.mxu1 %v14762_v22  ;;  %v14768_v22 = vld [vmem:[#allocation54_spill] sm:$0xff] }
 0xaa5   :  { %10029 = vmatprep.subr.bf16.mxu0 %v14763_v25  ;;  %10061 = vmatprep.subr.bf16.mxu1 %v14764_v61 }
 0xb3a   :  { %v5151_v11 = vpop.f32.mrb[34].mxu0  ;;  %v5222_v48 = vpop.f32.mrb[34].mxu1 }
 0xb3b   :  { %v10886_v53 = vadd.f32 %v5151_v11, %v14765_v57  ;;  %v5153_v62 = vpop.f32.mrb[35].mxu0  ;;  %v5224_v29 = vpop.f32.mrb[35].mxu1  ;;  %v10902_v1 = vadd.f32 %v5222_v48, %v14768_v22  ;;  %v14770_v22 = vld [vmem:[#allocation52_spill] sm:$0xff] }
 0xb3c   :  { %v10887_v4 = vadd.f32 %v5153_v62, %v14766_v60  ;;  %v10903_v52 = vadd.f32 %v5224_v29, %v14767_v10 }
 0xb3d   :  { %v8111_v3 = vmul.f32 -1.442695, %v10886_v53 }
 0xb3e   :  { %v8112_v24 = vmul.f32 -1.442695, %v10887_v4  ;;  %v8113_v58 = vmul.f32 -1.442695, %v10903_v52 }
 0xb3f   :  { %11380 = vpow2.f32 %v8111_v3 }
 0xb40   :  { %11382 = vpow2.f32 %v8112_v24  ;;  %v14769_v24 = vld [vmem:[#allocation47_spill] sm:$0xff] }
 0xb41   :  { %11384 = vpow2.f32 %v8113_v58 }
 0xb42   :  { %11386 = vtanh.f32 %v10902_v1 }
 0xb49   :  { %v11381_v25 = vpop.eup %11380 }
 0xb4a   :  { %v11383_v37 = vpop.eup %11382  ;;  %v5384_v61 = vadd.f32 1.0, %v11381_v25 }
 0xb4b   :  { %v5390_v46 = vadd.f32 1.0, %v11383_v37  ;;  %v11385_v11 = vpop.eup %11384 }
 0xb4c   :  { %11388 = vrcp.f32 %v5384_v61  ;;  %v11387_v57 = vpop.eup %11386  ;;  %v5397_v3 = vadd.f32 1.0, %v11385_v11 }
 0xb4d   :  { %11390 = vrcp.f32 %v5390_v46 }
 0xb4e   :  { %11392 = vrcp.f32 %v5397_v3 }
 0xb56   :  { %v11389_v62 = vpop.eup %11388 }
 0xb57   :  { %v11391_v53 = vpop.eup %11390  ;;  %v5401_v4 = vmul.f32 %v11389_v62, %v11387_v57 }
 0xb58   :  { %v5400_v60 = vmul.f32 %v11391_v53, %v14769_v24  ;;  %v11393_v11 = vpop.eup %11392 }
 0xb5a   :  { %v13401_v29 = vadd.f32 %v5401_v4, %v5400_v60  ;;  %v5301_v52 = vpop.f32.mrb[60].mxu0  ;;  %v5372_v48 = vpop.f32.mrb[60].mxu1 }
 0xb5b   :  { %v10928_v25 = vadd.f32 %v5301_v52, %v14770_v22  ;;  %v5303_v58 = vpop.f32.mrb[61].mxu0  ;;  %v5374_v1 = vpop.f32.mrb[61].mxu1  ;;  %v10944_v53 = vadd.f32 %v5372_v48, %v13314_v44  ;;  %v14772_v48 = vld [vmem:[#allocation43_spill] sm:$0xff] }
 0xb5c   :  { %v10929_v37 = vadd.f32 %v5303_v58, %v13300_v43  ;;  %11394 = vtanh.f32 %v13401_v29  ;;  %v10945_v57 = vadd.f32 %v5374_v1, %v13309_v20  ;;  %v14773_v58 = vld [vmem:[#allocation44_spill] sm:$0xff]  ;;  %v14774_v1 = vld [vmem:[#allocation45_spill] sm:$0xff] }
 0xb5d   :  { %v8114_v46 = vmul.f32 -1.442695, %v10928_v25 }
 0xb5e   :  { %v8115_v61 = vmul.f32 -1.442695, %v10929_v37  ;;  %v8116_v62 = vmul.f32 -1.442695, %v10945_v57 }
 0xb5f   :  { %11396 = vpow2.f32 %v8114_v46 }
 0xb60   :  { %11398 = vpow2.f32 %v8115_v61 }
 0xb61   :  { %11400 = vpow2.f32 %v8116_v62 }
 0xb62   :  { %11402 = vtanh.f32 %v10944_v53 }
 0xb66   :  { %v11395_v60 = vpop.eup %11394 }
 0xb67   :  { %v13408_v4 = vmul.f32 %v11395_v60, %v11393_v11 }
 0xb69   :  { %14771 = vst [vmem:[#allocation42_spill] sm:$0xff] %v13408_v4  ;;  %v11397_v3 = vpop.eup %11396  ;;  %5502 = vmatmul.mubr.f32.vlgmr.msra.gmra.mrb[36].mxu0 %v13408_v4  ;;  %5573 = vmatmul.mubr.f32.vlgmr.msra.gmra.mrb[36].mxu1 %v13408_v4  ;;  %v14788_v4 = vld [vmem:[#allocation32_spill] sm:$0xff] }
 0xb6a   :  { %v11399_v24 = vpop.eup %11398  ;;  %v5408_v52 = vadd.f32 1.0, %v11397_v3  ;;  %10031 = vmatpush1.bf16.msra.mxu0 %v13137_v7  ;;  %10063 = vmatpush1.bf16.msra.mxu1 %v13139_v49 }
 0xb6b   :  { %v5414_v25 = vadd.f32 1.0, %v11399_v24  ;;  %10033 = vmatprep.subr.bf16.mxu0 %v13143_v47  ;;  %10065 = vmatprep.subr.bf16.mxu1 %v13145_v31  ;;  %v11401_v37 = vpop.eup %11400 }
 0xb6c   :  { %11404 = vrcp.f32 %v5408_v52  ;;  %5651 = vmatprep.mubr.f32.mxu0 %v14503_v21  ;;  %5722 = vmatprep.mubr.f32.mxu1 %v14503_v21  ;;  %v11403_v46 = vpop.eup %11402  ;;  %v5421_v60 = vadd.f32 1.0, %v11401_v37  ;;  %v14776_v52 = vld [vmem:[#allocation61_spill] sm:$0xff]  ;;  %v14778_v37 = vld [vmem:[#allocation22_spill] sm:$0xff] }
 0xb6d   :  { %11406 = vrcp.f32 %v5414_v25  ;;  %v14777_v25 = vld [vmem:[#allocation21_spill] sm:$0xff] }
 0xb6e   :  { %10035 = vmatpush1.bf16.msra.mxu0 %v13151_v28  ;;  %10067 = vmatpush1.bf16.msra.mxu1 %v13153_v59  ;;  %11408 = vrcp.f32 %v5421_v60  ;;  %v14783_v60 = vld [vmem:[#allocation27_spill] sm:$0xff] }
 0xb6f   :  { %10037 = vmatprep.subr.bf16.mxu0 %v13157_v15  ;;  %10069 = vmatprep.subr.bf16.mxu1 %v14744_v56 }
 0xb72   :  { %10039 = vmatpush1.bf16.msra.mxu0 %v14745_v16  ;;  %10071 = vmatpush1.bf16.msra.mxu1 %v14772_v48 }
 0xb73   :  { %10041 = vmatprep.subr.bf16.mxu0 %v14773_v58  ;;  %10073 = vmatprep.subr.bf16.mxu1 %v14774_v1 }
 0xb76   :  { %v11405_v61 = vpop.eup %11404  ;;  %10043 = vmatpush1.bf16.msra.mxu0 %v14749_v63  ;;  %10075 = vmatpush1.bf16.msra.mxu1 %v14750_v30 }
 0xb77   :  { %v11407_v57 = vpop.eup %11406  ;;  %v5425_v11 = vmul.f32 %v11405_v61, %v11403_v46  ;;  %10045 = vmatprep.subr.bf16.mxu0 %v14751_v27  ;;  %10077 = vmatprep.subr.bf16.mxu1 %v14752_v54  ;;  %v14779_v46 = vld [vmem:[#allocation23_spill] sm:$0xff]  ;;  %v14780_v61 = vld [vmem:[#allocation24_spill] sm:$0xff] }
 0xb78   :  { %v5424_v62 = vmul.f32 %v11407_v57, %v13339_v36  ;;  %v11409_v36 = vpop.eup %11408  ;;  %v14781_v57 = vld [vmem:[#allocation25_spill] sm:$0xff] }
 0xb7a   :  { %v13431_v53 = vadd.f32 %v5425_v11, %v5424_v62  ;;  %10047 = vmatpush1.bf16.msra.mxu0 %v14753_v42  ;;  %10079 = vmatpush1.bf16.msra.mxu1 %v14754_v55  ;;  %v14782_v11 = vld [vmem:[#allocation26_spill] sm:$0xff]  ;;  %v14784_v62 = vld [vmem:[#allocation28_spill] sm:$0xff] }
 0xb7b   :  { %10049 = vmatprep.subr.bf16.mxu0 %v13195_v51  ;;  %10081 = vmatprep.subr.bf16.mxu1 %v13197_v40 }
 0xb7c   :  { %11410 = vtanh.f32 %v13431_v53 }
 0xb7e   :  { %10051 = vmatpush1.bf16.msra.mxu0 %v13201_v6  ;;  %10083 = vmatpush1.bf16.msra.mxu1 %v13203_v9 }
 0xb7f   :  { %10053 = vmatprep.subr.bf16.mxu0 %v13207_v13  ;;  %10085 = vmatprep.subr.bf16.mxu1 %v13209_v32 }
 0xb82   :  { %10055 = vmatpush1.bf16.msra.mxu0 %v13213_v17  ;;  %10087 = vmatpush1.bf16.msra.mxu1 %v13215_v19 }
 0xb83   :  { %10057 = vmatprep.subr.bf16.mxu0 %v13219_v12  ;;  %10089 = vmatprep.subr.bf16.mxu1 %v13221_v26 }
 0xb86   :  { %v11411_v3 = vpop.eup %11410  ;;  %10059 = vmatpush1.bf16.msra.mxu0 %v13225_v34  ;;  %10091 = vmatpush1.bf16.msra.mxu1 %v13227_v38 }
 0xb87   :  { %v13448_v24 = vmul.f32 %v11411_v3, %v11409_v36  ;;  %10093 = vmatprep.subr.bf16.mxu0 %v13005_v23  ;;  %10125 = vmatprep.subr.bf16.mxu1 %v13007_v8  ;;  %v14785_v36 = vld [vmem:[#allocation29_spill] sm:$0xff]  ;;  %v14786_v3 = vld [vmem:[#allocation30_spill] sm:$0xff] }
 0xb89   :  { %14775 = vst [vmem:[#allocation46_spill] sm:$0xff] %v13448_v24  ;;  %5652 = vmatmul.mubr.f32.vlgmr.msra.gmra.mrb[58].mxu0 %v13448_v24  ;;  %5723 = vmatmul.mubr.f32.vlgmr.msra.gmra.mrb[58].mxu1 %v13448_v24  ;;  %v14787_v24 = vld [vmem:[#allocation31_spill] sm:$0xff] }
 0xb8a   :  { %10095 = vmatpush1.bf16.msra.mxu0 %v13011_v2  ;;  %10127 = vmatpush1.bf16.msra.mxu1 %v13013_v39 }
 0xb8b   :  { %10097 = vmatprep.subr.bf16.mxu0 %v13015_v0  ;;  %10129 = vmatprep.subr.bf16.mxu1 %v13017_v5 }
 0xb8c   :  { %5853 = vmatprep.mubr.f32.mxu0 %v14503_v21  ;;  %5924 = vmatprep.mubr.f32.mxu1 %v14503_v21 }
 0xb8e   :  { %10099 = vmatpush1.bf16.msra.mxu0 %v13025_v18  ;;  %10131 = vmatpush1.bf16.msra.mxu1 %v13027_v45 }
 0xb8f   :  { %10101 = vmatprep.subr.bf16.mxu0 %v13031_v14  ;;  %10133 = vmatprep.subr.bf16.mxu1 %v13033_v35 }
 0xb92   :  { %10103 = vmatpush1.bf16.msra.mxu0 %v13041_v50  ;;  %10135 = vmatpush1.bf16.msra.mxu1 %v13043_v41 }
 0xb93   :  { %10105 = vmatprep.subr.bf16.mxu0 %v13047_v33  ;;  %10137 = vmatprep.subr.bf16.mxu1 %v14776_v52  ;;  %v14798_v33 = vld [vmem:[#allocation56_spill] sm:$0xff] }
 0xb96   :  { %10107 = vmatpush1.bf16.msra.mxu0 %v14777_v25  ;;  %10139 = vmatpush1.bf16.msra.mxu1 %v14778_v37  ;;  %v14789_v37 = vld [vmem:[#allocation33_spill] sm:$0xff]  ;;  %v14797_v25 = vld [vmem:[#allocation55_spill] sm:$0xff] }
 0xb97   :  { %10109 = vmatprep.subr.bf16.mxu0 %v14779_v46  ;;  %10141 = vmatprep.subr.bf16.mxu1 %v14780_v61  ;;  %v14790_v46 = vld [vmem:[#allocation34_spill] sm:$0xff]  ;;  %v14791_v61 = vld [vmem:[#allocation35_spill] sm:$0xff] }
 0xb9a   :  { %10111 = vmatpush1.bf16.msra.mxu0 %v14781_v57  ;;  %10143 = vmatpush1.bf16.msra.mxu1 %v14782_v11  ;;  %v14792_v57 = vld [vmem:[#allocation36_spill] sm:$0xff]  ;;  %v14793_v11 = vld [vmem:[#allocation37_spill] sm:$0xff] }
 0xb9b   :  { %10113 = vmatprep.subr.bf16.mxu0 %v14783_v60  ;;  %10145 = vmatprep.subr.bf16.mxu1 %v14784_v62  ;;  %v14794_v60 = vld [vmem:[#allocation38_spill] sm:$0xff]  ;;  %v14795_v62 = vld [vmem:[#allocation39_spill] sm:$0xff] }
 0xb9e   :  { %10115 = vmatpush1.bf16.msra.mxu0 %v14785_v36  ;;  %10147 = vmatpush1.bf16.msra.mxu1 %v14786_v3  ;;  %v14796_v36 = vld [vmem:[#allocation40_spill] sm:$0xff] }
 0xb9f   :  { %10117 = vmatprep.subr.bf16.mxu0 %v14787_v24  ;;  %10149 = vmatprep.subr.bf16.mxu1 %v14788_v4 }
 0xba2   :  { %10119 = vmatpush1.bf16.msra.mxu0 %v14789_v37  ;;  %10151 = vmatpush1.bf16.msra.mxu1 %v14790_v46 }
 0xba3   :  { %10121 = vmatprep.subr.bf16.mxu0 %v14791_v61  ;;  %10153 = vmatprep.subr.bf16.mxu1 %v14792_v57 }
 0xba6   :  { %10123 = vmatpush1.bf16.msra.mxu0 %v14793_v11  ;;  %10155 = vmatpush1.bf16.msra.mxu1 %v14794_v60  ;;  %v14799_v60 = vld [vmem:[#allocation54_spill] sm:$0xff] }
 0xba7   :  { %10157 = vmatprep.subr.bf16.mxu0 %v14795_v62  ;;  %10189 = vmatprep.subr.bf16.mxu1 %v14796_v36 }
 0xc3c   :  { %v5503_v3 = vpop.f32.mrb[36].mxu0  ;;  %v5574_v24 = vpop.f32.mrb[36].mxu1 }
 0xc3d   :  { %v10888_v4 = vadd.f32 %v5503_v3, %v14797_v25  ;;  %v5505_v52 = vpop.f32.mrb[37].mxu0  ;;  %v5576_v37 = vpop.f32.mrb[37].mxu1  ;;  %v10904_v50 = vadd.f32 %v5574_v24, %v14799_v60 }
 0xc3e   :  { %v10889_v46 = vadd.f32 %v5505_v52, %v14798_v33  ;;  %v10905_v11 = vadd.f32 %v5576_v37, %v14767_v10 }
 0xc3f   :  { %v8117_v41 = vmul.f32 -1.442695, %v10888_v4 }
 0xc40   :  { %v8118_v61 = vmul.f32 -1.442695, %v10889_v46  ;;  %v8119_v57 = vmul.f32 -1.442695, %v10905_v11 }
 0xc41   :  { %11412 = vpow2.f32 %v8117_v41 }
 0xc42   :  { %11414 = vpow2.f32 %v8118_v61 }
 0xc43   :  { %11416 = vpow2.f32 %v8119_v57 }
 0xc44   :  { %11418 = vtanh.f32 %v10904_v50 }
 0xc4b   :  { %v11413_v62 = vpop.eup %11412 }
 0xc4c   :  { %v11415_v35 = vpop.eup %11414  ;;  %v5736_v36 = vadd.f32 1.0, %v11413_v62 }
 0xc4d   :  { %v5742_v14 = vadd.f32 1.0, %v11415_v35  ;;  %v11417_v3 = vpop.eup %11416 }
 0xc4e   :  { %11420 = vrcp.f32 %v5736_v36  ;;  %v11419_v25 = vpop.eup %11418  ;;  %v5749_v41 = vadd.f32 1.0, %v11417_v3 }
 0xc4f   :  { %11422 = vrcp.f32 %v5742_v14 }
 0xc50   :  { %11424 = vrcp.f32 %v5749_v41 }
 0xc58   :  { %v11421_v52 = vpop.eup %11420 }
 0xc59   :  { %v11423_v4 = vpop.eup %11422  ;;  %v5753_v46 = vmul.f32 %v11421_v52, %v11419_v25 }
 0xc5a   :  { %v5752_v61 = vmul.f32 %v11423_v4, %v13401_v29  ;;  %v11425_v29 = vpop.eup %11424 }
 0xc5c   :  { %v13493_v37 = vadd.f32 %v5753_v46, %v5752_v61  ;;  %v5653_v11 = vpop.f32.mrb[58].mxu0  ;;  %v5724_v24 = vpop.f32.mrb[58].mxu1 }
 0xc5d   :  { %v10926_v62 = vadd.f32 %v5653_v11, %v14770_v22  ;;  %v5655_v57 = vpop.f32.mrb[59].mxu0  ;;  %v5726_v50 = vpop.f32.mrb[59].mxu1  ;;  %v10942_v4 = vadd.f32 %v5724_v24, %v13314_v44 }
 0xc5e   :  { %v10927_v35 = vadd.f32 %v5655_v57, %v13300_v43  ;;  %11426 = vtanh.f32 %v13493_v37  ;;  %v10943_v25 = vadd.f32 %v5726_v50, %v13309_v20 }
 0xc5f   :  { %v8120_v14 = vmul.f32 -1.442695, %v10926_v62 }
 0xc60   :  { %v8121_v36 = vmul.f32 -1.442695, %v10927_v35  ;;  %v8122_v52 = vmul.f32 -1.442695, %v10943_v25 }
 0xc61   :  { %11428 = vpow2.f32 %v8120_v14 }
 0xc62   :  { %11430 = vpow2.f32 %v8121_v36 }
 0xc63   :  { %11432 = vpow2.f32 %v8122_v52 }
 0xc64   :  { %11434 = vtanh.f32 %v10942_v4  ;;  %v14802_v4 = vld [vmem:[#allocation63_spill] sm:$0xff] }
 0xc68   :  { %v11427_v3 = vpop.eup %11426 }
 0xc69   :  { %v13500_v46 = vmul.f32 %v11427_v3, %v11425_v29 }
 0xc6b   :  { %14800 = vst [vmem:[#allocation58_spill] sm:$0xff] %v13500_v46  ;;  %v11429_v41 = vpop.eup %11428  ;;  %5854 = vmatmul.mubr.f32.vlgmr.msra.gmra.mrb[38].mxu0 %v13500_v46  ;;  %5925 = vmatmul.mubr.f32.vlgmr.msra.gmra.mrb[38].mxu1 %v13500_v46  ;;  %v14817_v46 = vld [vmem:[#allocation30_spill] sm:$0xff] }
 0xc6c   :  { %v11431_v61 = vpop.eup %11430  ;;  %v5760_v11 = vadd.f32 1.0, %v11429_v41  ;;  %10159 = vmatpush1.bf16.msra.mxu0 %v13137_v7  ;;  %10191 = vmatpush1.bf16.msra.mxu1 %v13139_v49  ;;  %v14803_v41 = vld [vmem:[#allocation48_spill] sm:$0xff] }
 0xc6d   :  { %v5766_v62 = vadd.f32 1.0, %v11431_v61  ;;  %10161 = vmatprep.subr.bf16.mxu0 %v13143_v47  ;;  %10193 = vmatprep.subr.bf16.mxu1 %v13145_v31  ;;  %v11433_v24 = vpop.eup %11432  ;;  %v14804_v61 = vld [vmem:[#allocation49_spill] sm:$0xff] }
 0xc6e   :  { %11436 = vrcp.f32 %v5760_v11  ;;  %6003 = vmatprep.mubr.f32.mxu0 %v14503_v21  ;;  %6074 = vmatprep.mubr.f32.mxu1 %v14503_v21  ;;  %v11435_v57 = vpop.eup %11434  ;;  %v5773_v36 = vadd.f32 1.0, %v11433_v24  ;;  %v14805_v11 = vld [vmem:[#allocation50_spill] sm:$0xff]  ;;  %v14807_v24 = vld [vmem:[#allocation61_spill] sm:$0xff] }
 0xc6f   :  { %11438 = vrcp.f32 %v5766_v62  ;;  %v14806_v62 = vld [vmem:[#allocation60_spill] sm:$0xff] }
 0xc70   :  { %10163 = vmatpush1.bf16.msra.mxu0 %v13151_v28  ;;  %10195 = vmatpush1.bf16.msra.mxu1 %v13153_v59  ;;  %11440 = vrcp.f32 %v5773_v36  ;;  %v14812_v36 = vld [vmem:[#allocation25_spill] sm:$0xff] }
 0xc71   :  { %10165 = vmatprep.subr.bf16.mxu0 %v13157_v15  ;;  %10197 = vmatprep.subr.bf16.mxu1 %v14744_v56 }
 0xc74   :  { %10167 = vmatpush1.bf16.msra.mxu0 %v14745_v16  ;;  %10199 = vmatpush1.bf16.msra.mxu1 %v14772_v48 }
 0xc75   :  { %10169 = vmatprep.subr.bf16.mxu0 %v14773_v58  ;;  %10201 = vmatprep.subr.bf16.mxu1 %v14774_v1 }
 0xc78   :  { %v11437_v50 = vpop.eup %11436  ;;  %10171 = vmatpush1.bf16.msra.mxu0 %v14749_v63  ;;  %10203 = vmatpush1.bf16.msra.mxu1 %v14750_v30 }
 0xc79   :  { %v11439_v35 = vpop.eup %11438  ;;  %v5777_v14 = vmul.f32 %v11437_v50, %v11435_v57  ;;  %10173 = vmatprep.subr.bf16.mxu0 %v14751_v27  ;;  %10205 = vmatprep.subr.bf16.mxu1 %v14752_v54  ;;  %v14808_v57 = vld [vmem:[#allocation21_spill] sm:$0xff]  ;;  %v14809_v50 = vld [vmem:[#allocation22_spill] sm:$0xff] }
 0xc7a   :  { %v5776_v25 = vmul.f32 %v11439_v35, %v13431_v53  ;;  %v11441_v53 = vpop.eup %11440  ;;  %v14810_v35 = vld [vmem:[#allocation23_spill] sm:$0xff] }
 0xc7c   :  { %v13523_v29 = vadd.f32 %v5777_v14, %v5776_v25  ;;  %10175 = vmatpush1.bf16.msra.mxu0 %v14753_v42  ;;  %10207 = vmatpush1.bf16.msra.mxu1 %v14754_v55  ;;  %v14811_v14 = vld [vmem:[#allocation24_spill] sm:$0xff]  ;;  %v14813_v25 = vld [vmem:[#allocation26_spill] sm:$0xff] }
 0xc7d   :  { %10177 = vmatprep.subr.bf16.mxu0 %v13195_v51  ;;  %10209 = vmatprep.subr.bf16.mxu1 %v13197_v40 }
 0xc7e   :  { %11442 = vtanh.f32 %v13523_v29 }
 0xc80   :  { %10179 = vmatpush1.bf16.msra.mxu0 %v13201_v6  ;;  %10211 = vmatpush1.bf16.msra.mxu1 %v13203_v9 }
 0xc81   :  { %10181 = vmatprep.subr.bf16.mxu0 %v13207_v13  ;;  %10213 = vmatprep.subr.bf16.mxu1 %v13209_v32 }
 0xc84   :  { %10183 = vmatpush1.bf16.msra.mxu0 %v13213_v17  ;;  %10215 = vmatpush1.bf16.msra.mxu1 %v13215_v19 }
 0xc85   :  { %10185 = vmatprep.subr.bf16.mxu0 %v13219_v12  ;;  %10217 = vmatprep.subr.bf16.mxu1 %v13221_v26 }
 0xc88   :  { %v11443_v3 = vpop.eup %11442  ;;  %10187 = vmatpush1.bf16.msra.mxu0 %v13225_v34  ;;  %10219 = vmatpush1.bf16.msra.mxu1 %v13227_v38 }
 0xc89   :  { %v13540_v52 = vmul.f32 %v11443_v3, %v11441_v53  ;;  %10221 = vmatprep.subr.bf16.mxu0 %v13005_v23  ;;  %10253 = vmatprep.subr.bf16.mxu1 %v13007_v8  ;;  %v14814_v53 = vld [vmem:[#allocation27_spill] sm:$0xff]  ;;  %v14815_v3 = vld [vmem:[#allocation28_spill] sm:$0xff] }
 0xc8b   :  { %14801 = vst [vmem:[#allocation64_spill] sm:$0xff] %v13540_v52  ;;  %6004 = vmatmul.mubr.f32.vlgmr.msra.gmra.mrb[56].mxu0 %v13540_v52  ;;  %6075 = vmatmul.mubr.f32.vlgmr.msra.gmra.mrb[56].mxu1 %v13540_v52  ;;  %v14816_v52 = vld [vmem:[#allocation29_spill] sm:$0xff] }
 0xc8c   :  { %10223 = vmatpush1.bf16.msra.mxu0 %v13011_v2  ;;  %10255 = vmatpush1.bf16.msra.mxu1 %v13013_v39 }
 0xc8d   :  { %10225 = vmatprep.subr.bf16.mxu0 %v13015_v0  ;;  %10257 = vmatprep.subr.bf16.mxu1 %v13017_v5 }
 0xc8e   :  { %6205 = vmatprep.mubr.f32.mxu0 %v14503_v21  ;;  %6276 = vmatprep.mubr.f32.mxu1 %v14503_v21 }
 0xc90   :  { %10227 = vmatpush1.bf16.msra.mxu0 %v13025_v18  ;;  %10259 = vmatpush1.bf16.msra.mxu1 %v13027_v45 }
 0xc91   :  { %10229 = vmatprep.subr.bf16.mxu0 %v14802_v4  ;;  %10261 = vmatprep.subr.bf16.mxu1 %v14803_v41 }
 0xc94   :  { %10231 = vmatpush1.bf16.msra.mxu0 %v14804_v61  ;;  %10263 = vmatpush1.bf16.msra.mxu1 %v14805_v11 }
 0xc95   :  { %10233 = vmatprep.subr.bf16.mxu0 %v14806_v62  ;;  %10265 = vmatprep.subr.bf16.mxu1 %v14807_v24  ;;  %v14818_v24 = vld [vmem:[#allocation31_spill] sm:$0xff] }
 0xc96   :  { %v14828_v62 = vld [vmem:[#allocation55_spill] sm:$0xff] }
 0xc98   :  { %10235 = vmatpush1.bf16.msra.mxu0 %v14808_v57  ;;  %10267 = vmatpush1.bf16.msra.mxu1 %v14809_v50  ;;  %v14819_v57 = vld [vmem:[#allocation32_spill] sm:$0xff]  ;;  %v14820_v50 = vld [vmem:[#allocation33_spill] sm:$0xff] }
 0xc99   :  { %10237 = vmatprep.subr.bf16.mxu0 %v14810_v35  ;;  %10269 = vmatprep.subr.bf16.mxu1 %v14811_v14  ;;  %v14821_v35 = vld [vmem:[#allocation34_spill] sm:$0xff]  ;;  %v14822_v14 = vld [vmem:[#allocation35_spill] sm:$0xff] }
 0xc9c   :  { %10239 = vmatpush1.bf16.msra.mxu0 %v14812_v36  ;;  %10271 = vmatpush1.bf16.msra.mxu1 %v14813_v25  ;;  %v14823_v36 = vld [vmem:[#allocation36_spill] sm:$0xff]  ;;  %v14824_v25 = vld [vmem:[#allocation37_spill] sm:$0xff] }
 0xc9d   :  { %10241 = vmatprep.subr.bf16.mxu0 %v14814_v53  ;;  %10273 = vmatprep.subr.bf16.mxu1 %v14815_v3  ;;  %v14825_v53 = vld [vmem:[#allocation38_spill] sm:$0xff]  ;;  %v14826_v3 = vld [vmem:[#allocation39_spill] sm:$0xff] }
 0xca0   :  { %10243 = vmatpush1.bf16.msra.mxu0 %v14816_v52  ;;  %10275 = vmatpush1.bf16.msra.mxu1 %v14817_v46  ;;  %v14827_v52 = vld [vmem:[#allocation40_spill] sm:$0xff] }
 0xca1   :  { %10245 = vmatprep.subr.bf16.mxu0 %v14818_v24  ;;  %10277 = vmatprep.subr.bf16.mxu1 %v14819_v57 }
 0xca4   :  { %10247 = vmatpush1.bf16.msra.mxu0 %v14820_v50  ;;  %10279 = vmatpush1.bf16.msra.mxu1 %v14821_v35 }
 0xca5   :  { %10249 = vmatprep.subr.bf16.mxu0 %v14822_v14  ;;  %10281 = vmatprep.subr.bf16.mxu1 %v14823_v36 }
 0xca8   :  { %10251 = vmatpush1.bf16.msra.mxu0 %v14824_v25  ;;  %10283 = vmatpush1.bf16.msra.mxu1 %v14825_v53 }
 0xca9   :  { %10285 = vmatprep.subr.bf16.mxu0 %v14826_v3  ;;  %10317 = vmatprep.subr.bf16.mxu1 %v14827_v52 }
 0xd3e   :  { %v5855_v46 = vpop.f32.mrb[38].mxu0  ;;  %v5926_v24 = vpop.f32.mrb[38].mxu1 }
 0xd3f   :  { %v10890_v57 = vadd.f32 %v5855_v46, %v14828_v62  ;;  %v5857_v11 = vpop.f32.mrb[39].mxu0  ;;  %v5928_v50 = vpop.f32.mrb[39].mxu1  ;;  %v10906_v53 = vadd.f32 %v5926_v24, %v14799_v60 }
 0xd40   :  { %v10891_v35 = vadd.f32 %v5857_v11, %v14798_v33  ;;  %v10907_v25 = vadd.f32 %v5928_v50, %v14767_v10 }
 0xd41   :  { %v8123_v61 = vmul.f32 -1.442695, %v10890_v57 }
 0xd42   :  { %v8124_v14 = vmul.f32 -1.442695, %v10891_v35  ;;  %v8125_v36 = vmul.f32 -1.442695, %v10907_v25 }
 0xd43   :  { %11444 = vpow2.f32 %v8123_v61 }
 0xd44   :  { %11446 = vpow2.f32 %v8124_v14 }
 0xd45   :  { %11448 = vpow2.f32 %v8125_v36 }
 0xd46   :  { %11450 = vtanh.f32 %v10906_v53 }
 0xd4d   :  { %v11445_v3 = vpop.eup %11444 }
 0xd4e   :  { %v11447_v41 = vpop.eup %11446  ;;  %v6088_v52 = vadd.f32 1.0, %v11445_v3 }
 0xd4f   :  { %v6094_v4 = vadd.f32 1.0, %v11447_v41  ;;  %v11449_v46 = vpop.eup %11448 }
 0xd50   :  { %11452 = vrcp.f32 %v6088_v52  ;;  %v11451_v62 = vpop.eup %11450  ;;  %v6101_v61 = vadd.f32 1.0, %v11449_v46 }
 0xd51   :  { %11454 = vrcp.f32 %v6094_v4 }
 0xd52   :  { %11456 = vrcp.f32 %v6101_v61 }
 0xd5a   :  { %v11453_v11 = vpop.eup %11452 }
 0xd5b   :  { %v11455_v57 = vpop.eup %11454  ;;  %v6105_v35 = vmul.f32 %v11453_v11, %v11451_v62 }
 0xd5c   :  { %v6104_v14 = vmul.f32 %v11455_v57, %v13493_v37  ;;  %v11457_v37 = vpop.eup %11456 }
 0xd5e   :  { %v13585_v50 = vadd.f32 %v6105_v35, %v6104_v14  ;;  %v6005_v25 = vpop.f32.mrb[56].mxu0  ;;  %v6076_v24 = vpop.f32.mrb[56].mxu1 }
 0xd5f   :  { %v10924_v3 = vadd.f32 %v6005_v25, %v14770_v22  ;;  %v6007_v36 = vpop.f32.mrb[57].mxu0  ;;  %v6078_v53 = vpop.f32.mrb[57].mxu1  ;;  %v10940_v57 = vadd.f32 %v6076_v24, %v13314_v44 }
 0xd60   :  { %v10925_v52 = vadd.f32 %v6007_v36, %v13300_v43  ;;  %11458 = vtanh.f32 %v13585_v50  ;;  %v10941_v62 = vadd.f32 %v6078_v53, %v13309_v20 }
 0xd61   :  { %v8126_v4 = vmul.f32 -1.442695, %v10924_v3 }
 0xd62   :  { %v8127_v41 = vmul.f32 -1.442695, %v10925_v52  ;;  %v8128_v11 = vmul.f32 -1.442695, %v10941_v62 }
 0xd63   :  { %11460 = vpow2.f32 %v8126_v4 }
 0xd64   :  { %11462 = vpow2.f32 %v8127_v41 }
 0xd65   :  { %11464 = vpow2.f32 %v8128_v11 }
 0xd66   :  { %11466 = vtanh.f32 %v10940_v57  ;;  %v14831_v57 = vld [vmem:[#allocation63_spill] sm:$0xff] }
 0xd6a   :  { %v11459_v46 = vpop.eup %11458 }
 0xd6b   :  { %v13592_v35 = vmul.f32 %v11459_v46, %v11457_v37 }
 0xd6d   :  { %14829 = vst [vmem:[#allocation51_spill] sm:$0xff] %v13592_v35  ;;  %v11461_v61 = vpop.eup %11460  ;;  %6206 = vmatmul.mubr.f32.vlgmr.msra.gmra.mrb[40].mxu0 %v13592_v35  ;;  %6277 = vmatmul.mubr.f32.vlgmr.msra.gmra.mrb[40].mxu1 %v13592_v35  ;;  %v14846_v35 = vld [vmem:[#allocation30_spill] sm:$0xff] }
 0xd6e   :  { %v11463_v14 = vpop.eup %11462  ;;  %v6112_v25 = vadd.f32 1.0, %v11461_v61  ;;  %10287 = vmatpush1.bf16.msra.mxu0 %v13137_v7  ;;  %10319 = vmatpush1.bf16.msra.mxu1 %v13139_v49  ;;  %v14832_v61 = vld [vmem:[#allocation48_spill] sm:$0xff] }
 0xd6f   :  { %v6118_v3 = vadd.f32 1.0, %v11463_v14  ;;  %10289 = vmatprep.subr.bf16.mxu0 %v13143_v47  ;;  %10321 = vmatprep.subr.bf16.mxu1 %v13145_v31  ;;  %v11465_v24 = vpop.eup %11464  ;;  %v14833_v14 = vld [vmem:[#allocation49_spill] sm:$0xff] }
 0xd70   :  { %11468 = vrcp.f32 %v6112_v25  ;;  %6355 = vmatprep.mubr.f32.mxu0 %v14503_v21  ;;  %6426 = vmatprep.mubr.f32.mxu1 %v14503_v21  ;;  %v11467_v36 = vpop.eup %11466  ;;  %v6125_v41 = vadd.f32 1.0, %v11465_v24  ;;  %v14834_v25 = vld [vmem:[#allocation50_spill] sm:$0xff]  ;;  %v14836_v24 = vld [vmem:[#allocation61_spill] sm:$0xff] }
 0xd71   :  { %11470 = vrcp.f32 %v6118_v3  ;;  %v14835_v3 = vld [vmem:[#allocation60_spill] sm:$0xff] }
 0xd72   :  { %10291 = vmatpush1.bf16.msra.mxu0 %v13151_v28  ;;  %10323 = vmatpush1.bf16.msra.mxu1 %v13153_v59  ;;  %11472 = vrcp.f32 %v6125_v41  ;;  %v14841_v41 = vld [vmem:[#allocation25_spill] sm:$0xff] }
 0xd73   :  { %10293 = vmatprep.subr.bf16.mxu0 %v13157_v15  ;;  %10325 = vmatprep.subr.bf16.mxu1 %v14744_v56 }
 0xd76   :  { %10295 = vmatpush1.bf16.msra.mxu0 %v14745_v16  ;;  %10327 = vmatpush1.bf16.msra.mxu1 %v14772_v48 }
 0xd77   :  { %10297 = vmatprep.subr.bf16.mxu0 %v14773_v58  ;;  %10329 = vmatprep.subr.bf16.mxu1 %v14774_v1 }
 0xd7a   :  { %v11469_v53 = vpop.eup %11468  ;;  %10299 = vmatpush1.bf16.msra.mxu0 %v14749_v63  ;;  %10331 = vmatpush1.bf16.msra.mxu1 %v14750_v30 }
 0xd7b   :  { %v11471_v52 = vpop.eup %11470  ;;  %v6129_v4 = vmul.f32 %v11469_v53, %v11467_v36  ;;  %10301 = vmatprep.subr.bf16.mxu0 %v14751_v27  ;;  %10333 = vmatprep.subr.bf16.mxu1 %v14752_v54  ;;  %v14837_v36 = vld [vmem:[#allocation21_spill] sm:$0xff]  ;;  %v14838_v53 = vld [vmem:[#allocation22_spill] sm:$0xff] }
 0xd7c   :  { %v6128_v62 = vmul.f32 %v11471_v52, %v13523_v29  ;;  %v11473_v29 = vpop.eup %11472  ;;  %v14839_v52 = vld [vmem:[#allocation23_spill] sm:$0xff] }
 0xd7e   :  { %v13615_v37 = vadd.f32 %v6129_v4, %v6128_v62  ;;  %10303 = vmatpush1.bf16.msra.mxu0 %v14753_v42  ;;  %10335 = vmatpush1.bf16.msra.mxu1 %v14754_v55  ;;  %v14840_v4 = vld [vmem:[#allocation24_spill] sm:$0xff]  ;;  %v14842_v62 = vld [vmem:[#allocation26_spill] sm:$0xff] }
 0xd7f   :  { %10305 = vmatprep.subr.bf16.mxu0 %v13195_v51  ;;  %10337 = vmatprep.subr.bf16.mxu1 %v13197_v40 }
 0xd80   :  { %11474 = vtanh.f32 %v13615_v37 }
 0xd82   :  { %10307 = vmatpush1.bf16.msra.mxu0 %v13201_v6  ;;  %10339 = vmatpush1.bf16.msra.mxu1 %v13203_v9 }
 0xd83   :  { %10309 = vmatprep.subr.bf16.mxu0 %v13207_v13  ;;  %10341 = vmatprep.subr.bf16.mxu1 %v13209_v32 }
 0xd86   :  { %10311 = vmatpush1.bf16.msra.mxu0 %v13213_v17  ;;  %10343 = vmatpush1.bf16.msra.mxu1 %v13215_v19 }
 0xd87   :  { %10313 = vmatprep.subr.bf16.mxu0 %v13219_v12  ;;  %10345 = vmatprep.subr.bf16.mxu1 %v13221_v26 }
 0xd8a   :  { %v11475_v46 = vpop.eup %11474  ;;  %10315 = vmatpush1.bf16.msra.mxu0 %v13225_v34  ;;  %10347 = vmatpush1.bf16.msra.mxu1 %v13227_v38 }
 0xd8b   :  { %v13632_v11 = vmul.f32 %v11475_v46, %v11473_v29  ;;  %10349 = vmatprep.subr.bf16.mxu0 %v13005_v23  ;;  %10381 = vmatprep.subr.bf16.mxu1 %v13007_v8  ;;  %v14843_v29 = vld [vmem:[#allocation27_spill] sm:$0xff]  ;;  %v14844_v46 = vld [vmem:[#allocation28_spill] sm:$0xff] }
 0xd8d   :  { %14830 = vst [vmem:[#allocation53_spill] sm:$0xff] %v13632_v11  ;;  %6356 = vmatmul.mubr.f32.vlgmr.msra.gmra.mrb[54].mxu0 %v13632_v11  ;;  %6427 = vmatmul.mubr.f32.vlgmr.msra.gmra.mrb[54].mxu1 %v13632_v11  ;;  %v14845_v11 = vld [vmem:[#allocation29_spill] sm:$0xff] }
 0xd8e   :  { %10351 = vmatpush1.bf16.msra.mxu0 %v13011_v2  ;;  %10383 = vmatpush1.bf16.msra.mxu1 %v13013_v39 }
 0xd8f   :  { %10353 = vmatprep.subr.bf16.mxu0 %v13015_v0  ;;  %10385 = vmatprep.subr.bf16.mxu1 %v13017_v5 }
 0xd90   :  { %6555 = vmatprep.mubr.f32.mxu0 %v14503_v21  ;;  %6626 = vmatprep.mubr.f32.mxu1 %v14503_v21 }
 0xd92   :  { %10355 = vmatpush1.bf16.msra.mxu0 %v13025_v18  ;;  %10387 = vmatpush1.bf16.msra.mxu1 %v13027_v45 }
 0xd93   :  { %10357 = vmatprep.subr.bf16.mxu0 %v14831_v57  ;;  %10389 = vmatprep.subr.bf16.mxu1 %v14832_v61 }
 0xd96   :  { %10359 = vmatpush1.bf16.msra.mxu0 %v14833_v14  ;;  %10391 = vmatpush1.bf16.msra.mxu1 %v14834_v25 }
 0xd97   :  { %10361 = vmatprep.subr.bf16.mxu0 %v14835_v3  ;;  %10393 = vmatprep.subr.bf16.mxu1 %v14836_v24  ;;  %v14847_v24 = vld [vmem:[#allocation31_spill] sm:$0xff] }
 0xd98   :  { %v14857_v3 = vld [vmem:[#allocation55_spill] sm:$0xff] }
 0xd9a   :  { %10363 = vmatpush1.bf16.msra.mxu0 %v14837_v36  ;;  %10395 = vmatpush1.bf16.msra.mxu1 %v14838_v53  ;;  %v14848_v36 = vld [vmem:[#allocation32_spill] sm:$0xff]  ;;  %v14849_v53 = vld [vmem:[#allocation33_spill] sm:$0xff] }
 0xd9b   :  { %10365 = vmatprep.subr.bf16.mxu0 %v14839_v52  ;;  %10397 = vmatprep.subr.bf16.mxu1 %v14840_v4  ;;  %v14850_v52 = vld [vmem:[#allocation34_spill] sm:$0xff]  ;;  %v14851_v4 = vld [vmem:[#allocation35_spill] sm:$0xff] }
 0xd9e   :  { %10367 = vmatpush1.bf16.msra.mxu0 %v14841_v41  ;;  %10399 = vmatpush1.bf16.msra.mxu1 %v14842_v62  ;;  %v14852_v41 = vld [vmem:[#allocation36_spill] sm:$0xff]  ;;  %v14853_v62 = vld [vmem:[#allocation37_spill] sm:$0xff] }
 0xd9f   :  { %10369 = vmatprep.subr.bf16.mxu0 %v14843_v29  ;;  %10401 = vmatprep.subr.bf16.mxu1 %v14844_v46  ;;  %v14854_v29 = vld [vmem:[#allocation38_spill] sm:$0xff]  ;;  %v14855_v46 = vld [vmem:[#allocation39_spill] sm:$0xff] }
 0xda2   :  { %10371 = vmatpush1.bf16.msra.mxu0 %v14845_v11  ;;  %10403 = vmatpush1.bf16.msra.mxu1 %v14846_v35  ;;  %v14856_v11 = vld [vmem:[#allocation40_spill] sm:$0xff] }
 0xda3   :  { %10373 = vmatprep.subr.bf16.mxu0 %v14847_v24  ;;  %10405 = vmatprep.subr.bf16.mxu1 %v14848_v36 }
 0xda6   :  { %10375 = vmatpush1.bf16.msra.mxu0 %v14849_v53  ;;  %10407 = vmatpush1.bf16.msra.mxu1 %v14850_v52 }
 0xda7   :  { %10377 = vmatprep.subr.bf16.mxu0 %v14851_v4  ;;  %10409 = vmatprep.subr.bf16.mxu1 %v14852_v41 }
 0xdaa   :  { %10379 = vmatpush1.bf16.msra.mxu0 %v14853_v62  ;;  %10411 = vmatpush1.bf16.msra.mxu1 %v14854_v29 }
 0xdab   :  { %10413 = vmatprep.subr.bf16.mxu0 %v14855_v46  ;;  %10445 = vmatprep.subr.bf16.mxu1 %v14856_v11 }
 0xe40   :  { %v6207_v35 = vpop.f32.mrb[40].mxu0  ;;  %v6278_v24 = vpop.f32.mrb[40].mxu1 }
 0xe41   :  { %v10892_v36 = vadd.f32 %v6207_v35, %v14857_v3  ;;  %v6209_v25 = vpop.f32.mrb[41].mxu0  ;;  %v6280_v53 = vpop.f32.mrb[41].mxu1  ;;  %v10908_v29 = vadd.f32 %v6278_v24, %v14799_v60 }
 0xe42   :  { %v10893_v52 = vadd.f32 %v6209_v25, %v14798_v33  ;;  %v10909_v62 = vadd.f32 %v6280_v53, %v14767_v10 }
 0xe43   :  { %v8129_v14 = vmul.f32 -1.442695, %v10892_v36 }
 0xe44   :  { %v8130_v4 = vmul.f32 -1.442695, %v10893_v52  ;;  %v8131_v41 = vmul.f32 -1.442695, %v10909_v62 }
 0xe45   :  { %11476 = vpow2.f32 %v8129_v14 }
 0xe46   :  { %11478 = vpow2.f32 %v8130_v4 }
 0xe47   :  { %11480 = vpow2.f32 %v8131_v41 }
 0xe48   :  { %11482 = vtanh.f32 %v10908_v29 }
 0xe4f   :  { %v11477_v46 = vpop.eup %11476 }
 0xe50   :  { %v11479_v61 = vpop.eup %11478  ;;  %v6440_v11 = vadd.f32 1.0, %v11477_v46 }
 0xe51   :  { %v6446_v57 = vadd.f32 1.0, %v11479_v61  ;;  %v11481_v35 = vpop.eup %11480 }
 0xe52   :  { %11484 = vrcp.f32 %v6440_v11  ;;  %v11483_v3 = vpop.eup %11482  ;;  %v6453_v14 = vadd.f32 1.0, %v11481_v35 }
 0xe53   :  { %11486 = vrcp.f32 %v6446_v57 }
 0xe54   :  { %11488 = vrcp.f32 %v6453_v14 }
 0xe5c   :  { %v11485_v25 = vpop.eup %11484 }
 0xe5d   :  { %v11487_v36 = vpop.eup %11486  ;;  %v6457_v52 = vmul.f32 %v11485_v25, %v11483_v3 }
 0xe5e   :  { %v6456_v4 = vmul.f32 %v11487_v36, %v13585_v50  ;;  %v11489_v50 = vpop.eup %11488 }
 0xe60   :  { %v13677_v53 = vadd.f32 %v6457_v52, %v6456_v4  ;;  %v6357_v62 = vpop.f32.mrb[54].mxu0  ;;  %v6428_v24 = vpop.f32.mrb[54].mxu1 }
 0xe61   :  { %v10922_v46 = vadd.f32 %v6357_v62, %v14770_v22  ;;  %v6359_v41 = vpop.f32.mrb[55].mxu0  ;;  %v6430_v29 = vpop.f32.mrb[55].mxu1  ;;  %v10938_v36 = vadd.f32 %v6428_v24, %v13314_v44 }
 0xe62   :  { %v10923_v11 = vadd.f32 %v6359_v41, %v13300_v43  ;;  %11490 = vtanh.f32 %v13677_v53  ;;  %v10939_v3 = vadd.f32 %v6430_v29, %v13309_v20 }
 0xe63   :  { %v8132_v57 = vmul.f32 -1.442695, %v10922_v46 }
 0xe64   :  { %v8133_v61 = vmul.f32 -1.442695, %v10923_v11  ;;  %v8134_v25 = vmul.f32 -1.442695, %v10939_v3 }
 0xe65   :  { %11492 = vpow2.f32 %v8132_v57 }
 0xe66   :  { %11494 = vpow2.f32 %v8133_v61 }
 0xe67   :  { %11496 = vpow2.f32 %v8134_v25 }
 0xe68   :  { %11498 = vtanh.f32 %v10938_v36  ;;  %v14860_v36 = vld [vmem:[#allocation63_spill] sm:$0xff] }
 0xe6c   :  { %v11491_v35 = vpop.eup %11490 }
 0xe6d   :  { %v13684_v52 = vmul.f32 %v11491_v35, %v11489_v50 }
 0xe6f   :  { %14858 = vst [vmem:[#allocation62_spill] sm:$0xff] %v13684_v52  ;;  %v11493_v14 = vpop.eup %11492  ;;  %6556 = vmatmul.mubr.f32.vlgmr.msra.gmra.mrb[42].mxu0 %v13684_v52  ;;  %6627 = vmatmul.mubr.f32.vlgmr.msra.gmra.mrb[42].mxu1 %v13684_v52  ;;  %v14874_v52 = vld [vmem:[#allocation29_spill] sm:$0xff] }
 0xe70   :  { %v11495_v4 = vpop.eup %11494  ;;  %v6464_v62 = vadd.f32 1.0, %v11493_v14  ;;  %10415 = vmatpush1.bf16.msra.mxu0 %v13137_v7  ;;  %10447 = vmatpush1.bf16.msra.mxu1 %v13139_v49  ;;  %v14861_v14 = vld [vmem:[#allocation48_spill] sm:$0xff] }
 0xe71   :  { %v6470_v46 = vadd.f32 1.0, %v11495_v4  ;;  %10417 = vmatprep.subr.bf16.mxu0 %v13143_v47  ;;  %10449 = vmatprep.subr.bf16.mxu1 %v13145_v31  ;;  %v11497_v24 = vpop.eup %11496  ;;  %v14862_v4 = vld [vmem:[#allocation49_spill] sm:$0xff] }
 0xe72   :  { %11500 = vrcp.f32 %v6464_v62  ;;  %6705 = vmatprep.mubr.f32.mxu0 %v14503_v21  ;;  %6776 = vmatprep.mubr.f32.mxu1 %v14503_v21  ;;  %v11499_v41 = vpop.eup %11498  ;;  %v6477_v61 = vadd.f32 1.0, %v11497_v24  ;;  %v14863_v62 = vld [vmem:[#allocation50_spill] sm:$0xff]  ;;  %v14865_v24 = vld [vmem:[#allocation61_spill] sm:$0xff] }
 0xe73   :  { %11502 = vrcp.f32 %v6470_v46  ;;  %v14864_v46 = vld [vmem:[#allocation60_spill] sm:$0xff] }
 0xe74   :  { %10419 = vmatpush1.bf16.msra.mxu0 %v13151_v28  ;;  %10451 = vmatpush1.bf16.msra.mxu1 %v13153_v59  ;;  %11504 = vrcp.f32 %v6477_v61  ;;  %v14870_v61 = vld [vmem:[#allocation25_spill] sm:$0xff] }
 0xe75   :  { %10421 = vmatprep.subr.bf16.mxu0 %v13157_v15  ;;  %10453 = vmatprep.subr.bf16.mxu1 %v14744_v56 }
 0xe78   :  { %10423 = vmatpush1.bf16.msra.mxu0 %v14745_v16  ;;  %10455 = vmatpush1.bf16.msra.mxu1 %v14772_v48 }
 0xe79   :  { %10425 = vmatprep.subr.bf16.mxu0 %v14773_v58  ;;  %10457 = vmatprep.subr.bf16.mxu1 %v14774_v1 }
 0xe7c   :  { %v11501_v29 = vpop.eup %11500  ;;  %10427 = vmatpush1.bf16.msra.mxu0 %v14749_v63  ;;  %10459 = vmatpush1.bf16.msra.mxu1 %v14750_v30 }
 0xe7d   :  { %v11503_v11 = vpop.eup %11502  ;;  %v6481_v57 = vmul.f32 %v11501_v29, %v11499_v41  ;;  %10429 = vmatprep.subr.bf16.mxu0 %v14751_v27  ;;  %10461 = vmatprep.subr.bf16.mxu1 %v14752_v54  ;;  %v14866_v41 = vld [vmem:[#allocation21_spill] sm:$0xff]  ;;  %v14867_v29 = vld [vmem:[#allocation22_spill] sm:$0xff] }
 0xe7e   :  { %v6480_v3 = vmul.f32 %v11503_v11, %v13615_v37  ;;  %v11505_v37 = vpop.eup %11504  ;;  %v14868_v11 = vld [vmem:[#allocation23_spill] sm:$0xff] }
 0xe80   :  { %v13707_v50 = vadd.f32 %v6481_v57, %v6480_v3  ;;  %10431 = vmatpush1.bf16.msra.mxu0 %v14753_v42  ;;  %10463 = vmatpush1.bf16.msra.mxu1 %v14754_v55  ;;  %v14869_v57 = vld [vmem:[#allocation24_spill] sm:$0xff]  ;;  %v14871_v3 = vld [vmem:[#allocation26_spill] sm:$0xff] }
 0xe81   :  { %10433 = vmatprep.subr.bf16.mxu0 %v13195_v51  ;;  %10465 = vmatprep.subr.bf16.mxu1 %v13197_v40 }
 0xe82   :  { %11506 = vtanh.f32 %v13707_v50 }
 0xe84   :  { %10435 = vmatpush1.bf16.msra.mxu0 %v13201_v6  ;;  %10467 = vmatpush1.bf16.msra.mxu1 %v13203_v9 }
 0xe85   :  { %10437 = vmatprep.subr.bf16.mxu0 %v13207_v13  ;;  %10469 = vmatprep.subr.bf16.mxu1 %v13209_v32 }
 0xe88   :  { %10439 = vmatpush1.bf16.msra.mxu0 %v13213_v17  ;;  %10471 = vmatpush1.bf16.msra.mxu1 %v13215_v19 }
 0xe89   :  { %10441 = vmatprep.subr.bf16.mxu0 %v13219_v12  ;;  %10473 = vmatprep.subr.bf16.mxu1 %v13221_v26 }
 0xe8c   :  { %v11507_v35 = vpop.eup %11506  ;;  %10443 = vmatpush1.bf16.msra.mxu0 %v13225_v34  ;;  %10475 = vmatpush1.bf16.msra.mxu1 %v13227_v38 }
 0xe8d   :  { %v13724_v25 = vmul.f32 %v11507_v35, %v11505_v37  ;;  %10477 = vmatprep.subr.bf16.mxu0 %v13005_v23  ;;  %10509 = vmatprep.subr.bf16.mxu1 %v13007_v8  ;;  %v14872_v37 = vld [vmem:[#allocation27_spill] sm:$0xff]  ;;  %v14873_v35 = vld [vmem:[#allocation28_spill] sm:$0xff] }
 0xe8f   :  { %14859 = vst [vmem:[#allocation59_spill] sm:$0xff] %v13724_v25  ;;  %6706 = vmatmul.mubr.f32.vlgmr.msra.gmra.mrb[52].mxu0 %v13724_v25  ;;  %6777 = vmatmul.mubr.f32.vlgmr.msra.gmra.mrb[52].mxu1 %v13724_v25  ;;  %v14875_v25 = vld [vmem:[#allocation30_spill] sm:$0xff] }
 0xe90   :  { %10479 = vmatpush1.bf16.msra.mxu0 %v13011_v2  ;;  %10511 = vmatpush1.bf16.msra.mxu1 %v13013_v39 }
 0xe91   :  { %10481 = vmatprep.subr.bf16.mxu0 %v13015_v0  ;;  %10513 = vmatprep.subr.bf16.mxu1 %v13017_v5 }
 0xe92   :  { %6905 = vmatprep.mubr.f32.mxu0 %v14503_v21  ;;  %6976 = vmatprep.mubr.f32.mxu1 %v14503_v21 }
 0xe94   :  { %10483 = vmatpush1.bf16.msra.mxu0 %v13025_v18  ;;  %10515 = vmatpush1.bf16.msra.mxu1 %v13027_v45 }
 0xe95   :  { %10485 = vmatprep.subr.bf16.mxu0 %v14860_v36  ;;  %10517 = vmatprep.subr.bf16.mxu1 %v14861_v14 }
 0xe98   :  { %10487 = vmatpush1.bf16.msra.mxu0 %v14862_v4  ;;  %10519 = vmatpush1.bf16.msra.mxu1 %v14863_v62 }
 0xe99   :  { %10489 = vmatprep.subr.bf16.mxu0 %v14864_v46  ;;  %10521 = vmatprep.subr.bf16.mxu1 %v14865_v24  ;;  %v14876_v24 = vld [vmem:[#allocation31_spill] sm:$0xff] }
 0xe9a   :  { %v14886_v46 = vld [vmem:[#allocation55_spill] sm:$0xff] }
 0xe9c   :  { %10491 = vmatpush1.bf16.msra.mxu0 %v14866_v41  ;;  %10523 = vmatpush1.bf16.msra.mxu1 %v14867_v29  ;;  %v14877_v41 = vld [vmem:[#allocation32_spill] sm:$0xff]  ;;  %v14878_v29 = vld [vmem:[#allocation33_spill] sm:$0xff] }
 0xe9d   :  { %10493 = vmatprep.subr.bf16.mxu0 %v14868_v11  ;;  %10525 = vmatprep.subr.bf16.mxu1 %v14869_v57  ;;  %v14879_v11 = vld [vmem:[#allocation34_spill] sm:$0xff]  ;;  %v14880_v57 = vld [vmem:[#allocation35_spill] sm:$0xff] }
 0xea0   :  { %10495 = vmatpush1.bf16.msra.mxu0 %v14870_v61  ;;  %10527 = vmatpush1.bf16.msra.mxu1 %v14871_v3  ;;  %v14881_v61 = vld [vmem:[#allocation36_spill] sm:$0xff]  ;;  %v14882_v3 = vld [vmem:[#allocation37_spill] sm:$0xff] }
 0xea1   :  { %10497 = vmatprep.subr.bf16.mxu0 %v14872_v37  ;;  %10529 = vmatprep.subr.bf16.mxu1 %v14873_v35  ;;  %v14883_v37 = vld [vmem:[#allocation38_spill] sm:$0xff]  ;;  %v14884_v35 = vld [vmem:[#allocation39_spill] sm:$0xff] }
 0xea4   :  { %10499 = vmatpush1.bf16.msra.mxu0 %v14874_v52  ;;  %10531 = vmatpush1.bf16.msra.mxu1 %v14875_v25  ;;  %v14885_v52 = vld [vmem:[#allocation40_spill] sm:$0xff] }
 0xea5   :  { %10501 = vmatprep.subr.bf16.mxu0 %v14876_v24  ;;  %10533 = vmatprep.subr.bf16.mxu1 %v14877_v41 }
 0xea8   :  { %10503 = vmatpush1.bf16.msra.mxu0 %v14878_v29  ;;  %10535 = vmatpush1.bf16.msra.mxu1 %v14879_v11 }
 0xea9   :  { %10505 = vmatprep.subr.bf16.mxu0 %v14880_v57  ;;  %10537 = vmatprep.subr.bf16.mxu1 %v14881_v61 }
 0xeac   :  { %10507 = vmatpush1.bf16.msra.mxu0 %v14882_v3  ;;  %10539 = vmatpush1.bf16.msra.mxu1 %v14883_v37 }
 0xead   :  { %10541 = vmatprep.subr.bf16.mxu0 %v14884_v35  ;;  %10573 = vmatprep.subr.bf16.mxu1 %v14885_v52 }
 0xf42   :  { %v6557_v25 = vpop.f32.mrb[42].mxu0  ;;  %v6628_v24 = vpop.f32.mrb[42].mxu1 }
 0xf43   :  { %v10894_v41 = vadd.f32 %v6557_v25, %v14886_v46  ;;  %v6559_v62 = vpop.f32.mrb[43].mxu0  ;;  %v6630_v29 = vpop.f32.mrb[43].mxu1  ;;  %v10910_v37 = vadd.f32 %v6628_v24, %v14799_v60 }
 0xf44   :  { %v10895_v11 = vadd.f32 %v6559_v62, %v14798_v33  ;;  %v10911_v3 = vadd.f32 %v6630_v29, %v14767_v10 }
 0xf45   :  { %v8135_v4 = vmul.f32 -1.442695, %v10894_v41 }
 0xf46   :  { %v8136_v57 = vmul.f32 -1.442695, %v10895_v11  ;;  %v8137_v61 = vmul.f32 -1.442695, %v10911_v3 }
 0xf47   :  { %11508 = vpow2.f32 %v8135_v4 }
 0xf48   :  { %11510 = vpow2.f32 %v8136_v57 }
 0xf49   :  { %11512 = vpow2.f32 %v8137_v61 }
 0xf4a   :  { %11514 = vtanh.f32 %v10910_v37 }
 0xf51   :  { %v11509_v35 = vpop.eup %11508 }
 0xf52   :  { %v11511_v14 = vpop.eup %11510  ;;  %v6790_v52 = vadd.f32 1.0, %v11509_v35 }
 0xf53   :  { %v6796_v36 = vadd.f32 1.0, %v11511_v14  ;;  %v11513_v25 = vpop.eup %11512 }
 0xf54   :  { %11516 = vrcp.f32 %v6790_v52  ;;  %v11515_v46 = vpop.eup %11514  ;;  %v6803_v4 = vadd.f32 1.0, %v11513_v25 }
 0xf55   :  { %11518 = vrcp.f32 %v6796_v36 }
 0xf56   :  { %11520 = vrcp.f32 %v6803_v4 }
 0xf5e   :  { %v11517_v62 = vpop.eup %11516 }
 0xf5f   :  { %v11519_v41 = vpop.eup %11518  ;;  %v6807_v11 = vmul.f32 %v11517_v62, %v11515_v46 }
 0xf60   :  { %v6806_v57 = vmul.f32 %v11519_v41, %v13677_v53  ;;  %v11521_v53 = vpop.eup %11520 }
 0xf62   :  { %v13769_v29 = vadd.f32 %v6807_v11, %v6806_v57  ;;  %v6707_v3 = vpop.f32.mrb[52].mxu0  ;;  %v6778_v24 = vpop.f32.mrb[52].mxu1 }
 0xf63   :  { %v10920_v35 = vadd.f32 %v6707_v3, %v14770_v22  ;;  %v6709_v61 = vpop.f32.mrb[53].mxu0  ;;  %v6780_v37 = vpop.f32.mrb[53].mxu1  ;;  %v10936_v41 = vadd.f32 %v6778_v24, %v13314_v44 }
 0xf64   :  { %v10921_v52 = vadd.f32 %v6709_v61, %v13300_v43  ;;  %11522 = vtanh.f32 %v13769_v29  ;;  %v10937_v46 = vadd.f32 %v6780_v37, %v13309_v20 }
 0xf65   :  { %v8138_v36 = vmul.f32 -1.442695, %v10920_v35 }
 0xf66   :  { %v8139_v14 = vmul.f32 -1.442695, %v10921_v52  ;;  %v8140_v62 = vmul.f32 -1.442695, %v10937_v46 }
 0xf67   :  { %11524 = vpow2.f32 %v8138_v36 }
 0xf68   :  { %11526 = vpow2.f32 %v8139_v14 }
 0xf69   :  { %11528 = vpow2.f32 %v8140_v62 }
 0xf6a   :  { %11530 = vtanh.f32 %v10936_v41  ;;  %v14889_v41 = vld [vmem:[#allocation49_spill] sm:$0xff] }
 0xf6e   :  { %v11523_v25 = vpop.eup %11522 }
 0xf6f   :  { %v13776_v11 = vmul.f32 %v11523_v25, %v11521_v53 }
 0xf71   :  { %v11525_v4 = vpop.eup %11524  ;;  %6906 = vmatmul.mubr.f32.vlgmr.msra.gmra.mrb[44].mxu0 %v13776_v11  ;;  %6977 = vmatmul.mubr.f32.vlgmr.msra.gmra.mrb[44].mxu1 %v13776_v11 }
 0xf72   :  { %v11527_v57 = vpop.eup %11526  ;;  %v6814_v3 = vadd.f32 1.0, %v11525_v4  ;;  %10543 = vmatpush1.bf16.msra.mxu0 %v13137_v7  ;;  %10575 = vmatpush1.bf16.msra.mxu1 %v13139_v49  ;;  %v14894_v4 = vld [vmem:[#allocation22_spill] sm:$0xff] }
 0xf73   :  { %v6820_v35 = vadd.f32 1.0, %v11527_v57  ;;  %10545 = vmatprep.subr.bf16.mxu0 %v13143_v47  ;;  %10577 = vmatprep.subr.bf16.mxu1 %v13145_v31  ;;  %v11529_v24 = vpop.eup %11528  ;;  %v14895_v57 = vld [vmem:[#allocation23_spill] sm:$0xff] }
 0xf74   :  { %11532 = vrcp.f32 %v6814_v3  ;;  %7055 = vmatprep.mubr.f32.mxu0 %v14503_v21  ;;  %7126 = vmatprep.mubr.f32.mxu1 %v14503_v21  ;;  %v11531_v61 = vpop.eup %11530  ;;  %v6827_v14 = vadd.f32 1.0, %v11529_v24  ;;  %v14898_v3 = vld [vmem:[#allocation26_spill] sm:$0xff]  ;;  %v14900_v24 = vld [vmem:[#allocation28_spill] sm:$0xff] }
 0xf75   :  { %11534 = vrcp.f32 %v6820_v35  ;;  %v14899_v35 = vld [vmem:[#allocation27_spill] sm:$0xff] }
 0xf76   :  { %10547 = vmatpush1.bf16.msra.mxu0 %v13151_v28  ;;  %10579 = vmatpush1.bf16.msra.mxu1 %v13153_v59  ;;  %11536 = vrcp.f32 %v6827_v14  ;;  %v14905_v14 = vld [vmem:[#allocation33_spill] sm:$0xff] }
 0xf77   :  { %10549 = vmatprep.subr.bf16.mxu0 %v13157_v15  ;;  %10581 = vmatprep.subr.bf16.mxu1 %v14744_v56 }
 0xf7a   :  { %10551 = vmatpush1.bf16.msra.mxu0 %v14745_v16  ;;  %10583 = vmatpush1.bf16.msra.mxu1 %v14772_v48 }
 0xf7b   :  { %10553 = vmatprep.subr.bf16.mxu0 %v14773_v58  ;;  %10585 = vmatprep.subr.bf16.mxu1 %v14774_v1 }
 0xf7e   :  { %v11533_v37 = vpop.eup %11532  ;;  %10555 = vmatpush1.bf16.msra.mxu0 %v14749_v63  ;;  %10587 = vmatpush1.bf16.msra.mxu1 %v14750_v30 }
 0xf7f   :  { %v11535_v52 = vpop.eup %11534  ;;  %v6831_v36 = vmul.f32 %v11533_v37, %v11531_v61  ;;  %10557 = vmatprep.subr.bf16.mxu0 %v14751_v27  ;;  %10589 = vmatprep.subr.bf16.mxu1 %v14752_v54  ;;  %v14901_v61 = vld [vmem:[#allocation29_spill] sm:$0xff]  ;;  %v14902_v37 = vld [vmem:[#allocation30_spill] sm:$0xff] }
 0xf80   :  { %v6830_v46 = vmul.f32 %v11535_v52, %v13707_v50  ;;  %v11537_v50 = vpop.eup %11536  ;;  %v14903_v52 = vld [vmem:[#allocation31_spill] sm:$0xff] }
 0xf82   :  { %v13799_v53 = vadd.f32 %v6831_v36, %v6830_v46  ;;  %10559 = vmatpush1.bf16.msra.mxu0 %v14753_v42  ;;  %10591 = vmatpush1.bf16.msra.mxu1 %v14754_v55  ;;  %v14904_v36 = vld [vmem:[#allocation32_spill] sm:$0xff]  ;;  %v14906_v46 = vld [vmem:[#allocation34_spill] sm:$0xff] }
 0xf83   :  { %10561 = vmatprep.subr.bf16.mxu0 %v13195_v51  ;;  %10593 = vmatprep.subr.bf16.mxu1 %v13197_v40 }
 0xf84   :  { %11538 = vtanh.f32 %v13799_v53 }
 0xf86   :  { %10563 = vmatpush1.bf16.msra.mxu0 %v13201_v6  ;;  %10595 = vmatpush1.bf16.msra.mxu1 %v13203_v9 }
 0xf87   :  { %10565 = vmatprep.subr.bf16.mxu0 %v13207_v13  ;;  %10597 = vmatprep.subr.bf16.mxu1 %v13209_v32 }
 0xf8a   :  { %10567 = vmatpush1.bf16.msra.mxu0 %v13213_v17  ;;  %10599 = vmatpush1.bf16.msra.mxu1 %v13215_v19 }
 0xf8b   :  { %10569 = vmatprep.subr.bf16.mxu0 %v13219_v12  ;;  %10601 = vmatprep.subr.bf16.mxu1 %v13221_v26 }
 0xf8e   :  { %v11539_v25 = vpop.eup %11538  ;;  %10571 = vmatpush1.bf16.msra.mxu0 %v13225_v34  ;;  %10603 = vmatpush1.bf16.msra.mxu1 %v13227_v38 }
 0xf8f   :  { %v13816_v62 = vmul.f32 %v11539_v25, %v11537_v50  ;;  %10605 = vmatprep.subr.bf16.mxu0 %v13005_v23  ;;  %10637 = vmatprep.subr.bf16.mxu1 %v13007_v8  ;;  %v14887_v23 = vld [vmem:[#allocation63_spill] sm:$0xff]  ;;  %v14888_v8 = vld [vmem:[#allocation48_spill] sm:$0xff] }
 0xf90   :  { %v14907_v50 = vld [vmem:[#allocation35_spill] sm:$0xff]  ;;  %v14908_v25 = vld [vmem:[#allocation36_spill] sm:$0xff] }
 0xf91   :  { %7056 = vmatmul.mubr.f32.vlgmr.msra.gmra.mrb[50].mxu0 %v13816_v62  ;;  %7127 = vmatmul.mubr.f32.vlgmr.msra.gmra.mrb[50].mxu1 %v13816_v62 }
 0xf92   :  { %10607 = vmatpush1.bf16.msra.mxu0 %v13011_v2  ;;  %10639 = vmatpush1.bf16.msra.mxu1 %v13013_v39  ;;  %v14890_v2 = vld [vmem:[#allocation50_spill] sm:$0xff]  ;;  %v14891_v39 = vld [vmem:[#allocation60_spill] sm:$0xff] }
 0xf93   :  { %10609 = vmatprep.subr.bf16.mxu0 %v13015_v0  ;;  %10641 = vmatprep.subr.bf16.mxu1 %v13017_v5  ;;  %v14892_v0 = vld [vmem:[#allocation61_spill] sm:$0xff] }
 0xf94   :  { %7255 = vmatprep.mubr.f32.mxu0 %v14503_v21  ;;  %7326 = vmatprep.mubr.f32.mxu1 %v14503_v21  ;;  %v14893_v5 = vld [vmem:[#allocation21_spill] sm:$0xff] }
 0xf96   :  { %10611 = vmatpush1.bf16.msra.mxu0 %v13025_v18  ;;  %10643 = vmatpush1.bf16.msra.mxu1 %v13027_v45  ;;  %v14896_v18 = vld [vmem:[#allocation24_spill] sm:$0xff]  ;;  %v14897_v45 = vld [vmem:[#allocation25_spill] sm:$0xff] }
 0xf97   :  { %10613 = vmatprep.subr.bf16.mxu0 %v14887_v23  ;;  %10645 = vmatprep.subr.bf16.mxu1 %v14888_v8  ;;  %v14909_v23 = vld [vmem:[#allocation37_spill] sm:$0xff]  ;;  %v14910_v8 = vld [vmem:[#allocation38_spill] sm:$0xff] }
 0xf9a   :  { %10615 = vmatpush1.bf16.msra.mxu0 %v14889_v41  ;;  %10647 = vmatpush1.bf16.msra.mxu1 %v14890_v2  ;;  %v14911_v41 = vld [vmem:[#allocation39_spill] sm:$0xff]  ;;  %v14912_v2 = vld [vmem:[#allocation40_spill] sm:$0xff] }
 0xf9b   :  { %10617 = vmatprep.subr.bf16.mxu0 %v14891_v39  ;;  %10649 = vmatprep.subr.bf16.mxu1 %v14892_v0 }
 0xf9e   :  { %10619 = vmatpush1.bf16.msra.mxu0 %v14893_v5  ;;  %10651 = vmatpush1.bf16.msra.mxu1 %v14894_v4  ;;  %v14913_v5 = vld [vmem:[#allocation55_spill] sm:$0xff] }
 0xf9f   :  { %10621 = vmatprep.subr.bf16.mxu0 %v14895_v57  ;;  %10653 = vmatprep.subr.bf16.mxu1 %v14896_v18 }
 0xfa2   :  { %10623 = vmatpush1.bf16.msra.mxu0 %v14897_v45  ;;  %10655 = vmatpush1.bf16.msra.mxu1 %v14898_v3 }
 0xfa3   :  { %10625 = vmatprep.subr.bf16.mxu0 %v14899_v35  ;;  %10657 = vmatprep.subr.bf16.mxu1 %v14900_v24 }
 0xfa6   :  { %10627 = vmatpush1.bf16.msra.mxu0 %v14901_v61  ;;  %10659 = vmatpush1.bf16.msra.mxu1 %v14902_v37 }
 0xfa7   :  { %10629 = vmatprep.subr.bf16.mxu0 %v14903_v52  ;;  %10661 = vmatprep.subr.bf16.mxu1 %v14904_v36 }
 0xfaa   :  { %10631 = vmatpush1.bf16.msra.mxu0 %v14905_v14  ;;  %10663 = vmatpush1.bf16.msra.mxu1 %v14906_v46 }
 0xfab   :  { %10633 = vmatprep.subr.bf16.mxu0 %v14907_v50  ;;  %10665 = vmatprep.subr.bf16.mxu1 %v14908_v25 }
 0xfae   :  { %10635 = vmatpush1.bf16.msra.mxu0 %v14909_v23  ;;  %10667 = vmatpush1.bf16.msra.mxu1 %v14910_v8 }
 0xfaf   :  { %10669 = vmatprep.subr.bf16.mxu0 %v14911_v41  ;;  %10701 = vmatprep.subr.bf16.mxu1 %v14912_v2 }
0x1044   :  { %v6907_v39 = vpop.f32.mrb[44].mxu0  ;;  %v6978_v0 = vpop.f32.mrb[44].mxu1 }
0x1045   :  { %v10896_v4 = vadd.f32 %v6907_v39, %v14913_v5  ;;  %v6909_v57 = vpop.f32.mrb[45].mxu0  ;;  %v6980_v18 = vpop.f32.mrb[45].mxu1  ;;  %v10912_v37 = vadd.f32 %v6978_v0, %v14799_v60 }
0x1046   :  { %v10897_v45 = vadd.f32 %v6909_v57, %v14798_v33  ;;  %v10913_v24 = vadd.f32 %v6980_v18, %v14767_v10 }
0x1047   :  { %v8141_v3 = vmul.f32 -1.442695, %v10896_v4 }
0x1048   :  { %v8142_v35 = vmul.f32 -1.442695, %v10897_v45  ;;  %v8143_v61 = vmul.f32 -1.442695, %v10913_v24 }
0x1049   :  { %11540 = vpow2.f32 %v8141_v3 }
0x104a   :  { %11542 = vpow2.f32 %v8142_v35 }
0x104b   :  { %11544 = vpow2.f32 %v8143_v61 }
0x104c   :  { %11546 = vtanh.f32 %v10912_v37 }
0x1053   :  { %v11541_v52 = vpop.eup %11540 }
0x1054   :  { %v11543_v36 = vpop.eup %11542  ;;  %v7140_v14 = vadd.f32 1.0, %v11541_v52 }
0x1055   :  { %v7146_v46 = vadd.f32 1.0, %v11543_v36  ;;  %v11545_v50 = vpop.eup %11544 }
0x1056   :  { %11548 = vrcp.f32 %v7140_v14  ;;  %v11547_v25 = vpop.eup %11546  ;;  %v7153_v2 = vadd.f32 1.0, %v11545_v50 }
0x1057   :  { %11550 = vrcp.f32 %v7146_v46 }
0x1058   :  { %11552 = vrcp.f32 %v7153_v2  ;;  %v7559_v2 = vld [vmem:[%s14239_s9 + $0x30] sm:$0xff] }
0x1060   :  { %v11549_v23 = vpop.eup %11548 }
0x1061   :  { %v11551_v8 = vpop.eup %11550  ;;  %v7157_v41 = vmul.f32 %v11549_v23, %v11547_v25 }
0x1062   :  { %v7156_v39 = vmul.f32 %v11551_v8, %v13769_v29  ;;  %v11553_v29 = vpop.eup %11552 }
0x1064   :  { %v13861_v4 = vadd.f32 %v7157_v41, %v7156_v39  ;;  %v7057_v57 = vpop.f32.mrb[50].mxu0  ;;  %v7128_v0 = vpop.f32.mrb[50].mxu1  ;;  %v7560_v39 = vld [vmem:[%s14239_s9 + $0x38] sm:$0xff] }
0x1065   :  { %v10918_v18 = vadd.f32 %v7057_v57, %v14770_v22  ;;  %v7059_v45 = vpop.f32.mrb[51].mxu0  ;;  %v7130_v3 = vpop.f32.mrb[51].mxu1  ;;  %v10934_v14 = vadd.f32 %v7128_v0, %v13314_v44  ;;  %v10746_v57 = vpack.c.bf16 %v7560_v39, %v7559_v2  ;;  %v7577_v0 = vld [vmem:[%s14239_s9 + $0xc0] sm:$0xff] }
0x1066   :  { %v10919_v35 = vadd.f32 %v7059_v45, %v13300_v43  ;;  %11554 = vtanh.f32 %v13861_v4  ;;  %v10935_v37 = vadd.f32 %v7130_v3, %v13309_v20  ;;  %v7561_v45 = vld [vmem:[%s14239_s9 + $0x40] sm:$0xff] }
0x1067   :  { %v8144_v24 = vmul.f32 -1.442695, %v10918_v18  ;;  %v7578_v18 = vld [vmem:[%s14239_s9 + $0xc8] sm:$0xff] }
0x1068   :  { %v8145_v61 = vmul.f32 -1.442695, %v10919_v35  ;;  %v8146_v36 = vmul.f32 -1.442695, %v10935_v37  ;;  %v10748_v3 = vpack.c.bf16 %v7578_v18, %v7577_v0  ;;  %v7562_v35 = vld [vmem:[%s14239_s9 + $0x48] sm:$0xff] }
0x1069   :  { %11556 = vpow2.f32 %v8144_v24  ;;  %v7579_v24 = vld [vmem:[%s14239_s9 + $0xd0] sm:$0xff]  ;;  %v10750_v37 = vpack.c.bf16 %v7562_v35, %v7561_v45 }
0x106a   :  { %11558 = vpow2.f32 %v8145_v61  ;;  %v7580_v61 = vld [vmem:[%s14239_s9 + $0xd8] sm:$0xff] }
0x106b   :  { %11560 = vpow2.f32 %v8146_v36  ;;  %v7564_v36 = vld [vmem:[%s14239_s9 + $0x58] sm:$0xff] }
0x106c   :  { %11562 = vtanh.f32 %v10934_v14  ;;  %v7581_v14 = vld [vmem:[%s14239_s9 + $0xe0] sm:$0xff] }
0x1070   :  { %v11555_v52 = vpop.eup %11554 }
0x1071   :  { %v13868_v46 = vmul.f32 %v11555_v52, %v11553_v29  ;;  %v10752_v29 = vpack.c.bf16 %v7580_v61, %v7579_v24  ;;  %v7563_v52 = vld [vmem:[%s14239_s9 + $0x50] sm:$0xff] }
0x1073   :  { %v11557_v50 = vpop.eup %11556  ;;  %7256 = vmatmul.mubr.f32.vlgmr.msra.gmra.mrb[46].mxu0 %v13868_v46  ;;  %7327 = vmatmul.mubr.f32.vlgmr.msra.gmra.mrb[46].mxu1 %v13868_v46 }
0x1074   :  { %v11559_v25 = vpop.eup %11558  ;;  %v7164_v23 = vadd.f32 1.0, %v11557_v50  ;;  %10671 = vmatpush1.bf16.msra.mxu0 %v13137_v7  ;;  %10703 = vmatpush1.bf16.msra.mxu1 %v13139_v49  ;;  %v7582_v50 = vld [vmem:[%s14239_s9 + $0xe8] sm:$0xff] }
0x1075   :  { %v7170_v8 = vadd.f32 1.0, %v11559_v25  ;;  %10673 = vmatprep.subr.bf16.mxu0 %v13143_v47  ;;  %10705 = vmatprep.subr.bf16.mxu1 %v13145_v31  ;;  %v11561_v7 = vpop.eup %11560  ;;  %v10754_v25 = vpack.c.bf16 %v7564_v36, %v7563_v52 }
0x1076   :  { %11564 = vrcp.f32 %v7164_v23  ;;  %7405 = vmatprep.mubr.f32.mxu0 %v14503_v21  ;;  %7476 = vmatprep.mubr.f32.mxu1 %v14503_v21  ;;  %v11563_v49 = vpop.eup %11562  ;;  %v10756_v23 = vpack.c.bf16 %v7582_v50, %v7581_v14 }
0x1077   :  { %11566 = vrcp.f32 %v7170_v8  ;;  %v7565_v8 = vld [vmem:[%s14239_s9 + $0x60] sm:$0xff] }
0x1078   :  { %10675 = vmatpush1.bf16.msra.mxu0 %v13151_v28  ;;  %10707 = vmatpush1.bf16.msra.mxu1 %v13153_v59  ;;  %v7177_v59 = vadd.f32 1.0, %v11561_v7  ;;  %v7566_v7 = vld [vmem:[%s14239_s9 + $0x68] sm:$0xff] }
0x1079   :  { %10677 = vmatprep.subr.bf16.mxu0 %v13157_v15  ;;  %10709 = vmatprep.subr.bf16.mxu1 %v14744_v56 }
0x107a   :  { %11568 = vrcp.f32 %v7177_v59  ;;  %v7567_v59 = vld [vmem:[%s14239_s9 + $0x70] sm:$0xff] }
0x107c   :  { %10679 = vmatpush1.bf16.msra.mxu0 %v14745_v16  ;;  %10711 = vmatpush1.bf16.msra.mxu1 %v14772_v48  ;;  %v7555_v16 = vld [vmem:[%s14239_s9 + $0x10] sm:$0xff]  ;;  %v7558_v48 = vld [vmem:[%s14239_s9 + $0x28] sm:$0xff] }
0x107d   :  { %10681 = vmatprep.subr.bf16.mxu0 %v14773_v58  ;;  %10713 = vmatprep.subr.bf16.mxu1 %v14774_v1  ;;  %v7575_v1 = vld [vmem:[%s14239_s9 + $0xb0] sm:$0xff] }
0x1080   :  { %v11565_v47 = vpop.eup %11564  ;;  %10683 = vmatpush1.bf16.msra.mxu0 %v14749_v63  ;;  %10715 = vmatpush1.bf16.msra.mxu1 %v14750_v30  ;;  %v7573_v63 = vld [vmem:[%s14239_s9 + $0xa0] sm:$0xff]  ;;  %v7574_v30 = vld [vmem:[%s14239_s9 + $0xa8] sm:$0xff] }
0x1081   :  { %v11567_v31 = vpop.eup %11566  ;;  %v7181_v28 = vmul.f32 %v11565_v47, %v11563_v49  ;;  %10685 = vmatprep.subr.bf16.mxu0 %v14751_v27  ;;  %10717 = vmatprep.subr.bf16.mxu1 %v14752_v54  ;;  %v10740_v27 = vpack.c.bf16 %v7574_v30, %v7573_v63  ;;  %v7557_v54 = vld [vmem:[%s14239_s9 + $0x20] sm:$0xff]  ;;  %v7583_v49 = vld [vmem:[%s14239_s9 + $0xf0] sm:$0xff]  ;;  %v7584_v47 = vld [vmem:[%s14239_s9 + $0xf8] sm:$0xff] }
0x1082   :  { %v7180_v15 = vmul.f32 %v11567_v31, %v13799_v53  ;;  %v10742_v58 = vpack.c.bf16 %v7558_v48, %v7557_v54  ;;  %v7576_v53 = vld [vmem:[%s14239_s9 + $0xb8] sm:$0xff]  ;;  %v10758_v31 = vpack.c.bf16 %v7566_v7, %v7565_v8 }
0x1083   :  { %v10744_v41 = vpack.c.bf16 %v7576_v53, %v7575_v1 }
0x1084   :  { %v13891_v56 = vadd.f32 %v7181_v28, %v7180_v15  ;;  %10687 = vmatpush1.bf16.msra.mxu0 %v14753_v42  ;;  %10719 = vmatpush1.bf16.msra.mxu1 %v14754_v55  ;;  %v7556_v42 = vld [vmem:[%s14239_s9 + $0x18] sm:$0xff]  ;;  %v10760_v28 = vpack.c.bf16 %v7584_v47, %v7583_v49  ;;  %v14914_v47 = vld [vmem:[#allocation57_spill] sm:$0xff] }
0x1085   :  { %10689 = vmatprep.subr.bf16.mxu0 %v13195_v51  ;;  %10721 = vmatprep.subr.bf16.mxu1 %v13197_v40  ;;  %v11569_v51 = vpop.eup %11568  ;;  %v10738_v55 = vpack.c.bf16 %v7556_v42, %v7555_v16  ;;  %v7568_v15 = vld [vmem:[%s14239_s9 + $0x78] sm:$0xff] }
0x1086   :  { %11570 = vtanh.f32 %v13891_v56 }
0x1088   :  { %10691 = vmatpush1.bf16.msra.mxu0 %v13201_v6  ;;  %10723 = vmatpush1.bf16.msra.mxu1 %v13203_v9  ;;  %v7569_v9 = vld [vmem:[%s14239_s9 + $0x80] sm:$0xff] }
0x1089   :  { %10693 = vmatprep.subr.bf16.mxu0 %v13207_v13  ;;  %10725 = vmatprep.subr.bf16.mxu1 %v13209_v32  ;;  %v7570_v13 = vld [vmem:[%s14239_s9 + $0x88] sm:$0xff] }
0x108a   :  { %v10732_v32 = vpack.c.bf16 %v7570_v13, %v7569_v9 }
0x108c   :  { %10695 = vmatpush1.bf16.msra.mxu0 %v13213_v17  ;;  %10727 = vmatpush1.bf16.msra.mxu1 %v13215_v19  ;;  %v7553_v17 = vld [vmem:[%s14239_s9] sm:$0xff]  ;;  %v7554_v19 = vld [vmem:[%s14239_s9 + $0x8] sm:$0xff] }
0x108d   :  { %10697 = vmatprep.subr.bf16.mxu0 %v13219_v12  ;;  %10729 = vmatprep.subr.bf16.mxu1 %v13221_v26  ;;  %v10734_v12 = vpack.c.bf16 %v7554_v19, %v7553_v17  ;;  %v7571_v26 = vld [vmem:[%s14239_s9 + $0x90] sm:$0xff] }
0x1090   :  { %v11571_v40 = vpop.eup %11570  ;;  %10699 = vmatpush1.bf16.msra.mxu0 %v13225_v34  ;;  %10731 = vmatpush1.bf16.msra.mxu1 %v13227_v38  ;;  %v7572_v34 = vld [vmem:[%s14239_s9 + $0x98] sm:$0xff] }
0x1091   :  { %v13908_v6 = vmul.f32 %v11571_v40, %v11569_v51  ;;  %10733 = vmatprep.subr.bf16.mxu0 %v10732_v32  ;;  %v10736_v38 = vpack.c.bf16 %v7572_v34, %v7571_v26  ;;  %v10762_v51 = vpack.c.bf16 %v7568_v15, %v7567_v59  ;;  %v14918_v59 = vld [vmem:[#allocation51_spill] sm:$0xff]  ;;  %v14919_v15 = vld [vmem:[#allocation53_spill] sm:$0xff] }
0x1093   :  { %7406 = vmatmul.mubr.f32.vlgmr.msra.gmra.mrb[48].mxu0 %v13908_v6  ;;  %7477 = vmatmul.mubr.f32.vlgmr.msra.gmra.mrb[48].mxu1 %v13908_v6 }
0x1094   :  { %10735 = vmatpush3.bf16.msra.mxu0 %v10734_v12 }
0x1095   :  { %10737 = vmatprep.subr.bf16.mxu0 %v10736_v38 }
0x1098   :  { %10739 = vmatpush3.bf16.msra.mxu0 %v10738_v55 }
0x1099   :  { %10741 = vmatprep.subr.bf16.mxu0 %v10740_v27 }
0x109c   :  { %10743 = vmatpush3.bf16.msra.mxu0 %v10742_v58 }
0x109d   :  { %10745 = vmatprep.subr.bf16.mxu0 %v10744_v41 }
0x10a0   :  { %10747 = vmatpush3.bf16.msra.mxu0 %v10746_v57 }
0x10a1   :  { %10749 = vmatprep.subr.bf16.mxu0 %v10748_v3 }
0x10a4   :  { %10751 = vmatpush3.bf16.msra.mxu0 %v10750_v37 }
0x10a5   :  { %10753 = vmatprep.subr.bf16.mxu0 %v10752_v29 }
0x10a8   :  { %10755 = vmatpush3.bf16.msra.mxu0 %v10754_v25 }
0x10a9   :  { %10757 = vmatprep.subr.bf16.mxu0 %v10756_v23 }
0x10ac   :  { %10759 = vmatpush3.bf16.msra.mxu0 %v10758_v31  ;;  %v14915_v31 = vld [vmem:[#allocation42_spill] sm:$0xff] }
0x10ad   :  { %10761 = vmatprep.subr.bf16.mxu0 %v10760_v28  ;;  %v14916_v28 = vld [vmem:[#allocation58_spill] sm:$0xff] }
0x10b0   :  { %10763 = vmatpush3.bf16.msra.mxu0 %v10762_v51  ;;  %v14920_v51 = vld [vmem:[#allocation62_spill] sm:$0xff] }
0x1146   :  { %v7257_v40 = vpop.f32.mrb[46].mxu0  ;;  %v7328_v9 = vpop.f32.mrb[46].mxu1 }
0x1147   :  { %v10898_v13 = vadd.f32 %v7257_v40, %v14913_v5  ;;  %v7259_v32 = vpop.f32.mrb[47].mxu0  ;;  %v7330_v17 = vpop.f32.mrb[47].mxu1  ;;  %v10914_v16 = vadd.f32 %v7328_v9, %v14799_v60  ;;  %v14921_v40 = vld [vmem:[#allocation64_spill] sm:$0xff]  ;;  %v14922_v9 = vld [vmem:[#allocation46_spill] sm:$0xff] }
0x1148   :  { %v10899_v19 = vadd.f32 %v7259_v32, %v14798_v33  ;;  %v10915_v34 = vadd.f32 %v7330_v17, %v14767_v10  ;;  %v11793_v32 = vmov 0   ;;  %v7855_v17 = vld [vmem:[%s14241_s11 + $0x80] sm:$0xff] }
0x1149   :  { %v8147_v12 = vmul.f32 -1.442695, %v10898_v13  ;;  %v14923_v13 = vld [vmem:[#allocation41_spill] sm:$0xff]  ;;  %11091 = vset.pattern.permute.xlu1 %v11793_v32  ;;  %11090 = vset.pattern.permute.xlu0 %v11793_v32 }
0x114a   :  { %v8148_v26 = vmul.f32 -1.442695, %v10899_v19  ;;  %v8149_v38 = vmul.f32 -1.442695, %v10915_v34  ;;  %v7856_v19 = vld [vmem:[%s14241_s11 + $0x88] sm:$0xff] }
0x114b   :  { %11572 = vpow2.f32 %v8147_v12  ;;  %v7839_v12 = vld [vmem:[%s14241_s11] sm:$0xff]  ;;  %v7840_v34 = vld [vmem:[%s14241_s11 + $0x8] sm:$0xff] }
0x114c   :  { %11574 = vpow2.f32 %v8148_v26  ;;  %v10764_v26 = vpack.c.bf16 %v7856_v19, %v7855_v17 }
0x114d   :  { %11576 = vpow2.f32 %v8149_v38  ;;  %v7857_v38 = vld [vmem:[%s14241_s11 + $0x90] sm:$0xff] }
0x114e   :  { %11578 = vtanh.f32 %v10914_v16  ;;  %v7858_v16 = vld [vmem:[%s14241_s11 + $0x98] sm:$0xff]  ;;  %10765 = vmatprep.subr.bf16.mxu1 %v10764_v26 }
0x1155   :  { %v11573_v42 = vpop.eup %11572 }
0x1156   :  { %v11575_v55 = vpop.eup %11574  ;;  %v7490_v63 = vadd.f32 1.0, %v11573_v42  ;;  %v10766_v42 = vpack.c.bf16 %v7840_v34, %v7839_v12 }
0x1157   :  { %v7496_v30 = vadd.f32 1.0, %v11575_v55  ;;  %v11577_v5 = vpop.eup %11576  ;;  %v10768_v55 = vpack.c.bf16 %v7858_v16, %v7857_v38 }
0x1158   :  { %11580 = vrcp.f32 %v7490_v63  ;;  %v11579_v27 = vpop.eup %11578  ;;  %v7503_v58 = vadd.f32 1.0, %v11577_v5  ;;  %v7841_v63 = vld [vmem:[%s14241_s11 + $0x10] sm:$0xff]  ;;  %v7859_v5 = vld [vmem:[%s14241_s11 + $0xa0] sm:$0xff]  ;;  %10767 = vmatpush3.bf16.msra.mxu1 %v10766_v42 }
0x1159   :  { %11582 = vrcp.f32 %v7496_v30  ;;  %v7842_v30 = vld [vmem:[%s14241_s11 + $0x18] sm:$0xff]  ;;  %10769 = vmatprep.subr.bf16.mxu1 %v10768_v55 }
0x115a   :  { %11584 = vrcp.f32 %v7503_v58  ;;  %v7844_v58 = vld [vmem:[%s14241_s11 + $0x28] sm:$0xff] }
0x1162   :  { %v11581_v33 = vpop.eup %11580 }
0x1163   :  { %v11583_v54 = vpop.eup %11582  ;;  %v7507_v48 = vmul.f32 %v11581_v33, %v11579_v27  ;;  %v7860_v27 = vld [vmem:[%s14241_s11 + $0xa8] sm:$0xff]  ;;  %v10770_v33 = vpack.c.bf16 %v7842_v30, %v7841_v63 }
0x1164   :  { %v7506_v1 = vmul.f32 %v11583_v54, %v13861_v4  ;;  %v11585_v3 = vpop.eup %11584  ;;  %v10772_v54 = vpack.c.bf16 %v7860_v27, %v7859_v5 }
0x1165   :  { %10771 = vmatpush3.bf16.msra.mxu1 %v10770_v33 }
0x1166   :  { %v7407_v10 = vpop.f32.mrb[48].mxu0  ;;  %v7478_v53 = vpop.f32.mrb[48].mxu1  ;;  %v7508_v41 = vadd.f32 %v7507_v48, %v7506_v1  ;;  %v7843_v48 = vld [vmem:[%s14241_s11 + $0x20] sm:$0xff]  ;;  %10773 = vmatprep.subr.bf16.mxu1 %v10772_v54 }
0x1167   :  { %v10916_v60 = vadd.f32 %v7407_v10, %v14770_v22  ;;  %v7409_v2 = vpop.f32.mrb[49].mxu0  ;;  %v7480_v39 = vpop.f32.mrb[49].mxu1  ;;  %v10932_v24 = vadd.f32 %v7478_v53, %v13314_v44  ;;  %v10774_v1 = vpack.c.bf16 %v7844_v58, %v7843_v48 }
0x1168   :  { %v10917_v57 = vadd.f32 %v7409_v2, %v13300_v43  ;;  %11586 = vtanh.f32 %v7508_v41  ;;  %v10933_v45 = vadd.f32 %v7480_v39, %v13309_v20 }
0x1169   :  { %v8150_v0 = vmul.f32 -1.442695, %v10916_v60  ;;  %10775 = vmatpush3.bf16.msra.mxu1 %v10774_v1 }
0x116a   :  { %v8151_v18 = vmul.f32 -1.442695, %v10917_v57  ;;  %v8152_v4 = vmul.f32 -1.442695, %v10933_v45 }
0x116b   :  { %11588 = vpow2.f32 %v8150_v0 }
0x116c   :  { %11590 = vpow2.f32 %v8151_v18 }
0x116d   :  { %11592 = vpow2.f32 %v8152_v4 }
0x116e   :  { %11594 = vtanh.f32 %v10932_v24 }
0x1172   :  { %v11587_v35 = vpop.eup %11586 }
0x1173   :  { %v14017_v61 = vmul.f32 %v11587_v35, %v11585_v3  ;;  %v8153_v3 = vld [vmem:[#allocation5] ss:$0 sm:$0xff] }
0x1175   :  { %v11589_v37 = vpop.eup %11588 }
0x1176   :  { %v11591_v22 = vpop.eup %11590  ;;  %v7514_v29 = vadd.f32 1.0, %v11589_v37 }
0x1177   :  { %v7520_v43 = vadd.f32 1.0, %v11591_v22  ;;  %v11593_v52 = vpop.eup %11592 }
0x1178   :  { %11596 = vrcp.f32 %v7514_v29  ;;  %v11595_v36 = vpop.eup %11594  ;;  %v7527_v25 = vadd.f32 1.0, %v11593_v52 }
0x1179   :  { %11598 = vrcp.f32 %v7520_v43 }
0x117a   :  { %11600 = vrcp.f32 %v7527_v25 }
0x1182   :  { %v11597_v14 = vpop.eup %11596 }
0x1183   :  { %v11599_v50 = vpop.eup %11598  ;;  %v7531_v20 = vmul.f32 %v11597_v14, %v11595_v36 }
0x1184   :  { %v7530_v23 = vmul.f32 %v11599_v50, %v13891_v56  ;;  %v11601_v44 = vpop.eup %11600  ;;  %v14917_v56 = vld [vmem:[#allocation59_spill] sm:$0xff] }
0x1186   :  { %v7532_v8 = vadd.f32 %v7531_v20, %v7530_v23 }
0x1188   :  { %11602 = vtanh.f32 %v7532_v8 }
0x1192   :  { %v11603_v7 = vpop.eup %11602 }
0x1193   :  { %v14020_v49 = vmul.f32 %v11603_v7, %v11601_v44 }
0x1195   :  { %7656 = vmatprep.mubr.f32.mxu0 %v14020_v49 }
0x1196   :  { %7657 = vmatmul.mubr.f32.vlgmr.msra.gmra.mrb[64].mxu0 %v14914_v47 }
0x1197   :  { %7661 = vmatprep.mubr.f32.mxu0 %v13908_v6 }
0x119a   :  { %7662 = vmatmul.mubr.f32.gmra.mrb[66].mxu0 %v14915_v31 }
0x119b   :  { %7666 = vmatprep.mubr.f32.mxu0 %v13816_v62 }
0x119e   :  { %7667 = vmatmul.mubr.f32.gmra.mrb[68].mxu0 %v14916_v28 }
0x119f   :  { %7671 = vmatprep.mubr.f32.mxu0 %v14917_v56 }
0x11a2   :  { %7672 = vmatmul.mubr.f32.gmra.mrb[70].mxu0 %v14918_v59 }
0x11a3   :  { %7676 = vmatprep.mubr.f32.mxu0 %v14919_v15 }
0x11a6   :  { %7677 = vmatmul.mubr.f32.gmra.mrb[72].mxu0 %v14920_v51 }
0x11a7   :  { %7681 = vmatprep.mubr.f32.mxu0 %v14921_v40 }
0x11aa   :  { %7682 = vmatmul.mubr.f32.gmra.mrb[74].mxu0 %v13776_v11 }
0x11ab   :  { %7686 = vmatprep.mubr.f32.mxu0 %v14922_v9 }
0x11ae   :  { %7687 = vmatmul.mubr.f32.gmra.mrb[76].mxu0 %v13868_v46 }
0x11af   :  { %7691 = vmatprep.mubr.f32.mxu0 %v14923_v13 }
0x11b2   :  { %7692 = vmatmul.mubr.f32.gmra.mrb[78].mxu0 %v14017_v61 }
0x11b3   :  { %8297 = vmatprep.mubr.msk.f32.mxu0 %vm11795_vm1, %v14503_v21 }
0x1269   :  { %v8189_v10 = vpop.f32.mrb[64].mxu0 }
0x126a   :  { %v8190_v53 = vpop.f32.mrb[65].mxu0 }
0x126b   :  { %v8191_v41 = vadd.f32 %v8190_v53, %v8189_v10 }
0x126d   :  { %v8192_v60 = vpop.f32.mrb[66].mxu0  ;;  %v7659_v24 = vadd.f32 %v8191_v41, %v8153_v3 }
0x126e   :  { %v8193_v2 = vpop.f32.mrb[67].mxu0 }
0x126f   :  { %v8194_v39 = vadd.f32 %v8193_v2, %v8192_v60  ;;  %11604 = vtanh.f32 %v7659_v24 }
0x1271   :  { %v8195_v57 = vpop.f32.mrb[68].mxu0  ;;  %v7664_v43 = vadd.f32 %v8194_v39, %v8153_v3 }
0x1272   :  { %v8196_v0 = vpop.f32.mrb[69].mxu0 }
0x1273   :  { %v8197_v18 = vadd.f32 %v8196_v0, %v8195_v57 }
0x1275   :  { %v8198_v45 = vpop.f32.mrb[70].mxu0  ;;  %v7669_v20 = vadd.f32 %v8197_v18, %v8153_v3 }
0x1276   :  { %v8199_v35 = vpop.f32.mrb[71].mxu0 }
0x1277   :  { %v8200_v4 = vadd.f32 %v8199_v35, %v8198_v45 }
0x1279   :  { %v8201_v37 = vpop.f32.mrb[72].mxu0  ;;  %v7674_v7 = vadd.f32 %v8200_v4, %v8153_v3  ;;  %v11605_v12 = vpop.eup %11604 }
0x127a   :  { %v8202_v22 = vpop.f32.mrb[73].mxu0  ;;  %v7706_v16 = vsel %vm7705_vm0, %v11605_v12, -inf }
0x127b   :  { %v8203_v29 = vadd.f32 %v8202_v22, %v8201_v37 }
0x127d   :  { %v7679_v52 = vadd.f32 %v8203_v29, %v8153_v3  ;;  %v8204_v36 = vpop.f32.mrb[74].mxu0 }
0x127e   :  { %v8205_v14 = vpop.f32.mrb[75].mxu0 }
0x127f   :  { %11606 = vtanh.f32 %v7679_v52  ;;  %v8206_v50 = vadd.f32 %v8205_v14, %v8204_v36 }
0x1280   :  { %11608 = vtanh.f32 %v7664_v43 }
0x1281   :  { %v7684_v25 = vadd.f32 %v8206_v50, %v8153_v3  ;;  %v8207_v23 = vpop.f32.mrb[76].mxu0 }
0x1282   :  { %v8208_v8 = vpop.f32.mrb[77].mxu0 }
0x1283   :  { %11610 = vtanh.f32 %v7684_v25  ;;  %v8209_v44 = vadd.f32 %v8208_v8, %v8207_v23 }
0x1284   :  { %11612 = vtanh.f32 %v7669_v20 }
0x1285   :  { %v7689_v32 = vadd.f32 %v8209_v44, %v8153_v3  ;;  %v8210_v17 = vpop.f32.mrb[78].mxu0 }
0x1286   :  { %v8211_v19 = vpop.f32.mrb[79].mxu0 }
0x1287   :  { %11614 = vtanh.f32 %v7689_v32  ;;  %v8212_v26 = vadd.f32 %v8211_v19, %v8210_v17 }
0x1288   :  { %11616 = vtanh.f32 %v7674_v7 }
0x1289   :  { %v11607_v34 = vpop.eup %11606  ;;  %v7694_v38 = vadd.f32 %v8212_v26, %v8153_v3 }
0x128a   :  { %v7710_v42 = vsel %vm7705_vm0, %v11607_v34, -inf  ;;  %v11609_v55 = vpop.eup %11608 }
0x128b   :  { %v7711_v63 = vmax.f32 %v7706_v16, %v7710_v42  ;;  %11618 = vtanh.f32 %v7694_v38  ;;  %v7707_v5 = vsel %vm7705_vm0, %v11609_v55, -inf }
0x128d   :  { %v11611_v30 = vpop.eup %11610 }
0x128e   :  { %v7712_v27 = vsel %vm7705_vm0, %v11611_v30, -inf  ;;  %v11613_v33 = vpop.eup %11612 }
0x128f   :  { %v7713_v54 = vmax.f32 %v7707_v5, %v7712_v27  ;;  %v7708_v1 = vsel %vm7705_vm0, %v11613_v33, -inf }
0x1291   :  { %v11615_v48 = vpop.eup %11614  ;;  %v7718_v58 = vmax.f32 %v7711_v63, %v7713_v54 }
0x1292   :  { %v7714_v10 = vsel %vm7705_vm0, %v11615_v48, -inf  ;;  %v11617_v53 = vpop.eup %11616 }
0x1293   :  { %v7715_v41 = vmax.f32 %v7708_v1, %v7714_v10  ;;  %v7709_v2 = vsel %vm7705_vm0, %v11617_v53, -inf }
0x1295   :  { %v11619_v60 = vpop.eup %11618 }
0x1296   :  { %v7716_v39 = vsel %vm7705_vm0, %v11619_v60, -inf }
0x1297   :  { %v7717_v57 = vmax.f32 %v7709_v2, %v7716_v39 }
0x1299   :  { %v7719_v0 = vmax.f32 %v7715_v41, %v7717_v57 }
0x129b   :  { %v7720_v18 = vmax.f32 %v7718_v58, %v7719_v0 }
0x129d   :  { %v7728_v45 = vsub.f32 %v11619_v60, %v7720_v18  ;;  %v7721_v3 = vsub.f32 %v11605_v12, %v7720_v18  ;;  %v7722_v35 = vsub.f32 %v11609_v55, %v7720_v18  ;;  %v7723_v4 = vsub.f32 %v11613_v33, %v7720_v18 }
0x129e   :  { %v7724_v24 = vsub.f32 %v11617_v53, %v7720_v18  ;;  %v7725_v37 = vsub.f32 %v11607_v34, %v7720_v18  ;;  %v7726_v22 = vsub.f32 %v11611_v30, %v7720_v18  ;;  %v7727_v29 = vsub.f32 %v11615_v48, %v7720_v18 }
0x129f   :  { %v7729_v43 = vmul.f32 1.442695, %v7721_v3  ;;  %v7731_v52 = vmul.f32 1.442695, %v7722_v35  ;;  %v7733_v36 = vmul.f32 1.442695, %v7723_v4 }
0x12a0   :  { %v7735_v14 = vmul.f32 1.442695, %v7724_v24  ;;  %v7737_v50 = vmul.f32 1.442695, %v7725_v37  ;;  %v7739_v20 = vmul.f32 1.442695, %v7726_v22 }
0x12a1   :  { %11620 = vpow2.f32 %v7729_v43  ;;  %v7741_v25 = vmul.f32 1.442695, %v7727_v29  ;;  %v7743_v23 = vmul.f32 1.442695, %v7728_v45  ;;  %v7861_v3 = vld [vmem:[%s14241_s11 + $0xb0] sm:$0xff]  ;;  %v7862_v35 = vld [vmem:[%s14241_s11 + $0xb8] sm:$0xff] }
0x12a2   :  { %11622 = vpow2.f32 %v7731_v52  ;;  %v7845_v4 = vld [vmem:[%s14241_s11 + $0x30] sm:$0xff]  ;;  %v10776_v24 = vpack.c.bf16 %v7862_v35, %v7861_v3  ;;  %v7846_v37 = vld [vmem:[%s14241_s11 + $0x38] sm:$0xff]  ;;  %v7863_v29 = vld [vmem:[%s14241_s11 + $0xc0] sm:$0xff] }
0x12a3   :  { %11624 = vpow2.f32 %v7733_v36  ;;  %v10778_v22 = vpack.c.bf16 %v7846_v37, %v7845_v4  ;;  %v7864_v43 = vld [vmem:[%s14241_s11 + $0xc8] sm:$0xff]  ;;  %v7847_v36 = vld [vmem:[%s14241_s11 + $0x40] sm:$0xff]  ;;  %v7960_v3 = vld [vmem:[%s14243_s13 + $0x58] sm:$0xff] }
0x12a4   :  { %11626 = vpow2.f32 %v7735_v14  ;;  %10777 = vmatprep.subr.bf16.mxu1 %v10776_v24  ;;  %v10780_v52 = vpack.c.bf16 %v7864_v43, %v7863_v29  ;;  %v7848_v14 = vld [vmem:[%s14241_s11 + $0x48] sm:$0xff] }
0x12a5   :  { %11628 = vpow2.f32 %v7737_v50  ;;  %10779 = vmatpush3.bf16.msra.mxu1 %v10778_v22  ;;  %v10782_v50 = vpack.c.bf16 %v7848_v14, %v7847_v36 }
0x12a6   :  { %11630 = vpow2.f32 %v7739_v20  ;;  %10781 = vmatprep.subr.bf16.mxu1 %v10780_v52  ;;  %v7865_v20 = vld [vmem:[%s14241_s11 + $0xd0] sm:$0xff] }
0x12a7   :  { %11632 = vpow2.f32 %v7741_v25  ;;  %v7866_v25 = vld [vmem:[%s14241_s11 + $0xd8] sm:$0xff] }
0x12a8   :  { %11634 = vpow2.f32 %v7743_v23  ;;  %v10784_v23 = vpack.c.bf16 %v7866_v25, %v7865_v20 }
0x12a9   :  { %10783 = vmatpush3.bf16.msra.mxu1 %v10782_v50 }
0x12aa   :  { %10785 = vmatprep.subr.bf16.mxu1 %v10784_v23 }
0x12ab   :  { %v11621_v8 = vpop.eup %11620 }
0x12ac   :  { %v11623_v44 = vpop.eup %11622  ;;  %v7745_v7 = vsel %vm7705_vm0, %v11621_v8, 0.0 }
0x12ad   :  { %v11625_v32 = vpop.eup %11624  ;;  %v7746_v17 = vsel %vm7705_vm0, %v11623_v44, 0.0 }
0x12ae   :  { %v11627_v19 = vpop.eup %11626  ;;  %v7747_v12 = vadd.f32 %v7746_v17, %v7745_v7  ;;  %v7748_v26 = vsel %vm7705_vm0, %v11625_v32, 0.0  ;;  %v7868_v17 = vld [vmem:[%s14241_s11 + $0xe8] sm:$0xff] }
0x12af   :  { %v11629_v34 = vpop.eup %11628  ;;  %v7750_v16 = vsel %vm7705_vm0, %v11627_v19, 0.0 }
0x12b0   :  { %v7749_v38 = vadd.f32 %v7748_v26, %v7747_v12  ;;  %v11631_v42 = vpop.eup %11630  ;;  %v7752_v63 = vsel %vm7705_vm0, %v11629_v34, 0.0  ;;  %v7851_v12 = vld [vmem:[%s14241_s11 + $0x60] sm:$0xff]  ;;  %v7852_v26 = vld [vmem:[%s14241_s11 + $0x68] sm:$0xff] }
0x12b1   :  { %v11633_v30 = vpop.eup %11632  ;;  %v7754_v27 = vsel %vm7705_vm0, %v11631_v42, 0.0 }
0x12b2   :  { %v7751_v55 = vadd.f32 %v7750_v16, %v7749_v38  ;;  %v11635_v33 = vpop.eup %11634  ;;  %v7756_v48 = vsel %vm7705_vm0, %v11633_v30, 0.0  ;;  %v7869_v38 = vld [vmem:[%s14241_s11 + $0xf0] sm:$0xff]  ;;  %v7870_v16 = vld [vmem:[%s14241_s11 + $0xf8] sm:$0xff] }
0x12b3   :  { %v7758_v1 = vsel %vm7705_vm0, %v11635_v33, 0.0 }
0x12b4   :  { %v7753_v5 = vadd.f32 %v7752_v63, %v7751_v55  ;;  %v10792_v55 = vpack.c.bf16 %v7870_v16, %v7869_v38  ;;  %v7854_v63 = vld [vmem:[%s14241_s11 + $0x78] sm:$0xff] }
0x12b6   :  { %v7755_v54 = vadd.f32 %v7754_v27, %v7753_v5  ;;  %v7949_v5 = vld [vmem:[%s14243_s13] sm:$0xff]  ;;  %v7950_v27 = vld [vmem:[%s14243_s13 + $0x8] sm:$0xff] }
0x12b8   :  { %v7757_v58 = vadd.f32 %v7756_v48, %v7755_v54  ;;  %v11794_v54 = vmov 0.0|0.0   ;;  %v10797_v48 = vpack.c.bf16 %v7950_v27, %v7949_v5  ;;  %v8154_v27 = vld [vmem:[%s14242_s12] ss:$0 sm:$0xff] }
0x12b9   :  { %10796 = vmatprep.subr.bf16.mxu0 %v11794_v54 }
0x12ba   :  { %v7759_v10 = vadd.f32 %v7758_v1, %v7757_v58  ;;  %v7952_v58 = vld [vmem:[%s14243_s13 + $0x18] sm:$0xff]  ;;  %10798 = vmatpush3.bf16.msra.mxu0 %v10797_v48 }
0x12bb   :  { %10799 = vmatprep.subr.bf16.mxu0 %v11794_v54 }
0x12bc   :  { %11636 = vrcp.f32 %v7759_v10  ;;  %v7953_v10 = vld [vmem:[%s14243_s13 + $0x20] sm:$0xff] }
0x12c6   :  { %v11637_v53 = vpop.eup %11636 }
0x12c7   :  { %v7763_v41 = vmul.f32 %v11637_v53, %v11625_v32  ;;  %v7761_v60 = vmul.f32 %v11637_v53, %v11621_v8  ;;  %v7764_v2 = vmul.f32 %v11637_v53, %v11627_v19  ;;  %v7762_v39 = vmul.f32 %v11637_v53, %v11623_v44  ;;  %v7849_v8 = vld [vmem:[%s14241_s11 + $0x50] sm:$0xff]  ;;  %v7850_v44 = vld [vmem:[%s14241_s11 + $0x58] sm:$0xff]  ;;  %v7867_v32 = vld [vmem:[%s14241_s11 + $0xe0] sm:$0xff] }
0x12c8   :  { %v7766_v57 = vmul.f32 %v11637_v53, %v11631_v42  ;;  %v7765_v0 = vmul.f32 %v11637_v53, %v11629_v34  ;;  %v7768_v18 = vmul.f32 %v11637_v53, %v11635_v33  ;;  %v7767_v45 = vmul.f32 %v11637_v53, %v11633_v30  ;;  %v7853_v42 = vld [vmem:[%s14241_s11 + $0x70] sm:$0xff]  ;;  %v7954_v53 = vld [vmem:[%s14243_s13 + $0x28] sm:$0xff] }
0x12c9   :  { %7781 = vperm.xlu1 %11091, %v7763_v41   ;;  %7771 = vperm.xlu0 %11090, %v7761_v60   ;;  %v10786_v7 = vpack.c.bf16 %v7850_v44, %v7849_v8  ;;  %v10788_v19 = vpack.c.bf16 %v7868_v17, %v7867_v32  ;;  %v10790_v34 = vpack.c.bf16 %v7852_v26, %v7851_v12  ;;  %v7951_v33 = vld [vmem:[%s14243_s13 + $0x10] sm:$0xff] }
0x12ca   :  { %v10794_v30 = vpack.c.bf16 %v7854_v63, %v7853_v42  ;;  %v10800_v1 = vpack.c.bf16 %v7952_v58, %v7951_v33  ;;  %v10803_v41 = vpack.c.bf16 %v7954_v53, %v7953_v10  ;;  %v7955_v60 = vld [vmem:[%s14243_s13 + $0x30] sm:$0xff] }
0x12cb   :  { %10787 = vmatpush3.bf16.msra.mxu1 %v10786_v7 }
0x12cc   :  { %10789 = vmatprep.subr.bf16.mxu1 %v10788_v19  ;;  %10801 = vmatpush3.bf16.msra.mxu0 %v10800_v1  ;;  %v8155_v1 = vld [vmem:[#allocation6] ss:$0 sm:$0xff] }
0x12cd   :  { %7786 = vperm.xlu1 %11091, %v7764_v2   ;;  %7776 = vperm.xlu0 %11090, %v7762_v39   ;;  %v7956_v2 = vld [vmem:[%s14243_s13 + $0x38] sm:$0xff] }
0x12ce   :  { %10802 = vmatprep.subr.bf16.mxu0 %v11794_v54  ;;  %v10806_v39 = vpack.c.bf16 %v7956_v2, %v7955_v60 }
0x12cf   :  { %10791 = vmatpush3.bf16.msra.mxu1 %v10790_v34 }
0x12d0   :  { %10793 = vmatprep.subr.bf16.mxu1 %v10792_v55  ;;  %10804 = vmatpush3.bf16.msra.mxu0 %v10803_v41 }
0x12d1   :  { %7796 = vperm.xlu1 %11091, %v7766_v57   ;;  %7791 = vperm.xlu0 %11090, %v7765_v0   ;;  %v7957_v57 = vld [vmem:[%s14243_s13 + $0x40] sm:$0xff]  ;;  %v7958_v0 = vld [vmem:[%s14243_s13 + $0x48] sm:$0xff] }
0x12d2   :  { %10805 = vmatprep.subr.bf16.mxu0 %v11794_v54 }
0x12d3   :  { %10795 = vmatpush3.bf16.msra.mxu1 %v10794_v30 }
0x12d4   :  { %10807 = vmatpush3.bf16.msra.mxu0 %v10806_v39 }
0x12d5   :  { %7806 = vperm.xlu1 %11091, %v7768_v18   ;;  %7801 = vperm.xlu0 %11090, %v7767_v45   ;;  %v10809_v18 = vpack.c.bf16 %v7958_v0, %v7957_v57  ;;  %v7959_v45 = vld [vmem:[%s14243_s13 + $0x50] sm:$0xff] }
0x12d6   :  { %10808 = vmatprep.subr.bf16.mxu0 %v11794_v54  ;;  %v10812_v35 = vpack.c.bf16 %v7960_v3, %v7959_v45 }
0x12d8   :  { %10810 = vmatpush3.bf16.msra.mxu0 %v10809_v18 }
0x12d9   :  { %10811 = vmatprep.subr.bf16.mxu0 %v11794_v54 }
0x12dc   :  { %10813 = vmatpush3.bf16.msra.mxu0 %v10812_v35 }
0x12dd   :  { %10814 = vmatprep.subr.bf16.mxu0 %v11794_v54 }
0x1348   :  { %v7782_v4 = vpop.permute.xlu1 %7781  ;;  %v7772_v24 = vpop.permute.xlu0 %7771 }
0x1349   :  { %v7809_v29 = vmul.f32 %v7772_v24, %v14914_v47  ;;  %v7810_v43 = vmul.f32 %v7772_v24, %v14020_v49  ;;  %v7813_v14 = vmul.f32 %v7782_v4, %v14916_v28  ;;  %v7814_v50 = vmul.f32 %v7782_v4, %v13816_v62 }
0x134c   :  { %v7787_v37 = vpop.permute.xlu1 %7786  ;;  %v7777_v22 = vpop.permute.xlu0 %7776 }
0x134d   :  { %v7811_v52 = vmul.f32 %v7777_v22, %v14915_v31  ;;  %v7812_v36 = vmul.f32 %v7777_v22, %v13908_v6  ;;  %v7815_v44 = vmul.f32 %v7787_v37, %v14918_v59  ;;  %v7816_v7 = vmul.f32 %v7787_v37, %v14917_v56 }
0x134f   :  { %v7825_v20 = vadd.f32 %v7811_v52, %v7809_v29  ;;  %v7832_v25 = vadd.f32 %v7812_v36, %v7810_v43 }
0x1350   :  { %v7797_v23 = vpop.permute.xlu1 %7796  ;;  %v7792_v8 = vpop.permute.xlu0 %7791 }
0x1351   :  { %v7826_v32 = vadd.f32 %v7825_v20, %v7813_v14  ;;  %v7833_v47 = vadd.f32 %v7832_v25, %v7814_v50  ;;  %v7817_v31 = vmul.f32 %v7792_v8, %v14920_v51  ;;  %v7818_v6 = vmul.f32 %v7792_v8, %v14919_v15 }
0x1352   :  { %v7819_v28 = vmul.f32 %v7797_v23, %v13776_v11  ;;  %v7820_v62 = vmul.f32 %v7797_v23, %v14921_v40  ;;  %v7961_v11 = vld [vmem:[%s14243_s13 + $0x60] sm:$0xff] }
0x1353   :  { %v7827_v17 = vadd.f32 %v7826_v32, %v7815_v44  ;;  %v7834_v49 = vadd.f32 %v7833_v47, %v7816_v7 }
0x1354   :  { %v7802_v19 = vpop.permute.xlu0 %7801  ;;  %v7807_v34 = vpop.permute.xlu1 %7806 }
0x1355   :  { %v7828_v12 = vadd.f32 %v7827_v17, %v7817_v31  ;;  %v7835_v26 = vadd.f32 %v7834_v49, %v7818_v6  ;;  %v7821_v56 = vmul.f32 %v7802_v19, %v13868_v46  ;;  %v7822_v16 = vmul.f32 %v7802_v19, %v14922_v9  ;;  %v7962_v46 = vld [vmem:[%s14243_s13 + $0x68] sm:$0xff]  ;;  %v7964_v9 = vld [vmem:[%s14243_s13 + $0x78] sm:$0xff] }
0x1356   :  { %v7823_v42 = vmul.f32 %v7807_v34, %v14017_v61  ;;  %v7824_v51 = vmul.f32 %v7807_v34, %v14923_v13  ;;  %v10815_v40 = vpack.c.bf16 %v7962_v46, %v7961_v11  ;;  %v7963_v61 = vld [vmem:[%s14243_s13 + $0x70] sm:$0xff] }
0x1357   :  { %v7829_v38 = vadd.f32 %v7828_v12, %v7819_v28  ;;  %v7836_v59 = vadd.f32 %v7835_v26, %v7820_v62  ;;  %v10818_v13 = vpack.c.bf16 %v7964_v9, %v7963_v61 }
0x1358   :  { %10816 = vmatpush3.bf16.msra.mxu0 %v10815_v40 }
0x1359   :  { %v7830_v55 = vadd.f32 %v7829_v38, %v7821_v56  ;;  %v7837_v15 = vadd.f32 %v7836_v59, %v7822_v16  ;;  %10817 = vmatprep.subr.bf16.mxu0 %v11794_v54 }
0x135b   :  { %v7831_v63 = vadd.f32 %v7830_v55, %v7823_v42  ;;  %v7838_v30 = vadd.f32 %v7837_v15, %v7824_v51 }
0x135c   :  { %10819 = vmatpush3.bf16.msra.mxu0 %v10818_v13 }
0x135d   :  { %7942 = vmatprep.mubr.f32.mxu1 %v7838_v30 }
0x135e   :  { %7943 = vmatmul.mubr.f32.vlgmr.msra.gmra.mrb[64].mxu1 %v7831_v63 }
0x1431   :  { %v8245_v5 = vpop.f32.mrb[64].mxu1 }
0x1432   :  { %v8246_v33 = vpop.f32.mrb[65].mxu1 }
0x1433   :  { %v8247_v54 = vadd.f32 %v8246_v33, %v8245_v5 }
0x1435   :  { %v7945_v48 = vadd.f32 %v8247_v54, %v8154_v27 }
0x1437   :  { %v7948_v58 = vmax.f32 %v7945_v48, 0.0 }
0x1439   :  { %8298 = vmatmul.mubr.f32.vlgmr.msra.gmra.mrb[80].mxu0 %v7948_v58 }
0x150c   :  { %v8038_v10 = vpop.f32.mrb[80].mxu0 }
0x150d   :  { %v8039_v53 = vadd.f32 %v8155_v1, %v8038_v10  ;;  %v8299_v41 = vpop.f32.mrb[81].mxu0 }
0x150f   :  { %v8156_v60 = vmul.f32 -1.442695, %v8039_v53 }
0x1511   :  { %11638 = vpow2.f32 %v8156_v60 }
0x151b   :  { %v11639_v2 = vpop.eup %11638 }
0x151c   :  { %v8045_v39 = vadd.f32 1.0, %v11639_v2 }
0x151e   :  { %11640 = vrcp.f32 %v8045_v39 }
0x1528   :  { %v11641_v21 = vpop.eup %11640 }
0x1529   :  { %8048 = vst.msk [vmem:[%s14244_s15] sm:$0xff] %vm7705_vm0, %v11641_v21 }
0x152a   :  { %8053 = vsyncpa [#allocation8], 1 }
0x152b   :  { %8054 = vsyncpa [#allocation10], 1 }
0x152c   :  { %8055 = vsyncpa [#allocation13], 1 }
0x152d   :  { %8056 = vsyncpa [#allocation16], 1 }

</bundles_post_ra>
